<compile_context>
chip_gen: v6e
topology: v6e:2x2x1
jax: 0.10.0
libtpu: 0.0.40
codegen_flags: <defaults>
</compile_context>

<pallas_src>
import functools

import jax
import jax.numpy as jnp
import numpy as np
from jax.experimental import pallas as pl
from jax.experimental.pallas import tpu as pltpu


# ----------------------------- Pallas kernel -----------------------------

def _char_cnn_kernel(n_highway, x_ref, wc_ref, bc_ref, *refs):
    """Fused im2col conv (+max over chars +relu) -> highway x n -> word projection.

    Refs (in order after x_ref):
      wc_ref : (Kp, d_sum)        bf16 flattened conv weights (all convs / taps fused)
      bc_ref : (1, d_sum)         f32 concatenated conv biases
      per highway layer: w (d_sum, 2*d_sum) bf16 [proj | gate], b (1, 2*d_sum) f32
      ow_ref : (d_sum, d_emb_word) bf16,  ob_ref : (1, d_emb_word) f32
      o_ref  : (tile_n, d_emb_word)
    """
    hw_refs = refs[: 2 * n_highway]
    ow_ref, ob_ref, o_ref = refs[2 * n_highway:]

    TN, n_pos, Kp = x_ref.shape
    d_sum = wc_ref.shape[1]
    mxu_dtype = wc_ref.dtype

    # Single dense-K conv matmul: (TN*n_pos, Kp) @ (Kp, d_sum), f32 accumulation on the MXU.
    # n_pos is a multiple of 8 and Kp a multiple of 128, so the reshape stays tile-aligned.
    xin = x_ref[...].reshape(TN * n_pos, Kp)
    scores = jnp.dot(xin, wc_ref[...], preferred_element_type=jnp.float32)
    scores = scores.reshape(TN, n_pos, d_sum)

    # max over character positions, bias, activation (relu(max(s)+b) == relu(max(s+b))).
    h = jax.nn.relu(jnp.max(scores, axis=1) + bc_ref[...])          # (TN, d_sum) f32

    # Highway layers with fused [proj|gate] matmul: h = relu(Ph)*sig(Gh) + h*(1-sig(Gh)).
    # MXU operands are bf16; skip path / elementwise math stays f32.
    for l in range(n_highway):
        w_ref, b_ref = hw_refs[2 * l], hw_refs[2 * l + 1]
        pg = jnp.dot(h.astype(mxu_dtype), w_ref[...],
                     preferred_element_type=jnp.float32) + b_ref[...]
        proj = jax.nn.relu(pg[:, :d_sum])
        gate = jax.nn.sigmoid(pg[:, d_sum:])
        h = proj * gate + h * (1.0 - gate)

    out = jnp.dot(h.astype(mxu_dtype), ow_ref[...],
                  preferred_element_type=jnp.float32) + ob_ref[...]
    o_ref[...] = out.astype(o_ref.dtype)


# ----------------------------- parameter fusion (one-time layout plumbing) ---------------

def fuse_params(params, d_convs, k_sizes, mxu_dtype=jnp.bfloat16):
    """Repack per-conv / per-Linear params into the fused layouts the kernel consumes."""
    assert all(k % 2 == 1 for k in k_sizes), "even kernel sizes need one extra output pos"
    # TODO(synk): support even kernel sizes (Conv1d then emits C+1 output positions).
    d_sum = sum(d_convs)
    D = params["conv_w"][0].shape[1]
    p_max = max(k // 2 for k in k_sizes)
    n_off = 2 * p_max + 1
    K = n_off * D
    Kp = -(-K // 128) * 128                    # pad contraction dim up to lane-dense 128

    # Flattened, offset-stacked conv weight: rows [o*D:(o+1)*D] hold tap o of every conv,
    # columns are the concatenated conv output channels (so the conv outputs emerge already
    # concatenated along the lane axis).
    wc = np.zeros((Kp, d_sum), np.float32)
    col = 0
    for w, dc, k in zip(params["conv_w"], d_convs, k_sizes):
        w = np.asarray(w)
        p = k // 2
        for j in range(k):
            o = j + (p_max - p)                # absolute character offset in [0, n_off)
            wc[o * D:(o + 1) * D, col:col + dc] = w[j]
        col += dc
    b_cat = jnp.concatenate(list(params["conv_b"]), axis=-1).astype(jnp.float32)  # (1, d_sum)

    hw = [(jnp.concatenate([pw, gw], axis=1).astype(mxu_dtype),
           jnp.concatenate([pb, gb], axis=1).astype(jnp.float32))
          for (pw, pb, gw, gb) in params["hw"]]
    return {"wc": jnp.asarray(wc, mxu_dtype), "b_cat": b_cat, "hw": hw,
            "ow": params["ow"].astype(mxu_dtype), "ob": params["ob"].astype(jnp.float32),
            "p_max": p_max, "n_off": n_off, "Kp": Kp, "d_sum": d_sum}


# ----------------------------- wrapper -----------------------------

def char_cnn_forward(x, params, d_convs, k_sizes, d_emb_word, tile_n=256,
                     mxu_dtype=jnp.bfloat16):
    B, L, C, D = x.shape
    N = B * L
    fp = fuse_params(params, d_convs, k_sizes, mxu_dtype)
    p_max, n_off, Kp, d_sum = fp["p_max"], fp["n_off"], fp["Kp"], fp["d_sum"]
    n_pos = C                                   # odd kernels, 'same' padding -> C positions

    # ---- one-time HBM layout plumbing: im2col, lane-dense pad, row pad, bf16 cast ----
    xp = jnp.pad(x.reshape(N, C, D), ((0, 0), (p_max, p_max), (0, 0)))
    cols = jnp.concatenate([xp[:, o:o + n_pos, :] for o in range(n_off)], axis=-1)
    if Kp > n_off * D:
        cols = jnp.pad(cols, ((0, 0), (0, 0), (0, Kp - n_off * D)))
    tile_n = min(tile_n, N)
    n_row_pad = (-N) % tile_n
    if n_row_pad:
        cols = jnp.pad(cols, ((0, n_row_pad), (0, 0), (0, 0)))
    n_rows = N + n_row_pad
    cols = cols.astype(mxu_dtype)               # bf16 MXU operand; f32 accumulation in-kernel

    def weight_spec(arr):
        nd = arr.ndim
        idx = lambda i, _nd=nd: (0,) * _nd
        try:
            # grid-invariant weights -> single-buffer (halves resident weight VMEM)
            return pl.BlockSpec(arr.shape, idx, pipeline_mode=pl.Buffered(1))
        except (TypeError, AttributeError):
            return pl.BlockSpec(arr.shape, idx)

    flat_inputs = [cols, fp["wc"], fp["b_cat"]]
    in_specs = [pl.BlockSpec((tile_n, n_pos, Kp), lambda i: (i, 0, 0)),
                weight_spec(fp["wc"]), weight_spec(fp["b_cat"])]
    for (w, b) in fp["hw"]:
        flat_inputs += [w, b]
        in_specs += [weight_spec(w), weight_spec(b)]
    flat_inputs += [fp["ow"], fp["ob"]]
    in_specs += [weight_spec(fp["ow"]), weight_spec(fp["ob"])]

    kernel = functools.partial(_char_cnn_kernel, len(fp["hw"]))

    # VMEM budget from actual buffer sizes (2x margin), with headroom under v7x's 64 MiB.
    out_itemsize = jnp.zeros((), x.dtype).dtype.itemsize
    in_tile_b = 2 * tile_n * n_pos * Kp * cols.dtype.itemsize        # double-buffered x tile
    out_tile_b = 2 * tile_n * d_emb_word * out_itemsize
    weight_b = sum(int(a.size) * a.dtype.itemsize for a in flat_inputs[1:])
    interm_b = tile_n * n_pos * d_sum * 4 + 8 * tile_n * 2 * d_sum * 4
    vmem_limit = int(min(48 * 1024 * 1024,
                         max(32 * 1024 * 1024,
                             2 * (in_tile_b + out_tile_b + weight_b + interm_b))))

    out = pl.pallas_call(
        kernel,
        grid=(n_rows // tile_n,),                # tile over flattened (B*L) rows
        in_specs=in_specs,
        out_specs=pl.BlockSpec((tile_n, d_emb_word), lambda i: (i, 0)),
        out_shape=jax.ShapeDtypeStruct((n_rows, d_emb_word), x.dtype),
        compiler_params=pltpu.CompilerParams(
            dimension_semantics=("parallel",),   # shards rows across TCs on v7x
            vmem_limit_bytes=vmem_limit,
        ),
    )(*flat_inputs)

    return out[:N].reshape(B, L, d_emb_word)


# ----------------------------- parameters & reference -----------------------------

def init_params(key, d_emb_char, d_convs, k_sizes, d_emb_word, n_highway=2):
    d_sum = sum(d_convs)
    keys = iter(jax.random.split(key, 64))

    def nrm(shape, scale=0.1):
        return scale * jax.random.normal(next(keys), shape, jnp.float32)

    params = {"conv_w": [], "conv_b": [], "hw": []}
    for dc, k in zip(d_convs, k_sizes):
        params["conv_w"].append(nrm((k, d_emb_char, dc)))   # (k, D_in, D_out)
        params["conv_b"].append(nrm((1, dc)))
    for _ in range(n_highway):
        params["hw"].append((nrm((d_sum, d_sum)), nrm((1, d_sum)),
                             nrm((d_sum, d_sum)), nrm((1, d_sum))))
    params["ow"] = nrm((d_sum, d_emb_word))
    params["ob"] = nrm((1, d_emb_word))
    return params


def reference_forward(x, params, d_convs, k_sizes):
    """Pure-JAX f32 reference with the original (unfused) math, for correctness check."""
    B, L, C, D = x.shape
    xr = x.reshape(B * L, C, D)
    feats = []
    for i, (dc, k) in enumerate(zip(d_convs, k_sizes)):
        p = k // 2
        c_out = C + 2 * p - k + 1
        xp = jnp.pad(xr, ((0, 0), (p, p), (0, 0)))
        w, b = params["conv_w"][i], params["conv_b"][i]
        scores = jnp.stack(
            [jnp.einsum("nkd,kdo->no", xp[:, t:t + k, :], w) for t in range(c_out)],
            axis=1) + b[:, None, :]
        feats.append(jax.nn.relu(jnp.max(scores, axis=1)))
    h = jnp.concatenate(feats, axis=-1)
    for (pw, pb, gw, gb) in params["hw"]:
        proj = jax.nn.relu(h @ pw + pb)
        gate = jax.nn.sigmoid(h @ gw + gb)
        h = proj * gate + h * (1.0 - gate)
    out = h @ params["ow"] + params["ob"]
    return out.reshape(B, L, -1)


# ----------------------------- main -----------------------------

if __name__ == "__main__":
    # x is (batch, seq_len, n_char_max, d_emb_char); d_convs chosen so d_highway = 128 and
    # d_emb_word = 128 keep every matmul output / store lane-dense.
    B, L, C, D = 8, 64, 16, 16
    d_convs = [32, 64, 32]          # sum = 128 = d_highway
    k_sizes = [3, 5, 3]
    d_emb_word = 128

    key = jax.random.PRNGKey(0)
    kx, kp = jax.random.split(key)
    x = jax.random.normal(kx, (B, L, C, D), jnp.float32)
    params = init_params(kp, D, d_convs, k_sizes, d_emb_word)

    out = char_cnn_forward(x, params, d_convs, k_sizes, d_emb_word, tile_n=256)
    out = jax.block_until_ready(out)
    assert out.shape == (B, L, d_emb_word)

    ref = reference_forward(x, params, d_convs, k_sizes)
    # Tolerance loosened vs. the pure-f32 version: MXU operands are bf16 (f32 accumulation),
    # so per the review ~1e-2-level agreement with the f32 reference is expected.
    np.testing.assert_allclose(np.asarray(out), np.asarray(ref), rtol=2e-2, atol=3e-2)

    print("KERNEL_OK")
</pallas_src>

<mosaic_0001>
module attributes {stable_mosaic.version = 11 : i64} {
  func.func @_char_cnn_kernel(%arg0: i32, %arg1: memref<256x16x128xbf16, #tpu.memory_space<vmem>>, %arg2: memref<128x128xbf16, #tpu.memory_space<vmem>>, %arg3: memref<1x128xf32, #tpu.memory_space<vmem>>, %arg4: memref<128x256xbf16, #tpu.memory_space<vmem>>, %arg5: memref<1x256xf32, #tpu.memory_space<vmem>>, %arg6: memref<128x256xbf16, #tpu.memory_space<vmem>>, %arg7: memref<1x256xf32, #tpu.memory_space<vmem>>, %arg8: memref<128x128xbf16, #tpu.memory_space<vmem>>, %arg9: memref<1x128xf32, #tpu.memory_space<vmem>>, %arg10: memref<256x128xf32, #tpu.memory_space<vmem>>) attributes {dimension_semantics = [#tpu.dimension_semantics<parallel>], iteration_bounds = array<i64: 2>, scalar_prefetch = 0 : i64, scratch_operands = 0 : i64, tpu.core_type = #tpu.core_type<tc>, window_params = [{transform_indices = @transform_0, window_bounds = array<i64: 256, 16, 128>}, {pipeline_mode = #tpu.pipeline_mode<synchronous>, transform_indices = @transform_1, window_bounds = array<i64: 128, 128>}, {pipeline_mode = #tpu.pipeline_mode<synchronous>, transform_indices = @transform_2, window_bounds = array<i64: 1, 128>}, {pipeline_mode = #tpu.pipeline_mode<synchronous>, transform_indices = @transform_3, window_bounds = array<i64: 128, 256>}, {pipeline_mode = #tpu.pipeline_mode<synchronous>, transform_indices = @transform_4, window_bounds = array<i64: 1, 256>}, {pipeline_mode = #tpu.pipeline_mode<synchronous>, transform_indices = @transform_5, window_bounds = array<i64: 128, 256>}, {pipeline_mode = #tpu.pipeline_mode<synchronous>, transform_indices = @transform_6, window_bounds = array<i64: 1, 256>}, {pipeline_mode = #tpu.pipeline_mode<synchronous>, transform_indices = @transform_7, window_bounds = array<i64: 128, 128>}, {pipeline_mode = #tpu.pipeline_mode<synchronous>, transform_indices = @transform_8, window_bounds = array<i64: 1, 128>}, {transform_indices = @transform_9, window_bounds = array<i64: 256, 128>}]} {
    %c0 = arith.constant 0 : index
    %c0_0 = arith.constant 0 : index
    %c0_1 = arith.constant 0 : index
    %0 = vector.load %arg1[%c0, %c0_0, %c0_1] : memref<256x16x128xbf16, #tpu.memory_space<vmem>>, vector<256x16x128xbf16>
    %1 = vector.shape_cast %0 : vector<256x16x128xbf16> to vector<4096x128xbf16>
    %c0_2 = arith.constant 0 : index
    %c0_3 = arith.constant 0 : index
    %2 = vector.load %arg2[%c0_2, %c0_3] : memref<128x128xbf16, #tpu.memory_space<vmem>>, vector<128x128xbf16>
    %cst = arith.constant dense<0.000000e+00> : vector<4096x128xf32>
    %3 = tpu.matmul %1, %2, %cst {dimension_numbers = #tpu.dot_dimension_numbers<[1], [0], [0], [1], [0, 0, 1, 1], [], []>} : vector<4096x128xbf16>, vector<128x128xbf16>, vector<4096x128xf32> -> vector<4096x128xf32>
    %4 = vector.shape_cast %3 : vector<4096x128xf32> to vector<256x16x128xf32>
    %cst_4 = arith.constant dense<0xFF800000> : vector<256x128xf32>
    %5 = vector.multi_reduction <maximumf>, %4, %cst_4 [1] : vector<256x16x128xf32> to vector<256x128xf32>
    %c0_5 = arith.constant 0 : index
    %c0_6 = arith.constant 0 : index
    %6 = vector.load %arg3[%c0_5, %c0_6] : memref<1x128xf32, #tpu.memory_space<vmem>>, vector<1x128xf32>
    %7 = vector.broadcast %6 : vector<1x128xf32> to vector<256x128xf32>
    %8 = arith.addf %5, %7 : vector<256x128xf32>
    %cst_7 = arith.constant 0.000000e+00 : f32
    %9 = vector.broadcast %cst_7 : f32 to vector<256x128xf32>
    %10 = arith.maximumf %8, %9 : vector<256x128xf32>
    %11 = arith.truncf %10 : vector<256x128xf32> to vector<256x128xbf16>
    %c0_8 = arith.constant 0 : index
    %c0_9 = arith.constant 0 : index
    %12 = vector.load %arg4[%c0_8, %c0_9] : memref<128x256xbf16, #tpu.memory_space<vmem>>, vector<128x256xbf16>
    %cst_10 = arith.constant dense<0.000000e+00> : vector<256x256xf32>
    %13 = tpu.matmul %11, %12, %cst_10 {dimension_numbers = #tpu.dot_dimension_numbers<[1], [0], [0], [1], [0, 0, 1, 1], [], []>} : vector<256x128xbf16>, vector<128x256xbf16>, vector<256x256xf32> -> vector<256x256xf32>
    %c0_11 = arith.constant 0 : index
    %c0_12 = arith.constant 0 : index
    %14 = vector.load %arg5[%c0_11, %c0_12] : memref<1x256xf32, #tpu.memory_space<vmem>>, vector<1x256xf32>
    %15 = vector.broadcast %14 : vector<1x256xf32> to vector<256x256xf32>
    %16 = arith.addf %13, %15 : vector<256x256xf32>
    %17 = vector.extract_strided_slice %16 {offsets = [0, 0], sizes = [256, 128], strides = [1, 1]} : vector<256x256xf32> to vector<256x128xf32>
    %cst_13 = arith.constant 0.000000e+00 : f32
    %18 = vector.broadcast %cst_13 : f32 to vector<256x128xf32>
    %19 = arith.maximumf %17, %18 : vector<256x128xf32>
    %20 = vector.extract_strided_slice %16 {offsets = [0, 128], sizes = [256, 128], strides = [1, 1]} : vector<256x256xf32> to vector<256x128xf32>
    %21 = arith.negf %20 : vector<256x128xf32>
    %22 = math.exp %21 : vector<256x128xf32>
    %cst_14 = arith.constant 1.000000e+00 : f32
    %23 = vector.broadcast %cst_14 : f32 to vector<256x128xf32>
    %24 = arith.addf %23, %22 : vector<256x128xf32>
    %25 = arith.divf %23, %24 : vector<256x128xf32>
    %26 = arith.mulf %19, %25 : vector<256x128xf32>
    %cst_15 = arith.constant 1.000000e+00 : f32
    %27 = vector.broadcast %cst_15 : f32 to vector<256x128xf32>
    %28 = arith.subf %27, %25 : vector<256x128xf32>
    %29 = arith.mulf %10, %28 : vector<256x128xf32>
    %30 = arith.addf %26, %29 : vector<256x128xf32>
    %31 = arith.truncf %30 : vector<256x128xf32> to vector<256x128xbf16>
    %c0_16 = arith.constant 0 : index
    %c0_17 = arith.constant 0 : index
    %32 = vector.load %arg6[%c0_16, %c0_17] : memref<128x256xbf16, #tpu.memory_space<vmem>>, vector<128x256xbf16>
    %cst_18 = arith.constant dense<0.000000e+00> : vector<256x256xf32>
    %33 = tpu.matmul %31, %32, %cst_18 {dimension_numbers = #tpu.dot_dimension_numbers<[1], [0], [0], [1], [0, 0, 1, 1], [], []>} : vector<256x128xbf16>, vector<128x256xbf16>, vector<256x256xf32> -> vector<256x256xf32>
    %c0_19 = arith.constant 0 : index
    %c0_20 = arith.constant 0 : index
    %34 = vector.load %arg7[%c0_19, %c0_20] : memref<1x256xf32, #tpu.memory_space<vmem>>, vector<1x256xf32>
    %35 = vector.broadcast %34 : vector<1x256xf32> to vector<256x256xf32>
    %36 = arith.addf %33, %35 : vector<256x256xf32>
    %37 = vector.extract_strided_slice %36 {offsets = [0, 0], sizes = [256, 128], strides = [1, 1]} : vector<256x256xf32> to vector<256x128xf32>
    %cst_21 = arith.constant 0.000000e+00 : f32
    %38 = vector.broadcast %cst_21 : f32 to vector<256x128xf32>
    %39 = arith.maximumf %37, %38 : vector<256x128xf32>
    %40 = vector.extract_strided_slice %36 {offsets = [0, 128], sizes = [256, 128], strides = [1, 1]} : vector<256x256xf32> to vector<256x128xf32>
    %41 = arith.negf %40 : vector<256x128xf32>
    %42 = math.exp %41 : vector<256x128xf32>
    %cst_22 = arith.constant 1.000000e+00 : f32
    %43 = vector.broadcast %cst_22 : f32 to vector<256x128xf32>
    %44 = arith.addf %43, %42 : vector<256x128xf32>
    %45 = arith.divf %43, %44 : vector<256x128xf32>
    %46 = arith.mulf %39, %45 : vector<256x128xf32>
    %cst_23 = arith.constant 1.000000e+00 : f32
    %47 = vector.broadcast %cst_23 : f32 to vector<256x128xf32>
    %48 = arith.subf %47, %45 : vector<256x128xf32>
    %49 = arith.mulf %30, %48 : vector<256x128xf32>
    %50 = arith.addf %46, %49 : vector<256x128xf32>
    %51 = arith.truncf %50 : vector<256x128xf32> to vector<256x128xbf16>
    %c0_24 = arith.constant 0 : index
    %c0_25 = arith.constant 0 : index
    %52 = vector.load %arg8[%c0_24, %c0_25] : memref<128x128xbf16, #tpu.memory_space<vmem>>, vector<128x128xbf16>
    %cst_26 = arith.constant dense<0.000000e+00> : vector<256x128xf32>
    %53 = tpu.matmul %51, %52, %cst_26 {dimension_numbers = #tpu.dot_dimension_numbers<[1], [0], [0], [1], [0, 0, 1, 1], [], []>} : vector<256x128xbf16>, vector<128x128xbf16>, vector<256x128xf32> -> vector<256x128xf32>
    %c0_27 = arith.constant 0 : index
    %c0_28 = arith.constant 0 : index
    %54 = vector.load %arg9[%c0_27, %c0_28] : memref<1x128xf32, #tpu.memory_space<vmem>>, vector<1x128xf32>
    %55 = vector.broadcast %54 : vector<1x128xf32> to vector<256x128xf32>
    %56 = arith.addf %53, %55 : vector<256x128xf32>
    %c0_29 = arith.constant 0 : index
    %c0_30 = arith.constant 0 : index
    %57 = vector.load %arg10[%c0_29, %c0_30] : memref<256x128xf32, #tpu.memory_space<vmem>>, vector<256x128xf32>
    tpu.vector_store %arg10[%c0_29, %c0_30], %56 {strides = array<i32>} : memref<256x128xf32, #tpu.memory_space<vmem>>, vector<256x128xf32>,
    return
  }
  func.func @transform_0(%arg0: i32) -> (i32, i32, i32) {
    %c0_i32 = arith.constant 0 : i32
    %c0_i32_0 = arith.constant 0 : i32
    %c0_i32_1 = arith.constant 0 : i32
    return %arg0, %c0_i32, %c0_i32_0 : i32, i32, i32
  }
  func.func @transform_1(%arg0: i32) -> (i32, i32) {
    %c0_i32 = arith.constant 0 : i32
    %c0_i32_0 = arith.constant 0 : i32
    %c0_i32_1 = arith.constant 0 : i32
    return %c0_i32, %c0_i32_0 : i32, i32
  }
  func.func @transform_2(%arg0: i32) -> (i32, i32) {
    %c0_i32 = arith.constant 0 : i32
    %c0_i32_0 = arith.constant 0 : i32
    %c0_i32_1 = arith.constant 0 : i32
    return %c0_i32, %c0_i32_0 : i32, i32
  }
  func.func @transform_3(%arg0: i32) -> (i32, i32) {
    %c0_i32 = arith.constant 0 : i32
    %c0_i32_0 = arith.constant 0 : i32
    %c0_i32_1 = arith.constant 0 : i32
    return %c0_i32, %c0_i32_0 : i32, i32
  }
  func.func @transform_4(%arg0: i32) -> (i32, i32) {
    %c0_i32 = arith.constant 0 : i32
    %c0_i32_0 = arith.constant 0 : i32
    %c0_i32_1 = arith.constant 0 : i32
    return %c0_i32, %c0_i32_0 : i32, i32
  }
  func.func @transform_5(%arg0: i32) -> (i32, i32) {
    %c0_i32 = arith.constant 0 : i32
    %c0_i32_0 = arith.constant 0 : i32
    %c0_i32_1 = arith.constant 0 : i32
    return %c0_i32, %c0_i32_0 : i32, i32
  }
  func.func @transform_6(%arg0: i32) -> (i32, i32) {
    %c0_i32 = arith.constant 0 : i32
    %c0_i32_0 = arith.constant 0 : i32
    %c0_i32_1 = arith.constant 0 : i32
    return %c0_i32, %c0_i32_0 : i32, i32
  }
  func.func @transform_7(%arg0: i32) -> (i32, i32) {
    %c0_i32 = arith.constant 0 : i32
    %c0_i32_0 = arith.constant 0 : i32
    %c0_i32_1 = arith.constant 0 : i32
    return %c0_i32, %c0_i32_0 : i32, i32
  }
  func.func @transform_8(%arg0: i32) -> (i32, i32) {
    %c0_i32 = arith.constant 0 : i32
    %c0_i32_0 = arith.constant 0 : i32
    %c0_i32_1 = arith.constant 0 : i32
    return %c0_i32, %c0_i32_0 : i32, i32
  }
  func.func @transform_9(%arg0: i32) -> (i32, i32) {
    %c0_i32 = arith.constant 0 : i32
    %c0_i32_0 = arith.constant 0 : i32
    return %arg0, %c0_i32 : i32, i32
  }
}

</mosaic_0001>

<bundles_post_ra>
// kernel: tpu_custom_call.1
= control target key start
LH: loop header
LB: loop body
LE: loop exit
PB: predicated region body
PF: predicated region fallthrough
CT: control target
= control target key end

     0   :  { %s20053_s0 = inlined_call_operand.hbm [shape: bf16[512,16,128], index: 0, kind: input, shape index: {}]   ;;  %s20054_s1 = inlined_call_operand.hbm [shape: bf16[128,128], index: 1, kind: input, shape index: {}]   ;;  %s20055_s2 = inlined_call_operand.hbm [shape: f32[1,128], index: 2, kind: input, shape index: {}]   ;;  %s20056_s3 = inlined_call_operand.hbm [shape: bf16[128,256], index: 3, kind: input, shape index: {}]   ;;  %s20057_s4 = inlined_call_operand.hbm [shape: f32[1,256], index: 4, kind: input, shape index: {}]   ;;  %s20058_s5 = inlined_call_operand.hbm [shape: bf16[128,256], index: 5, kind: input, shape index: {}]   ;;  %s20059_s6 = inlined_call_operand.hbm [shape: f32[1,256], index: 6, kind: input, shape index: {}]   ;;  %s20060_s7 = inlined_call_operand.hbm [shape: bf16[128,128], index: 7, kind: input, shape index: {}]   ;;  %s20061_s8 = inlined_call_operand.hbm [shape: f32[1,128], index: 8, kind: input, shape index: {}]   ;;  %s20062_s9 = inlined_call_operand.hbm [shape: f32[512,128], index: 9, kind: output, shape index: {}]  }
   0x1   :  { %20439 = sst [smem:[#allocation362_spill]] %s20054_s1 }
   0x2   :  { %20440 = sst [smem:[#allocation363_spill]] %s20055_s2 }
   0x3   :  { %20441 = sst [smem:[#allocation364_spill]] %s20056_s3 }
   0x4   :  { %14 = vsyncpa [#allocation3], 0 }
   0x5   :  { %16 = vsyncpa [#allocation3 + $0x1], 0 }
   0x6   :  { %17 = vsyncpa [#allocation6], 0 }
   0x7   :  { %18 = vsyncpa [#allocation9], 0 }
   0x8   :  { %19 = vsyncpa [#allocation12], 0 }
   0x9   :  { %20 = vsyncpa [#allocation15], 0 }
   0xa   :  { %21 = vsyncpa [#allocation4], 0 }
   0xb   :  { %23 = vsyncpa [#allocation4 + $0x1], 0  ;;  %s13846_s30 = smov 0   ;;  %s13848_s10 = smov 0  }
   0xc   :  { %s13850_s11 = smov 0   ;;  %s13852_s12 = smov 0  }
   0xd LB: > { %s13779_s13 = smov [#allocation5]   ;;  %s13867_s15 = sadd.s32 4294967295, %s13777_s12   ;;  %s13777_s12 = sphi %s13852_s12, %s21794_s12   ;;  %s13773_s11 = sphi %s13850_s11, %s21793_s11   ;;  %s13769_s10 = sphi %s13848_s10, %s21792_s10   ;;  %s13765_s30 = sphi %s13846_s30, %s21791_s30  }
   0xe   : > { %s266_s14 = sshll.u32 %s13779_s13, 4  ;;  %p11460_p0 = scmp.ge.s32.totalorder %s13777_s12, 1  ;;  %s267_s14 = int_to_ptr.vmem [resolvable:$true] %s266_s14 }
   0xf   : > { %p20063_p1 = scmp.eq.s32.totalorder %s13867_s15, 0  ;;  %p254_p2 = scmp.lt.s32.totalorder %s13777_s12, 3 }
  0x10   : > { %s13780_s17 = smov [#allocation8]   ;;  %s13781_s20 = smov [#allocation11]  }
  0x11   : > { %p13872_p3 = pnand %p11460_p0, %p254_p2  ;;  %s290_s18 = sshll.u32 %s13780_s17, 4  ;;  %s13885_s18 = int_to_ptr.vmem [resolvable:$true] %s290_s18 }
  0x12   : > { %s13887_s21 = sshll.u32 %s13781_s20, 4  ;;  %s13472_s23 = scalar_lea.vmem %s267_s14, 1024  ;;  %s315_s21 = int_to_ptr.vmem [resolvable:$true] %s13887_s21 }
  0x13   : > { %s20442_s16 = scalar_select %p13872_p3, 1, 0 }
  0x14   : > { %p12779_p5 = pneg %p13872_p3  ;;  %p13473_p8 = scmp.ne.s32.totalorder %s267_s14, %s13472_s23 }
  0x15   : > { %p13480_p11 = scmp.lt.s32.totalorder %s267_s14, %s267_s14  ;;  %p13481_p12 = scmp.lt.s32.totalorder %s13472_s23, %s13472_s23 }
  0x16   : > { %p13881_p6 = pnand %p12779_p5, %p20063_p1 }
  0x17   : > { %p13482_p13 = por %p13481_p12, %p13480_p11 }
  0x18   : > { %p13891_p7 = pneg %p13881_p6 }
  0x1a   : > { %p13475_p9 = pnand %p13473_p8, %p13891_p7 }
  0x1c   : > { %p13476_p10 = pneg %p13475_p9 }
  0x1e   : > { %p13483_p0 = pnand %p13482_p13, %p13476_p10 }
  0x20   : > { %13486 = shalt.err (!%p13483_p0)
}
  0x21   : > { %s20065_s24 = smov 64   ;;  %s20066_s25 = smov 4  }
  0x22   : > { %s20445_s1 = sld [smem:[#allocation362_spill]]  ;;  %s13498_s28 = scalar_lea.vmem %s13885_s18, 2048 }
  0x23   : > { %p13499_p2 = scmp.ne.s32.totalorder %s13885_s18, %s13498_s28  ;;  %p13506_p9 = scmp.lt.s32.totalorder %s13885_s18, %s13885_s18 }
  0x24   : > { %p13507_p10 = scmp.lt.s32.totalorder %s13498_s28, %s13498_s28 }
  0x25   : > { %p13501_p5 = pnand %p13499_p2, %p13891_p7 }
  0x26   : > { %p13508_p11 = por %p13507_p10, %p13506_p9 }
  0x27   : > { %p13502_p8 = pneg %p13501_p5 }
  0x28   : > { %12782 = dma.hbm_to_vmem [thread:$0]  (!%p13881_p6), %s20445_s1, 1024, %s267_s14, [#allocation6], %s20065_s24, %s20065_s24, %s20066_s25  }
  0x29   : > { %p13509_p12 = pnand %p13508_p11, %p13502_p8 }
  0x2b   : > { %13512 = shalt.err (!%p13509_p12)
}
  0x2c   : > { %s13784_s29 = smov 128   ;;  %s13785_s13 = smov 8  }
  0x2d   : > { %s20446_s3 = sld [smem:[#allocation364_spill]]  ;;  %s13524_s20 = scalar_lea.vmem %s315_s21, 2048 }
  0x2e   : > { %p13525_p13 = scmp.ne.s32.totalorder %s315_s21, %s13524_s20  ;;  %p13532_p5 = scmp.lt.s32.totalorder %s315_s21, %s315_s21 }
  0x2f   : > { %p13533_p8 = scmp.lt.s32.totalorder %s13524_s20, %s13524_s20 }
  0x30   : > { %p13527_p0 = pnand %p13525_p13, %p13891_p7 }
  0x31   : > { %p13534_p9 = por %p13533_p8, %p13532_p5 }
  0x32   : > { %p13528_p2 = pneg %p13527_p0 }
  0x33   : > { %12788 = dma.hbm_to_vmem [thread:$0]  (!%p13881_p6), %s20446_s3, 2048, %s13885_s18, [#allocation9], %s13784_s29, %s13784_s29, %s13785_s13  }
  0x34   : > { %p13535_p10 = pnand %p13534_p9, %p13528_p2 }
  0x36   : > { %13538 = shalt.err (!%p13535_p10)
}
  0x37   : > { %12794 = dma.hbm_to_vmem [thread:$0]  (!%p13881_p6), %s20058_s5, 2048, %s315_s21, [#allocation12], %s13784_s29, %s13784_s29, %s13785_s13  }
  0x38   : > { %s13786_s27 = smov [#allocation14]   ;;  %s13787_s28 = smov [#allocation7]  }
  0x39   : > { %s338_s18 = sshll.u32 %s13786_s27, 4  ;;  %s280_s17 = sshll.u32 %s13787_s28, 4  ;;  %s339_s18 = int_to_ptr.vmem [resolvable:$true] %s338_s18  ;;  %s281_s17 = int_to_ptr.vmem [resolvable:$true] %s280_s17 }
  0x3a   : > { %s13550_s14 = scalar_lea.vmem %s339_s18, 1024  ;;  %p13558_p0 = scmp.lt.s32.totalorder %s339_s18, %s339_s18 }
  0x3b   : > { %p13551_p11 = scmp.ne.s32.totalorder %s339_s18, %s13550_s14  ;;  %p13559_p2 = scmp.lt.s32.totalorder %s13550_s14, %s13550_s14 }
  0x3d   : > { %p13553_p12 = pnand %p13551_p11, %p13891_p7  ;;  %p13560_p5 = por %p13559_p2, %p13558_p0 }
  0x3f   : > { %p13554_p13 = pneg %p13553_p12 }
  0x41   : > { %p13561_p8 = pnand %p13560_p5, %p13554_p13 }
  0x43   : > { %13564 = shalt.err (!%p13561_p8)
}
  0x44   : > { %12800 = dma.hbm_to_vmem [thread:$0]  (!%p13881_p6), %s20060_s7, 1024, %s339_s18, [#allocation15], %s20065_s24, %s20065_s24, %s20066_s25  }
  0x45   : > { %s13576_s13 = scalar_lea.vmem %s281_s17, 16  ;;  %s13583_s20 = scalar_lea.vmem %s281_s17, 32 }
  0x46   : > { %p13577_p9 = scmp.ne.s32.totalorder %s281_s17, %s13576_s13  ;;  %p13584_p12 = scmp.lt.s32.totalorder %s281_s17, %s281_s17 }
  0x47   : > { %p13585_p13 = scmp.lt.s32.totalorder %s13583_s20, %s13576_s13 }
  0x48   : > { %p13579_p10 = pnand %p13577_p9, %p13891_p7 }
  0x49   : > { %p13586_p0 = por %p13585_p13, %p13584_p12 }
  0x4a   : > { %p13580_p11 = pneg %p13579_p10 }
  0x4c   : > { %p13587_p2 = pnand %p13586_p0, %p13580_p11 }
  0x4e   : > { %13590 = shalt.err (!%p13587_p2)
}
  0x4f   : > { %s20447_s2 = sld [smem:[#allocation363_spill]]  ;;  %s13788_s27 = smov [#allocation10]  }
  0x50   : > { %s304_s18 = sshll.u32 %s13788_s27, 4  ;;  %s13789_s28 = smov [#allocation13]   ;;  %s305_s18 = int_to_ptr.vmem [resolvable:$true] %s304_s18 }
  0x51   : > { %s328_s14 = sshll.u32 %s13789_s28, 4  ;;  %s13602_s21 = scalar_lea.vmem %s305_s18, 32  ;;  %s329_s14 = int_to_ptr.vmem [resolvable:$true] %s328_s14 }
  0x52   : > { %p13603_p5 = scmp.ne.s32.totalorder %s305_s18, %s13602_s21  ;;  %p13610_p10 = scmp.lt.s32.totalorder %s305_s18, %s305_s18 }
  0x53   : > { %p13611_p11 = scmp.lt.s32.totalorder %s13602_s21, %s13602_s21 }
  0x54   : > { %p13605_p8 = pnand %p13603_p5, %p13891_p7 }
  0x55   : > { %12785 = dma.hbm_to_vmem [thread:$0]  (!%p13881_p6), %s20447_s2, 16, %s281_s17, [#allocation6]  }
  0x56   : > { %p13606_p9 = pneg %p13605_p8  ;;  %p13612_p12 = por %p13611_p11, %p13610_p10 }
  0x58   : > { %p13613_p13 = pnand %p13612_p12, %p13606_p9 }
  0x5a   : > { %13616 = shalt.err (!%p13613_p13)
}
  0x5b   : > { %12791 = dma.hbm_to_vmem [thread:$0]  (!%p13881_p6), %s20057_s4, 32, %s305_s18, [#allocation9]  }
  0x5c   : > { %s13628_s17 = scalar_lea.vmem %s329_s14, 32  ;;  %p13636_p5 = scmp.lt.s32.totalorder %s329_s14, %s329_s14 }
  0x5d   : > { %p13629_p0 = scmp.ne.s32.totalorder %s329_s14, %s13628_s17  ;;  %p13637_p8 = scmp.lt.s32.totalorder %s13628_s17, %s13628_s17 }
  0x5f   : > { %p13631_p2 = pnand %p13629_p0, %p13891_p7  ;;  %p13638_p1 = por %p13637_p8, %p13636_p5 }
  0x61   : > { %p13632_p4 = pneg %p13631_p2 }
  0x63   : > { %p13639_p3 = pnand %p13638_p1, %p13632_p4 }
  0x65   : > { %13642 = shalt.err (!%p13639_p3)
}
  0x66   : > { %12797 = dma.hbm_to_vmem [thread:$0]  (!%p13881_p6), %s20059_s6, 32, %s329_s14, [#allocation12]  }
  0x67   : > { %s13790_s26 = smov [#allocation16]  }
  0x68   : > { %s352_s27 = sshll.u32 %s13790_s26, 4  ;;  %s353_s27 = int_to_ptr.vmem [resolvable:$true] %s352_s27 }
  0x69   : > { %s13654_s18 = scalar_lea.vmem %s353_s27, 16  ;;  %s13661_s28 = scalar_lea.vmem %s353_s27, 32 }
  0x6a   : > { %p13655_p9 = scmp.ne.s32.totalorder %s353_s27, %s13654_s18  ;;  %p13662_p12 = scmp.lt.s32.totalorder %s353_s27, %s353_s27 }
  0x6b   : > { %p13663_p13 = scmp.lt.s32.totalorder %s13661_s28, %s13654_s18 }
  0x6c   : > { %p13657_p10 = pnand %p13655_p9, %p13891_p7 }
  0x6d   : > { %p13664_p1 = por %p13663_p13, %p13662_p12 }
  0x6e   : > { %p13658_p11 = pneg %p13657_p10 }
  0x70   : > { %p13665_p3 = pnand %p13664_p1, %p13658_p11 }
  0x72   : > { %13668 = shalt.err (!%p13665_p3)
}
  0x73   : > { %12803 = dma.hbm_to_vmem [thread:$0]  (!%p13881_p6), %s20061_s8, 16, %s353_s27, [#allocation15]  }
  0x74   : > { %s11459_s22 = sadd.s32 4294967294, %s13777_s12   ;;  %s13965_s19 = sadd.s32 1, %s13777_s12  }
  0x75   : > { %s33_s14 = ssub.s32 %s13777_s12, %s13965_s19  ;;  %s36_s13 = sadd.s32 1, %s13773_s11 }
  0x76   : > { %p34_p4 = scmp.eq.s32.totalorder %s33_s14, 0  ;;  %p43_p7 = scmp.ne.s32.totalorder %s13773_s11, %s13769_s10 }
  0x77   : > { %p44_p0 = scmp.eq.s32.totalorder %s13777_s12, 0  ;;  %p49_p2 = scmp.ne.s32.totalorder %s13769_s10, %s13765_s30 }
  0x78   : > { %s13976_s17 = scalar_select %p34_p4, %s13773_s11, %s36_s13  }
  0x79   : > { %p13978_p5 = por %p44_p0, %p43_p7  ;;  %p20449_p8 = scmp.eq.s32.totalorder %s13867_s15, 0 }
  0x7a   : > { %p241_p9 = scmp.eq.s32.totalorder %s13867_s15, 1  ;;  %p247_p10 = scmp.eq.s32.totalorder %s11459_s22, 1 }
  0x7b   : > { %p13984_p6 = por %p20449_p8, %p49_p2  ;;  %p12820_p11 = scmp.lt.s32.totalorder %s13777_s12, 2 }
  0x7c   : > { %s363_s26 = sand.u32 1, %s13773_s11   ;;  %p13991_p12 = por %p241_p9, %p43_p7 }
  0x7d   : > { %s20450_s23 = scalar_select %p13984_p6, 1, 0 }
  0x7e   : > { %s20451_s27 = scalar_select %p13991_p12, 1, 0 }
  0x7f   : > { %p13995_p13 = por %p247_p10, %p49_p2  ;;  %s11470_s28 = sshll.u32 %s363_s26, 11 }
  0x80   : > { %s11861_s21 = sshll.u32 %s13777_s12, 15  ;;  %s367_s22 = scalar_lea.vmem [#allocation2], %s11470_s28 }
  0x81   : > { %s20452_s18 = scalar_select %p13995_p13, 1, 0 }
  0x82   : > { %s14003_s13 = scalar_lea.hbm %s20053_s0, %s11861_s21  ;;  %s375_s24 = sshll.u32 %s367_s22, 4  ;;  %s14005_s24 = int_to_ptr.vmem [resolvable:$true] %s375_s24 }
  0x83   : > { %p14009_p1 = pnand %p12820_p11, %p13978_p5  ;;  %s14013_s1 = scalar_lea.sflag [#allocation3], %s363_s26 }
  0x84   : > { %s13669_s2 = scalar_lea.hbm %s14003_s13, 32768  ;;  %s13674_s28 = scalar_lea.hbm %s20053_s0, 65536 }
  0x85   : > { %p13670_p3 = scmp.ne.s32.totalorder %s14003_s13, %s13669_s2  ;;  %p13671_p4 = pneg %p14009_p1 }
  0x86   : > { %p13675_p2 = scmp.lt.s32.totalorder %s14003_s13, %s20053_s0  ;;  %p13676_p5 = scmp.lt.s32.totalorder %s13674_s28, %s13669_s2 }
  0x87   : > { %p13672_p7 = pnand %p13671_p4, %p13670_p3 }
  0x88   : > { %p13677_p8 = por %p13676_p5, %p13675_p2 }
  0x89   : > { %p13673_p0 = pneg %p13672_p7 }
  0x8b   : > { %p13678_p9 = pnand %p13677_p8, %p13673_p0 }
  0x8d   : > { %13681 = shalt.err (!%p13678_p9)
}
  0x8e   : > { %s13682_s20 = scalar_lea.vmem %s14005_s24, 32768  ;;  %s13791_s26 = smov [#allocation2]  }
  0x8f   : > { %p13683_p10 = scmp.ne.s32.totalorder %s14005_s24, %s13682_s20  ;;  %s13687_s3 = sshll.u32 %s13791_s26, 4  ;;  %s13688_s3 = int_to_ptr.vmem [resolvable:$false] %s13687_s3 }
  0x90   : > { %s13689_s21 = scalar_lea.vmem %s13688_s3, 65536  ;;  %p13690_p7 = scmp.lt.s32.totalorder %s14005_s24, %s13688_s3 }
  0x91   : > { %p13685_p11 = pnand %p13683_p10, %p13671_p4  ;;  %p13691_p13 = scmp.lt.s32.totalorder %s13689_s21, %s13682_s20 }
  0x93   : > { %p13686_p3 = pneg %p13685_p11  ;;  %p13692_p12 = por %p13691_p13, %p13690_p7 }
  0x95   : > { %p13693_p6 = pnand %p13692_p12, %p13686_p3 }
  0x97   : > { %13696 = shalt.err (!%p13693_p6)
}
  0x98   : > { %s20454_s2 = smov 4   ;;  %s20455_s29 = smov 64  }
  0x99   : > { %12807 = dma.hbm_to_vmem [thread:$0]  (!%p14009_p1), %s14003_s13, 32768, %s14005_s24, %s14013_s1, %s20455_s29, %s20455_s29, %s20454_s2  }
  0x9a   : > { %p20456_p4 = scmp.ne.s32.totalorder %s20442_s16, 0 }
  0x9c   : > { %387 = sbr.rel (%p20456_p4) target bundleno = 2085 (0x825), region = 56 }
  0xa1   : > { %s14040_s28 = sand.u32 1, %s13769_s10   ;;  %p20457_p6 = scmp.ne.s32.totalorder %s20450_s23, 0 }
  0xa2   : > { %s11475_s3 = sshll.u32 %s14040_s28, 11  ;;  %s390_s14 = scalar_lea.sflag [#allocation3], %s14040_s28 }
  0xa3   : > { %s14044_s22 = scalar_lea.vmem [#allocation2], %s11475_s3 }
  0xa4   : > { %13740 = dma.done.wait (%p20457_p6), %s390_s14, 32768  }
  0xa5   : > { %13742 = vsyncadd (%p20457_p6), %s390_s14, 4294934528  ;;  %p20458_p12 = scmp.eq.s32.totalorder %s13867_s15, 0 }
  0xa7   : > { %13744 = dma.done.wait (%p20458_p12), [#allocation6], 1040   ;;  %p20459_p13 = pmov %p20458_p12 }
  0xa8   : > { %p20460_p1 = pmov %p20458_p12 }
  0xa9   : > { %13746 = vsyncadd (%p20459_p13), [#allocation6], 4294966256 }
  0xaa   : > { %13748 = dma.done.wait (%p20460_p1), [#allocation9], 2080   ;;  %p20461_p0 = pmov %p20460_p1 }
  0xac   : > { %13750 = vsyncadd (%p20461_p0), [#allocation9], 4294965216  ;;  %p20462_p2 = pmov %p20461_p0 }
  0xad   : > { %p20463_p5 = pmov %p20461_p0 }
  0xae   : > { %13752 = dma.done.wait (%p20462_p2), [#allocation12], 2080  }
  0xaf   : > { %13754 = vsyncadd (%p20463_p5), [#allocation12], 4294965216  ;;  %p20464_p8 = pmov %p20461_p0 }
  0xb0   : > { %p20465_p9 = pmov %p20461_p0 }
  0xb1   : > { %13756 = dma.done.wait (%p20464_p8), [#allocation15], 1040  }
  0xb2   : > { %13758 = vsyncadd (%p20465_p9), [#allocation15], 4294966256  ;;  %v12877_v0 = vld [vmem:[#allocation5 + $0x38] sm:$0xff]   ;;  %v12878_v1 = vld [vmem:[#allocation5 + $0x30] sm:$0xff]   ;;  %vm7764_vm0 = vcmask 1041409   ;;  %vm7767_vm1 = vcmask 1042434  }
  0xb3   : > { %12151 = vmatprep.subr.bf16.mxu0 %v12877_v0  ;;  %12727 = vmatprep.subr.bf16.mxu1 %v12877_v0  ;;  %v12879_v2 = vld [vmem:[#allocation5 + $0x28] sm:$0xff]   ;;  %v12880_v3 = vld [vmem:[#allocation5 + $0x20] sm:$0xff]   ;;  %v12881_v6 = vld [vmem:[#allocation5 + $0x18] sm:$0xff]   ;;  %vm7770_vm2 = vcmask 1043459   ;;  %vm7773_vm3 = vcmask 1044484   ;;  %vm7776_vm4 = vcmask 1045509  }
  0xb4   : > { %12152 = vmatpush3.bf16.msra.mxu0 %v12877_v0  ;;  %12735 = vmatpush3.bf16.msra.mxu1 %v12877_v0  ;;  %v12885_v4 = vld [vmem:[%s14044_s22] sm:$0xff]   ;;  %v12882_v7 = vld [vmem:[#allocation5 + $0x10] sm:$0xff]   ;;  %v12883_v8 = vld [vmem:[#allocation5 + $0x8] sm:$0xff]   ;;  %vm7779_vm5 = vcmask 1046534   ;;  %vm7782_vm6 = vcmask 1047559   ;;  %s11484_s1 = sshll.u32 %s14040_s28, 8 }
  0xb5   : > { %12153 = vmatprep.subr.bf16.mxu0 %v12878_v1  ;;  %12728 = vmatprep.subr.bf16.mxu1 %v12878_v1  ;;  %v12886_v5 = vld [vmem:[%s14044_s22 + $0x540] sm:$0xff]   ;;  %v12887_v10 = vld [vmem:[%s14044_s22 + $0x8] sm:$0xff]   ;;  %v12889_v12 = vld [vmem:[%s14044_s22 + $0x10] sm:$0xff]   ;;  %s19926_s16 = scalar_lea.vmem [#allocation17], %s11484_s1  ;;  %s11862_s24 = sshll.u32 %s13867_s15, 12 }
  0xb6   : > { %12167 = vmatprep.mubr.bf16.mxu0 %v12885_v4  ;;  %12503 = vmatprep.mubr.bf16.mxu1 %v12886_v5  ;;  %v12884_v9 = vld [vmem:[#allocation5] sm:$0xff]   ;;  %v12888_v11 = vld [vmem:[%s14044_s22 + $0x548] sm:$0xff]   ;;  %v12890_v13 = vld [vmem:[%s14044_s22 + $0x550] sm:$0xff]   ;;  %s11310_s25 = sshll.u32 %s19926_s16, 4  ;;  %s20005_s20 = scalar_lea.hbm %s20062_s9, %s11862_s24  ;;  %s20007_s25 = int_to_ptr.vmem [resolvable:$true] %s11310_s25 }
  0xb7   : > { %v12891_v14 = vld [vmem:[%s14044_s22 + $0x18] sm:$0xff]   ;;  %v12893_v16 = vld [vmem:[%s14044_s22 + $0x20] sm:$0xff]   ;;  %v12895_v18 = vld [vmem:[%s14044_s22 + $0x28] sm:$0xff]   ;;  %s11297_s15 = scalar_lea.sflag [#allocation4], %s14040_s28  ;;  %s13697_s26 = scalar_lea.vmem %s20007_s25, 4096 }
  0xb8   : > { %12154 = vmatpush3.bf16.msra.mxu0 %v12878_v1  ;;  %12736 = vmatpush3.bf16.msra.mxu1 %v12878_v1  ;;  %v12892_v15 = vld [vmem:[%s14044_s22 + $0x558] sm:$0xff]   ;;  %v12894_v17 = vld [vmem:[%s14044_s22 + $0x560] sm:$0xff]   ;;  %v12896_v19 = vld [vmem:[%s14044_s22 + $0x568] sm:$0xff]   ;;  %p13698_p10 = scmp.ne.s32.totalorder %s20007_s25, %s13697_s26  ;;  %p21788_p11 = scmp.ne.s32.totalorder %s20451_s27, 0 }
  0xb9   : > { %12155 = vmatprep.subr.bf16.mxu0 %v12879_v2  ;;  %12729 = vmatprep.subr.bf16.mxu1 %v12879_v2  ;;  %v12897_v20 = vld [vmem:[%s14044_s22 + $0x30] sm:$0xff]   ;;  %v12899_v22 = vld [vmem:[%s14044_s22 + $0x38] sm:$0xff]   ;;  %v12901_v24 = vld [vmem:[%s14044_s22 + $0x40] sm:$0xff]   ;;  %s13793_s21 = smov [#allocation17]  }
  0xba   : > { %v12898_v21 = vld [vmem:[%s14044_s22 + $0x570] sm:$0xff]   ;;  %v12900_v23 = vld [vmem:[%s14044_s22 + $0x578] sm:$0xff]   ;;  %v12902_v25 = vld [vmem:[%s14044_s22 + $0x580] sm:$0xff]   ;;  %p13699_p3 = pnand %p13698_p10, %p21788_p11  ;;  %s13701_s2 = sshll.u32 %s13793_s21, 4  ;;  %s13702_s2 = int_to_ptr.vmem [resolvable:$false] %s13701_s2 }
  0xbb   : > { %v12903_v26 = vld [vmem:[%s14044_s22 + $0x48] sm:$0xff]   ;;  %v12905_v28 = vld [vmem:[%s14044_s22 + $0x50] sm:$0xff]   ;;  %v12907_v30 = vld [vmem:[%s14044_s22 + $0x58] sm:$0xff]   ;;  %s13703_s29 = scalar_lea.vmem %s13702_s2, 8192  ;;  %p13704_p4 = scmp.lt.s32.totalorder %s20007_s25, %s13702_s2 }
  0xbc   : > { %12156 = vmatpush3.bf16.msra.mxu0 %v12879_v2  ;;  %12737 = vmatpush3.bf16.msra.mxu1 %v12879_v2  ;;  %v12904_v27 = vld [vmem:[%s14044_s22 + $0x588] sm:$0xff]   ;;  %v12906_v29 = vld [vmem:[%s14044_s22 + $0x590] sm:$0xff]   ;;  %v12908_v31 = vld [vmem:[%s14044_s22 + $0x598] sm:$0xff]   ;;  %p13700_p7 = pneg %p13699_p3  ;;  %p13705_p6 = scmp.lt.s32.totalorder %s13703_s29, %s13697_s26 }
  0xbd   : > { %12157 = vmatprep.subr.bf16.mxu0 %v12880_v3  ;;  %12730 = vmatprep.subr.bf16.mxu1 %v12880_v3  ;;  %v12909_v32 = vld [vmem:[%s14044_s22 + $0x60] sm:$0xff]   ;;  %v12911_v34 = vld [vmem:[%s14044_s22 + $0x68] sm:$0xff]   ;;  %v12913_v36 = vld [vmem:[%s14044_s22 + $0x70] sm:$0xff]  }
  0xbe   : > { %v12910_v33 = vld [vmem:[%s14044_s22 + $0x5a0] sm:$0xff]   ;;  %v12912_v35 = vld [vmem:[%s14044_s22 + $0x5a8] sm:$0xff]   ;;  %v12914_v37 = vld [vmem:[%s14044_s22 + $0x5b0] sm:$0xff]   ;;  %p13706_p12 = por %p13705_p6, %p13704_p4 }
  0xbf   : > { %v12915_v38 = vld [vmem:[%s14044_s22 + $0x78] sm:$0xff]   ;;  %v12917_v40 = vld [vmem:[%s14044_s22 + $0x80] sm:$0xff]   ;;  %v12919_v42 = vld [vmem:[%s14044_s22 + $0x88] sm:$0xff]  }
  0xc0   : > { %12158 = vmatpush3.bf16.msra.mxu0 %v12880_v3  ;;  %12738 = vmatpush3.bf16.msra.mxu1 %v12880_v3  ;;  %v12916_v39 = vld [vmem:[%s14044_s22 + $0x5b8] sm:$0xff]   ;;  %v12918_v41 = vld [vmem:[%s14044_s22 + $0x5c0] sm:$0xff]   ;;  %v12920_v43 = vld [vmem:[%s14044_s22 + $0x5c8] sm:$0xff]   ;;  %p13707_p13 = pnand %p13706_p12, %p13700_p7 }
  0xc1   : > { %12159 = vmatprep.subr.bf16.mxu0 %v12881_v6  ;;  %12731 = vmatprep.subr.bf16.mxu1 %v12881_v6  ;;  %v12921_v44 = vld [vmem:[%s14044_s22 + $0x90] sm:$0xff]   ;;  %v12923_v46 = vld [vmem:[%s14044_s22 + $0x98] sm:$0xff]   ;;  %v12925_v48 = vld [vmem:[%s14044_s22 + $0xa0] sm:$0xff]  }
  0xc2   : > { %v12922_v45 = vld [vmem:[%s14044_s22 + $0x5d0] sm:$0xff]   ;;  %v12924_v47 = vld [vmem:[%s14044_s22 + $0x5d8] sm:$0xff]   ;;  %v12926_v49 = vld [vmem:[%s14044_s22 + $0x5e0] sm:$0xff]  }
  0xc3   : > { %v12927_v50 = vld [vmem:[%s14044_s22 + $0xa8] sm:$0xff]   ;;  %v12929_v52 = vld [vmem:[%s14044_s22 + $0xb0] sm:$0xff]   ;;  %v12931_v54 = vld [vmem:[%s14044_s22 + $0xb8] sm:$0xff]  }
  0xc4   : > { %12160 = vmatpush3.bf16.msra.mxu0 %v12881_v6  ;;  %12739 = vmatpush3.bf16.msra.mxu1 %v12881_v6  ;;  %v12928_v51 = vld [vmem:[%s14044_s22 + $0x5e8] sm:$0xff]   ;;  %v12930_v53 = vld [vmem:[%s14044_s22 + $0x5f0] sm:$0xff]   ;;  %v12932_v55 = vld [vmem:[%s14044_s22 + $0x5f8] sm:$0xff]  }
  0xc5   : > { %12161 = vmatprep.subr.bf16.mxu0 %v12882_v7  ;;  %12732 = vmatprep.subr.bf16.mxu1 %v12882_v7  ;;  %v12933_v56 = vld [vmem:[%s14044_s22 + $0xc0] sm:$0xff]   ;;  %v12935_v58 = vld [vmem:[%s14044_s22 + $0xc8] sm:$0xff]   ;;  %v12937_v60 = vld [vmem:[%s14044_s22 + $0xd0] sm:$0xff]  }
  0xc6   : > { %v12934_v57 = vld [vmem:[%s14044_s22 + $0x600] sm:$0xff]   ;;  %v12936_v59 = vld [vmem:[%s14044_s22 + $0x608] sm:$0xff]   ;;  %v12938_v61 = vld [vmem:[%s14044_s22 + $0x610] sm:$0xff]  }
  0xc7   : > { %v12939_v62 = vld [vmem:[%s14044_s22 + $0xd8] sm:$0xff]   ;;  %v12941_v0 = vld [vmem:[%s14044_s22 + $0xe0] sm:$0xff]   ;;  %v12943_v2 = vld [vmem:[%s14044_s22 + $0xe8] sm:$0xff]  }
  0xc8   : > { %12162 = vmatpush3.bf16.msra.mxu0 %v12882_v7  ;;  %12740 = vmatpush3.bf16.msra.mxu1 %v12882_v7  ;;  %v12940_v63 = vld [vmem:[%s14044_s22 + $0x618] sm:$0xff]   ;;  %v12942_v1 = vld [vmem:[%s14044_s22 + $0x620] sm:$0xff]   ;;  %v12944_v3 = vld [vmem:[%s14044_s22 + $0x628] sm:$0xff]  }
  0xc9   : > { %12163 = vmatprep.subr.bf16.mxu0 %v12883_v8  ;;  %12733 = vmatprep.subr.bf16.mxu1 %v12883_v8  ;;  %v12945_v4 = vld [vmem:[%s14044_s22 + $0xf0] sm:$0xff]   ;;  %v12947_v6 = vld [vmem:[%s14044_s22 + $0xf8] sm:$0xff]  }
  0xca   : > { %v12946_v5 = vld [vmem:[%s14044_s22 + $0x630] sm:$0xff]   ;;  %v12948_v7 = vld [vmem:[%s14044_s22 + $0x638] sm:$0xff]  }
  0xcc   : > { %12164 = vmatpush3.bf16.msra.mxu0 %v12883_v8  ;;  %12741 = vmatpush3.bf16.msra.mxu1 %v12883_v8  ;;  %v12949_v8 = vld [vmem:[%s14044_s22 + $0x100] sm:$0xff]  }
  0xcd   : > { %12165 = vmatprep.subr.bf16.mxu0 %v12884_v9  ;;  %12734 = vmatprep.subr.bf16.mxu1 %v12884_v9 }
  0xd0   : > { %12166 = vmatpush3.bf16.msra.mxu0 %v12884_v9  ;;  %12742 = vmatpush3.bf16.msra.mxu1 %v12884_v9  ;;  %v12950_v9 = vld [vmem:[%s14044_s22 + $0x640] sm:$0xff]  }
  0xd3   : > { %12168 = vmatmul.mubr.bf16.vlgmr.msra.gmra.mxu0 %v12887_v10  ;;  %12504 = vmatmul.mubr.bf16.vlgmr.msra.gmra.mxu1 %v12888_v11  ;;  %v12951_v10 = vld [vmem:[%s14044_s22 + $0x108] sm:$0xff]  }
  0xd4   : > { %12171 = vmatprep.mubr.bf16.mxu0 %v12889_v12  ;;  %12507 = vmatprep.mubr.bf16.mxu1 %v12890_v13  ;;  %v12952_v11 = vld [vmem:[%s14044_s22 + $0x648] sm:$0xff]   ;;  %v12953_v12 = vld [vmem:[%s14044_s22 + $0x110] sm:$0xff]  }
  0xd5   : > { %v12954_v13 = vld [vmem:[%s14044_s22 + $0x650] sm:$0xff]  }
  0xdb   : > { %12172 = vmatmul.mubr.bf16.gmra.mxu0 %v12891_v14  ;;  %12508 = vmatmul.mubr.bf16.gmra.mxu1 %v12892_v15  ;;  %v12955_v14 = vld [vmem:[%s14044_s22 + $0x118] sm:$0xff]  }
  0xdc   : > { %12175 = vmatprep.mubr.bf16.mxu0 %v12893_v16  ;;  %12511 = vmatprep.mubr.bf16.mxu1 %v12894_v17  ;;  %v12956_v15 = vld [vmem:[%s14044_s22 + $0x658] sm:$0xff]   ;;  %v12957_v16 = vld [vmem:[%s14044_s22 + $0x120] sm:$0xff]  }
  0xdd   : > { %v12958_v17 = vld [vmem:[%s14044_s22 + $0x660] sm:$0xff]  }
  0xe3   : > { %12176 = vmatmul.mubr.bf16.gmra.mxu0 %v12895_v18  ;;  %12512 = vmatmul.mubr.bf16.gmra.mxu1 %v12896_v19  ;;  %v12959_v18 = vld [vmem:[%s14044_s22 + $0x128] sm:$0xff]  }
  0xe4   : > { %12179 = vmatprep.mubr.bf16.mxu0 %v12897_v20  ;;  %12515 = vmatprep.mubr.bf16.mxu1 %v12898_v21  ;;  %v12960_v19 = vld [vmem:[%s14044_s22 + $0x668] sm:$0xff]   ;;  %v12961_v20 = vld [vmem:[%s14044_s22 + $0x130] sm:$0xff]  }
  0xe5   : > { %v12962_v21 = vld [vmem:[%s14044_s22 + $0x670] sm:$0xff]  }
  0xeb   : > { %12180 = vmatmul.mubr.bf16.gmra.mxu0 %v12899_v22  ;;  %12516 = vmatmul.mubr.bf16.gmra.mxu1 %v12900_v23  ;;  %v12963_v22 = vld [vmem:[%s14044_s22 + $0x138] sm:$0xff]  }
  0xec   : > { %12183 = vmatprep.mubr.bf16.mxu0 %v12901_v24  ;;  %12519 = vmatprep.mubr.bf16.mxu1 %v12902_v25  ;;  %v12964_v23 = vld [vmem:[%s14044_s22 + $0x678] sm:$0xff]   ;;  %v12965_v24 = vld [vmem:[%s14044_s22 + $0x140] sm:$0xff]  }
  0xed   : > { %v12966_v25 = vld [vmem:[%s14044_s22 + $0x680] sm:$0xff]  }
  0xf3   : > { %12184 = vmatmul.mubr.bf16.gmra.mxu0 %v12903_v26  ;;  %12520 = vmatmul.mubr.bf16.gmra.mxu1 %v12904_v27  ;;  %v12967_v26 = vld [vmem:[%s14044_s22 + $0x148] sm:$0xff]  }
  0xf4   : > { %12187 = vmatprep.mubr.bf16.mxu0 %v12905_v28  ;;  %12523 = vmatprep.mubr.bf16.mxu1 %v12906_v29  ;;  %v12968_v27 = vld [vmem:[%s14044_s22 + $0x688] sm:$0xff]   ;;  %v12969_v28 = vld [vmem:[%s14044_s22 + $0x150] sm:$0xff]  }
  0xf5   : > { %v12970_v29 = vld [vmem:[%s14044_s22 + $0x690] sm:$0xff]  }
  0xfb   : > { %12188 = vmatmul.mubr.bf16.gmra.mxu0 %v12907_v30  ;;  %12524 = vmatmul.mubr.bf16.gmra.mxu1 %v12908_v31  ;;  %v12971_v30 = vld [vmem:[%s14044_s22 + $0x158] sm:$0xff]  }
  0xfc   : > { %12191 = vmatprep.mubr.bf16.mxu0 %v12909_v32  ;;  %12527 = vmatprep.mubr.bf16.mxu1 %v12910_v33  ;;  %v12972_v31 = vld [vmem:[%s14044_s22 + $0x698] sm:$0xff]   ;;  %v12973_v32 = vld [vmem:[%s14044_s22 + $0x160] sm:$0xff]  }
  0xfd   : > { %v12974_v33 = vld [vmem:[%s14044_s22 + $0x6a0] sm:$0xff]  }
 0x103   : > { %12192 = vmatmul.mubr.bf16.gmra.mxu0 %v12911_v34  ;;  %12528 = vmatmul.mubr.bf16.gmra.mxu1 %v12912_v35  ;;  %v12975_v34 = vld [vmem:[%s14044_s22 + $0x168] sm:$0xff]  }
 0x104   : > { %12195 = vmatprep.mubr.bf16.mxu0 %v12913_v36  ;;  %12531 = vmatprep.mubr.bf16.mxu1 %v12914_v37  ;;  %v12976_v35 = vld [vmem:[%s14044_s22 + $0x6a8] sm:$0xff]   ;;  %v12977_v36 = vld [vmem:[%s14044_s22 + $0x170] sm:$0xff]  }
 0x105   : > { %v12978_v37 = vld [vmem:[%s14044_s22 + $0x6b0] sm:$0xff]  }
 0x10b   : > { %12196 = vmatmul.mubr.bf16.gmra.mxu0 %v12915_v38  ;;  %12532 = vmatmul.mubr.bf16.gmra.mxu1 %v12916_v39  ;;  %v12979_v38 = vld [vmem:[%s14044_s22 + $0x178] sm:$0xff]  }
 0x10c   : > { %12199 = vmatprep.mubr.bf16.mxu0 %v12917_v40  ;;  %12535 = vmatprep.mubr.bf16.mxu1 %v12918_v41  ;;  %v12980_v39 = vld [vmem:[%s14044_s22 + $0x6b8] sm:$0xff]   ;;  %v12981_v40 = vld [vmem:[%s14044_s22 + $0x180] sm:$0xff]  }
 0x10d   : > { %v12982_v41 = vld [vmem:[%s14044_s22 + $0x6c0] sm:$0xff]  }
 0x113   : > { %12200 = vmatmul.mubr.bf16.gmra.mxu0 %v12919_v42  ;;  %12536 = vmatmul.mubr.bf16.gmra.mxu1 %v12920_v43  ;;  %v12983_v42 = vld [vmem:[%s14044_s22 + $0x188] sm:$0xff]  }
 0x114   : > { %12203 = vmatprep.mubr.bf16.mxu0 %v12921_v44  ;;  %12539 = vmatprep.mubr.bf16.mxu1 %v12922_v45  ;;  %v12984_v43 = vld [vmem:[%s14044_s22 + $0x6c8] sm:$0xff]   ;;  %v12985_v44 = vld [vmem:[%s14044_s22 + $0x190] sm:$0xff]  }
 0x115   : > { %v12986_v45 = vld [vmem:[%s14044_s22 + $0x6d0] sm:$0xff]  }
 0x11b   : > { %12204 = vmatmul.mubr.bf16.gmra.mxu0 %v12923_v46  ;;  %12540 = vmatmul.mubr.bf16.gmra.mxu1 %v12924_v47 }
 0x11c   : > { %12207 = vmatprep.mubr.bf16.mxu0 %v12925_v48  ;;  %12543 = vmatprep.mubr.bf16.mxu1 %v12926_v49 }
 0x123   : > { %12208 = vmatmul.mubr.bf16.gmra.mxu0 %v12927_v50  ;;  %12544 = vmatmul.mubr.bf16.gmra.mxu1 %v12928_v51  ;;  %v12987_v50 = vld [vmem:[%s14044_s22 + $0x198] sm:$0xff]  }
 0x124   : > { %12211 = vmatprep.mubr.bf16.mxu0 %v12929_v52  ;;  %12547 = vmatprep.mubr.bf16.mxu1 %v12930_v53  ;;  %v12988_v51 = vld [vmem:[%s14044_s22 + $0x6d8] sm:$0xff]   ;;  %v12989_v52 = vld [vmem:[%s14044_s22 + $0x1a0] sm:$0xff]  }
 0x125   : > { %v12990_v53 = vld [vmem:[%s14044_s22 + $0x6e0] sm:$0xff]  }
 0x12b   : > { %12212 = vmatmul.mubr.bf16.gmra.mxu0 %v12931_v54  ;;  %12548 = vmatmul.mubr.bf16.gmra.mxu1 %v12932_v55 }
 0x12c   : > { %12215 = vmatprep.mubr.bf16.mxu0 %v12933_v56  ;;  %12551 = vmatprep.mubr.bf16.mxu1 %v12934_v57 }
 0x133   : > { %12216 = vmatmul.mubr.bf16.gmra.mxu0 %v12935_v58  ;;  %12552 = vmatmul.mubr.bf16.gmra.mxu1 %v12936_v59 }
 0x134   : > { %12219 = vmatprep.mubr.bf16.mxu0 %v12937_v60  ;;  %12555 = vmatprep.mubr.bf16.mxu1 %v12938_v61 }
 0x13b   : > { %12220 = vmatmul.mubr.bf16.gmra.mxu0 %v12939_v62  ;;  %12556 = vmatmul.mubr.bf16.gmra.mxu1 %v12940_v63 }
 0x13c   : > { %12223 = vmatprep.mubr.bf16.mxu0 %v12941_v0  ;;  %12559 = vmatprep.mubr.bf16.mxu1 %v12942_v1 }
 0x143   : > { %12224 = vmatmul.mubr.bf16.gmra.mxu0 %v12943_v2  ;;  %12560 = vmatmul.mubr.bf16.gmra.mxu1 %v12944_v3 }
 0x144   : > { %12227 = vmatprep.mubr.bf16.mxu0 %v12945_v4  ;;  %12563 = vmatprep.mubr.bf16.mxu1 %v12946_v5 }
 0x14b   : > { %12228 = vmatmul.mubr.bf16.gmra.mxu0 %v12947_v6  ;;  %12564 = vmatmul.mubr.bf16.gmra.mxu1 %v12948_v7 }
 0x14c   : > { %12231 = vmatprep.mubr.bf16.mxu0 %v12949_v8  ;;  %12567 = vmatprep.mubr.bf16.mxu1 %v12950_v9  ;;  %v12991_v8 = vld [vmem:[%s14044_s22 + $0x1a8] sm:$0xff]  }
 0x14d   : > { %v12992_v9 = vld [vmem:[%s14044_s22 + $0x6e8] sm:$0xff]  }
 0x153   : > { %12232 = vmatmul.mubr.bf16.gmra.mxu0 %v12951_v10  ;;  %12568 = vmatmul.mubr.bf16.gmra.mxu1 %v12952_v11 }
 0x154   : > { %12235 = vmatprep.mubr.bf16.mxu0 %v12953_v12  ;;  %12571 = vmatprep.mubr.bf16.mxu1 %v12954_v13 }
 0x15b   : > { %12236 = vmatmul.mubr.bf16.gmra.mxu0 %v12955_v14  ;;  %12572 = vmatmul.mubr.bf16.gmra.mxu1 %v12956_v15  ;;  %v12993_v14 = vld [vmem:[%s14044_s22 + $0x1b0] sm:$0xff]  }
 0x15c   : > { %12239 = vmatprep.mubr.bf16.mxu0 %v12957_v16  ;;  %12575 = vmatprep.mubr.bf16.mxu1 %v12958_v17  ;;  %v12994_v15 = vld [vmem:[%s14044_s22 + $0x6f0] sm:$0xff]  }
 0x163   : > { %12240 = vmatmul.mubr.bf16.gmra.mxu0 %v12959_v18  ;;  %12576 = vmatmul.mubr.bf16.gmra.mxu1 %v12960_v19 }
 0x164   : > { %12243 = vmatprep.mubr.bf16.mxu0 %v12961_v20  ;;  %12579 = vmatprep.mubr.bf16.mxu1 %v12962_v21 }
 0x16b   : > { %12244 = vmatmul.mubr.bf16.gmra.mxu0 %v12963_v22  ;;  %12580 = vmatmul.mubr.bf16.gmra.mxu1 %v12964_v23 }
 0x16c   : > { %12247 = vmatprep.mubr.bf16.mxu0 %v12965_v24  ;;  %12583 = vmatprep.mubr.bf16.mxu1 %v12966_v25 }
 0x173   : > { %12248 = vmatmul.mubr.bf16.gmra.mxu0 %v12967_v26  ;;  %12584 = vmatmul.mubr.bf16.gmra.mxu1 %v12968_v27  ;;  %v14176_v27 = vld [vmem:[#allocation7] ss:$0 sm:$0xff] }
 0x174   : > { %12251 = vmatprep.mubr.bf16.mxu0 %v12969_v28  ;;  %12587 = vmatprep.mubr.bf16.mxu1 %v12970_v29 }
 0x17b   : > { %12252 = vmatmul.mubr.bf16.gmra.mxu0 %v12971_v30  ;;  %12588 = vmatmul.mubr.bf16.gmra.mxu1 %v12972_v31 }
 0x17c   : > { %12255 = vmatprep.mubr.bf16.mxu0 %v12973_v32  ;;  %12591 = vmatprep.mubr.bf16.mxu1 %v12974_v33 }
 0x183   : > { %12256 = vmatmul.mubr.bf16.gmra.mxu0 %v12975_v34  ;;  %12592 = vmatmul.mubr.bf16.gmra.mxu1 %v12976_v35 }
 0x184   : > { %12259 = vmatprep.mubr.bf16.mxu0 %v12977_v36  ;;  %12595 = vmatprep.mubr.bf16.mxu1 %v12978_v37 }
 0x18b   : > { %12260 = vmatmul.mubr.bf16.gmra.mxu0 %v12979_v38  ;;  %12596 = vmatmul.mubr.bf16.gmra.mxu1 %v12980_v39 }
 0x18c   : > { %12263 = vmatprep.mubr.bf16.mxu0 %v12981_v40  ;;  %12599 = vmatprep.mubr.bf16.mxu1 %v12982_v41 }
 0x193   : > { %v12169_v46 = vpop.f32.mrf.mxu0  ;;  %12264 = vmatmul.mubr.bf16.gmra.mxu0 %v12983_v42  ;;  %v12505_v47 = vpop.f32.mrf.mxu1  ;;  %12600 = vmatmul.mubr.bf16.gmra.mxu1 %v12984_v43 }
 0x194   : > { %12267 = vmatprep.mubr.bf16.mxu0 %v12985_v44  ;;  %12603 = vmatprep.mubr.bf16.mxu1 %v12986_v45 }
 0x195   : > { %v2609_v48 = vpop.f32.mrf.mxu0  ;;  %v3953_v49 = vpop.f32.mrf.mxu1 }
 0x197   : > { %v12170_v54 = vpop.f32.mrf.mxu0  ;;  %v12506_v55 = vpop.f32.mrf.mxu1 }
 0x198   : > { %v4663_v56 = vmax.f32 %v12169_v46, %v12170_v54  ;;  %v5839_v57 = vmax.f32 %v12505_v47, %v12506_v55 }
 0x199   : > { %v2612_v58 = vpop.f32.mrf.mxu0  ;;  %v3956_v59 = vpop.f32.mrf.mxu1 }
 0x19a   : > { %v4664_v60 = vrot.slane %v4663_v56, 4  ;;  %v5840_v61 = vrot.slane %v5839_v57, 4  ;;  %v4656_v62 = vmax.f32 %v2609_v48, %v2612_v58  ;;  %v5832_v63 = vmax.f32 %v3953_v49, %v3956_v59 }
 0x19b   : > { %v12173_v0 = vpop.f32.mrf.mxu0  ;;  %12268 = vmatmul.mubr.bf16.gmra.mxu0 %v12987_v50  ;;  %v12509_v1 = vpop.f32.mrf.mxu1  ;;  %12604 = vmatmul.mubr.bf16.gmra.mxu1 %v12988_v51 }
 0x19c   : > { %v4665_v2 = vmax.f32 %v4663_v56, %v4664_v60  ;;  %v5841_v3 = vmax.f32 %v5839_v57, %v5840_v61  ;;  %v4657_v4 = vrot.slane %v4656_v62, 4  ;;  %v5833_v5 = vrot.slane %v5832_v63, 4  ;;  %12271 = vmatprep.mubr.bf16.mxu0 %v12989_v52  ;;  %12607 = vmatprep.mubr.bf16.mxu1 %v12990_v53  ;;  %v12995_v56 = vld [vmem:[%s14044_s22 + $0x1b8] sm:$0xff]  }
 0x19d   : > { %v2625_v6 = vpop.f32.mrf.mxu0  ;;  %v3969_v7 = vpop.f32.mrf.mxu1  ;;  %v12996_v57 = vld [vmem:[%s14044_s22 + $0x6f8] sm:$0xff]  }
 0x19e   : > { %v4666_v10 = vrot.slane %v4665_v2, 2  ;;  %v5842_v11 = vrot.slane %v5841_v3, 2  ;;  %v4658_v12 = vmax.f32 %v4656_v62, %v4657_v4  ;;  %v5834_v13 = vmax.f32 %v5832_v63, %v5833_v5  ;;  %v12997_v62 = vld [vmem:[%s14044_s22 + $0x1c0] sm:$0xff]  }
 0x19f   : > { %v12174_v16 = vpop.f32.mrf.mxu0  ;;  %v12510_v17 = vpop.f32.mrf.mxu1  ;;  %v12998_v63 = vld [vmem:[%s14044_s22 + $0x700] sm:$0xff]  }
 0x1a0   : > { %v4667_v18 = vmax.f32 %v4665_v2, %v4666_v10  ;;  %v5843_v19 = vmax.f32 %v5841_v3, %v5842_v11  ;;  %v4659_v20 = vrot.slane %v4658_v12, 2  ;;  %v5835_v21 = vrot.slane %v5834_v13, 2 }
 0x1a1   : > { %v4677_v22 = vmax.f32 %v12173_v0, %v12174_v16  ;;  %v5853_v23 = vmax.f32 %v12509_v1, %v12510_v17  ;;  %v2628_v24 = vpop.f32.mrf.mxu0  ;;  %v3972_v25 = vpop.f32.mrf.mxu1 }
 0x1a2   : > { %v4668_v26 = vrot.slane %v4667_v18, 1  ;;  %v5844_v28 = vrot.slane %v5843_v19, 1  ;;  %v4660_v29 = vmax.f32 %v4658_v12, %v4659_v20  ;;  %v5836_v30 = vmax.f32 %v5834_v13, %v5835_v21 }
 0x1a3   : > { %v4678_v31 = vrot.slane %v4677_v22, 4  ;;  %v5854_v32 = vrot.slane %v5853_v23, 4  ;;  %v4670_v33 = vmax.f32 %v2625_v6, %v2628_v24  ;;  %v5846_v34 = vmax.f32 %v3969_v7, %v3972_v25  ;;  %v14178_v35 = vpop.f32.mrf.mxu0  ;;  %12272 = vmatmul.mubr.bf16.gmra.mxu0 %v12991_v8  ;;  %v14180_v36 = vpop.f32.mrf.mxu1  ;;  %12608 = vmatmul.mubr.bf16.gmra.mxu1 %v12992_v9 }
 0x1a4   : > { %v4669_v37 = vmax.f32 %v4667_v18, %v4668_v26  ;;  %v5845_v38 = vmax.f32 %v5843_v19, %v5844_v28  ;;  %v4661_v39 = vrot.slane %v4660_v29, 1  ;;  %v5837_v40 = vrot.slane %v5836_v30, 1  ;;  %12275 = vmatprep.mubr.bf16.mxu0 %v12993_v14  ;;  %12611 = vmatprep.mubr.bf16.mxu1 %v12994_v15  ;;  %v12999_v26 = vld [vmem:[%s14044_s22 + $0x1c8] sm:$0xff]  }
 0x1a5   : > { %v4679_v41 = vmax.f32 %v4677_v22, %v4678_v31  ;;  %v5855_v42 = vmax.f32 %v5853_v23, %v5854_v32  ;;  %v4671_v43 = vrot.slane %v4670_v33, 4  ;;  %v5847_v44 = vrot.slane %v5846_v34, 4  ;;  %v14182_v45 = vpop.f32.mrf.mxu0  ;;  %v14184_v46 = vpop.f32.mrf.mxu1  ;;  %v13000_v28 = vld [vmem:[%s14044_s22 + $0x708] sm:$0xff]   ;;  %v13001_v32 = vld [vmem:[%s14044_s22 + $0x1d0] sm:$0xff]  }
 0x1a6   : > { %v6456_v47 = vadd.f32 %v14176_v27, %v4669_v37  ;;  %v6624_v48 = vadd.f32 %v14176_v27, %v5845_v38  ;;  %v4662_v49 = vmax.f32 %v4660_v29, %v4661_v39  ;;  %v5838_v61 = vmax.f32 %v5836_v30, %v5837_v40 }
 0x1a7   : > { %v4680_v50 = vrot.slane %v4679_v41, 2  ;;  %v5856_v51 = vrot.slane %v5855_v42, 2  ;;  %v4672_v52 = vmax.f32 %v4670_v33, %v4671_v43  ;;  %v5848_v53 = vmax.f32 %v5846_v34, %v5847_v44  ;;  %v12178_v54 = vpop.f32.mrf.mxu0  ;;  %v12514_v55 = vpop.f32.mrf.mxu1  ;;  %v13002_v33 = vld [vmem:[%s14044_s22 + $0x710] sm:$0xff]  }
 0x1a8   : > { %v14190_v58 = vmax.f32 %v6456_v47, 0.0  ;;  %v14192_v59 = vmax.f32 %v6624_v48, 0.0  ;;  %v6455_v60 = vadd.f32 %v14176_v27, %v4662_v49  ;;  %v6623_v14 = vadd.f32 %v14176_v27, %v5838_v61 }
 0x1a9   : > { %v4681_v0 = vmax.f32 %v4679_v41, %v4680_v50  ;;  %v5857_v1 = vmax.f32 %v5855_v42, %v5856_v51  ;;  %v4673_v2 = vrot.slane %v4672_v52, 2  ;;  %v5849_v3 = vrot.slane %v5848_v53, 2  ;;  %v2644_v4 = vpop.f32.mrf.mxu0  ;;  %v3988_v5 = vpop.f32.mrf.mxu1 }
 0x1aa   : > { %20466 = vst [vmem:[#allocation24_spill] sm:$0xff] %v14190_v58  ;;  %20467 = vst [vmem:[#allocation25_spill] sm:$0xff] %v14192_v59  ;;  %v6968_v12 = vpack.c.bf16 %v14190_v58, %v14190_v58  ;;  %v7136_v13 = vpack.c.bf16 %v14192_v59, %v14192_v59  ;;  %v14206_v15 = vmax.f32 %v6455_v60, 0.0  ;;  %v14214_v29 = vmax.f32 %v6623_v14, 0.0 }
 0x1ab   : > { %v4682_v6 = vrot.slane %v4681_v0, 1  ;;  %v5858_v7 = vrot.slane %v5857_v1, 1  ;;  %v4674_v8 = vmax.f32 %v4672_v52, %v4673_v2  ;;  %v5850_v9 = vmax.f32 %v5848_v53, %v5849_v3  ;;  %v14197_v10 = vpop.f32.mrf.mxu0  ;;  %12276 = vmatmul.mubr.bf16.gmra.mxu0 %v12995_v56  ;;  %v14199_v11 = vpop.f32.mrf.mxu1  ;;  %12612 = vmatmul.mubr.bf16.gmra.mxu1 %v12996_v57 }
 0x1ac   : > { %12279 = vmatprep.mubr.bf16.mxu0 %v12997_v62  ;;  %12615 = vmatprep.mubr.bf16.mxu1 %v12998_v63  ;;  %20468 = vst [vmem:[#allocation26_spill] sm:$0xff] %v14206_v15  ;;  %20469 = vst [vmem:[#allocation27_spill] sm:$0xff] %v14214_v29  ;;  %v4691_v30 = vmax.f32 %v14178_v35, %v12178_v54  ;;  %v5867_v31 = vmax.f32 %v14180_v36, %v12514_v55  ;;  %v14220_v34 = vunpack.c.l.b16 %v6968_v12 }
 0x1ad   : > { %v4683_v16 = vmax.f32 %v4681_v0, %v4682_v6  ;;  %v4675_v17 = vrot.slane %v4674_v8, 1  ;;  %v5851_v18 = vrot.slane %v5850_v9, 1  ;;  %v14208_v19 = vpop.f32.mrf.mxu0  ;;  %v14210_v20 = vpop.f32.mrf.mxu1  ;;  %v5859_v21 = vmax.f32 %v5857_v1, %v5858_v7  ;;  %v13003_v7 = vld [vmem:[%s14044_s22 + $0x1d8] sm:$0xff]  }
 0x1ae   : > { %v14222_v37 = vunpack.c.l.b16 %v7136_v13  ;;  %v6967_v38 = vpack.c.bf16 %v14206_v15, %v14206_v15  ;;  %v4692_v42 = vrot.slane %v4691_v30, 4  ;;  %v5868_v43 = vrot.slane %v5867_v31, 4 }
 0x1af   : > { %v4676_v22 = vmax.f32 %v4674_v8, %v4675_v17  ;;  %v5852_v23 = vmax.f32 %v5850_v9, %v5851_v18  ;;  %v12182_v24 = vpop.f32.mrf.mxu0  ;;  %v12518_v25 = vpop.f32.mrf.mxu1  ;;  %v6458_v39 = vadd.f32 %v14176_v27, %v4683_v16  ;;  %v4684_v35 = vmax.f32 %v14182_v45, %v2644_v4  ;;  %v13004_v8 = vld [vmem:[%s14044_s22 + $0x718] sm:$0xff]   ;;  %v13005_v16 = vld [vmem:[%s14044_s22 + $0x1e0] sm:$0xff]  }
 0x1b0   : > { %v5860_v36 = vmax.f32 %v14184_v46, %v3988_v5  ;;  %v6626_v44 = vadd.f32 %v14176_v27, %v5859_v21  ;;  %v4693_v51 = vmax.f32 %v4691_v30, %v4692_v42  ;;  %v5869_v52 = vmax.f32 %v5867_v31, %v5868_v43  ;;  %v13006_v17 = vld [vmem:[%s14044_s22 + $0x720] sm:$0xff]  }
 0x1b1   : > { %v14227_v40 = vpop.f32.mrf.mxu0  ;;  %v14229_v41 = vpop.f32.mrf.mxu1  ;;  %v6457_v47 = vadd.f32 %v14176_v27, %v4676_v22  ;;  %v6625_v48 = vadd.f32 %v14176_v27, %v5852_v23  ;;  %v4685_v53 = vrot.slane %v4684_v35, 4  ;;  %v7763_v45 = vrot.slane %v14220_v34, 7 }
 0x1b2   : > { %v5861_v54 = vrot.slane %v5860_v36, 4  ;;  %v8064_v46 = vrot.slane %v14222_v37, 7  ;;  %v7135_v55 = vpack.c.bf16 %v14214_v29, %v14214_v29  ;;  %v14244_v56 = vmax.f32 %v6458_v39, 0.0 }
 0x1b3   : > { %v14236_v49 = vpop.f32.mrf.mxu0  ;;  %12280 = vmatmul.mubr.bf16.gmra.mxu0 %v12999_v26  ;;  %v14238_v50 = vpop.f32.mrf.mxu1  ;;  %12616 = vmatmul.mubr.bf16.gmra.mxu1 %v13000_v28  ;;  %v4694_v61 = vrot.slane %v4693_v51, 2  ;;  %v5870_v62 = vrot.slane %v5869_v52, 2  ;;  %v4686_v63 = vmax.f32 %v4684_v35, %v4685_v53  ;;  %v14250_v1 = vunpack.c.l.b16 %v6967_v38 }
 0x1b4   : > { %12283 = vmatprep.mubr.bf16.mxu0 %v13001_v32  ;;  %12619 = vmatprep.mubr.bf16.mxu1 %v13002_v33  ;;  %20470 = vst [vmem:[#allocation28_spill] sm:$0xff] %v14244_v56  ;;  %v5862_v0 = vmax.f32 %v5860_v36, %v5861_v54  ;;  %v14252_v2 = vmax.f32 %v6626_v44, 0.0  ;;  %v14254_v3 = vmax.f32 %v6457_v47, 0.0  ;;  %v14256_v4 = vmax.f32 %v6625_v48, 0.0 }
 0x1b5   : > { %v14246_v57 = vpop.f32.mrf.mxu0  ;;  %v14248_v60 = vpop.f32.mrf.mxu1  ;;  %v4695_v9 = vmax.f32 %v4693_v51, %v4694_v61  ;;  %v5871_v12 = vmax.f32 %v5869_v52, %v5870_v62  ;;  %v4687_v13 = vrot.slane %v4686_v63, 2  ;;  %v14266_v18 = vunpack.c.l.b16 %v7135_v55 }
 0x1b6   : > { %20471 = vst [vmem:[#allocation29_spill] sm:$0xff] %v14252_v2  ;;  %20472 = vst [vmem:[#allocation30_spill] sm:$0xff] %v14254_v3  ;;  %v5863_v14 = vrot.slane %v5862_v0, 2  ;;  %v6970_v21 = vpack.c.bf16 %v14244_v56, %v14244_v56  ;;  %v4705_v22 = vmax.f32 %v14197_v10, %v12182_v24  ;;  %v5881_v23 = vmax.f32 %v14199_v11, %v12518_v25 }
 0x1b7   : > { %20473 = vst [vmem:[#allocation31_spill] sm:$0xff] %v14256_v4  ;;  %v14258_v5 = vpop.f32.mrf.mxu0  ;;  %v14260_v6 = vpop.f32.mrf.mxu1  ;;  %v4696_v30 = vrot.slane %v4695_v9, 1  ;;  %v5872_v31 = vrot.slane %v5871_v12, 1  ;;  %v4688_v32 = vmax.f32 %v4686_v63, %v4687_v13  ;;  %v7138_v38 = vpack.c.bf16 %v14252_v2, %v14252_v2 }
 0x1b8   : > { %v5864_v33 = vmax.f32 %v5862_v0, %v5863_v14  ;;  %v6969_v39 = vpack.c.bf16 %v14254_v3, %v14254_v3  ;;  %v4706_v42 = vrot.slane %v4705_v22, 4  ;;  %v5882_v43 = vrot.slane %v5881_v23, 4 }
 0x1b9   : > { %v14272_v26 = vpop.f32.mrf.mxu0  ;;  %v14274_v28 = vpop.f32.mrf.mxu1  ;;  %v7137_v11 = vpack.c.bf16 %v14256_v4, %v14256_v4  ;;  %v4697_v24 = vmax.f32 %v4695_v9, %v4696_v30  ;;  %v5873_v25 = vmax.f32 %v5871_v12, %v5872_v31  ;;  %v4689_v36 = vrot.slane %v4688_v32, 1  ;;  %v13008_v12 = vld [vmem:[%s14044_s22 + $0x728] sm:$0xff]   ;;  %v13051_v4 = vld [vmem:[#allocation8 + $0x74] ss:$8 sps:$4 sm:$0xff]  }
 0x1ba   : > { %v5865_v44 = vrot.slane %v5864_v33, 1  ;;  %v4707_v47 = vmax.f32 %v4705_v22, %v4706_v42  ;;  %v5883_v48 = vmax.f32 %v5881_v23, %v5882_v43  ;;  %v4698_v51 = vmax.f32 %v14208_v19, %v14227_v40  ;;  %v13007_v40 = vld [vmem:[%s14044_s22 + $0x1e8] sm:$0xff]   ;;  %v13009_v22 = vld [vmem:[%s14044_s22 + $0x1f0] sm:$0xff]   ;;  %8330 = vmatprep.subr.bf16.mxu1 %v13051_v4 }
 0x1bb   : > { %v14280_v35 = vpop.f32.mrf.mxu0  ;;  %12284 = vmatmul.mubr.bf16.gmra.mxu0 %v13003_v7  ;;  %v14282_v10 = vpop.f32.mrf.mxu1  ;;  %12620 = vmatmul.mubr.bf16.gmra.mxu1 %v13004_v8  ;;  %v6460_v54 = vadd.f32 %v14176_v27, %v4697_v24  ;;  %v6628_v55 = vadd.f32 %v14176_v27, %v5873_v25  ;;  %v4690_v61 = vmax.f32 %v4688_v32, %v4689_v36  ;;  %v7509_v13 = vunpack.c.l.b16 %v6969_v39  ;;  %v13010_v23 = vld [vmem:[%s14044_s22 + $0x730] sm:$0xff]  }
 0x1bc   : > { %12287 = vmatprep.mubr.bf16.mxu0 %v13005_v16  ;;  %12623 = vmatprep.mubr.bf16.mxu1 %v13006_v17  ;;  %v5874_v62 = vmax.f32 %v14210_v20, %v14229_v41  ;;  %v5866_v63 = vmax.f32 %v5864_v33, %v5865_v44  ;;  %v4708_v0 = vrot.slane %v4707_v47, 2  ;;  %v5884_v7 = vrot.slane %v5883_v48, 2 }
 0x1bd   : > { %v14288_v52 = vpop.f32.mrf.mxu0  ;;  %v14290_v53 = vpop.f32.mrf.mxu1  ;;  %v4699_v8 = vrot.slane %v4698_v51, 4  ;;  %v14302_v14 = vmax.f32 %v6460_v54, 0.0  ;;  %v6459_v16 = vadd.f32 %v14176_v27, %v4690_v61  ;;  %v14307_v20 = vmax.f32 %v6628_v55, 0.0 }
 0x1be   : > { %v5875_v17 = vrot.slane %v5874_v62, 4  ;;  %v4709_v41 = vmax.f32 %v4707_v47, %v4708_v0  ;;  %v5885_v30 = vmax.f32 %v5883_v48, %v5884_v7  ;;  %v7510_v42 = vunpack.c.l.b16 %v6970_v21 }
 0x1bf   : > { %v14296_v9 = vpop.f32.mrf.mxu0  ;;  %v14298_v19 = vpop.f32.mrf.mxu1  ;;  %20474 = vst [vmem:[#allocation32_spill] sm:$0xff] %v14302_v14  ;;  %20475 = vst [vmem:[#allocation33_spill] sm:$0xff] %v14307_v20  ;;  %v4700_v31 = vmax.f32 %v4698_v51, %v4699_v8  ;;  %v7677_v43 = vunpack.c.l.b16 %v7137_v11  ;;  %v6627_v39 = vadd.f32 %v14176_v27, %v5866_v63  ;;  %v14314_v25 = vmax.f32 %v6459_v16, 0.0  ;;  %v13011_v16 = vld [vmem:[%s14044_s22 + $0x1f8] sm:$0xff]  }
 0x1c0   : > { %v5876_v24 = vmax.f32 %v5874_v62, %v5875_v17  ;;  %v4710_v36 = vrot.slane %v4709_v41, 1  ;;  %v5886_v44 = vrot.slane %v5885_v30, 1  ;;  %v7765_v21 = vsel %vm7764_vm0, %v7763_v45, %v14250_v1 }
 0x1c1   : > { %v14309_v32 = vpop.f32.mrf.mxu0  ;;  %v14311_v33 = vpop.f32.mrf.mxu1  ;;  %20476 = vst [vmem:[#allocation34_spill] sm:$0xff] %v14314_v25  ;;  %v4701_v54 = vrot.slane %v4700_v31, 2  ;;  %v8065_v11 = vsel %vm7764_vm0, %v8064_v46, %v14266_v18  ;;  %v7766_v48 = vrot.slane %v7509_v13, 6  ;;  %v14331_v55 = vunpack.c.l.b16 %v7138_v38 }
 0x1c2   : > { %v5877_v51 = vrot.slane %v5876_v24, 2  ;;  %v6972_v34 = vpack.c.bf16 %v14302_v14, %v14302_v14  ;;  %v7140_v45 = vpack.c.bf16 %v14307_v20, %v14307_v20  ;;  %v7769_v18 = vrot.slane %v7510_v42, 5 }
 0x1c3   : > { %v14316_v61 = vpop.f32.mrf.mxu0  ;;  %12288 = vmatmul.mubr.bf16.gmra.mxu0 %v13007_v40  ;;  %v14318_v47 = vpop.f32.mrf.mxu1  ;;  %12624 = vmatmul.mubr.bf16.gmra.mxu1 %v13008_v12  ;;  %20477 = vst [vmem:[#allocation35_spill] sm:$0xff] %v14331_v55  ;;  %v4702_v1 = vmax.f32 %v4700_v31, %v4701_v54  ;;  %v8066_v62 = vrot.slane %v7677_v43, 6  ;;  %v4711_v63 = vmax.f32 %v4709_v41, %v4710_v36  ;;  %v14343_v7 = vmax.f32 %v6627_v39, 0.0  ;;  %v13012_v31 = vld [vmem:[%s14044_s22 + $0x738] sm:$0xff]   ;;  %v13014_v54 = vld [vmem:[%s14044_s22 + $0x740] sm:$0xff]  }
 0x1c4   : > { %12291 = vmatprep.mubr.bf16.mxu0 %v13009_v22  ;;  %12627 = vmatprep.mubr.bf16.mxu1 %v13010_v23  ;;  %v5878_v0 = vmax.f32 %v5876_v24, %v5877_v51  ;;  %v6971_v38 = vpack.c.bf16 %v14314_v25, %v14314_v25  ;;  %v5887_v8 = vmax.f32 %v5885_v30, %v5886_v44  ;;  %v14357_v42 = vunpack.c.l.b16 %v6972_v34  ;;  %v13013_v44 = vld [vmem:[%s14044_s22 + $0x200] sm:$0xff]   ;;  %v13016_v30 = vld [vmem:[%s14044_s22 + $0x748] sm:$0xff]  }
 0x1c5   : > { %v14337_v37 = vpop.f32.mrf.mxu0  ;;  %v14339_v46 = vpop.f32.mrf.mxu1  ;;  %20478 = vst [vmem:[#allocation36_spill] sm:$0xff] %v14343_v7  ;;  %v4703_v40 = vrot.slane %v4702_v1, 1  ;;  %v7768_v17 = vsel %vm7767_vm1, %v7766_v48, %v7765_v21  ;;  %v4719_v23 = vmax.f32 %v14236_v49, %v14258_v5  ;;  %v5895_v41 = vmax.f32 %v14238_v50, %v14260_v6 }
 0x1c6   : > { %v5879_v22 = vrot.slane %v5878_v0, 1  ;;  %v14359_v43 = vunpack.c.l.b16 %v7140_v45  ;;  %v14368_v21 = vsel %vm7767_vm1, %v8066_v62, %v8065_v11  ;;  %v6462_v49 = vadd.f32 %v14176_v27, %v4711_v63 }
 0x1c7   : > { %v14345_v12 = vpop.f32.mrf.mxu0  ;;  %v14347_v13 = vpop.f32.mrf.mxu1  ;;  %v4704_v39 = vmax.f32 %v4702_v1, %v4703_v40  ;;  %20480 = vst [vmem:[#allocation38_spill] sm:$0xff] %v14368_v21  ;;  %v4720_v50 = vrot.slane %v4719_v23, 4  ;;  %v5896_v5 = vrot.slane %v5895_v41, 4  ;;  %v14371_v6 = vunpack.c.l.b16 %v6971_v38 }
 0x1c8   : > { %20479 = vst [vmem:[#allocation37_spill] sm:$0xff] %v14359_v43  ;;  %v14374_v48 = vsel %vm7770_vm2, %v7769_v18, %v7768_v17  ;;  %v7139_v51 = vpack.c.bf16 %v14343_v7, %v14343_v7  ;;  %v6630_v34 = vadd.f32 %v14176_v27, %v5887_v8  ;;  %v5880_v11 = vmax.f32 %v5878_v0, %v5879_v22  ;;  %v13017_v18 = vld [vmem:[%s14044_s22 + $0x210] sm:$0xff]  }
 0x1c9   : > { %v14361_v24 = vpop.f32.mrf.mxu0  ;;  %v14363_v36 = vpop.f32.mrf.mxu1  ;;  %v4721_v62 = vmax.f32 %v4719_v23, %v4720_v50  ;;  %v5897_v63 = vmax.f32 %v5895_v41, %v5896_v5  ;;  %v4712_v38 = vmax.f32 %v14246_v57, %v14272_v26  ;;  %v6461_v17 = vadd.f32 %v14176_v27, %v4704_v39 }
 0x1ca   : > { %v5888_v8 = vmax.f32 %v14248_v60, %v14274_v28  ;;  %v14394_v57 = vmax.f32 %v6462_v49, 0.0  ;;  %v7772_v41 = vrot.slane %v14371_v6, 4  ;;  %v14399_v39 = vmax.f32 %v6630_v34, 0.0 }
 0x1cb   : > { %v14379_v45 = vpop.f32.mrf.mxu0  ;;  %12292 = vmatmul.mubr.bf16.gmra.mxu0 %v13011_v16  ;;  %v14381_v1 = vpop.f32.mrf.mxu1  ;;  %12628 = vmatmul.mubr.bf16.gmra.mxu1 %v13012_v31  ;;  %v4722_v26 = vrot.slane %v4721_v62, 2  ;;  %v5898_v22 = vrot.slane %v5897_v63, 2  ;;  %v4713_v23 = vrot.slane %v4712_v38, 4  ;;  %v14397_v31 = vunpack.c.l.b16 %v7139_v51 }
 0x1cc   : > { %12295 = vmatprep.mubr.bf16.mxu0 %v13013_v44  ;;  %12631 = vmatprep.mubr.bf16.mxu1 %v13014_v54  ;;  %20481 = vst [vmem:[#allocation39_spill] sm:$0xff] %v14394_v57  ;;  %20483 = vst [vmem:[#allocation41_spill] sm:$0xff] %v14399_v39  ;;  %v5889_v60 = vrot.slane %v5888_v8, 4  ;;  %v13015_v44 = vld [vmem:[%s14044_s22 + $0x208] sm:$0xff]   ;;  %v6629_v54 = vadd.f32 %v14176_v27, %v5880_v11  ;;  %v14409_v20 = vmax.f32 %v6461_v17, 0.0  ;;  %v13018_v11 = vld [vmem:[%s14044_s22 + $0x750] sm:$0xff]  }
 0x1cd   : > { %v14390_v16 = vpop.f32.mrf.mxu0  ;;  %v14392_v0 = vpop.f32.mrf.mxu1  ;;  %20482 = vst [vmem:[#allocation40_spill] sm:$0xff] %v14397_v31  ;;  %v4723_v49 = vmax.f32 %v4721_v62, %v4722_v26  ;;  %v5899_v5 = vmax.f32 %v5897_v63, %v5898_v22  ;;  %v4714_v40 = vmax.f32 %v4712_v38, %v4713_v23  ;;  %v4733_v51 = vmax.f32 %v14280_v35, %v14296_v9 }
 0x1ce   : > { %20484 = vst [vmem:[#allocation42_spill] sm:$0xff] %v14409_v20  ;;  %v5890_v6 = vmax.f32 %v5888_v8, %v5889_v60  ;;  %v5909_v34 = vmax.f32 %v14282_v10, %v14298_v19  ;;  %v6974_v62 = vpack.c.bf16 %v14394_v57, %v14394_v57  ;;  %v7142_v8 = vpack.c.bf16 %v14399_v39, %v14399_v39 }
 0x1cf   : > { %v14401_v28 = vpop.f32.mrf.mxu0  ;;  %v14403_v50 = vpop.f32.mrf.mxu1  ;;  %v4724_v63 = vrot.slane %v4723_v49, 1  ;;  %v5900_v38 = vrot.slane %v5899_v5, 1  ;;  %v4715_v17 = vrot.slane %v4714_v40, 2  ;;  %v4734_v22 = vrot.slane %v4733_v51, 4 }
 0x1d0   : > { %v5891_v26 = vrot.slane %v5890_v6, 2  ;;  %v5910_v35 = vrot.slane %v5909_v34, 4  ;;  %v14428_v19 = vmax.f32 %v6629_v54, 0.0  ;;  %v6973_v59 = vpack.c.bf16 %v14409_v20, %v14409_v20  ;;  %v13049_v54 = vld [vmem:[#allocation8 + $0x70] ss:$8 sps:$4 sm:$0xff]  }
 0x1d1   : > { %v14415_v29 = vpop.f32.mrf.mxu0  ;;  %v14417_v7 = vpop.f32.mrf.mxu1  ;;  %v4725_v23 = vmax.f32 %v4723_v49, %v4724_v63  ;;  %v5901_v60 = vmax.f32 %v5899_v5, %v5900_v38  ;;  %v4716_v2 = vmax.f32 %v4714_v40, %v4715_v17  ;;  %v4735_v57 = vmax.f32 %v4733_v51, %v4734_v22  ;;  %v13019_v38 = vld [vmem:[%s14044_s22 + $0x218] sm:$0xff]   ;;  %8331 = vmatpush1.bf16.msra.mxu1 %v13049_v54  ;;  %v13021_v22 = vld [vmem:[%s14044_s22 + $0x220] sm:$0xff]  }
 0x1d2   : > { %20485 = vst [vmem:[#allocation43_spill] sm:$0xff] %v14428_v19  ;;  %v5892_v39 = vmax.f32 %v5890_v6, %v5891_v26  ;;  %v5911_v14 = vmax.f32 %v5909_v34, %v5910_v35  ;;  %v5902_v34 = vmax.f32 %v14290_v53, %v14311_v33  ;;  %v7774_v17 = vsel %vm7773_vm3, %v7772_v41, %v14374_v48  ;;  %v13020_v26 = vld [vmem:[%s14044_s22 + $0x758] sm:$0xff]   ;;  %v13054_v53 = vld [vmem:[#allocation8 + $0x64] ss:$8 sps:$4 sm:$0xff]   ;;  %v13052_v41 = vld [vmem:[#allocation8 + $0x60] ss:$8 sps:$4 sm:$0xff]  }
 0x1d3   : > { %v14424_v9 = vpop.f32.mrf.mxu0  ;;  %12296 = vmatmul.mubr.bf16.gmra.mxu0 %v13015_v44  ;;  %v14426_v10 = vpop.f32.mrf.mxu1  ;;  %12632 = vmatmul.mubr.bf16.gmra.mxu1 %v13016_v30  ;;  %v6464_v49 = vadd.f32 %v14176_v27, %v4725_v23  ;;  %v6632_v40 = vadd.f32 %v14176_v27, %v5901_v60  ;;  %v4717_v30 = vrot.slane %v4716_v2, 1  ;;  %v4736_v6 = vrot.slane %v4735_v57, 2  ;;  %v13022_v48 = vld [vmem:[%s14044_s22 + $0x760] sm:$0xff]  }
 0x1d4   : > { %12299 = vmatprep.mubr.bf16.mxu0 %v13017_v18  ;;  %12635 = vmatprep.mubr.bf16.mxu1 %v13018_v11  ;;  %v4726_v18 = vmax.f32 %v14288_v52, %v14309_v32  ;;  %v5893_v5 = vrot.slane %v5892_v39, 1  ;;  %v5912_v51 = vrot.slane %v5911_v14, 2  ;;  %v7141_v4 = vpack.c.bf16 %v14428_v19, %v14428_v19 }
 0x1d5   : > { %v14432_v25 = vpop.f32.mrf.mxu0  ;;  %v14434_v44 = vpop.f32.mrf.mxu1  ;;  %v14451_v52 = vmax.f32 %v6464_v49, 0.0  ;;  %v14455_v33 = vmax.f32 %v6632_v40, 0.0  ;;  %v4737_v35 = vmax.f32 %v4735_v57, %v4736_v6  ;;  %v5903_v60 = vrot.slane %v5902_v34, 4  ;;  %8332 = vmatprep.subr.bf16.mxu1 %v13054_v53 }
 0x1d6   : > { %v4727_v32 = vrot.slane %v4726_v18, 4  ;;  %v5913_v23 = vmax.f32 %v5911_v14, %v5912_v51  ;;  %v14462_v56 = vunpack.c.l.b16 %v6974_v62  ;;  %v14464_v19 = vunpack.c.l.b16 %v7142_v8  ;;  %8333 = vmatpush1.bf16.msra.mxu1 %v13052_v41 }
 0x1d7   : > { %v14442_v63 = vpop.f32.mrf.mxu0  ;;  %v14444_v11 = vpop.f32.mrf.mxu1  ;;  %20486 = vst [vmem:[#allocation44_spill] sm:$0xff] %v14451_v52  ;;  %20487 = vst [vmem:[#allocation45_spill] sm:$0xff] %v14455_v33  ;;  %v7513_v49 = vunpack.c.l.b16 %v6973_v59  ;;  %v4718_v3 = vmax.f32 %v4716_v2, %v4717_v30  ;;  %v5894_v58 = vmax.f32 %v5892_v39, %v5893_v5  ;;  %v4738_v40 = vrot.slane %v4737_v35, 1 }
 0x1d8   : > { %20488 = vst [vmem:[#allocation46_spill] sm:$0xff] %v14462_v56  ;;  %20489 = vst [vmem:[#allocation47_spill] sm:$0xff] %v14464_v19  ;;  %v4728_v15 = vmax.f32 %v4726_v18, %v4727_v32  ;;  %v5904_v43 = vmax.f32 %v5902_v34, %v5903_v60  ;;  %v20490_v62 = vrot.slane %v14357_v42, 3  ;;  %v14474_v51 = vunpack.c.l.b16 %v7141_v4  ;;  %v13061_v42 = vld [vmem:[#allocation8 + $0x54] ss:$8 sps:$4 sm:$0xff]  }
 0x1d9   : > { %v14457_v20 = vpop.f32.mrf.mxu0  ;;  %v14459_v54 = vpop.f32.mrf.mxu1  ;;  %v6976_v2 = vpack.c.bf16 %v14451_v52, %v14451_v52  ;;  %v7144_v39 = vpack.c.bf16 %v14455_v33, %v14455_v33  ;;  %v5914_v30 = vrot.slane %v5913_v23, 1  ;;  %v4739_v4 = vmax.f32 %v4737_v35, %v4738_v40  ;;  %8334 = vmatprep.subr.bf16.mxu1 %v13061_v42  ;;  %v13024_v35 = vld [vmem:[%s14044_s22 + $0x768] sm:$0xff]   ;;  %v13025_v42 = vld [vmem:[%s14044_s22 + $0x230] sm:$0xff]  }
 0x1da   : > { %v7777_v8 = vsel %vm7776_vm4, %v20490_v62, %v7774_v17  ;;  %20491 = vst [vmem:[#allocation48_spill] sm:$0xff] %v14474_v51  ;;  %v4729_v59 = vrot.slane %v4728_v15, 2  ;;  %v5905_v18 = vrot.slane %v5904_v43, 2  ;;  %v6463_v53 = vadd.f32 %v14176_v27, %v4718_v3  ;;  %v13026_v17 = vld [vmem:[%s14044_s22 + $0x770] sm:$0xff]   ;;  %v13062_v19 = vld [vmem:[#allocation8 + $0x40] ss:$8 sps:$4 sm:$0xff]  }
 0x1db   : > { %v14466_v57 = vpop.f32.mrf.mxu0  ;;  %12300 = vmatmul.mubr.bf16.gmra.mxu0 %v13019_v38  ;;  %v14468_v14 = vpop.f32.mrf.mxu1  ;;  %12636 = vmatmul.mubr.bf16.gmra.mxu1 %v13020_v26  ;;  %v13059_v26 = vld [vmem:[#allocation8 + $0x50] ss:$8 sps:$4 sm:$0xff]   ;;  %v6631_v60 = vadd.f32 %v14176_v27, %v5894_v58  ;;  %v5923_v3 = vmax.f32 %v14318_v47, %v14347_v13  ;;  %v14499_v58 = vunpack.c.l.b16 %v6976_v2  ;;  %v6466_v33 = vadd.f32 %v14176_v27, %v4739_v4  ;;  %v13064_v47 = vld [vmem:[#allocation8 + $0x44] ss:$8 sps:$4 sm:$0xff]  }
 0x1dc   : > { %12303 = vmatprep.mubr.bf16.mxu0 %v13021_v22  ;;  %12639 = vmatprep.mubr.bf16.mxu1 %v13022_v48  ;;  %v4730_v32 = vmax.f32 %v4728_v15, %v4729_v59  ;;  %v7778_v22 = vrot.slane %v7513_v49, 2  ;;  %v5906_v41 = vmax.f32 %v5904_v43, %v5905_v18  ;;  %v13023_v48 = vld [vmem:[%s14044_s22 + $0x228] sm:$0xff]   ;;  %v4747_v15 = vmax.f32 %v14316_v61, %v14345_v12 }
 0x1dd   : > { %v14480_v5 = vpop.f32.mrf.mxu0  ;;  %v14482_v34 = vpop.f32.mrf.mxu1  ;;  %8335 = vmatpush1.bf16.msra.mxu1 %v13059_v26  ;;  %v14501_v43 = vunpack.c.l.b16 %v7144_v39  ;;  %v5915_v49 = vmax.f32 %v5913_v23, %v5914_v30  ;;  %v5924_v52 = vrot.slane %v5923_v3, 4  ;;  %v14513_v2 = vmax.f32 %v6463_v53, 0.0 }
 0x1de   : > { %v4731_v38 = vrot.slane %v4730_v32, 1  ;;  %v5907_v40 = vrot.slane %v5906_v41, 1  ;;  %v4748_v12 = vrot.slane %v4747_v15, 4  ;;  %v14511_v13 = vsel %vm7779_vm5, %v7778_v22, %v7777_v8  ;;  %8336 = vmatprep.subr.bf16.mxu1 %v13064_v47  ;;  %v13028_v47 = vld [vmem:[%s14044_s22 + $0x778] sm:$0xff]   ;;  %v13029_v22 = vld [vmem:[%s14044_s22 + $0x240] sm:$0xff]  }
 0x1df   : > { %v14488_v62 = vpop.f32.mrf.mxu0  ;;  %v14490_v6 = vpop.f32.mrf.mxu1  ;;  %20492 = vst [vmem:[#allocation49_spill] sm:$0xff] %v14511_v13  ;;  %20493 = vst [vmem:[#allocation50_spill] sm:$0xff] %v14513_v2  ;;  %v14515_v39 = vmax.f32 %v6631_v60, 0.0  ;;  %v4740_v51 = vmax.f32 %v14337_v37, %v14361_v24  ;;  %v6634_v53 = vadd.f32 %v14176_v27, %v5915_v49  ;;  %v5916_v60 = vmax.f32 %v14339_v46, %v14363_v36 }
 0x1e0   : > { %v4732_v61 = vmax.f32 %v4730_v32, %v4731_v38  ;;  %v5908_v23 = vmax.f32 %v5906_v41, %v5907_v40  ;;  %v4749_v38 = vmax.f32 %v4747_v15, %v4748_v12  ;;  %v5925_v32 = vmax.f32 %v5923_v3, %v5924_v52 }
 0x1e1   : > { %v14503_v59 = vpop.f32.mrf.mxu0  ;;  %v14505_v18 = vpop.f32.mrf.mxu1  ;;  %20494 = vst [vmem:[#allocation51_spill] sm:$0xff] %v14515_v39  ;;  %v14533_v52 = vmax.f32 %v6466_v33, 0.0  ;;  %v4741_v15 = vrot.slane %v4740_v51, 4  ;;  %v6975_v3 = vpack.c.bf16 %v14513_v2, %v14513_v2  ;;  %v7143_v46 = vpack.c.bf16 %v14515_v39, %v14515_v39  ;;  %8337 = vmatpush1.bf16.msra.mxu1 %v13062_v19  ;;  %v13030_v19 = vld [vmem:[%s14044_s22 + $0x780] sm:$0xff]  }
 0x1e2   : > { %v6465_v4 = vadd.f32 %v14176_v27, %v4732_v61  ;;  %v4750_v37 = vrot.slane %v4749_v38, 2  ;;  %v5926_v24 = vrot.slane %v5925_v32, 2  ;;  %v6633_v40 = vadd.f32 %v14176_v27, %v5908_v23 }
 0x1e3   : > { %v14517_v30 = vpop.f32.mrf.mxu0  ;;  %12304 = vmatmul.mubr.bf16.gmra.mxu0 %v13023_v48  ;;  %v14519_v26 = vpop.f32.mrf.mxu1  ;;  %12640 = vmatmul.mubr.bf16.gmra.mxu1 %v13024_v35  ;;  %20496 = vst [vmem:[#allocation53_spill] sm:$0xff] %v14533_v52  ;;  %v5917_v35 = vrot.slane %v5916_v60, 4  ;;  %v4742_v12 = vmax.f32 %v4740_v51, %v4741_v15  ;;  %v14549_v8 = vmax.f32 %v6634_v53, 0.0  ;;  %v5937_v2 = vmax.f32 %v14381_v1, %v14403_v50 }
 0x1e4   : > { %12307 = vmatprep.mubr.bf16.mxu0 %v13025_v42  ;;  %12643 = vmatprep.mubr.bf16.mxu1 %v13026_v17  ;;  %v14539_v36 = vmax.f32 %v6465_v4, 0.0  ;;  %v13027_v17 = vld [vmem:[%s14044_s22 + $0x238] sm:$0xff]   ;;  %v4751_v42 = vmax.f32 %v4749_v38, %v4750_v37  ;;  %v5927_v61 = vmax.f32 %v5925_v32, %v5926_v24  ;;  %v4761_v4 = vmax.f32 %v14379_v45, %v14401_v28 }
 0x1e5   : > { %v14529_v41 = vpop.f32.mrf.mxu0  ;;  %v14531_v48 = vpop.f32.mrf.mxu1  ;;  %20498 = vst [vmem:[#allocation55_spill] sm:$0xff] %v14549_v8  ;;  %v5918_v39 = vmax.f32 %v5916_v60, %v5917_v35  ;;  %v6978_v23 = vpack.c.bf16 %v14533_v52, %v14533_v52  ;;  %v4743_v32 = vrot.slane %v4742_v12, 2  ;;  %v5938_v45 = vrot.slane %v5937_v2, 4  ;;  %v13071_v52 = vld [vmem:[#allocation8 + $0x34] ss:$8 sps:$4 sm:$0xff]  }
 0x1e6   : > { %20495 = vst [vmem:[#allocation52_spill] sm:$0xff] %v14531_v48  ;;  %20497 = vst [vmem:[#allocation54_spill] sm:$0xff] %v14539_v36  ;;  %v4752_v51 = vrot.slane %v4751_v42, 1  ;;  %v5928_v38 = vrot.slane %v5927_v61, 1  ;;  %v6977_v53 = vpack.c.bf16 %v14539_v36, %v14539_v36  ;;  %v4762_v37 = vrot.slane %v4761_v4, 4  ;;  %8338 = vmatprep.subr.bf16.mxu1 %v13071_v52 }
 0x1e7   : > { %v14541_v49 = vpop.f32.mrf.mxu0  ;;  %v14543_v33 = vpop.f32.mrf.mxu1  ;;  %v5919_v60 = vrot.slane %v5918_v39, 2  ;;  %v14568_v50 = vmax.f32 %v6633_v40, 0.0  ;;  %v4744_v35 = vmax.f32 %v4742_v12, %v4743_v32  ;;  %v7515_v21 = vunpack.c.l.b16 %v6975_v3  ;;  %v13074_v32 = vld [vmem:[#allocation8 + $0x24] ss:$8 sps:$4 sm:$0xff]  }
 0x1e8   : > { %v4753_v24 = vmax.f32 %v4751_v42, %v4752_v51  ;;  %v5929_v15 = vmax.f32 %v5927_v61, %v5928_v38  ;;  %v4763_v13 = vmax.f32 %v4761_v4, %v4762_v37  ;;  %v5939_v36 = vmax.f32 %v5937_v2, %v5938_v45  ;;  %v13032_v51 = vld [vmem:[%s14044_s22 + $0x788] sm:$0xff]   ;;  %v13033_v38 = vld [vmem:[%s14044_s22 + $0x250] sm:$0xff]  }
 0x1e9   : > { %v14555_v31 = vpop.f32.mrf.mxu0  ;;  %v14557_v55 = vpop.f32.mrf.mxu1  ;;  %20501 = vst [vmem:[#allocation58_spill] sm:$0xff] %v14568_v50  ;;  %v5920_v56 = vmax.f32 %v5918_v39, %v5919_v60  ;;  %v14576_v3 = vunpack.c.l.b16 %v6978_v23  ;;  %v7146_v2 = vpack.c.bf16 %v14549_v8, %v14549_v8  ;;  %v14585_v4 = vunpack.c.l.b16 %v6977_v53  ;;  %v13072_v8 = vld [vmem:[#allocation8 + $0x20] ss:$8 sps:$4 sm:$0xff]  }
 0x1ea   : > { %20499 = vst [vmem:[#allocation56_spill] sm:$0xff] %v14557_v55  ;;  %v6468_v40 = vadd.f32 %v14176_v27, %v4753_v24  ;;  %v6636_v42 = vadd.f32 %v14176_v27, %v5929_v15  ;;  %v4764_v61 = vrot.slane %v4763_v13, 2  ;;  %v5940_v23 = vrot.slane %v5939_v36, 2 }
 0x1eb   : > { %v14564_v28 = vpop.f32.mrf.mxu0  ;;  %12308 = vmatmul.mubr.bf16.gmra.mxu0 %v13027_v17  ;;  %v14566_v1 = vpop.f32.mrf.mxu1  ;;  %12644 = vmatmul.mubr.bf16.gmra.mxu1 %v13028_v47  ;;  %v13069_v17 = vld [vmem:[#allocation8 + $0x30] ss:$8 sps:$4 sm:$0xff]   ;;  %v5921_v39 = vrot.slane %v5920_v56, 1  ;;  %v4754_v45 = vmax.f32 %v14390_v16, %v14415_v29  ;;  %v5930_v24 = vmax.f32 %v14392_v0, %v14417_v7 }
 0x1ec   : > { %20500 = vst [vmem:[#allocation57_spill] sm:$0xff] %v14566_v1  ;;  %12311 = vmatprep.mubr.bf16.mxu0 %v13029_v22  ;;  %12647 = vmatprep.mubr.bf16.mxu1 %v13030_v19  ;;  %v7683_v1 = vunpack.c.l.b16 %v7143_v46  ;;  %v4745_v22 = vrot.slane %v4744_v35, 1  ;;  %v13031_v46 = vld [vmem:[%s14044_s22 + $0x248] sm:$0xff]   ;;  %v7145_v19 = vpack.c.bf16 %v14568_v50, %v14568_v50  ;;  %v14591_v60 = vmax.f32 %v6468_v40, 0.0 }
 0x1ed   : > { %v14570_v48 = vpop.f32.mrf.mxu0  ;;  %v14572_v55 = vpop.f32.mrf.mxu1  ;;  %8339 = vmatpush1.bf16.msra.mxu1 %v13069_v17  ;;  %v4765_v37 = vmax.f32 %v4763_v13, %v4764_v61  ;;  %v13034_v17 = vld [vmem:[%s14044_s22 + $0x790] sm:$0xff]   ;;  %v5922_v50 = vmax.f32 %v5920_v56, %v5921_v39  ;;  %v5941_v40 = vmax.f32 %v5939_v36, %v5940_v23  ;;  %v20505_v13 = vrot.slane %v14499_v58, 7 }
 0x1ee   : > { %20502 = vst [vmem:[#allocation59_spill] sm:$0xff] %v14572_v55  ;;  %v4746_v52 = vmax.f32 %v4744_v35, %v4745_v22  ;;  %20503 = vst [vmem:[#allocation60_spill] sm:$0xff] %v14591_v60  ;;  %v14602_v35 = vmax.f32 %v6636_v42, 0.0  ;;  %8340 = vmatprep.subr.bf16.mxu1 %v13074_v32  ;;  %v4755_v61 = vrot.slane %v4754_v45, 4  ;;  %v5931_v7 = vrot.slane %v5930_v24, 4 }
 0x1ef   : > { %v14580_v12 = vpop.f32.mrf.mxu0  ;;  %v14582_v47 = vpop.f32.mrf.mxu1  ;;  %v7785_v29 = vsel %vm7764_vm0, %v20505_v13, %v7515_v21  ;;  %v4766_v16 = vrot.slane %v4765_v37, 1  ;;  %v20506_v42 = vrot.slane %v14501_v43, 7  ;;  %v7685_v56 = vunpack.c.l.b16 %v7145_v19  ;;  %v13081_v43 = vld [vmem:[#allocation8 + $0x14] ss:$8 sps:$4 sm:$0xff]   ;;  %v13079_v32 = vld [vmem:[#allocation8 + $0x10] ss:$8 sps:$4 sm:$0xff]  }
 0x1f0   : > { %20504 = vst [vmem:[#allocation61_spill] sm:$0xff] %v14602_v35  ;;  %v6467_v22 = vadd.f32 %v14176_v27, %v4746_v52  ;;  %v5942_v39 = vrot.slane %v5941_v40, 1  ;;  %v14617_v21 = vunpack.c.l.b16 %v7146_v2  ;;  %v6980_v58 = vpack.c.bf16 %v14591_v60, %v14591_v60 }
 0x1f1   : > { %v14597_v15 = vpop.f32.mrf.mxu0  ;;  %v14599_v53 = vpop.f32.mrf.mxu1  ;;  %8341 = vmatpush1.bf16.msra.mxu1 %v13072_v8  ;;  %v8079_v27 = vsel %vm7764_vm0, %v20506_v42, %v7683_v1  ;;  %v4756_v52 = vmax.f32 %v4754_v45, %v4755_v61  ;;  %v7788_v1 = vrot.slane %v14576_v3, 5  ;;  %v7786_v19 = vrot.slane %v14585_v4, 6  ;;  %v13035_v3 = vld [vmem:[%s14044_s22 + $0x258] sm:$0xff]  }
 0x1f2   : > { %v14615_v36 = vmax.f32 %v6467_v22, 0.0  ;;  %20508 = vst [vmem:[#allocation63_spill] sm:$0xff] %v14617_v21  ;;  %v7148_v2 = vpack.c.bf16 %v14602_v35, %v14602_v35  ;;  %v4767_v45 = vmax.f32 %v4765_v37, %v4766_v16  ;;  %8342 = vmatprep.subr.bf16.mxu1 %v13081_v43  ;;  %v8080_v4 = vrot.slane %v7685_v56, 6  ;;  %v13037_v43 = vld [vmem:[%s14044_s22 + $0x260] sm:$0xff]  }
 0x1f3   : > { %v14608_v0 = vpop.f32.mrf.mxu0  ;;  %12312 = vmatmul.mubr.bf16.gmra.mxu0 %v13031_v46  ;;  %v14610_v55 = vpop.f32.mrf.mxu1  ;;  %12648 = vmatmul.mubr.bf16.gmra.mxu1 %v13032_v51  ;;  %v5932_v46 = vmax.f32 %v5930_v24, %v5931_v7  ;;  %v14629_v51 = vld [vmem:[#allocation7] ss:$0 sm:$0xff]  ;;  %v5943_v24 = vmax.f32 %v5941_v40, %v5942_v39  ;;  %v4757_v22 = vrot.slane %v4756_v52, 2  ;;  %v5951_v37 = vmax.f32 %v14426_v10, %v14444_v11  ;;  %v13036_v40 = vld [vmem:[%s14044_s22 + $0x798] sm:$0xff]  }
 0x1f4   : > { %20507 = vst [vmem:[#allocation62_spill] sm:$0xff] %v14615_v36  ;;  %12315 = vmatprep.mubr.bf16.mxu0 %v13033_v38  ;;  %12651 = vmatprep.mubr.bf16.mxu1 %v13034_v17  ;;  %v6635_v38 = vadd.f32 %v14629_v51, %v5922_v50  ;;  %v6979_v7 = vpack.c.bf16 %v14615_v36, %v14615_v36  ;;  %v14645_v42 = vunpack.c.l.b16 %v6980_v58  ;;  %v13038_v36 = vld [vmem:[%s14044_s22 + $0x7a0] sm:$0xff]  }
 0x1f5   : > { %v14621_v23 = vpop.f32.mrf.mxu0  ;;  %v14623_v8 = vpop.f32.mrf.mxu1  ;;  %v5933_v13 = vrot.slane %v5932_v46, 2  ;;  %v4775_v50 = vmax.f32 %v14424_v9, %v14442_v63  ;;  %8343 = vmatpush1.bf16.msra.mxu1 %v13079_v32  ;;  %v4758_v39 = vmax.f32 %v4756_v52, %v4757_v22  ;;  %v7787_v9 = vsel %vm7767_vm1, %v7786_v19, %v7785_v29  ;;  %v13082_v32 = vld [vmem:[#allocation8] ss:$8 sps:$4 sm:$0xff]  }
 0x1f6   : > { %20509 = vst [vmem:[#allocation64_spill] sm:$0xff] %v14621_v23  ;;  %20510 = vst [vmem:[#allocation65_spill] sm:$0xff] %v14623_v8  ;;  %v13084_v8 = vld [vmem:[#allocation8 + $0x4] ss:$8 sps:$4 sm:$0xff]   ;;  %v14654_v63 = vunpack.c.l.b16 %v7148_v2  ;;  %v5952_v11 = vrot.slane %v5951_v37, 4  ;;  %v14656_v23 = vmax.f32 %v6635_v38, 0.0  ;;  %v6470_v58 = vadd.f32 %v14629_v51, %v4767_v45 }
 0x1f7   : > { %v14632_v61 = vpop.f32.mrf.mxu0  ;;  %v14634_v17 = vpop.f32.mrf.mxu1  ;;  %v5934_v35 = vmax.f32 %v5932_v46, %v5933_v13  ;;  %v4776_v10 = vrot.slane %v4775_v50, 4  ;;  %v6638_v52 = vadd.f32 %v14629_v51, %v5943_v24  ;;  %v4759_v46 = vrot.slane %v4758_v39, 1  ;;  %8344 = vmatprep.subr.bf16.mxu1 %v13084_v8  ;;  %v13042_v38 = vld [vmem:[%s14044_s22 + $0x7b0] sm:$0xff]  }
 0x1f8   : > { %20511 = vst [vmem:[#allocation66_spill] sm:$0xff] %v14654_v63  ;;  %20512 = vst [vmem:[#allocation67_spill] sm:$0xff] %v14656_v23  ;;  %v14665_v29 = vsel %vm7767_vm1, %v8080_v4, %v8079_v27  ;;  %v14667_v19 = vunpack.c.l.b16 %v6979_v7  ;;  %v5953_v16 = vmax.f32 %v5951_v37, %v5952_v11  ;;  %v7789_v45 = vsel %vm7770_vm2, %v7788_v1, %v7787_v9  ;;  %v13040_v11 = vld [vmem:[%s14044_s22 + $0x7a8] sm:$0xff]  }
 0x1f9   : > { %v14647_v60 = vpop.f32.mrf.mxu0  ;;  %v14649_v56 = vpop.f32.mrf.mxu1  ;;  %20514 = vst [vmem:[#allocation69_spill] sm:$0xff] %v14665_v29  ;;  %v4777_v2 = vmax.f32 %v4775_v50, %v4776_v10  ;;  %v4760_v24 = vmax.f32 %v4758_v39, %v4759_v46  ;;  %v5935_v21 = vrot.slane %v5934_v35, 1  ;;  %v4768_v7 = vmax.f32 %v14432_v25, %v14457_v20  ;;  %8345 = vmatpush1.bf16.msra.mxu1 %v13082_v32  ;;  %v13041_v32 = vld [vmem:[%s14044_s22 + $0x270] sm:$0xff]  }
 0x1fa   : > { %v5954_v4 = vrot.slane %v5953_v16, 2  ;;  %v7147_v1 = vpack.c.bf16 %v14656_v23, %v14656_v23  ;;  %v14680_v50 = vmax.f32 %v6470_v58, 0.0  ;;  %v14682_v37 = vmax.f32 %v6638_v52, 0.0 }
 0x1fb   : > { %v14660_v22 = vpop.f32.mrf.mxu0  ;;  %12316 = vmatmul.mubr.bf16.gmra.mxu0 %v13035_v3  ;;  %v14662_v13 = vpop.f32.mrf.mxu1  ;;  %12652 = vmatmul.mubr.bf16.gmra.mxu1 %v13036_v40  ;;  %v4778_v8 = vrot.slane %v4777_v2, 2  ;;  %v7790_v9 = vrot.slane %v14667_v19, 4  ;;  %v4769_v10 = vrot.slane %v4768_v7, 4  ;;  %v6469_v58 = vadd.f32 %v14629_v51, %v4760_v24 }
 0x1fc   : > { %20513 = vst [vmem:[#allocation68_spill] sm:$0xff] %v14660_v22  ;;  %12319 = vmatprep.mubr.bf16.mxu0 %v13037_v43  ;;  %12655 = vmatprep.mubr.bf16.mxu1 %v13038_v36  ;;  %20515 = vst [vmem:[#allocation70_spill] sm:$0xff] %v14680_v50  ;;  %v5944_v36 = vmax.f32 %v14434_v44, %v14459_v54  ;;  %v13039_v43 = vld [vmem:[%s14044_s22 + $0x268] sm:$0xff]   ;;  %v5955_v25 = vmax.f32 %v5953_v16, %v5954_v4 }
 0x1fd   : > { %v14671_v22 = vpop.f32.mrf.mxu0  ;;  %v14673_v3 = vpop.f32.mrf.mxu1  ;;  %20516 = vst [vmem:[#allocation71_spill] sm:$0xff] %v14682_v37  ;;  %v4779_v20 = vmax.f32 %v4777_v2, %v4778_v8  ;;  %v5936_v52 = vmax.f32 %v5934_v35, %v5935_v21  ;;  %v4789_v44 = vmax.f32 %v14466_v57, %v14488_v62  ;;  %v4770_v19 = vmax.f32 %v4768_v7, %v4769_v10 }
 0x1fe   : > { %v5945_v46 = vrot.slane %v5944_v36, 4  ;;  %v5956_v63 = vrot.slane %v5955_v25, 1  ;;  %v5965_v16 = vmax.f32 %v14468_v14, %v14490_v6  ;;  %v6982_v2 = vpack.c.bf16 %v14680_v50, %v14680_v50 }
 0x1ff   : > { %v14686_v40 = vpop.f32.mrf.mxu0  ;;  %v14688_v39 = vpop.f32.mrf.mxu1  ;;  %v4780_v23 = vrot.slane %v4779_v20, 1  ;;  %v7150_v35 = vpack.c.bf16 %v14682_v37, %v14682_v37  ;;  %v4790_v24 = vrot.slane %v4789_v44, 4  ;;  %v4771_v29 = vrot.slane %v4770_v19, 2 }
 0x200   : > { %v5946_v21 = vmax.f32 %v5944_v36, %v5945_v46  ;;  %v5957_v4 = vmax.f32 %v5955_v25, %v5956_v63  ;;  %v5966_v7 = vrot.slane %v5965_v16, 4  ;;  %v14712_v14 = vunpack.c.l.b16 %v7147_v1 }
 0x201   : > { %v14697_v54 = vpop.f32.mrf.mxu0  ;;  %v14699_v27 = vpop.f32.mrf.mxu1  ;;  %v4781_v8 = vmax.f32 %v4779_v20, %v4780_v23  ;;  %v6637_v6 = vadd.f32 %v14629_v51, %v5936_v52  ;;  %v4791_v37 = vmax.f32 %v4789_v44, %v4790_v24  ;;  %v4772_v63 = vmax.f32 %v4770_v19, %v4771_v29  ;;  %v13044_v29 = vld [vmem:[%s14044_s22 + $0x7b8] sm:$0xff]   ;;  %v13045_v19 = vld [vmem:[%s14044_s22 + $0x280] sm:$0xff]  }
 0x202   : > { %20518 = vst [vmem:[#allocation73_spill] sm:$0xff] %v14712_v14  ;;  %v5947_v10 = vrot.slane %v5946_v21, 2  ;;  %v5967_v20 = vmax.f32 %v5965_v16, %v5966_v7  ;;  %v7791_v1 = vsel %vm7773_vm3, %v7790_v9, %v7789_v45  ;;  %v14723_v25 = vunpack.c.l.b16 %v6982_v2 }
 0x203   : > { %v14708_v57 = vpop.f32.mrf.mxu0  ;;  %12320 = vmatmul.mubr.bf16.gmra.mxu0 %v13039_v43  ;;  %v14710_v62 = vpop.f32.mrf.mxu1  ;;  %12656 = vmatmul.mubr.bf16.gmra.mxu1 %v13040_v11  ;;  %v14719_v43 = vmax.f32 %v6469_v58, 0.0  ;;  %v6472_v23 = vadd.f32 %v14629_v51, %v4781_v8  ;;  %v14730_v24 = vunpack.c.l.b16 %v7150_v35  ;;  %v6640_v58 = vadd.f32 %v14629_v51, %v5957_v4 }
 0x204   : > { %20517 = vst [vmem:[#allocation72_spill] sm:$0xff] %v14710_v62  ;;  %12323 = vmatprep.mubr.bf16.mxu0 %v13041_v32  ;;  %12659 = vmatprep.mubr.bf16.mxu1 %v13042_v38  ;;  %20522 = vst [vmem:[#allocation77_spill] sm:$0xff] %v14723_v25  ;;  %v5948_v11 = vmax.f32 %v5946_v21, %v5947_v10  ;;  %v4792_v32 = vrot.slane %v4791_v37, 2  ;;  %v13043_v38 = vld [vmem:[%s14044_s22 + $0x278] sm:$0xff]   ;;  %v4773_v50 = vrot.slane %v4772_v63, 1  ;;  %v5968_v8 = vrot.slane %v5967_v20, 2 }
 0x205   : > { %v14715_v36 = vpop.f32.mrf.mxu0  ;;  %v14717_v46 = vpop.f32.mrf.mxu1  ;;  %20521 = vst [vmem:[#allocation76_spill] sm:$0xff] %v14719_v43  ;;  %20524 = vst [vmem:[#allocation79_spill] sm:$0xff] %v14730_v24  ;;  %v14735_v16 = vmax.f32 %v6472_v23, 0.0  ;;  %v4782_v2 = vmax.f32 %v14480_v5, %v14503_v59  ;;  %v13046_v10 = vld [vmem:[%s14044_s22 + $0x7c0] sm:$0xff]   ;;  %v6981_v35 = vpack.c.bf16 %v14719_v43, %v14719_v43  ;;  %v14746_v4 = vmax.f32 %v6637_v6, 0.0  ;;  %v13055_v43 = vld [vmem:[%s14044_s22 + $0x290] sm:$0xff]  }
 0x206   : > { %20519 = vst [vmem:[#allocation74_spill] sm:$0xff] %v14715_v36  ;;  %20520 = vst [vmem:[#allocation75_spill] sm:$0xff] %v14717_v46  ;;  %v5949_v45 = vrot.slane %v5948_v11, 1  ;;  %v4793_v9 = vmax.f32 %v4791_v37, %v4792_v32  ;;  %v4774_v46 = vmax.f32 %v4772_v63, %v4773_v50  ;;  %v5969_v36 = vmax.f32 %v5967_v20, %v5968_v8 }
 0x207   : > { %v14725_v52 = vpop.f32.mrf.mxu0  ;;  %v14727_v44 = vpop.f32.mrf.mxu1  ;;  %20525 = vst [vmem:[#allocation80_spill] sm:$0xff] %v14735_v16  ;;  %20527 = vst [vmem:[#allocation82_spill] sm:$0xff] %v14746_v4  ;;  %v5958_v37 = vmax.f32 %v14482_v34, %v14505_v18  ;;  %v14760_v50 = vmax.f32 %v6640_v58, 0.0  ;;  %v6984_v34 = vpack.c.bf16 %v14735_v16, %v14735_v16  ;;  %v7149_v58 = vpack.c.bf16 %v14746_v4, %v14746_v4 }
 0x208   : > { %20523 = vst [vmem:[#allocation78_spill] sm:$0xff] %v14727_v44  ;;  %v5950_v62 = vmax.f32 %v5948_v11, %v5949_v45  ;;  %v4794_v23 = vrot.slane %v4793_v9, 1  ;;  %v4783_v44 = vrot.slane %v4782_v2, 4  ;;  %v5970_v63 = vrot.slane %v5969_v36, 1 }
 0x209   : > { %v14739_v21 = vpop.f32.mrf.mxu0  ;;  %v14741_v7 = vpop.f32.mrf.mxu1  ;;  %20529 = vst [vmem:[#allocation83_spill] sm:$0xff] %v14760_v50  ;;  %v6471_v18 = vadd.f32 %v14629_v51, %v4774_v46  ;;  %v5959_v11 = vrot.slane %v5958_v37, 4 }
 0x20a   : > { %20526 = vst [vmem:[#allocation81_spill] sm:$0xff] %v14741_v7  ;;  %v20528_v7 = vrot.slane %v14645_v42, 3  ;;  %v4784_v20 = vmax.f32 %v4782_v2, %v4783_v44  ;;  %v4795_v46 = vmax.f32 %v4793_v9, %v4794_v23  ;;  %v5971_v59 = vmax.f32 %v5969_v36, %v5970_v63  ;;  %v13048_v9 = vld [vmem:[%s14044_s22 + $0x7c8] sm:$0xff]  }
 0x20b   : > { %v14750_v32 = vpop.f32.mrf.mxu0  ;;  %12324 = vmatmul.mubr.bf16.gmra.mxu0 %v13043_v38  ;;  %v14752_v5 = vpop.f32.mrf.mxu1  ;;  %12660 = vmatmul.mubr.bf16.gmra.mxu1 %v13044_v29  ;;  %v6639_v29 = vadd.f32 %v14629_v51, %v5950_v62  ;;  %v5960_v45 = vmax.f32 %v5958_v37, %v5959_v11  ;;  %v4803_v42 = vmax.f32 %v14517_v30, %v14541_v49  ;;  %v14790_v23 = vmax.f32 %v6471_v18, 0.0 }
 0x20c   : > { %v14758_v6 = vsel %vm7776_vm4, %v20528_v7, %v7791_v1  ;;  %12327 = vmatprep.mubr.bf16.mxu0 %v13045_v19  ;;  %12663 = vmatprep.mubr.bf16.mxu1 %v13046_v10  ;;  %v14774_v19 = vunpack.c.l.b16 %v6981_v35  ;;  %v4785_v44 = vrot.slane %v4784_v20, 2  ;;  %v13047_v10 = vld [vmem:[%s14044_s22 + $0x288] sm:$0xff]   ;;  %v7152_v1 = vpack.c.bf16 %v14760_v50, %v14760_v50  ;;  %v13056_v50 = vld [vmem:[%s14044_s22 + $0x7d0] sm:$0xff]  }
 0x20d   : > { %v14765_v38 = vpop.f32.mrf.mxu0  ;;  %v14767_v8 = vpop.f32.mrf.mxu1  ;;  %v5979_v62 = vmax.f32 %v14519_v26, %v14543_v33  ;;  %v14788_v35 = vunpack.c.l.b16 %v6984_v34  ;;  %20531 = vst [vmem:[#allocation85_spill] sm:$0xff] %v14790_v23  ;;  %v5961_v11 = vrot.slane %v5960_v45, 2  ;;  %v14798_v36 = vunpack.c.l.b16 %v7149_v58 }
 0x20e   : > { %20530 = vst [vmem:[#allocation84_spill] sm:$0xff] %v14767_v8  ;;  %v4786_v37 = vmax.f32 %v4784_v20, %v4785_v44  ;;  %v14800_v63 = vmax.f32 %v6639_v29, 0.0  ;;  %v4804_v30 = vrot.slane %v4803_v42, 4  ;;  %v6474_v33 = vadd.f32 %v14629_v51, %v4795_v46 }
 0x20f   : > { %v14776_v2 = vpop.f32.mrf.mxu0  ;;  %v14778_v7 = vpop.f32.mrf.mxu1  ;;  %20533 = vst [vmem:[#allocation87_spill] sm:$0xff] %v14798_v36  ;;  %v5980_v49 = vrot.slane %v5979_v62, 4  ;;  %v5962_v18 = vmax.f32 %v5960_v45, %v5961_v11  ;;  %v14808_v24 = vunpack.c.l.b16 %v7152_v1  ;;  %v6642_v58 = vadd.f32 %v14629_v51, %v5971_v59 }
 0x210   : > { %20534 = vst [vmem:[#allocation88_spill] sm:$0xff] %v14800_v63  ;;  %v4787_v34 = vrot.slane %v4786_v37, 1  ;;  %v4805_v14 = vmax.f32 %v4803_v42, %v4804_v30  ;;  %v6983_v26 = vpack.c.bf16 %v14790_v23, %v14790_v23  ;;  %v7151_v59 = vpack.c.bf16 %v14800_v63, %v14800_v63  ;;  %v13057_v63 = vld [vmem:[%s14044_s22 + $0x298] sm:$0xff]  }
 0x211   : > { %v14792_v4 = vpop.f32.mrf.mxu0  ;;  %v14794_v16 = vpop.f32.mrf.mxu1  ;;  %v5981_v29 = vmax.f32 %v5979_v62, %v5980_v49  ;;  %v5963_v45 = vrot.slane %v5962_v18, 1  ;;  %v4796_v62 = vmax.f32 %v14529_v41, %v14555_v31  ;;  %v20540_v49 = vld [vmem:[#allocation56_spill] sm:$0xff]  ;;  %v14832_v23 = vmax.f32 %v6642_v58, 0.0  ;;  %v13058_v31 = vld [vmem:[%s14044_s22 + $0x7d8] sm:$0xff]   ;;  %v13065_v41 = vld [vmem:[%s14044_s22 + $0x2a0] sm:$0xff]  }
 0x212   : > { %20532 = vst [vmem:[#allocation86_spill] sm:$0xff] %v14794_v16  ;;  %v4788_v46 = vmax.f32 %v4786_v37, %v4787_v34  ;;  %v4806_v42 = vrot.slane %v4805_v14, 2  ;;  %v20541_v34 = vld [vmem:[#allocation52_spill] sm:$0xff] }
 0x213   : > { %v14804_v20 = vpop.f32.mrf.mxu0  ;;  %12328 = vmatmul.mubr.bf16.gmra.mxu0 %v13047_v10  ;;  %v14806_v44 = vpop.f32.mrf.mxu1  ;;  %12664 = vmatmul.mubr.bf16.gmra.mxu1 %v13048_v9  ;;  %v5982_v1 = vrot.slane %v5981_v29, 2  ;;  %v14822_v9 = vmax.f32 %v6474_v33, 0.0  ;;  %v5964_v30 = vmax.f32 %v5962_v18, %v5963_v45  ;;  %v5972_v25 = vmax.f32 %v20541_v34, %v20540_v49  ;;  %20544 = vst [vmem:[#allocation94_spill] sm:$0xff] %v14832_v23 }
 0x214   : > { %20535 = vst [vmem:[#allocation89_spill] sm:$0xff] %v14804_v20  ;;  %20536 = vst [vmem:[#allocation90_spill] sm:$0xff] %v14806_v44  ;;  %12331 = vmatprep.mubr.bf16.mxu0 %v13055_v43  ;;  %12667 = vmatprep.mubr.bf16.mxu1 %v13056_v50  ;;  %v6473_v37 = vadd.f32 %v14629_v51, %v4788_v46  ;;  %v4797_v44 = vrot.slane %v4796_v62, 4  ;;  %v4817_v45 = vmax.f32 %v14564_v28, %v14580_v12 }
 0x215   : > { %v14814_v11 = vpop.f32.mrf.mxu0  ;;  %v14816_v10 = vpop.f32.mrf.mxu1  ;;  %20539 = vst [vmem:[#allocation93_spill] sm:$0xff] %v14822_v9  ;;  %v6641_v18 = vadd.f32 %v14629_v51, %v5964_v30  ;;  %v5973_v46 = vrot.slane %v5972_v25, 4 }
 0x216   : > { %20537 = vst [vmem:[#allocation91_spill] sm:$0xff] %v14814_v11  ;;  %20538 = vst [vmem:[#allocation92_spill] sm:$0xff] %v14816_v10  ;;  %v4807_v10 = vmax.f32 %v4805_v14, %v4806_v42  ;;  %v5983_v11 = vmax.f32 %v5981_v29, %v5982_v1  ;;  %v14836_v33 = vmax.f32 %v6473_v37, 0.0  ;;  %v4798_v14 = vmax.f32 %v4796_v62, %v4797_v44  ;;  %v20548_v29 = vld [vmem:[#allocation57_spill] sm:$0xff] }
 0x217   : > { %v14827_v43 = vpop.f32.mrf.mxu0  ;;  %v14829_v50 = vpop.f32.mrf.mxu1  ;;  %v5993_v42 = vmax.f32 %v20548_v29, %v14582_v47  ;;  %v6986_v1 = vpack.c.bf16 %v14822_v9, %v14822_v9  ;;  %v14850_v37 = vmax.f32 %v6641_v18, 0.0  ;;  %v5974_v30 = vmax.f32 %v5972_v25, %v5973_v46 }
 0x218   : > { %20542 = vst [vmem:[#allocation56_spill] sm:$0xff] %v14827_v43  ;;  %20543 = vst [vmem:[#allocation52_spill] sm:$0xff] %v14829_v50  ;;  %v13066_v50 = vld [vmem:[%s14044_s22 + $0x7e0] sm:$0xff]   ;;  %v4808_v58 = vrot.slane %v4807_v10, 1  ;;  %v5984_v20 = vrot.slane %v5983_v11, 1  ;;  %v4818_v43 = vrot.slane %v4817_v45, 4  ;;  %v7154_v47 = vpack.c.bf16 %v14832_v23, %v14832_v23 }
 0x219   : > { %20545 = vst [vmem:[#allocation95_spill] sm:$0xff] %v14836_v33  ;;  %v14841_v49 = vpop.f32.mrf.mxu0  ;;  %v14843_v34 = vpop.f32.mrf.mxu1  ;;  %20549 = vst [vmem:[#allocation57_spill] sm:$0xff] %v14850_v37  ;;  %v5994_v16 = vrot.slane %v5993_v42, 4  ;;  %v6985_v44 = vpack.c.bf16 %v14836_v33, %v14836_v33  ;;  %v5975_v25 = vrot.slane %v5974_v30, 2  ;;  %v7523_v46 = vunpack.c.l.b16 %v6983_v26  ;;  %v13067_v23 = vld [vmem:[%s14044_s22 + $0x2a8] sm:$0xff]  }
 0x21a   : > { %20546 = vst [vmem:[#allocation96_spill] sm:$0xff] %v14841_v49  ;;  %20547 = vst [vmem:[#allocation97_spill] sm:$0xff] %v14843_v34  ;;  %v4809_v12 = vmax.f32 %v4807_v10, %v4808_v58  ;;  %v5985_v34 = vmax.f32 %v5983_v11, %v5984_v20  ;;  %v4799_v49 = vrot.slane %v4798_v14, 2  ;;  %v4819_v62 = vmax.f32 %v4817_v45, %v4818_v43 }
 0x21b   : > { %v14852_v8 = vpop.f32.mrf.mxu0  ;;  %12332 = vmatmul.mubr.bf16.gmra.mxu0 %v13057_v63  ;;  %v14854_v28 = vpop.f32.mrf.mxu1  ;;  %12668 = vmatmul.mubr.bf16.gmra.mxu1 %v13058_v31  ;;  %v5995_v31 = vmax.f32 %v5993_v42, %v5994_v16  ;;  %v5976_v58 = vmax.f32 %v5974_v30, %v5975_v25  ;;  %v13076_v25 = vld [vmem:[%s14044_s22 + $0x7f0] sm:$0xff]  }
 0x21c   : > { %20550 = vst [vmem:[#allocation98_spill] sm:$0xff] %v14854_v28  ;;  %12335 = vmatprep.mubr.bf16.mxu0 %v13065_v41  ;;  %12671 = vmatprep.mubr.bf16.mxu1 %v13066_v50  ;;  %v6476_v20 = vadd.f32 %v14629_v51, %v4809_v12  ;;  %v6644_v11 = vadd.f32 %v14629_v51, %v5985_v34  ;;  %v8092_v41 = vrot.slane %v14808_v24, 7  ;;  %v4820_v29 = vrot.slane %v4819_v62, 2  ;;  %v13068_v34 = vld [vmem:[%s14044_s22 + $0x7e8] sm:$0xff]  }
 0x21d   : > { %v14860_v18 = vpop.f32.mrf.mxu0  ;;  %v14862_v63 = vpop.f32.mrf.mxu1  ;;  %v4800_v10 = vmax.f32 %v4798_v14, %v4799_v49  ;;  %v7691_v50 = vunpack.c.l.b16 %v7151_v59  ;;  %v7153_v12 = vpack.c.bf16 %v14850_v37, %v14850_v37  ;;  %v5996_v33 = vrot.slane %v5995_v31, 2  ;;  %v13075_v49 = vld [vmem:[%s14044_s22 + $0x2b0] sm:$0xff]  }
 0x21e   : > { %20551 = vst [vmem:[#allocation99_spill] sm:$0xff] %v14860_v18  ;;  %20552 = vst [vmem:[#allocation100_spill] sm:$0xff] %v14862_v63  ;;  %v14877_v24 = vmax.f32 %v6476_v20, 0.0  ;;  %v5977_v26 = vrot.slane %v5976_v58, 1  ;;  %v4821_v14 = vmax.f32 %v4819_v62, %v4820_v29  ;;  %v14884_v63 = vunpack.c.l.b16 %v6986_v1 }
 0x21f   : > { %v14867_v43 = vpop.f32.mrf.mxu0  ;;  %v14869_v45 = vpop.f32.mrf.mxu1  ;;  %v4801_v9 = vrot.slane %v4800_v10, 1  ;;  %v14886_v59 = vunpack.c.l.b16 %v7154_v47  ;;  %v7525_v37 = vunpack.c.l.b16 %v6985_v44  ;;  %v14888_v18 = vmax.f32 %v6644_v11, 0.0 }
 0x220   : > { %20553 = vst [vmem:[#allocation101_spill] sm:$0xff] %v14877_v24  ;;  %20555 = vst [vmem:[#allocation103_spill] sm:$0xff] %v14884_v63  ;;  %v20558_v28 = vrot.slane %v14774_v19, 2  ;;  %v5997_v62 = vmax.f32 %v5995_v31, %v5996_v33  ;;  %v4810_v29 = vmax.f32 %v14570_v48, %v14597_v15  ;;  %v20560_v47 = vrot.slane %v14788_v35, 7  ;;  %v20561_v15 = vld [vmem:[#allocation59_spill] sm:$0xff] }
 0x221   : > { %v14879_v42 = vpop.f32.mrf.mxu0  ;;  %v14881_v30 = vpop.f32.mrf.mxu1  ;;  %20556 = vst [vmem:[#allocation104_spill] sm:$0xff] %v14886_v59  ;;  %20557 = vst [vmem:[#allocation105_spill] sm:$0xff] %v14888_v18  ;;  %v4802_v16 = vmax.f32 %v4800_v10, %v4801_v9  ;;  %v8093_v11 = vsel %vm7764_vm0, %v8092_v41, %v7691_v50  ;;  %v7693_v19 = vunpack.c.l.b16 %v7153_v12  ;;  %v4822_v9 = vrot.slane %v4821_v14, 1  ;;  %v13085_v10 = vld [vmem:[%s14044_s22 + $0x2c0] sm:$0xff]  }
 0x222   : > { %20554 = vst [vmem:[#allocation102_spill] sm:$0xff] %v14881_v30  ;;  %v14894_v20 = vsel %vm7779_vm5, %v20558_v28, %v14758_v6  ;;  %v7799_v44 = vsel %vm7764_vm0, %v20560_v47, %v7523_v46  ;;  %v5978_v30 = vmax.f32 %v5976_v58, %v5977_v26  ;;  %v6988_v6 = vpack.c.bf16 %v14877_v24, %v14877_v24 }
 0x223   : > { %20559 = vst [vmem:[#allocation106_spill] sm:$0xff] %v14894_v20  ;;  %v14898_v36 = vpop.f32.mrf.mxu0  ;;  %12336 = vmatmul.mubr.bf16.gmra.mxu0 %v13067_v23  ;;  %v14900_v1 = vpop.f32.mrf.mxu1  ;;  %12672 = vmatmul.mubr.bf16.gmra.mxu1 %v13068_v34  ;;  %v4811_v48 = vrot.slane %v4810_v29, 4  ;;  %v5986_v23 = vmax.f32 %v20561_v15, %v14599_v53  ;;  %v7800_v31 = vrot.slane %v7525_v37, 6  ;;  %v7156_v41 = vpack.c.bf16 %v14888_v18, %v14888_v18  ;;  %v13078_v15 = vld [vmem:[%s14044_s22 + $0x7f8] sm:$0xff]  }
 0x224   : > { %12339 = vmatprep.mubr.bf16.mxu0 %v13075_v49  ;;  %12675 = vmatprep.mubr.bf16.mxu1 %v13076_v25  ;;  %v6475_v46 = vadd.f32 %v14629_v51, %v4802_v16  ;;  %v5998_v58 = vrot.slane %v5997_v62, 1  ;;  %v13077_v49 = vld [vmem:[%s14044_s22 + $0x2b8] sm:$0xff]   ;;  %v8094_v26 = vrot.slane %v7693_v19, 6  ;;  %v6643_v25 = vadd.f32 %v14629_v51, %v5978_v30 }
 0x225   : > { %v14910_v33 = vpop.f32.mrf.mxu0  ;;  %v14912_v35 = vpop.f32.mrf.mxu1  ;;  %v4812_v50 = vmax.f32 %v4810_v29, %v4811_v48  ;;  %v5987_v53 = vrot.slane %v5986_v23, 4  ;;  %v4831_v47 = vmax.f32 %v14608_v0, %v14632_v61  ;;  %v6007_v37 = vmax.f32 %v14610_v55, %v14634_v17 }
 0x226   : > { %v14931_v16 = vunpack.c.l.b16 %v6988_v6  ;;  %v4823_v29 = vmax.f32 %v4821_v14, %v4822_v9  ;;  %v14938_v19 = vsel %vm7767_vm1, %v7800_v31, %v7799_v44  ;;  %v14940_v30 = vunpack.c.l.b16 %v7156_v41 }
 0x227   : > { %v14919_v12 = vpop.f32.mrf.mxu0  ;;  %v14921_v34 = vpop.f32.mrf.mxu1  ;;  %v4813_v48 = vrot.slane %v4812_v50, 2  ;;  %v5988_v28 = vmax.f32 %v5986_v23, %v5987_v53  ;;  %20563 = vst [vmem:[#allocation107_spill] sm:$0xff] %v14938_v19  ;;  %v4832_v0 = vrot.slane %v4831_v47, 4  ;;  %v6008_v61 = vrot.slane %v6007_v37, 4 }
 0x228   : > { %20562 = vst [vmem:[#allocation59_spill] sm:$0xff] %v14931_v16  ;;  %20564 = vst [vmem:[#allocation108_spill] sm:$0xff] %v14940_v30  ;;  %v14942_v59 = vmax.f32 %v6475_v46, 0.0  ;;  %v5999_v55 = vmax.f32 %v5997_v62, %v5998_v58  ;;  %v14949_v9 = vsel %vm7767_vm1, %v8094_v26, %v8093_v11  ;;  %v14951_v23 = vmax.f32 %v6643_v25, 0.0  ;;  %v20569_v25 = vld [vmem:[#allocation64_spill] sm:$0xff] }
 0x229   : > { %v14933_v18 = vpop.f32.mrf.mxu0  ;;  %v14935_v24 = vpop.f32.mrf.mxu1  ;;  %v4814_v17 = vmax.f32 %v4812_v50, %v4813_v48  ;;  %v5989_v6 = vrot.slane %v5988_v28, 2  ;;  %20566 = vst [vmem:[#allocation110_spill] sm:$0xff] %v14949_v9  ;;  %v4833_v44 = vmax.f32 %v4831_v47, %v4832_v0  ;;  %v6009_v31 = vmax.f32 %v6007_v37, %v6008_v61  ;;  %v13086_v61 = vld [vmem:[%s14044_s22 + $0x2c8] sm:$0xff]  }
 0x22a   : > { %20565 = vst [vmem:[#allocation109_spill] sm:$0xff] %v14942_v59  ;;  %20567 = vst [vmem:[#allocation111_spill] sm:$0xff] %v14951_v23  ;;  %v6478_v62 = vadd.f32 %v14629_v51, %v4823_v29  ;;  %v4824_v47 = vmax.f32 %v20569_v25, %v14647_v60  ;;  %v6646_v37 = vadd.f32 %v14629_v51, %v5999_v55  ;;  %v13087_v25 = vld [vmem:[%s14044_s22 + $0x2d0] sm:$0xff]   ;;  %v20572_v9 = vld [vmem:[#allocation68_spill] sm:$0xff] }
 0x22b   : > { %v14944_v63 = vpop.f32.mrf.mxu0  ;;  %12340 = vmatmul.mubr.bf16.gmra.mxu0 %v13077_v49  ;;  %v14946_v14 = vpop.f32.mrf.mxu1  ;;  %12676 = vmatmul.mubr.bf16.gmra.mxu1 %v13078_v15  ;;  %v4815_v46 = vrot.slane %v4814_v17, 1  ;;  %v5990_v58 = vmax.f32 %v5988_v28, %v5989_v6  ;;  %v4834_v49 = vrot.slane %v4833_v44, 2  ;;  %v6010_v26 = vrot.slane %v6009_v31, 2  ;;  %v20570_v28 = vld [vmem:[#allocation65_spill] sm:$0xff] }
 0x22c   : > { %12343 = vmatprep.mubr.bf16.mxu0 %v13085_v10  ;;  %v6987_v10 = vpack.c.bf16 %v14942_v59, %v14942_v59  ;;  %v6000_v29 = vmax.f32 %v20570_v28, %v14649_v56  ;;  %v7155_v6 = vpack.c.bf16 %v14951_v23, %v14951_v23  ;;  %v4825_v60 = vrot.slane %v4824_v47, 4 }
 0x22d   : > { %v14955_v50 = vpop.f32.mrf.mxu0  ;;  %v14957_v53 = vpop.f32.mrf.mxu1  ;;  %v5991_v15 = vrot.slane %v5990_v58, 1  ;;  %v4835_v11 = vmax.f32 %v4833_v44, %v4834_v49  ;;  %v6011_v41 = vmax.f32 %v6009_v31, %v6010_v26  ;;  %v14975_v30 = vmax.f32 %v6478_v62, 0.0 }
 0x22e   : > { %20568 = vst [vmem:[#allocation112_spill] sm:$0xff] %v14957_v53  ;;  %v4816_v59 = vmax.f32 %v4814_v17, %v4815_v46  ;;  %v6001_v55 = vrot.slane %v6000_v29, 4  ;;  %v4845_v16 = vmax.f32 %v20572_v9, %v14686_v40  ;;  %v4826_v53 = vmax.f32 %v4824_v47, %v4825_v60 }
 0x22f   : > { %v14967_v48 = vpop.f32.mrf.mxu0  ;;  %v14969_v0 = vpop.f32.mrf.mxu1  ;;  %20571 = vst [vmem:[#allocation64_spill] sm:$0xff] %v14975_v30  ;;  %v4836_v19 = vrot.slane %v4835_v11, 1  ;;  %v6012_v20 = vrot.slane %v6011_v41, 1  ;;  %v6021_v44 = vmax.f32 %v14662_v13, %v14688_v39  ;;  %v14985_v31 = vunpack.c.l.b16 %v6987_v10 }
 0x230   : > { %v5992_v49 = vmax.f32 %v5990_v58, %v5991_v15  ;;  %v6002_v62 = vmax.f32 %v6000_v29, %v6001_v55  ;;  %v4846_v26 = vrot.slane %v4845_v16, 4  ;;  %v4827_v23 = vrot.slane %v4826_v53, 2  ;;  %v13088_v55 = vld [vmem:[%s14044_s22 + $0x2d8] sm:$0xff]  }
 0x231   : > { %v14979_v56 = vpop.f32.mrf.mxu0  ;;  %v14981_v28 = vpop.f32.mrf.mxu1  ;;  %v4837_v40 = vmax.f32 %v4835_v11, %v4836_v19  ;;  %v6013_v9 = vmax.f32 %v6011_v41, %v6012_v20  ;;  %v6990_v47 = vpack.c.bf16 %v14975_v30, %v14975_v30  ;;  %v14993_v13 = vmax.f32 %v6646_v37, 0.0 }
 0x232   : > { %20573 = vst [vmem:[#allocation65_spill] sm:$0xff] %v14981_v28  ;;  %v6022_v28 = vrot.slane %v6021_v44, 4  ;;  %v6003_v39 = vrot.slane %v6002_v62, 2  ;;  %v4847_v58 = vmax.f32 %v4845_v16, %v4846_v26  ;;  %v6477_v29 = vadd.f32 %v14629_v51, %v4816_v59 }
 0x233   : > { %v14987_v17 = vpop.f32.mrf.mxu0  ;;  %12344 = vmatmul.mubr.bf16.gmra.mxu0 %v13086_v61  ;;  %v14989_v46 = vpop.f32.mrf.mxu1  ;;  %20575 = vst [vmem:[#allocation113_spill] sm:$0xff] %v14993_v13  ;;  %v6480_v20 = vadd.f32 %v14629_v51, %v4837_v40  ;;  %v4828_v19 = vmax.f32 %v4826_v53, %v4827_v23  ;;  %v15001_v11 = vunpack.c.l.b16 %v7155_v6  ;;  %v6645_v61 = vadd.f32 %v14629_v51, %v5992_v49  ;;  %v13089_v40 = vld [vmem:[%s14044_s22 + $0x2e0] sm:$0xff]  }
 0x234   : > { %20574 = vst [vmem:[#allocation68_spill] sm:$0xff] %v14989_v46  ;;  %12347 = vmatprep.mubr.bf16.mxu0 %v13087_v25  ;;  %v6023_v41 = vmax.f32 %v6021_v44, %v6022_v28  ;;  %v6004_v60 = vmax.f32 %v6002_v62, %v6003_v39  ;;  %v4848_v37 = vrot.slane %v4847_v58, 2  ;;  %v6648_v30 = vadd.f32 %v14629_v51, %v6013_v9 }
 0x235   : > { %v14995_v10 = vpop.f32.mrf.mxu0  ;;  %v14997_v15 = vpop.f32.mrf.mxu1  ;;  %20578 = vst [vmem:[#allocation116_spill] sm:$0xff] %v15001_v11  ;;  %v15009_v26 = vmax.f32 %v6480_v20, 0.0  ;;  %v4829_v59 = vrot.slane %v4828_v19, 1  ;;  %v7158_v53 = vpack.c.bf16 %v14993_v13, %v14993_v13  ;;  %v15020_v62 = vunpack.c.l.b16 %v6990_v47 }
 0x236   : > { %20576 = vst [vmem:[#allocation114_spill] sm:$0xff] %v14995_v10  ;;  %20577 = vst [vmem:[#allocation115_spill] sm:$0xff] %v14997_v15  ;;  %v6024_v15 = vrot.slane %v6023_v41, 2  ;;  %v6005_v6 = vrot.slane %v6004_v60, 1  ;;  %v4849_v28 = vmax.f32 %v4847_v58, %v4848_v37  ;;  %v15022_v39 = vmax.f32 %v6477_v29, 0.0 }
 0x237   : > { %v15004_v25 = vpop.f32.mrf.mxu0  ;;  %v15006_v16 = vpop.f32.mrf.mxu1  ;;  %20580 = vst [vmem:[#allocation118_spill] sm:$0xff] %v15009_v26  ;;  %v4830_v20 = vmax.f32 %v4828_v19, %v4829_v59  ;;  %v15024_v10 = vmax.f32 %v6645_v61, 0.0  ;;  %v4838_v23 = vmax.f32 %v14671_v22, %v14697_v54  ;;  %v6992_v47 = vpack.c.bf16 %v15009_v26, %v15009_v26  ;;  %v13091_v26 = vld [vmem:[%s14044_s22 + $0x2f0] sm:$0xff]  }
 0x238   : > { %20579 = vst [vmem:[#allocation117_spill] sm:$0xff] %v15006_v16  ;;  %20581 = vst [vmem:[#allocation119_spill] sm:$0xff] %v15022_v39  ;;  %v6025_v9 = vmax.f32 %v6023_v41, %v6024_v15  ;;  %v6006_v46 = vmax.f32 %v6004_v60, %v6005_v6  ;;  %v4850_v16 = vrot.slane %v4849_v28, 1  ;;  %v15033_v37 = vmax.f32 %v6648_v30, 0.0  ;;  %v20589_v60 = vld [vmem:[#allocation78_spill] sm:$0xff] }
 0x239   : > { %v15016_v44 = vpop.f32.mrf.mxu0  ;;  %v15018_v49 = vpop.f32.mrf.mxu1  ;;  %20582 = vst [vmem:[#allocation120_spill] sm:$0xff] %v15024_v10  ;;  %v6479_v15 = vadd.f32 %v14629_v51, %v4830_v20  ;;  %v4839_v41 = vrot.slane %v4838_v23, 4  ;;  %v6014_v22 = vmax.f32 %v14673_v3, %v14699_v27  ;;  %v6989_v30 = vpack.c.bf16 %v15022_v39, %v15022_v39  ;;  %v20590_v39 = vld [vmem:[#allocation72_spill] sm:$0xff] }
 0x23a   : > { %20584 = vst [vmem:[#allocation122_spill] sm:$0xff] %v15033_v37  ;;  %v6026_v29 = vrot.slane %v6025_v9, 1  ;;  %v4851_v19 = vmax.f32 %v4849_v28, %v4850_v16  ;;  %v6647_v59 = vadd.f32 %v14629_v51, %v6006_v46  ;;  %v7157_v16 = vpack.c.bf16 %v15024_v10, %v15024_v10  ;;  %v13090_v28 = vld [vmem:[%s14044_s22 + $0x2e8] sm:$0xff]  }
 0x23b   : > { %v15028_v13 = vpop.f32.mrf.mxu0  ;;  %12348 = vmatmul.mubr.bf16.gmra.mxu0 %v13088_v55  ;;  %v15038_v54 = vpop.f32.mrf.mxu1  ;;  %v15043_v55 = vunpack.c.l.b16 %v7158_v53  ;;  %v4840_v6 = vmax.f32 %v4838_v23, %v4839_v41  ;;  %v6015_v3 = vrot.slane %v6014_v22, 4  ;;  %v7160_v20 = vpack.c.bf16 %v15033_v37, %v15033_v37 }
 0x23c   : > { %20583 = vst [vmem:[#allocation121_spill] sm:$0xff] %v15028_v13  ;;  %12351 = vmatprep.mubr.bf16.mxu0 %v13089_v40  ;;  %20585 = vst [vmem:[#allocation123_spill] sm:$0xff] %v15038_v54  ;;  %v6027_v40 = vmax.f32 %v6025_v9, %v6026_v29  ;;  %v6482_v53 = vadd.f32 %v14629_v51, %v4851_v19  ;;  %v4859_v58 = vmax.f32 %v14708_v57, %v14725_v52 }
 0x23d   : > { %v15040_v61 = vpop.f32.mrf.mxu0  ;;  %20587 = vst [vmem:[#allocation125_spill] sm:$0xff] %v15043_v55  ;;  %v6035_v46 = vmax.f32 %v20590_v39, %v20589_v60  ;;  %v15061_v11 = vunpack.c.l.b16 %v6992_v47  ;;  %v15063_v9 = vmax.f32 %v6479_v15, 0.0  ;;  %v4841_v23 = vrot.slane %v4840_v6, 2  ;;  %v15065_v41 = vpop.f32.mrf.mxu1  ;;  %v20621_v55 = vld [vmem:[#allocation56_spill] sm:$0xff] }
 0x23e   : > { %20586 = vst [vmem:[#allocation124_spill] sm:$0xff] %v15040_v61  ;;  %v6016_v29 = vmax.f32 %v6014_v22, %v6015_v3  ;;  %20592 = vst [vmem:[#allocation72_spill] sm:$0xff] %v15065_v41  ;;  %v15069_v37 = vunpack.c.l.b16 %v6989_v30  ;;  %v15071_v19 = vmax.f32 %v6647_v59, 0.0  ;;  %v4860_v61 = vrot.slane %v4859_v58, 4  ;;  %v20602_v59 = vld [vmem:[#allocation81_spill] sm:$0xff] }
 0x23f   : > { %v15050_v27 = vpop.f32.mrf.mxu0  ;;  %20591 = vst [vmem:[#allocation78_spill] sm:$0xff] %v15063_v9  ;;  %v6036_v57 = vrot.slane %v6035_v46, 4  ;;  %v15073_v52 = vunpack.c.l.b16 %v7157_v16  ;;  %v6650_v39 = vadd.f32 %v14629_v51, %v6027_v40  ;;  %v4842_v47 = vmax.f32 %v4840_v6, %v4841_v23  ;;  %v15085_v6 = vpop.f32.mrf.mxu1 }
 0x240   : > { %20588 = vst [vmem:[#allocation126_spill] sm:$0xff] %v15050_v27  ;;  %20594 = vst [vmem:[#allocation128_spill] sm:$0xff] %v15071_v19  ;;  %v6017_v60 = vrot.slane %v6016_v29, 2  ;;  %v15078_v22 = vunpack.c.l.b16 %v7160_v20  ;;  %v15080_v3 = vmax.f32 %v6482_v53, 0.0  ;;  %v4861_v41 = vmax.f32 %v4859_v58, %v4860_v61  ;;  %v20600_v58 = vld [vmem:[#allocation74_spill] sm:$0xff] }
 0x241   : > { %v15067_v10 = vpop.f32.mrf.mxu0  ;;  %20595 = vst [vmem:[#allocation129_spill] sm:$0xff] %v15073_v52  ;;  %v6037_v30 = vmax.f32 %v6035_v46, %v6036_v57  ;;  %v6991_v16 = vpack.c.bf16 %v15063_v9, %v15063_v9  ;;  %20598 = vst [vmem:[#allocation132_spill] sm:$0xff] %v15085_v6  ;;  %v15093_v61 = vmax.f32 %v6650_v39, 0.0  ;;  %v20603_v9 = vld [vmem:[#allocation75_spill] sm:$0xff]  ;;  %v15105_v39 = vpop.f32.mrf.mxu1  ;;  %v20623_v52 = vld [vmem:[#allocation52_spill] sm:$0xff] }
 0x242   : > { %20593 = vst [vmem:[#allocation127_spill] sm:$0xff] %v15067_v10  ;;  %20597 = vst [vmem:[#allocation131_spill] sm:$0xff] %v15080_v3  ;;  %v4843_v10 = vrot.slane %v4842_v47, 1  ;;  %v6018_v40 = vmax.f32 %v6016_v29, %v6017_v60  ;;  %v4862_v20 = vrot.slane %v4861_v41, 2  ;;  %v13092_v60 = vld [vmem:[%s14044_s22 + $0x2f8] sm:$0xff]  }
 0x243   : > { %v15076_v15 = vpop.f32.mrf.mxu0  ;;  %12352 = vmatmul.mubr.bf16.gmra.mxu0 %v13090_v28  ;;  %v7159_v28 = vpack.c.bf16 %v15071_v19, %v15071_v19  ;;  %v6038_v53 = vrot.slane %v6037_v30, 2  ;;  %20601 = vst [vmem:[#allocation74_spill] sm:$0xff] %v15093_v61 }
 0x244   : > { %20596 = vst [vmem:[#allocation130_spill] sm:$0xff] %v15076_v15  ;;  %12355 = vmatprep.mubr.bf16.mxu0 %v13091_v26  ;;  %v4852_v26 = vmax.f32 %v20600_v58, %v14739_v21  ;;  %v4844_v46 = vmax.f32 %v4842_v47, %v4843_v10  ;;  %v6019_v57 = vrot.slane %v6018_v40, 1  ;;  %v6028_v15 = vmax.f32 %v20603_v9, %v20602_v59 }
 0x245   : > { %v15087_v23 = vpop.f32.mrf.mxu0  ;;  %v4863_v54 = vmax.f32 %v4861_v41, %v4862_v20  ;;  %v6039_v19 = vmax.f32 %v6037_v30, %v6038_v53  ;;  %v4873_v10 = vmax.f32 %v14750_v32, %v14776_v2 }
 0x246   : > { %20599 = vst [vmem:[#allocation133_spill] sm:$0xff] %v15087_v23  ;;  %v6994_v23 = vpack.c.bf16 %v15080_v3, %v15080_v3  ;;  %v4853_v6 = vrot.slane %v4852_v26, 4  ;;  %v6481_v13 = vadd.f32 %v14629_v51, %v4844_v46  ;;  %v6020_v27 = vmax.f32 %v6018_v40, %v6019_v57 }
 0x247   : > { %v15097_v29 = vpop.f32.mrf.mxu0  ;;  %v6029_v21 = vrot.slane %v6028_v15, 4  ;;  %v4864_v9 = vrot.slane %v4863_v54, 1  ;;  %v6040_v59 = vrot.slane %v6039_v19, 1  ;;  %v6049_v3 = vmax.f32 %v14752_v5, %v14778_v7  ;;  %v15120_v7 = vpop.f32.mrf.mxu1 }
 0x248   : > { %v4854_v58 = vmax.f32 %v4852_v26, %v4853_v6  ;;  %v15111_v41 = vmax.f32 %v6481_v13, 0.0  ;;  %v6649_v30 = vadd.f32 %v14629_v51, %v6020_v27  ;;  %v4874_v40 = vrot.slane %v4873_v10, 4 }
 0x249   : > { %v15107_v47 = vpop.f32.mrf.mxu0  ;;  %v6030_v20 = vmax.f32 %v6028_v15, %v6029_v21  ;;  %v4865_v32 = vmax.f32 %v4863_v54, %v4864_v9  ;;  %v6041_v2 = vmax.f32 %v6039_v19, %v6040_v59  ;;  %v6050_v57 = vrot.slane %v6049_v3, 4  ;;  %v15128_v21 = vld [vmem:[#allocation7] ss:$0 sm:$0xff] }
 0x24a   : > { %20604 = vst [vmem:[#allocation81_spill] sm:$0xff] %v15107_v47  ;;  %20605 = vst [vmem:[#allocation75_spill] sm:$0xff] %v15111_v41  ;;  %v4855_v46 = vrot.slane %v4854_v58, 2  ;;  %v7162_v47 = vpack.c.bf16 %v15093_v61, %v15093_v61  ;;  %v15118_v6 = vmax.f32 %v6649_v30, 0.0  ;;  %v4875_v5 = vmax.f32 %v4873_v10, %v4874_v40 }
 0x24b   : > { %v15114_v53 = vpop.f32.mrf.mxu0  ;;  %12356 = vmatmul.mubr.bf16.gmra.mxu0 %v13092_v60  ;;  %v6031_v26 = vrot.slane %v6030_v20, 2  ;;  %v6993_v27 = vpack.c.bf16 %v15111_v41, %v15111_v41  ;;  %v6484_v54 = vadd.f32 %v14629_v51, %v4865_v32  ;;  %v6051_v15 = vmax.f32 %v6049_v3, %v6050_v57  ;;  %v13094_v51 = vld [vmem:[%s14044_s22 + $0x308] sm:$0xff]  }
 0x24c   : > { %20606 = vst [vmem:[#allocation134_spill] sm:$0xff] %v15114_v53  ;;  %20607 = vst [vmem:[#allocation135_spill] sm:$0xff] %v15118_v6  ;;  %v4856_v19 = vmax.f32 %v4854_v58, %v4855_v46  ;;  %v8106_v60 = vrot.slane %v15078_v22, 7  ;;  %v6652_v9 = vadd.f32 %v15128_v21, %v6041_v2  ;;  %v4876_v59 = vrot.slane %v4875_v5, 2  ;;  %v13093_v53 = vld [vmem:[%s14044_s22 + $0x300] sm:$0xff]   ;;  %v15139_v46 = vpop.f32.mrf.mxu1 }
 0x24d   : > { %v15122_v13 = vpop.f32.mrf.mxu0  ;;  %v6032_v10 = vmax.f32 %v6030_v20, %v6031_v26  ;;  %v7531_v40 = vunpack.c.l.b16 %v6991_v16  ;;  %v7161_v61 = vpack.c.bf16 %v15118_v6, %v15118_v6  ;;  %v6052_v41 = vrot.slane %v6051_v15, 2  ;;  %20611 = vst [vmem:[#allocation139_spill] sm:$0xff] %v15139_v46  ;;  %12359 = vmatprep.mubr.bf16.mxu0 %v13093_v53  ;;  %v13095_v6 = vld [vmem:[%s14044_s22 + $0x310] sm:$0xff]  }
 0x24e   : > { %20608 = vst [vmem:[#allocation136_spill] sm:$0xff] %v15122_v13  ;;  %v4857_v13 = vrot.slane %v4856_v19, 1  ;;  %v7699_v58 = vunpack.c.l.b16 %v7159_v28  ;;  %v15137_v3 = vmax.f32 %v6484_v54, 0.0  ;;  %v4877_v32 = vmax.f32 %v4875_v5, %v4876_v59  ;;  %v20619_v59 = vld [vmem:[#allocation84_spill] sm:$0xff]  ;;  %v13096_v28 = vld [vmem:[%s14044_s22 + $0x318] sm:$0xff]  }
 0x24f   : > { %v15131_v30 = vpop.f32.mrf.mxu0  ;;  %v6033_v22 = vrot.slane %v6032_v10, 1  ;;  %v15143_v20 = vunpack.c.l.b16 %v6994_v23  ;;  %v15145_v57 = vunpack.c.l.b16 %v7162_v47  ;;  %v7533_v16 = vunpack.c.l.b16 %v6993_v27 }
 0x250   : > { %20609 = vst [vmem:[#allocation137_spill] sm:$0xff] %v15131_v30  ;;  %20610 = vst [vmem:[#allocation138_spill] sm:$0xff] %v15137_v3  ;;  %v4858_v26 = vmax.f32 %v4856_v19, %v4857_v13  ;;  %v15149_v54 = vmax.f32 %v6652_v9, 0.0  ;;  %v6053_v30 = vmax.f32 %v6051_v15, %v6052_v41  ;;  %v20616_v23 = vrot.slane %v15061_v11, 7  ;;  %v15162_v15 = vpop.f32.mrf.mxu1 }
 0x251   : > { %v15141_v2 = vpop.f32.mrf.mxu0  ;;  %20613 = vst [vmem:[#allocation141_spill] sm:$0xff] %v15145_v57  ;;  %v7701_v27 = vunpack.c.l.b16 %v7161_v61  ;;  %v6034_v13 = vmax.f32 %v6032_v10, %v6033_v22  ;;  %v8107_v53 = vsel %vm7764_vm0, %v8106_v60, %v7699_v58  ;;  %v6996_v19 = vpack.c.bf16 %v15137_v3, %v15137_v3  ;;  %v20622_v61 = vld [vmem:[#allocation89_spill] sm:$0xff] }
 0x252   : > { %20612 = vst [vmem:[#allocation140_spill] sm:$0xff] %v15141_v2  ;;  %20614 = vst [vmem:[#allocation142_spill] sm:$0xff] %v15149_v54  ;;  %v7813_v47 = vsel %vm7764_vm0, %v20616_v23, %v7531_v40  ;;  %v4878_v9 = vrot.slane %v4877_v32, 1  ;;  %v4866_v41 = vmax.f32 %v14765_v38, %v14792_v4  ;;  %v7814_v10 = vrot.slane %v7533_v16, 6  ;;  %v20618_v23 = vld [vmem:[#allocation86_spill] sm:$0xff]  ;;  %v15184_v46 = vpop.f32.mrf.mxu1 }
 0x253   : > { %v15151_v5 = vpop.f32.mrf.mxu0  ;;  %12360 = vmatmul.mubr.bf16.gmra.mxu0 %v13094_v51  ;;  %v6483_v60 = vadd.f32 %v15128_v21, %v4858_v26  ;;  %v7164_v40 = vpack.c.bf16 %v15149_v54, %v15149_v54  ;;  %v6054_v58 = vrot.slane %v6053_v30, 1  ;;  %v6042_v4 = vmax.f32 %v20619_v59, %v20618_v23  ;;  %v20624_v26 = vld [vmem:[#allocation90_spill] sm:$0xff] }
 0x254   : > { %20615 = vst [vmem:[#allocation143_spill] sm:$0xff] %v15151_v5  ;;  %v4867_v22 = vrot.slane %v4866_v41, 4  ;;  %12363 = vmatprep.mubr.bf16.mxu0 %v13095_v6  ;;  %v8108_v3 = vrot.slane %v7701_v27, 6  ;;  %v6651_v11 = vadd.f32 %v15128_v21, %v6034_v13  ;;  %v4887_v16 = vmax.f32 %v20622_v61, %v20621_v55 }
 0x255   : > { %v15164_v51 = vpop.f32.mrf.mxu0  ;;  %v6063_v57 = vmax.f32 %v20624_v26, %v20623_v52  ;;  %v4879_v54 = vmax.f32 %v4877_v32, %v4878_v9  ;;  %v6043_v2 = vrot.slane %v6042_v4, 4  ;;  %v15189_v6 = vsel %vm7767_vm1, %v7814_v10, %v7813_v47 }
 0x256   : > { %20617 = vst [vmem:[#allocation144_spill] sm:$0xff] %v15164_v51  ;;  %v15182_v51 = vunpack.c.l.b16 %v6996_v19  ;;  %v4868_v5 = vmax.f32 %v4866_v41, %v4867_v22  ;;  %v15191_v27 = vmax.f32 %v6483_v60, 0.0  ;;  %v4888_v13 = vrot.slane %v4887_v16, 4 }
 0x257   : > { %v15174_v38 = vpop.f32.mrf.mxu0  ;;  %v6064_v23 = vrot.slane %v6063_v57, 4  ;;  %v15193_v55 = vunpack.c.l.b16 %v7164_v40  ;;  %v6055_v61 = vmax.f32 %v6053_v30, %v6054_v58  ;;  %v6044_v19 = vmax.f32 %v6042_v4, %v6043_v2  ;;  %v20632_v58 = vld [vmem:[#allocation96_spill] sm:$0xff] }
 0x258   : > { %20620 = vst [vmem:[#allocation86_spill] sm:$0xff] %v15174_v38  ;;  %20626 = vst [vmem:[#allocation56_spill] sm:$0xff] %v15191_v27  ;;  %v4869_v52 = vrot.slane %v4868_v5, 2  ;;  %v15198_v32 = vsel %vm7767_vm1, %v8108_v3, %v8107_v53  ;;  %v15200_v9 = vmax.f32 %v6651_v11, 0.0  ;;  %v4889_v41 = vmax.f32 %v4887_v16, %v4888_v13  ;;  %v20633_v3 = vld [vmem:[#allocation91_spill] sm:$0xff]  ;;  %v20635_v13 = vld [vmem:[#allocation97_spill] sm:$0xff] }
 0x259   : > { %v15186_v59 = vpop.f32.mrf.mxu0  ;;  %20627 = vst [vmem:[#allocation89_spill] sm:$0xff] %v15193_v55  ;;  %20629 = vst [vmem:[#allocation90_spill] sm:$0xff] %v15198_v32  ;;  %v6065_v47 = vmax.f32 %v6063_v57, %v6064_v23  ;;  %v6486_v60 = vadd.f32 %v15128_v21, %v4879_v54  ;;  %v6045_v40 = vrot.slane %v6044_v19, 2  ;;  %v6995_v30 = vpack.c.bf16 %v15191_v27, %v15191_v27  ;;  %v20636_v54 = vld [vmem:[#allocation92_spill] sm:$0xff] }
 0x25a   : > { %20625 = vst [vmem:[#allocation84_spill] sm:$0xff] %v15186_v59  ;;  %20630 = vst [vmem:[#allocation145_spill] sm:$0xff] %v15200_v9  ;;  %v4870_v22 = vmax.f32 %v4868_v5, %v4869_v52  ;;  %v15204_v59 = vpop.f32.mrf.mxu1  ;;  %v4890_v2 = vrot.slane %v4889_v41, 2  ;;  %v4880_v53 = vmax.f32 %v20633_v3, %v20632_v58  ;;  %v6654_v57 = vadd.f32 %v15128_v21, %v6055_v61 }
 0x25b   : > { %v15195_v26 = vpop.f32.mrf.mxu0  ;;  %12364 = vmatmul.mubr.bf16.gmra.mxu0 %v13096_v28  ;;  %20631 = vst [vmem:[#allocation146_spill] sm:$0xff] %v15204_v59  ;;  %v6066_v28 = vrot.slane %v6065_v47, 2  ;;  %v6046_v16 = vmax.f32 %v6044_v19, %v6045_v40  ;;  %v6056_v5 = vmax.f32 %v20636_v54, %v20635_v13  ;;  %v7163_v23 = vpack.c.bf16 %v15200_v9, %v15200_v9  ;;  %v20638_v40 = vld [vmem:[#allocation98_spill] sm:$0xff] }
 0x25c   : > { %20628 = vst [vmem:[#allocation52_spill] sm:$0xff] %v15195_v26  ;;  %v4871_v4 = vrot.slane %v4870_v22, 1  ;;  %v4891_v52 = vmax.f32 %v4889_v41, %v4890_v2  ;;  %v4881_v27 = vrot.slane %v4880_v53, 4  ;;  %v4901_v58 = vmax.f32 %v14852_v8, %v14867_v43  ;;  %v15219_v3 = vpop.f32.mrf.mxu1 }
 0x25d   : > { %v15210_v11 = vpop.f32.mrf.mxu0  ;;  %v6067_v10 = vmax.f32 %v6065_v47, %v6066_v28  ;;  %v6047_v26 = vrot.slane %v6046_v16, 1  ;;  %v6057_v38 = vrot.slane %v6056_v5, 4  ;;  %20637 = vst [vmem:[#allocation91_spill] sm:$0xff] %v15219_v3  ;;  %v6077_v13 = vmax.f32 %v20638_v40, %v14869_v45 }
 0x25e   : > { %20634 = vst [vmem:[#allocation96_spill] sm:$0xff] %v15210_v11  ;;  %v4872_v32 = vmax.f32 %v4870_v22, %v4871_v4  ;;  %v4892_v61 = vrot.slane %v4891_v52, 1  ;;  %v4882_v19 = vmax.f32 %v4880_v53, %v4881_v27  ;;  %v15225_v9 = vmax.f32 %v6486_v60, 0.0  ;;  %v15230_v53 = vpop.f32.mrf.mxu1 }
 0x25f   : > { %v6068_v11 = vrot.slane %v6067_v10, 1  ;;  %v15223_v54 = vpop.f32.mrf.mxu0  ;;  %v6048_v41 = vmax.f32 %v6046_v16, %v6047_v26  ;;  %v6058_v47 = vmax.f32 %v6056_v5, %v6057_v38  ;;  %v4902_v22 = vrot.slane %v4901_v58, 4 }
 0x260   : > { %20639 = vst [vmem:[#allocation97_spill] sm:$0xff] %v15225_v9  ;;  %v4893_v2 = vmax.f32 %v4891_v52, %v4892_v61  ;;  %v4883_v4 = vrot.slane %v4882_v19, 2  ;;  %v6078_v59 = vrot.slane %v6077_v13, 4  ;;  %v15227_v8 = vmax.f32 %v6654_v57, 0.0 }
 0x261   : > { %v6069_v28 = vmax.f32 %v6067_v10, %v6068_v11  ;;  %v6485_v43 = vadd.f32 %v15128_v21, %v4872_v32  ;;  %v6059_v3 = vrot.slane %v6058_v47, 2  ;;  %v4903_v27 = vmax.f32 %v4901_v58, %v4902_v22  ;;  %v15234_v38 = vpop.f32.mrf.mxu0  ;;  %v13097_v22 = vld [vmem:[%s14044_s22 + $0x320] sm:$0xff]  }
 0x262   : > { %20640 = vst [vmem:[#allocation92_spill] sm:$0xff] %v15227_v8  ;;  %v6488_v45 = vadd.f32 %v15128_v21, %v4893_v2  ;;  %v4884_v40 = vmax.f32 %v4882_v19, %v4883_v4  ;;  %v6079_v26 = vmax.f32 %v6077_v13, %v6078_v59  ;;  %20641 = vst [vmem:[#allocation98_spill] sm:$0xff] %v15234_v38  ;;  %v15236_v16 = vunpack.c.l.b16 %v6995_v30  ;;  %v15247_v13 = vpop.f32.mrf.mxu1 }
 0x263   : > { %v6656_v60 = vadd.f32 %v15128_v21, %v6069_v28  ;;  %v6653_v10 = vadd.f32 %v15128_v21, %v6048_v41  ;;  %v6060_v11 = vmax.f32 %v6058_v47, %v6059_v3  ;;  %v4904_v57 = vrot.slane %v4903_v27, 2  ;;  %v15254_v2 = vpop.f32.mrf.mxu0  ;;  %v13098_v28 = vld [vmem:[%s14044_s22 + $0x328] sm:$0xff]   ;;  %12367 = vmatprep.mubr.bf16.mxu0 %v13097_v22 }
 0x264   : > { %v15239_v32 = vunpack.c.l.b16 %v7163_v23  ;;  %v15241_v5 = vmax.f32 %v6488_v45, 0.0  ;;  %v4885_v52 = vrot.slane %v4884_v40, 1  ;;  %v6080_v58 = vrot.slane %v6079_v26, 2  ;;  %20646 = vst [vmem:[#allocation151_spill] sm:$0xff] %v15254_v2  ;;  %v15271_v4 = vpop.f32.mrf.mxu1  ;;  %12368 = vmatmul.mubr.bf16.gmra.mxu0 %v13098_v28  ;;  %v20653_v28 = vld [vmem:[#allocation100_spill] sm:$0xff] }
 0x265   : > { %v6998_v61 = vpack.c.bf16 %v15225_v9, %v15225_v9  ;;  %v15245_v59 = vmax.f32 %v6656_v60, 0.0  ;;  %v6061_v19 = vrot.slane %v6060_v11, 1  ;;  %v4905_v30 = vmax.f32 %v4903_v27, %v4904_v57  ;;  %v13099_v9 = vld [vmem:[%s14044_s22 + $0x330] sm:$0xff]  }
 0x266   : > { %20642 = vst [vmem:[#allocation147_spill] sm:$0xff] %v15239_v32  ;;  %20643 = vst [vmem:[#allocation148_spill] sm:$0xff] %v15241_v5  ;;  %v7166_v3 = vpack.c.bf16 %v15227_v8, %v15227_v8  ;;  %v15251_v41 = vmax.f32 %v6485_v43, 0.0  ;;  %v4886_v23 = vmax.f32 %v4884_v40, %v4885_v52  ;;  %v6081_v47 = vmax.f32 %v6079_v26, %v6080_v58  ;;  %v15264_v26 = vpop.f32.mrf.mxu0 }
 0x267   : > { %20644 = vst [vmem:[#allocation149_spill] sm:$0xff] %v15245_v59  ;;  %v15258_v45 = vmax.f32 %v6653_v10, 0.0  ;;  %v6062_v60 = vmax.f32 %v6060_v11, %v6061_v19  ;;  %v4906_v27 = vrot.slane %v4905_v30, 1  ;;  %v7000_v43 = vpack.c.bf16 %v15241_v5, %v15241_v5  ;;  %20648 = vst [vmem:[#allocation153_spill] sm:$0xff] %v15264_v26  ;;  %v20649_v11 = vld [vmem:[#allocation99_spill] sm:$0xff]  ;;  %12371 = vmatprep.mubr.bf16.mxu0 %v13099_v9 }
 0x268   : > { %20645 = vst [vmem:[#allocation150_spill] sm:$0xff] %v15251_v41  ;;  %v6082_v40 = vrot.slane %v6081_v47, 1  ;;  %v7168_v52 = vpack.c.bf16 %v15245_v59, %v15245_v59  ;;  %v6487_v58 = vadd.f32 %v15128_v21, %v4886_v23  ;;  %v4894_v19 = vmax.f32 %v20649_v11, %v14879_v42  ;;  %v15281_v59 = vpop.f32.mrf.mxu0 }
 0x269   : > { %20647 = vst [vmem:[#allocation152_spill] sm:$0xff] %v15258_v45  ;;  %v4907_v10 = vmax.f32 %v4905_v30, %v4906_v27  ;;  %v15274_v57 = vunpack.c.l.b16 %v6998_v61  ;;  %v15276_v8 = vunpack.c.l.b16 %v7166_v3  ;;  %v6997_v22 = vpack.c.bf16 %v15251_v41, %v15251_v41  ;;  %20651 = vst [vmem:[#allocation154_spill] sm:$0xff] %v15281_v59  ;;  %v20652_v27 = vld [vmem:[#allocation102_spill] sm:$0xff] }
 0x26a   : > { %v6655_v5 = vadd.f32 %v15128_v21, %v6062_v60  ;;  %v7165_v30 = vpack.c.bf16 %v15258_v45, %v15258_v45  ;;  %v6083_v42 = vmax.f32 %v6081_v47, %v6082_v40  ;;  %v4895_v23 = vrot.slane %v4894_v19, 4  ;;  %v15298_v45 = vpop.f32.mrf.mxu1  ;;  %v15305_v26 = vpop.f32.mrf.mxu0 }
 0x26b   : > { %20650 = vst [vmem:[#allocation99_spill] sm:$0xff] %v15276_v8  ;;  %v6070_v11 = vmax.f32 %v20653_v28, %v20652_v27  ;;  %v15287_v61 = vunpack.c.l.b16 %v7000_v43  ;;  %v6490_v3 = vadd.f32 %v15128_v21, %v4907_v10  ;;  %v4915_v41 = vmax.f32 %v14898_v36, %v14919_v12  ;;  %v13100_v27 = vld [vmem:[%s14044_s22 + $0x338] sm:$0xff]   ;;  %20656 = vst [vmem:[#allocation155_spill] sm:$0xff] %v15305_v26  ;;  %v20683_v8 = vld [vmem:[#allocation77_spill] sm:$0xff] }
 0x26c   : > { %v6091_v60 = vmax.f32 %v14900_v1, %v14921_v34  ;;  %v15294_v55 = vunpack.c.l.b16 %v7168_v52  ;;  %v15296_v32 = vmax.f32 %v6487_v58, 0.0  ;;  %v4896_v47 = vmax.f32 %v4894_v19, %v4895_v23  ;;  %v15316_v26 = vpop.f32.mrf.mxu1  ;;  %12372 = vmatmul.mubr.bf16.gmra.mxu0 %v13100_v27 }
 0x26d   : > { %v6071_v40 = vrot.slane %v6070_v11, 4  ;;  %v15301_v9 = vunpack.c.l.b16 %v6997_v22  ;;  %v15303_v43 = vmax.f32 %v6655_v5, 0.0  ;;  %v4916_v10 = vrot.slane %v4915_v41, 4 }
 0x26e   : > { %20654 = vst [vmem:[#allocation102_spill] sm:$0xff] %v15296_v32  ;;  %v6092_v28 = vrot.slane %v6091_v60, 4  ;;  %v15307_v36 = vunpack.c.l.b16 %v7165_v30  ;;  %v6658_v1 = vadd.f32 %v15128_v21, %v6083_v42  ;;  %v4897_v12 = vrot.slane %v4896_v47, 2 }
 0x26f   : > { %20655 = vst [vmem:[#allocation100_spill] sm:$0xff] %v15303_v43  ;;  %v6072_v34 = vmax.f32 %v6070_v11, %v6071_v40  ;;  %v15311_v58 = vmax.f32 %v6490_v3, 0.0  ;;  %v4917_v19 = vmax.f32 %v4915_v41, %v4916_v10  ;;  %v6999_v5 = vpack.c.bf16 %v15296_v32, %v15296_v32  ;;  %v15322_v41 = vpop.f32.mrf.mxu0 }
 0x270   : > { %20657 = vst [vmem:[#allocation156_spill] sm:$0xff] %v15307_v36  ;;  %v6093_v23 = vmax.f32 %v6091_v60, %v6092_v28  ;;  %v4898_v2 = vmax.f32 %v4896_v47, %v4897_v12  ;;  %v7167_v30 = vpack.c.bf16 %v15303_v43, %v15303_v43  ;;  %v4908_v3 = vmax.f32 %v14910_v33, %v14933_v18  ;;  %v15332_v33 = vpop.f32.mrf.mxu1 }
 0x271   : > { %20658 = vst [vmem:[#allocation157_spill] sm:$0xff] %v15311_v58  ;;  %v6073_v59 = vrot.slane %v6072_v34, 2  ;;  %v4918_v42 = vrot.slane %v4917_v19, 2  ;;  %20659 = vst [vmem:[#allocation158_spill] sm:$0xff] %v15322_v41  ;;  %v15324_v60 = vmax.f32 %v6658_v1, 0.0  ;;  %v6084_v47 = vmax.f32 %v14912_v35, %v14935_v24  ;;  %v15336_v35 = vpop.f32.mrf.mxu0 }
 0x272   : > { %v6094_v11 = vrot.slane %v6093_v23, 2  ;;  %v4899_v40 = vrot.slane %v4898_v2, 1  ;;  %v7002_v27 = vpack.c.bf16 %v15311_v58, %v15311_v58  ;;  %v4909_v22 = vrot.slane %v4908_v3, 4  ;;  %20661 = vst [vmem:[#allocation160_spill] sm:$0xff] %v15336_v35 }
 0x273   : > { %20660 = vst [vmem:[#allocation159_spill] sm:$0xff] %v15324_v60  ;;  %v6074_v10 = vmax.f32 %v6072_v34, %v6073_v59  ;;  %v4919_v28 = vmax.f32 %v4917_v19, %v4918_v42  ;;  %v6085_v32 = vrot.slane %v6084_v47, 4  ;;  %v4929_v18 = vmax.f32 %v14944_v63, %v14967_v48 }
 0x274   : > { %v6095_v12 = vmax.f32 %v6093_v23, %v6094_v11  ;;  %v4900_v52 = vmax.f32 %v4898_v2, %v4899_v40  ;;  %v4910_v59 = vmax.f32 %v4908_v3, %v4909_v22  ;;  %v6105_v24 = vmax.f32 %v14946_v14, %v14969_v0  ;;  %v15342_v3 = vpop.f32.mrf.mxu1 }
 0x275   : > { %v6075_v43 = vrot.slane %v6074_v10, 1  ;;  %v4920_v1 = vrot.slane %v4919_v28, 1  ;;  %v6086_v23 = vmax.f32 %v6084_v47, %v6085_v32  ;;  %v4930_v2 = vrot.slane %v4929_v18, 4  ;;  %v15346_v32 = vpop.f32.mrf.mxu0 }
 0x276   : > { %v6096_v41 = vrot.slane %v6095_v12, 1  ;;  %v6489_v34 = vadd.f32 %v15128_v21, %v4900_v52  ;;  %v4911_v40 = vrot.slane %v4910_v59, 2  ;;  %v6106_v58 = vrot.slane %v6105_v24, 4  ;;  %20663 = vst [vmem:[#allocation162_spill] sm:$0xff] %v15346_v32 }
 0x277   : > { %v6076_v19 = vmax.f32 %v6074_v10, %v6075_v43  ;;  %v4921_v42 = vmax.f32 %v4919_v28, %v4920_v1  ;;  %v6087_v38 = vrot.slane %v6086_v23, 2  ;;  %v4931_v22 = vmax.f32 %v4929_v18, %v4930_v2  ;;  %v15358_v2 = vpop.f32.mrf.mxu1 }
 0x278   : > { %v6097_v11 = vmax.f32 %v6095_v12, %v6096_v41  ;;  %v15339_v63 = vmax.f32 %v6489_v34, 0.0  ;;  %v4912_v52 = vmax.f32 %v4910_v59, %v4911_v40  ;;  %v6107_v43 = vmax.f32 %v6105_v24, %v6106_v58 }
 0x279   : > { %v6657_v48 = vadd.f32 %v15128_v21, %v6076_v19  ;;  %v6492_v14 = vadd.f32 %v15128_v21, %v4921_v42  ;;  %v7170_v41 = vpack.c.bf16 %v15324_v60, %v15324_v60  ;;  %v6088_v47 = vmax.f32 %v6086_v23, %v6087_v38 }
 0x27a   : > { %20662 = vst [vmem:[#allocation161_spill] sm:$0xff] %v15339_v63  ;;  %v6660_v0 = vadd.f32 %v15128_v21, %v6097_v11  ;;  %v7001_v10 = vpack.c.bf16 %v15339_v63, %v15339_v63  ;;  %v4932_v28 = vrot.slane %v4931_v22, 2  ;;  %v7539_v12 = vunpack.c.l.b16 %v6999_v5  ;;  %v15362_v5 = vpop.f32.mrf.mxu0  ;;  %v13101_v63 = vld [vmem:[%s14044_s22 + $0x340] sm:$0xff]  }
 0x27b   : > { %v15352_v18 = vmax.f32 %v6657_v48, 0.0  ;;  %v4913_v1 = vrot.slane %v4912_v52, 1  ;;  %v6108_v34 = vrot.slane %v6107_v43, 2  ;;  %v15354_v59 = vmax.f32 %v6492_v14, 0.0  ;;  %20667 = vst [vmem:[#allocation166_spill] sm:$0xff] %v15362_v5  ;;  %12375 = vmatprep.mubr.bf16.mxu0 %v13101_v63  ;;  %v20695_v5 = vld [vmem:[#allocation103_spill] sm:$0xff] }
 0x27c   : > { %v15356_v58 = vmax.f32 %v6660_v0, 0.0  ;;  %v6089_v24 = vrot.slane %v6088_v47, 1  ;;  %v4933_v19 = vmax.f32 %v4931_v22, %v4932_v28  ;;  %v7707_v42 = vunpack.c.l.b16 %v7167_v30  ;;  %v13102_v0 = vld [vmem:[%s14044_s22 + $0x348] sm:$0xff]   ;;  %v15381_v28 = vpop.f32.mrf.mxu1 }
 0x27d   : > { %20664 = vst [vmem:[#allocation163_spill] sm:$0xff] %v15352_v18  ;;  %20665 = vst [vmem:[#allocation164_spill] sm:$0xff] %v15354_v59  ;;  %v15360_v11 = vunpack.c.l.b16 %v7002_v27  ;;  %v4914_v38 = vmax.f32 %v4912_v52, %v4913_v1  ;;  %v6109_v23 = vmax.f32 %v6107_v43, %v6108_v34  ;;  %v15365_v48 = vunpack.c.l.b16 %v7170_v41  ;;  %v15373_v52 = vpop.f32.mrf.mxu0  ;;  %12376 = vmatmul.mubr.bf16.gmra.mxu0 %v13102_v0 }
 0x27e   : > { %20666 = vst [vmem:[#allocation165_spill] sm:$0xff] %v15356_v58  ;;  %v7541_v60 = vunpack.c.l.b16 %v7001_v10  ;;  %v6090_v14 = vmax.f32 %v6088_v47, %v6089_v24  ;;  %v7169_v30 = vpack.c.bf16 %v15352_v18, %v15352_v18  ;;  %v4934_v27 = vrot.slane %v4933_v19, 1  ;;  %20669 = vst [vmem:[#allocation168_spill] sm:$0xff] %v15373_v52 }
 0x27f   : > { %20668 = vst [vmem:[#allocation167_spill] sm:$0xff] %v15365_v48  ;;  %v7004_v41 = vpack.c.bf16 %v15354_v59, %v15354_v59  ;;  %v7172_v10 = vpack.c.bf16 %v15356_v58, %v15356_v58  ;;  %v6491_v47 = vadd.f32 %v15128_v21, %v4914_v38  ;;  %v20670_v1 = vrot.slane %v15287_v61, 7  ;;  %v15392_v22 = vpop.f32.mrf.mxu0  ;;  %v13104_v48 = vld [vmem:[%s14044_s22 + $0x358] sm:$0xff]  }
 0x280   : > { %v20671_v24 = vrot.slane %v15294_v55, 7  ;;  %v6110_v40 = vrot.slane %v6109_v23, 1  ;;  %20672 = vst [vmem:[#allocation169_spill] sm:$0xff] %v15392_v22  ;;  %v7828_v58 = vrot.slane %v7541_v60, 6  ;;  %v6659_v63 = vadd.f32 %v15128_v21, %v6090_v14 }
 0x281   : > { %v7827_v34 = vsel %vm7764_vm0, %v20670_v1, %v7539_v12  ;;  %v4922_v61 = vmax.f32 %v14955_v50, %v14979_v56  ;;  %v13103_v12 = vld [vmem:[%s14044_s22 + $0x350] sm:$0xff]   ;;  %v15399_v1 = vunpack.c.l.b16 %v7169_v30  ;;  %v4935_v55 = vmax.f32 %v4933_v19, %v4934_v27  ;;  %v15403_v18 = vpop.f32.mrf.mxu0  ;;  %v15412_v50 = vpop.f32.mrf.mxu1  ;;  %v20680_v27 = vld [vmem:[#allocation46_spill] sm:$0xff] }
 0x282   : > { %v15389_v35 = vsel %vm7764_vm0, %v20671_v24, %v7707_v42  ;;  %v20673_v42 = vld [vmem:[#allocation65_spill] sm:$0xff]  ;;  %v20674_v24 = vld [vmem:[#allocation112_spill] sm:$0xff]  ;;  %v15405_v0 = vunpack.c.l.b16 %v7004_v41  ;;  %v15407_v59 = vunpack.c.l.b16 %v7172_v10  ;;  %v15409_v60 = vmax.f32 %v6491_v47, 0.0  ;;  %12379 = vmatprep.mubr.bf16.mxu0 %v13103_v12  ;;  %v20682_v41 = vld [vmem:[#allocation106_spill] sm:$0xff] }
 0x283   : > { %v6098_v43 = vmax.f32 %v20674_v24, %v20673_v42  ;;  %20675 = vst [vmem:[#allocation65_spill] sm:$0xff] %v15403_v18  ;;  %v4923_v14 = vrot.slane %v4922_v61, 4  ;;  %v20168_v38 = vmov 0   ;;  %v6111_v56 = vmax.f32 %v6109_v23, %v6110_v40  ;;  %v20679_v30 = vld [vmem:[#allocation49_spill] sm:$0xff]  ;;  %v15422_v36 = vpop.f32.mrf.mxu0  ;;  %v20694_v18 = vld [vmem:[#allocation107_spill] sm:$0xff] }
 0x284   : > { %20676 = vst [vmem:[#allocation112_spill] sm:$0xff] %v15405_v0  ;;  %20677 = vst [vmem:[#allocation170_spill] sm:$0xff] %v15407_v59  ;;  %8362 = vmatprep.mubr.bf16.mxu1 %v20168_v38  ;;  %v20681_v42 = vrot.slane %v20680_v27, 1  ;;  %v20684_v10 = vrot.slane %v20683_v8, 1  ;;  %v15426_v38 = vsel %vm7767_vm1, %v7828_v58, %v7827_v34  ;;  %v15428_v22 = vmax.f32 %v6659_v63, 0.0  ;;  %v20687_v58 = vld [vmem:[#allocation117_spill] sm:$0xff] }
 0x285   : > { %20678 = vst [vmem:[#allocation171_spill] sm:$0xff] %v15409_v60  ;;  %v6099_v19 = vrot.slane %v6098_v43, 4  ;;  %20685 = vst [vmem:[#allocation49_spill] sm:$0xff] %v15422_v36  ;;  %v4924_v23 = vmax.f32 %v4922_v61, %v4923_v14  ;;  %v6494_v27 = vadd.f32 %v15128_v21, %v4935_v55  ;;  %v4943_v8 = vmax.f32 %v14987_v17, %v15004_v25  ;;  %v20688_v34 = vld [vmem:[#allocation68_spill] sm:$0xff]  ;;  %v15439_v61 = vpop.f32.mrf.mxu1  ;;  %v15445_v25 = vpop.f32.mrf.mxu0 }
 0x286   : > { %v7783_v24 = vsel %vm7782_vm6, %v20681_v42, %v20679_v30  ;;  %v7797_v47 = vsel %vm7782_vm6, %v20684_v10, %v20682_v41  ;;  %20686 = vst [vmem:[#allocation46_spill] sm:$0xff] %v15428_v22  ;;  %v7003_v41 = vpack.c.bf16 %v15409_v60, %v15409_v60  ;;  %v6119_v63 = vmax.f32 %v20688_v34, %v20687_v58  ;;  %v20692_v58 = vld [vmem:[#allocation115_spill] sm:$0xff] }
 0x287   : > { %v8218_v40 = vpack.c.b16 %v7797_v47, %v7783_v24  ;;  %v6100_v30 = vmax.f32 %v6098_v43, %v6099_v19  ;;  %v4925_v10 = vrot.slane %v4924_v23, 2  ;;  %v6662_v14 = vadd.f32 %v15128_v21, %v6111_v56  ;;  %v20689_v43 = vld [vmem:[#allocation114_spill] sm:$0xff]  ;;  %20691 = vst [vmem:[#allocation106_spill] sm:$0xff] %v15445_v25  ;;  %12380 = vmatmul.mubr.bf16.gmra.mxu0 %v13104_v48  ;;  %v15457_v32 = vpop.f32.mrf.mxu1 }
 0x288   : > { %v4944_v55 = vrot.slane %v4943_v8, 4  ;;  %v4936_v19 = vmax.f32 %v20689_v43, %v15016_v44  ;;  %v20690_v17 = vmov 0   ;;  %v7171_v47 = vpack.c.bf16 %v15428_v22, %v15428_v22 }
 0x289   : > { %8363 = vmatmul.mubr.bf16.vlgmr.msra.gmra.mxu1 %v8218_v40  ;;  %v6101_v24 = vrot.slane %v6100_v30, 2  ;;  %v4926_v40 = vmax.f32 %v4924_v23, %v4925_v10  ;;  %v6120_v42 = vrot.slane %v6119_v63, 4  ;;  %v6112_v34 = vmax.f32 %v20692_v58, %v15018_v49 }
 0x28a   : > { %8372 = vmatprep.mubr.bf16.mxu1 %v20690_v17  ;;  %v15451_v12 = vmax.f32 %v6494_v27, 0.0  ;;  %v4945_v60 = vmax.f32 %v4943_v8, %v4944_v55  ;;  %v4937_v36 = vrot.slane %v4936_v19, 4  ;;  %v20696_v25 = vrot.slane %v20695_v5, 5 }
 0x28b   : > { %v6102_v56 = vmax.f32 %v6100_v30, %v6101_v24  ;;  %v4927_v52 = vrot.slane %v4926_v40, 1  ;;  %v6121_v44 = vmax.f32 %v6119_v63, %v6120_v42  ;;  %v6113_v43 = vrot.slane %v6112_v34, 4  ;;  %v15462_v30 = vpop.f32.mrf.mxu0 }
 0x28c   : > { %20693 = vst [vmem:[#allocation77_spill] sm:$0xff] %v15451_v12  ;;  %v7803_v48 = vsel %vm7770_vm2, %v20696_v25, %v20694_v18  ;;  %v4946_v10 = vrot.slane %v4945_v60, 2  ;;  %v4938_v22 = vmax.f32 %v4936_v19, %v4937_v36  ;;  %v20697_v49 = vrot.slane %v14985_v31, 4  ;;  %20698 = vst [vmem:[#allocation117_spill] sm:$0xff] %v15462_v30  ;;  %v20701_v19 = vld [vmem:[#allocation59_spill] sm:$0xff] }
 0x28d   : > { %v6103_v23 = vrot.slane %v6102_v56, 1  ;;  %v15464_v8 = vunpack.c.l.b16 %v7003_v41  ;;  %v15466_v42 = vmax.f32 %v6662_v14, 0.0  ;;  %v6122_v63 = vrot.slane %v6121_v44, 2 }
 0x28e   : > { %v7805_v27 = vsel %vm7773_vm3, %v20697_v49, %v7803_v48  ;;  %v6114_v24 = vmax.f32 %v6112_v34, %v6113_v43  ;;  %v15468_v5 = vunpack.c.l.b16 %v7171_v47  ;;  %v4928_v18 = vmax.f32 %v4926_v40, %v4927_v52  ;;  %v15473_v49 = vpop.f32.mrf.mxu1  ;;  %v15482_v47 = vpop.f32.mrf.mxu0 }
 0x28f   : > { %20699 = vst [vmem:[#allocation68_spill] sm:$0xff] %v15466_v42  ;;  %v4947_v55 = vmax.f32 %v4945_v60, %v4946_v10  ;;  %v4939_v25 = vrot.slane %v4938_v22, 2  ;;  %v6104_v58 = vmax.f32 %v6102_v56, %v6103_v23  ;;  %v6123_v0 = vmax.f32 %v6121_v44, %v6122_v63 }
 0x290   : > { %20700 = vst [vmem:[#allocation114_spill] sm:$0xff] %v15468_v5  ;;  %v6115_v36 = vrot.slane %v6114_v24, 2  ;;  %v20702_v31 = vrot.slane %v20701_v19, 3  ;;  %v20703_v14 = vrot.slane %v15069_v37, 2  ;;  %v20704_v52 = vrot.slane %v15143_v20, 5 }
 0x291   : > { %v4948_v41 = vrot.slane %v4947_v55, 1  ;;  %v4940_v30 = vmax.f32 %v4938_v22, %v4939_v25  ;;  %v7006_v40 = vpack.c.bf16 %v15451_v12, %v15451_v12  ;;  %v6124_v56 = vrot.slane %v6123_v0, 1 }
 0x292   : > { %v7807_v48 = vsel %vm7776_vm4, %v20702_v31, %v7805_v27  ;;  %v7817_v60 = vsel %vm7770_vm2, %v20704_v52, %v15189_v6  ;;  %v6116_v44 = vmax.f32 %v6114_v24, %v6115_v36  ;;  %v20705_v43 = vrot.slane %v15236_v16, 4  ;;  %v15499_v36 = vpop.f32.mrf.mxu1  ;;  %v20714_v52 = vld [vmem:[#allocation126_spill] sm:$0xff] }
 0x293   : > { %v7809_v34 = vsel %vm7779_vm5, %v20703_v14, %v7807_v48  ;;  %v6493_v37 = vadd.f32 %v15128_v21, %v4928_v18  ;;  %v4949_v23 = vmax.f32 %v4947_v55, %v4948_v41  ;;  %v4941_v10 = vrot.slane %v4940_v30, 1  ;;  %v15506_v48 = vpop.f32.mrf.mxu0 }
 0x294   : > { %v7819_v22 = vsel %vm7773_vm3, %v20705_v43, %v7817_v60  ;;  %v20706_v27 = vrot.slane %v15182_v51, 3  ;;  %v6125_v6 = vmax.f32 %v6123_v0, %v6124_v56  ;;  %v6117_v63 = vrot.slane %v6116_v44, 1  ;;  %20710 = vst [vmem:[#allocation115_spill] sm:$0xff] %v15506_v48  ;;  %v20715_v60 = vld [vmem:[#allocation121_spill] sm:$0xff] }
 0x295   : > { %v20707_v25 = vrot.slane %v15020_v62, 1  ;;  %v20708_v24 = vrot.slane %v15301_v9, 2  ;;  %v6661_v18 = vadd.f32 %v15128_v21, %v6104_v58  ;;  %v6496_v55 = vadd.f32 %v15128_v21, %v4949_v23  ;;  %v20716_v23 = vld [vmem:[#allocation132_spill] sm:$0xff] }
 0x296   : > { %v7821_v20 = vsel %vm7776_vm4, %v20706_v27, %v7819_v22  ;;  %v4942_v31 = vmax.f32 %v4940_v30, %v4941_v10  ;;  %v20709_v51 = vrot.slane %v15274_v57, 1  ;;  %v6664_v9 = vadd.f32 %v15128_v21, %v6125_v6  ;;  %v13105_v27 = vld [vmem:[%s14044_s22 + $0x360] sm:$0xff]   ;;  %v13106_v6 = vld [vmem:[%s14044_s22 + $0x368] sm:$0xff]  }
 0x297   : > { %v7811_v19 = vsel %vm7782_vm6, %v20707_v25, %v7809_v34  ;;  %v7823_v16 = vsel %vm7779_vm5, %v20708_v24, %v7821_v20  ;;  %v6118_v41 = vmax.f32 %v6116_v44, %v6117_v63  ;;  %v20711_v58 = vrot.slane %v15399_v1, 6  ;;  %v20717_v1 = vld [vmem:[#allocation123_spill] sm:$0xff]  ;;  %v15531_v20 = vpop.f32.mrf.mxu0  ;;  %12383 = vmatprep.mubr.bf16.mxu0 %v13105_v27 }
 0x298   : > { %v7825_v0 = vsel %vm7782_vm6, %v20709_v51, %v7823_v16  ;;  %v7174_v57 = vpack.c.bf16 %v15466_v42, %v15466_v42  ;;  %v15518_v30 = vmax.f32 %v6496_v55, 0.0  ;;  %v4957_v56 = vmax.f32 %v20715_v60, %v20714_v52  ;;  %20718 = vst [vmem:[#allocation59_spill] sm:$0xff] %v15531_v20  ;;  %v20723_v51 = vld [vmem:[#allocation124_spill] sm:$0xff]  ;;  %12384 = vmatmul.mubr.bf16.gmra.mxu0 %v13106_v6 }
 0x299   : > { %v8219_v14 = vpack.c.b16 %v7825_v0, %v7811_v19  ;;  %v15514_v34 = vsel %vm7767_vm1, %v20711_v58, %v15389_v35  ;;  %v15523_v22 = vunpack.c.l.b16 %v7006_v40  ;;  %v6495_v44 = vadd.f32 %v15128_v21, %v4942_v31  ;;  %v15528_v35 = vpop.f32.mrf.mxu1  ;;  %v20722_v31 = vld [vmem:[#allocation127_spill] sm:$0xff]  ;;  %v13107_v58 = vld [vmem:[%s14044_s22 + $0x370] sm:$0xff]   ;;  %v20726_v60 = vld [vmem:[#allocation72_spill] sm:$0xff] }
 0x29a   : > { %20712 = vst [vmem:[#allocation107_spill] sm:$0xff] %v15514_v34  ;;  %20713 = vst [vmem:[#allocation103_spill] sm:$0xff] %v15518_v30  ;;  %v6133_v10 = vmax.f32 %v20717_v1, %v20716_v23  ;;  %v15535_v25 = vmax.f32 %v6493_v37, 0.0  ;;  %v15537_v19 = vmax.f32 %v6661_v18, 0.0  ;;  %v4958_v40 = vrot.slane %v4957_v56, 4  ;;  %12387 = vmatprep.mubr.bf16.mxu0 %v13107_v58 }
 0x29b   : > { %8373 = vmatmul.mubr.bf16.gmra.mxu1 %v8219_v14  ;;  %v15540_v24 = vmax.f32 %v6664_v9, 0.0  ;;  %v6663_v16 = vadd.f32 %v15128_v21, %v6118_v41  ;;  %v4950_v0 = vmax.f32 %v20723_v51, %v20722_v31  ;;  %v15545_v14 = vpop.f32.mrf.mxu0  ;;  %v15548_v52 = vunpack.c.l.b16 %v7174_v57  ;;  %v15557_v27 = vpop.f32.mrf.mxu1  ;;  %v20731_v41 = vld [vmem:[#allocation130_spill] sm:$0xff] }
 0x29c   : > { %20719 = vst [vmem:[#allocation126_spill] sm:$0xff] %v15535_v25  ;;  %20720 = vst [vmem:[#allocation121_spill] sm:$0xff] %v15537_v19  ;;  %8382 = vmatprep.mubr.bf16.mxu1 %v20690_v17  ;;  %v6134_v55 = vrot.slane %v6133_v10, 4  ;;  %v7008_v37 = vpack.c.bf16 %v15518_v30, %v15518_v30  ;;  %v4959_v18 = vmax.f32 %v4957_v56, %v4958_v40  ;;  %v15555_v23 = vmax.f32 %v6495_v44, 0.0  ;;  %v13108_v57 = vld [vmem:[%s14044_s22 + $0x378] sm:$0xff]   ;;  %v20732_v30 = vld [vmem:[#allocation81_spill] sm:$0xff] }
 0x29d   : > { %20721 = vst [vmem:[#allocation132_spill] sm:$0xff] %v15540_v24  ;;  %20724 = vst [vmem:[#allocation123_spill] sm:$0xff] %v15545_v14  ;;  %v6126_v9 = vmax.f32 %v20726_v60, %v15105_v39  ;;  %v4951_v31 = vrot.slane %v4950_v0, 4  ;;  %v15559_v51 = vpop.f32.mrf.mxu0  ;;  %v7176_v44 = vpack.c.bf16 %v15540_v24, %v15540_v24  ;;  %v15567_v40 = vmax.f32 %v6663_v16, 0.0  ;;  %v15580_v24 = vpop.f32.mrf.mxu1  ;;  %v20735_v56 = vld [vmem:[#allocation139_spill] sm:$0xff] }
 0x29e   : > { %20725 = vst [vmem:[#allocation127_spill] sm:$0xff] %v15548_v52  ;;  %20727 = vst [vmem:[#allocation124_spill] sm:$0xff] %v15555_v23  ;;  %v6135_v1 = vmax.f32 %v6133_v10, %v6134_v55  ;;  %v4960_v39 = vrot.slane %v4959_v18, 2  ;;  %v15571_v62 = vunpack.c.l.b16 %v7008_v37  ;;  %v4971_v43 = vmax.f32 %v20731_v41, %v15097_v29 }
 0x29f   : > { %20728 = vst [vmem:[#allocation72_spill] sm:$0xff] %v15559_v51  ;;  %v6127_v6 = vrot.slane %v6126_v9, 4  ;;  %20729 = vst [vmem:[#allocation172_spill] sm:$0xff] %v15567_v40  ;;  %v4952_v55 = vmax.f32 %v4950_v0, %v4951_v31  ;;  %v15569_v60 = vpop.f32.mrf.mxu0  ;;  %v6147_v16 = vmax.f32 %v15120_v7, %v15162_v15  ;;  %v15588_v20 = vpop.f32.mrf.mxu1 }
 0x2a0   : > { %v6136_v10 = vrot.slane %v6135_v1, 2  ;;  %20730 = vst [vmem:[#allocation173_spill] sm:$0xff] %v15569_v60  ;;  %v4961_v58 = vmax.f32 %v4959_v18, %v4960_v39  ;;  %v4972_v37 = vrot.slane %v4971_v43, 4  ;;  %v20733_v18 = vld [vmem:[#allocation133_spill] sm:$0xff]  ;;  %12388 = vmatmul.mubr.bf16.gmra.mxu0 %v13108_v57 }
 0x2a1   : > { %v6128_v63 = vmax.f32 %v6126_v9, %v6127_v6  ;;  %v4953_v12 = vrot.slane %v4952_v55, 2  ;;  %v4964_v9 = vmax.f32 %v20733_v18, %v20732_v30  ;;  %v15584_v39 = vpop.f32.mrf.mxu0  ;;  %v6148_v6 = vrot.slane %v6147_v16, 4 }
 0x2a2   : > { %v6137_v42 = vmax.f32 %v6135_v1, %v6136_v10  ;;  %v4962_v0 = vrot.slane %v4961_v58, 1  ;;  %20734 = vst [vmem:[#allocation130_spill] sm:$0xff] %v15584_v39  ;;  %v6140_v1 = vmax.f32 %v20735_v56, %v15184_v46  ;;  %v4973_v5 = vmax.f32 %v4971_v43, %v4972_v37 }
 0x2a3   : > { %v6129_v31 = vrot.slane %v6128_v63, 2  ;;  %v4954_v41 = vmax.f32 %v4952_v55, %v4953_v12  ;;  %v4965_v7 = vrot.slane %v4964_v9, 4  ;;  %v6149_v14 = vmax.f32 %v6147_v16, %v6148_v6  ;;  %v15591_v55 = vpop.f32.mrf.mxu0  ;;  %v15599_v6 = vpop.f32.mrf.mxu1 }
 0x2a4   : > { %v6138_v29 = vrot.slane %v6137_v42, 1  ;;  %v4963_v10 = vmax.f32 %v4961_v58, %v4962_v0  ;;  %v6141_v60 = vrot.slane %v6140_v1, 4  ;;  %v4974_v39 = vrot.slane %v4973_v5, 2  ;;  %20736 = vst [vmem:[#allocation81_spill] sm:$0xff] %v15591_v55 }
 0x2a5   : > { %v6130_v59 = vmax.f32 %v6128_v63, %v6129_v31  ;;  %v4955_v34 = vrot.slane %v4954_v41, 1  ;;  %v4966_v12 = vmax.f32 %v4964_v9, %v4965_v7  ;;  %v6150_v63 = vrot.slane %v6149_v14, 2 }
 0x2a6   : > { %v6139_v15 = vmax.f32 %v6137_v42, %v6138_v29  ;;  %v6498_v30 = vadd.f32 %v15128_v21, %v4963_v10  ;;  %v6142_v43 = vmax.f32 %v6140_v1, %v6141_v60  ;;  %v4975_v57 = vmax.f32 %v4973_v5, %v4974_v39 }
 0x2a7   : > { %v6131_v18 = vrot.slane %v6130_v59, 1  ;;  %v4956_v56 = vmax.f32 %v4954_v41, %v4955_v34  ;;  %v4967_v16 = vrot.slane %v4966_v12, 2  ;;  %v6151_v37 = vmax.f32 %v6149_v14, %v6150_v63  ;;  %v15602_v41 = vpop.f32.mrf.mxu0  ;;  %v15622_v63 = vpop.f32.mrf.mxu1 }
 0x2a8   : > { %v6666_v46 = vadd.f32 %v15128_v21, %v6139_v15  ;;  %v15594_v58 = vmax.f32 %v6498_v30, 0.0  ;;  %v6143_v29 = vrot.slane %v6142_v43, 2  ;;  %v7716_v9 = vunpack.c.l.b16 %v7176_v44  ;;  %20739 = vst [vmem:[#allocation174_spill] sm:$0xff] %v15602_v41 }
 0x2a9   : > { %v6132_v42 = vmax.f32 %v6130_v59, %v6131_v18  ;;  %v6497_v31 = vadd.f32 %v15128_v21, %v4956_v56  ;;  %v4976_v7 = vrot.slane %v4975_v57, 1  ;;  %v4968_v34 = vmax.f32 %v4966_v12, %v4967_v16 }
 0x2aa   : > { %20737 = vst [vmem:[#allocation133_spill] sm:$0xff] %v15594_v58  ;;  %v15596_v0 = vmax.f32 %v6666_v46, 0.0  ;;  %v7175_v59 = vpack.c.bf16 %v15567_v40, %v15567_v40  ;;  %v6152_v60 = vrot.slane %v6151_v37, 1  ;;  %v6144_v39 = vmax.f32 %v6142_v43, %v6143_v29  ;;  %v15630_v29 = vpop.f32.mrf.mxu0 }
 0x2ab   : > { %v6665_v10 = vadd.f32 %v15128_v21, %v6132_v42  ;;  %v15606_v5 = vmax.f32 %v6497_v31, 0.0  ;;  %v7010_v14 = vpack.c.bf16 %v15594_v58, %v15594_v58  ;;  %v4977_v15 = vmax.f32 %v4975_v57, %v4976_v7  ;;  %20745 = vst [vmem:[#allocation178_spill] sm:$0xff] %v15630_v29  ;;  %v20747_v58 = vld [vmem:[#allocation137_spill] sm:$0xff]  ;;  %v20764_v29 = vld [vmem:[#allocation144_spill] sm:$0xff] }
 0x2ac   : > { %20738 = vst [vmem:[#allocation139_spill] sm:$0xff] %v15596_v0  ;;  %v4969_v44 = vrot.slane %v4968_v34, 1  ;;  %v20742_v18 = vpack.c.bf16 %v15535_v25, %v15535_v25  ;;  %v7178_v46 = vpack.c.bf16 %v15596_v0, %v15596_v0  ;;  %v20743_v43 = vpack.c.bf16 %v15537_v19, %v15537_v19  ;;  %v15643_v25 = vpop.f32.mrf.mxu0 }
 0x2ad   : > { %20740 = vst [vmem:[#allocation175_spill] sm:$0xff] %v15606_v5  ;;  %v15610_v1 = vmax.f32 %v6665_v10, 0.0  ;;  %v7009_v56 = vpack.c.bf16 %v15606_v5, %v15606_v5  ;;  %v7840_v57 = vrot.slane %v15571_v62, 7  ;;  %v6153_v16 = vmax.f32 %v6151_v37, %v6152_v60  ;;  %v20748_v62 = vld [vmem:[#allocation134_spill] sm:$0xff]  ;;  %v13109_v60 = vld [vmem:[%s14044_s22 + $0x380] sm:$0xff]   ;;  %20749 = vst [vmem:[#allocation137_spill] sm:$0xff] %v15643_v25 }
 0x2ae   : > { %v15616_v12 = vunpack.c.l.b16 %v20742_v18  ;;  %v15627_v42 = vunpack.c.l.b16 %v20743_v43  ;;  %v6145_v31 = vrot.slane %v6144_v39, 1  ;;  %v8134_v10 = vrot.slane %v7716_v9, 7  ;;  %v13110_v9 = vld [vmem:[%s14044_s22 + $0x388] sm:$0xff]   ;;  %12391 = vmatprep.mubr.bf16.mxu0 %v13109_v60 }
 0x2af   : > { %20741 = vst [vmem:[#allocation176_spill] sm:$0xff] %v15610_v1  ;;  %v20746_v7 = vpack.c.bf16 %v15555_v23, %v15555_v23  ;;  %v7177_v30 = vpack.c.bf16 %v15610_v1, %v15610_v1  ;;  %v6500_v0 = vadd.f32 %v15128_v21, %v4977_v15  ;;  %v7715_v40 = vunpack.c.l.b16 %v7175_v59  ;;  %v20751_v1 = vld [vmem:[#allocation146_spill] sm:$0xff]  ;;  %v15651_v59 = vpop.f32.mrf.mxu1  ;;  %12392 = vmatmul.mubr.bf16.gmra.mxu0 %v13110_v9  ;;  %v20756_v60 = vld [vmem:[#allocation136_spill] sm:$0xff] }
 0x2b0   : > { %20744 = vst [vmem:[#allocation177_spill] sm:$0xff] %v15627_v42  ;;  %v15638_v19 = vunpack.c.l.b16 %v7010_v14  ;;  %v4970_v43 = vmax.f32 %v4968_v34, %v4969_v44  ;;  %v4985_v37 = vmax.f32 %v20748_v62, %v20747_v58  ;;  %v15647_v23 = vunpack.c.l.b16 %v7178_v46  ;;  %v15654_v14 = vld [vmem:[#allocation7] ss:$0 sm:$0xff]  ;;  %v15657_v62 = vpop.f32.mrf.mxu0 }
 0x2b1   : > { %v7547_v18 = vunpack.c.l.b16 %v20746_v7  ;;  %v7549_v7 = vunpack.c.l.b16 %v7009_v56  ;;  %v6161_v21 = vmax.f32 %v20751_v1, %v15230_v53  ;;  %v6668_v58 = vadd.f32 %v15654_v14, %v6153_v16  ;;  %20752 = vst [vmem:[#allocation146_spill] sm:$0xff] %v15657_v62  ;;  %v13111_v1 = vld [vmem:[%s14044_s22 + $0x390] sm:$0xff]   ;;  %v15675_v9 = vpop.f32.mrf.mxu1 }
 0x2b2   : > { %20750 = vst [vmem:[#allocation134_spill] sm:$0xff] %v15647_v23  ;;  %v6146_v15 = vmax.f32 %v6144_v39, %v6145_v31  ;;  %v4986_v44 = vrot.slane %v4985_v37, 4  ;;  %v15660_v5 = vunpack.c.l.b16 %v7177_v30  ;;  %v15662_v56 = vmax.f32 %v6500_v0, 0.0  ;;  %v15670_v31 = vpop.f32.mrf.mxu0  ;;  %v20755_v0 = vld [vmem:[#allocation140_spill] sm:$0xff]  ;;  %12395 = vmatprep.mubr.bf16.mxu0 %v13111_v1  ;;  %v20761_v23 = vld [vmem:[#allocation86_spill] sm:$0xff] }
 0x2b3   : > { %v7841_v46 = vsel %vm7764_vm0, %v7840_v57, %v7547_v18  ;;  %v6162_v53 = vrot.slane %v6161_v21, 4  ;;  %v15666_v34 = vsel %vm7764_vm0, %v8134_v10, %v7715_v40  ;;  %v6499_v39 = vadd.f32 %v15654_v14, %v4970_v43  ;;  %20754 = vst [vmem:[#allocation180_spill] sm:$0xff] %v15670_v31  ;;  %v20758_v43 = vld [vmem:[#allocation91_spill] sm:$0xff] }
 0x2b4   : > { %20753 = vst [vmem:[#allocation179_spill] sm:$0xff] %v15662_v56  ;;  %v4987_v16 = vmax.f32 %v4985_v37, %v4986_v44  ;;  %v7842_v30 = vrot.slane %v7549_v7, 6  ;;  %v4978_v42 = vmax.f32 %v20756_v60, %v20755_v0  ;;  %v15677_v40 = vmax.f32 %v6668_v58, 0.0  ;;  %v15682_v44 = vpop.f32.mrf.mxu0  ;;  %v13112_v0 = vld [vmem:[%s14044_s22 + $0x398] sm:$0xff]  }
 0x2b5   : > { %v6163_v18 = vmax.f32 %v6161_v21, %v6162_v53  ;;  %v6667_v10 = vadd.f32 %v15654_v14, %v6146_v15  ;;  %v6154_v37 = vmax.f32 %v20758_v43, %v15247_v13  ;;  %20759 = vst [vmem:[#allocation136_spill] sm:$0xff] %v15682_v44  ;;  %v7012_v7 = vpack.c.bf16 %v15662_v56, %v15662_v56  ;;  %v20762_v15 = vld [vmem:[#allocation143_spill] sm:$0xff]  ;;  %v15697_v44 = vpop.f32.mrf.mxu1 }
 0x2b6   : > { %20757 = vst [vmem:[#allocation140_spill] sm:$0xff] %v15677_v40  ;;  %v4988_v52 = vrot.slane %v4987_v16, 2  ;;  %v4979_v53 = vrot.slane %v4978_v42, 4  ;;  %v15688_v60 = vmax.f32 %v6499_v39, 0.0  ;;  %v4999_v62 = vmax.f32 %v20762_v15, %v20761_v23  ;;  %v20763_v39 = vld [vmem:[#allocation84_spill] sm:$0xff] }
 0x2b7   : > { %v6164_v21 = vrot.slane %v6163_v18, 2  ;;  %v6155_v1 = vrot.slane %v6154_v37, 4  ;;  %v15693_v25 = vsel %vm7767_vm1, %v7842_v30, %v7841_v46  ;;  %v6175_v57 = vmax.f32 %v15271_v4, %v15316_v26  ;;  %12396 = vmatmul.mubr.bf16.gmra.mxu0 %v13112_v0 }
 0x2b8   : > { %20760 = vst [vmem:[#allocation91_spill] sm:$0xff] %v15688_v60  ;;  %v4989_v58 = vmax.f32 %v4987_v16, %v4988_v52  ;;  %v4980_v43 = vmax.f32 %v4978_v42, %v4979_v53  ;;  %v5000_v55 = vrot.slane %v4999_v62, 4  ;;  %v4992_v52 = vmax.f32 %v20764_v29, %v20763_v39  ;;  %v15701_v16 = vpop.f32.mrf.mxu0 }
 0x2b9   : > { %v6165_v13 = vmax.f32 %v6163_v18, %v6164_v21  ;;  %v6156_v31 = vmax.f32 %v6154_v37, %v6155_v1  ;;  %20765 = vst [vmem:[#allocation86_spill] sm:$0xff] %v15701_v16  ;;  %v6176_v15 = vrot.slane %v6175_v57, 4  ;;  %v6168_v46 = vmax.f32 %v15298_v45, %v15332_v33  ;;  %v15705_v1 = vpop.f32.mrf.mxu1 }
 0x2ba   : > { %v4990_v56 = vrot.slane %v4989_v58, 1  ;;  %v4981_v23 = vrot.slane %v4980_v43, 2  ;;  %v5001_v4 = vmax.f32 %v4999_v62, %v5000_v55  ;;  %v4993_v26 = vrot.slane %v4992_v52, 4  ;;  %v15709_v48 = vpop.f32.mrf.mxu0 }
 0x2bb   : > { %v6166_v41 = vrot.slane %v6165_v13, 1  ;;  %v6157_v30 = vrot.slane %v6156_v31, 2  ;;  %v6177_v37 = vmax.f32 %v6175_v57, %v6176_v15  ;;  %v6169_v53 = vrot.slane %v6168_v46, 4  ;;  %20766 = vst [vmem:[#allocation143_spill] sm:$0xff] %v15709_v48 }
 0x2bc   : > { %v4991_v42 = vmax.f32 %v4989_v58, %v4990_v56  ;;  %v4982_v21 = vmax.f32 %v4980_v43, %v4981_v23  ;;  %v7180_v29 = vpack.c.bf16 %v15677_v40, %v15677_v40  ;;  %v5002_v16 = vrot.slane %v5001_v4, 2 }
 0x2bd   : > { %v6167_v18 = vmax.f32 %v6165_v13, %v6166_v41  ;;  %v6158_v39 = vmax.f32 %v6156_v31, %v6157_v30  ;;  %v4994_v51 = vmax.f32 %v4992_v52, %v4993_v26  ;;  %v15711_v45 = vmax.f32 %v6667_v10, 0.0  ;;  %v15715_v31 = vpop.f32.mrf.mxu1  ;;  %v15719_v26 = vpop.f32.mrf.mxu0 }
 0x2be   : > { %v4983_v33 = vrot.slane %v4982_v21, 1  ;;  %v6178_v56 = vrot.slane %v6177_v37, 2  ;;  %v6170_v55 = vmax.f32 %v6168_v46, %v6169_v53  ;;  %v6502_v41 = vadd.f32 %v15654_v14, %v4991_v42  ;;  %20768 = vst [vmem:[#allocation144_spill] sm:$0xff] %v15719_v26 }
 0x2bf   : > { %20767 = vst [vmem:[#allocation84_spill] sm:$0xff] %v15711_v45  ;;  %v6159_v62 = vrot.slane %v6158_v39, 1  ;;  %v5003_v57 = vmax.f32 %v5001_v4, %v5002_v16  ;;  %v4995_v0 = vrot.slane %v4994_v51, 2  ;;  %v6670_v58 = vadd.f32 %v15654_v14, %v6167_v18 }
 0x2c0   : > { %v4984_v13 = vmax.f32 %v4982_v21, %v4983_v33  ;;  %v6179_v43 = vmax.f32 %v6177_v37, %v6178_v56  ;;  %v6171_v23 = vrot.slane %v6170_v55, 2  ;;  %v7011_v52 = vpack.c.bf16 %v15688_v60, %v15688_v60 }
 0x2c1   : > { %v6160_v10 = vmax.f32 %v6158_v39, %v6159_v62  ;;  %v5004_v15 = vrot.slane %v5003_v57, 1  ;;  %v4996_v30 = vmax.f32 %v4994_v51, %v4995_v0  ;;  %v7179_v46 = vpack.c.bf16 %v15711_v45, %v15711_v45  ;;  %v15731_v62 = vpop.f32.mrf.mxu1 }
 0x2c2   : > { %v6501_v16 = vadd.f32 %v15654_v14, %v4984_v13  ;;  %v6180_v42 = vrot.slane %v6179_v43, 1  ;;  %v6172_v4 = vmax.f32 %v6170_v55, %v6171_v23  ;;  %v15724_v18 = vmax.f32 %v6502_v41, 0.0  ;;  %v15740_v41 = vpop.f32.mrf.mxu0 }
 0x2c3   : > { %v6669_v21 = vadd.f32 %v15654_v14, %v6160_v10  ;;  %v5005_v37 = vmax.f32 %v5003_v57, %v5004_v15  ;;  %v4997_v53 = vrot.slane %v4996_v30, 1  ;;  %v15727_v33 = vunpack.c.l.b16 %v7012_v7  ;;  %20774 = vst [vmem:[#allocation186_spill] sm:$0xff] %v15740_v41 }
 0x2c4   : > { %20769 = vst [vmem:[#allocation181_spill] sm:$0xff] %v15724_v18  ;;  %v15729_v39 = vmax.f32 %v6670_v58, 0.0  ;;  %v6181_v51 = vmax.f32 %v6179_v43, %v6180_v42  ;;  %v6173_v56 = vrot.slane %v6172_v4, 1  ;;  %v15733_v0 = vunpack.c.l.b16 %v7180_v29 }
 0x2c5   : > { %v15735_v40 = vmax.f32 %v6501_v16, 0.0  ;;  %v15737_v13 = vmax.f32 %v6669_v21, 0.0  ;;  %v6504_v55 = vadd.f32 %v15654_v14, %v5005_v37  ;;  %v20775_v7 = vrot.slane %v15660_v5, 6  ;;  %v20778_v16 = vld [vmem:[#allocation52_spill] sm:$0xff] }
 0x2c6   : > { %20770 = vst [vmem:[#allocation182_spill] sm:$0xff] %v15729_v39  ;;  %20771 = vst [vmem:[#allocation183_spill] sm:$0xff] %v15733_v0  ;;  %v15748_v58 = vunpack.c.l.b16 %v7011_v52  ;;  %v6672_v29 = vadd.f32 %v15654_v14, %v6181_v51  ;;  %v4998_v43 = vmax.f32 %v4996_v30, %v4997_v53  ;;  %v15751_v23 = vunpack.c.l.b16 %v7179_v46  ;;  %v15764_v46 = vpop.f32.mrf.mxu1  ;;  %v13113_v53 = vld [vmem:[%s14044_s22 + $0x3a0] sm:$0xff]   ;;  %v15772_v51 = vpop.f32.mrf.mxu0 }
 0x2c7   : > { %20772 = vst [vmem:[#allocation184_spill] sm:$0xff] %v15735_v40  ;;  %20773 = vst [vmem:[#allocation185_spill] sm:$0xff] %v15737_v13  ;;  %v15746_v57 = vsel %vm7767_vm1, %v20775_v7, %v15666_v34  ;;  %v7014_v10 = vpack.c.bf16 %v15724_v18, %v15724_v18  ;;  %v6174_v15 = vmax.f32 %v6172_v4, %v6173_v56  ;;  %v15760_v52 = vmax.f32 %v6504_v55, 0.0  ;;  %v13114_v56 = vld [vmem:[%s14044_s22 + $0x3a8] sm:$0xff]  }
 0x2c8   : > { %20776 = vst [vmem:[#allocation187_spill] sm:$0xff] %v15746_v57  ;;  %20777 = vst [vmem:[#allocation188_spill] sm:$0xff] %v15751_v23  ;;  %v5013_v42 = vmax.f32 %v20778_v16, %v15223_v54  ;;  %v7182_v34 = vpack.c.bf16 %v15729_v39, %v15729_v39  ;;  %v6189_v30 = vmax.f32 %v15342_v3, %v15381_v28  ;;  %v15776_v7 = vmax.f32 %v6672_v29, 0.0  ;;  %v13115_v16 = vld [vmem:[%s14044_s22 + $0x3b0] sm:$0xff]   ;;  %v15784_v45 = vpop.f32.mrf.mxu0  ;;  %v15792_v0 = vpop.f32.mrf.mxu1 }
 0x2c9   : > { %20779 = vst [vmem:[#allocation52_spill] sm:$0xff] %v15760_v52  ;;  %v7013_v4 = vpack.c.bf16 %v15735_v40, %v15735_v40  ;;  %v7181_v54 = vpack.c.bf16 %v15737_v13, %v15737_v13  ;;  %20780 = vst [vmem:[#allocation189_spill] sm:$0xff] %v15772_v51  ;;  %v6503_v3 = vadd.f32 %v15654_v14, %v4998_v43  ;;  %v15781_v5 = vunpack.c.l.b16 %v7014_v10  ;;  %v20784_v40 = vld [vmem:[#allocation98_spill] sm:$0xff]  ;;  %v20785_v43 = vld [vmem:[#allocation96_spill] sm:$0xff] }
 0x2ca   : > { %v5014_v37 = vrot.slane %v5013_v42, 4  ;;  %20781 = vst [vmem:[#allocation190_spill] sm:$0xff] %v15776_v7  ;;  %v6190_v28 = vrot.slane %v6189_v30, 4  ;;  %v6671_v39 = vadd.f32 %v15654_v14, %v6174_v15  ;;  %12399 = vmatprep.mubr.bf16.mxu0 %v13113_v53  ;;  %20782 = vst [vmem:[#allocation191_spill] sm:$0xff] %v15784_v45  ;;  %v15786_v18 = vunpack.c.l.b16 %v7182_v34  ;;  %v15800_v34 = vpop.f32.mrf.mxu0  ;;  %v15814_v57 = vpop.f32.mrf.mxu1 }
 0x2cb   : > { %v7016_v29 = vpack.c.bf16 %v15760_v52, %v15760_v52  ;;  %v5006_v60 = vmax.f32 %v20785_v43, %v20784_v40  ;;  %20786 = vst [vmem:[#allocation98_spill] sm:$0xff] %v15792_v0  ;;  %12400 = vmatmul.mubr.bf16.gmra.mxu0 %v13114_v56  ;;  %v15794_v10 = vunpack.c.l.b16 %v7013_v4  ;;  %v15796_v21 = vunpack.c.l.b16 %v7181_v54  ;;  %20788 = vst [vmem:[#allocation193_spill] sm:$0xff] %v15800_v34  ;;  %v20792_v43 = vld [vmem:[#allocation151_spill] sm:$0xff]  ;;  %v20794_v34 = vld [vmem:[#allocation153_spill] sm:$0xff] }
 0x2cc   : > { %v5015_v13 = vmax.f32 %v5013_v42, %v5014_v37  ;;  %20783 = vst [vmem:[#allocation192_spill] sm:$0xff] %v15786_v18  ;;  %v6191_v55 = vmax.f32 %v6189_v30, %v6190_v28  ;;  %v6182_v42 = vmax.f32 %v15358_v2, %v15412_v50  ;;  %12403 = vmatprep.mubr.bf16.mxu0 %v13115_v16  ;;  %v15804_v37 = vmax.f32 %v6503_v3, 0.0  ;;  %v20791_v28 = vld [vmem:[#allocation154_spill] sm:$0xff] }
 0x2cd   : > { %20787 = vst [vmem:[#allocation96_spill] sm:$0xff] %v15796_v21  ;;  %v7184_v30 = vpack.c.bf16 %v15776_v7, %v15776_v7  ;;  %v5007_v53 = vrot.slane %v5006_v60, 4  ;;  %v15806_v56 = vmax.f32 %v6671_v39, 0.0  ;;  %v5027_v52 = vmax.f32 %v20792_v43, %v20791_v28  ;;  %v13116_v3 = vld [vmem:[%s14044_s22 + $0x3b8] sm:$0xff]   ;;  %v20793_v39 = vld [vmem:[#allocation155_spill] sm:$0xff] }
 0x2ce   : > { %v5016_v15 = vrot.slane %v5015_v13, 2  ;;  %20789 = vst [vmem:[#allocation194_spill] sm:$0xff] %v15804_v37  ;;  %v6192_v40 = vrot.slane %v6191_v55, 2  ;;  %v6183_v54 = vrot.slane %v6182_v42, 4  ;;  %v15810_v23 = vunpack.c.l.b16 %v7016_v29 }
 0x2cf   : > { %20790 = vst [vmem:[#allocation195_spill] sm:$0xff] %v15806_v56  ;;  %v5008_v50 = vmax.f32 %v5006_v60, %v5007_v53  ;;  %v6203_v16 = vmax.f32 %v15439_v61, %v15473_v49  ;;  %v5028_v51 = vrot.slane %v5027_v52, 4  ;;  %v6196_v60 = vmax.f32 %v15457_v32, %v15499_v36 }
 0x2d0   : > { %v5017_v4 = vmax.f32 %v5015_v13, %v5016_v15  ;;  %v6193_v2 = vmax.f32 %v6191_v55, %v6192_v40  ;;  %v6184_v45 = vmax.f32 %v6182_v42, %v6183_v54  ;;  %v5020_v13 = vmax.f32 %v20794_v34, %v20793_v39  ;;  %v15819_v15 = vpop.f32.mrf.mxu0  ;;  %v15823_v54 = vpop.f32.mrf.mxu1 }
 0x2d1   : > { %20795 = vst [vmem:[#allocation154_spill] sm:$0xff] %v15819_v15  ;;  %v5009_v28 = vrot.slane %v5008_v50, 2  ;;  %v6204_v29 = vrot.slane %v6203_v16, 4  ;;  %v5029_v61 = vmax.f32 %v5027_v52, %v5028_v51  ;;  %v6197_v42 = vrot.slane %v6196_v60, 4 }
 0x2d2   : > { %v5018_v7 = vrot.slane %v5017_v4, 1  ;;  %v6194_v48 = vrot.slane %v6193_v2, 1  ;;  %v6185_v40 = vrot.slane %v6184_v45, 2  ;;  %v5021_v49 = vrot.slane %v5020_v13, 4  ;;  %v15827_v0 = vpop.f32.mrf.mxu0 }
 0x2d3   : > { %v5010_v43 = vmax.f32 %v5008_v50, %v5009_v28  ;;  %v6205_v41 = vmax.f32 %v6203_v16, %v6204_v29  ;;  %12404 = vmatmul.mubr.bf16.gmra.mxu0 %v13116_v3  ;;  %v7015_v34 = vpack.c.bf16 %v15804_v37, %v15804_v37  ;;  %v5030_v15 = vrot.slane %v5029_v61, 2 }
 0x2d4   : > { %v5019_v55 = vmax.f32 %v5017_v4, %v5018_v7  ;;  %v6195_v53 = vmax.f32 %v6193_v2, %v6194_v48  ;;  %v6186_v39 = vmax.f32 %v6184_v45, %v6185_v40  ;;  %v5022_v26 = vmax.f32 %v5020_v13, %v5021_v49  ;;  %v15833_v45 = vpop.f32.mrf.mxu1  ;;  %v15837_v49 = vpop.f32.mrf.mxu0 }
 0x2d5   : > { %v15829_v32 = vunpack.c.l.b16 %v7184_v30  ;;  %v5011_v36 = vrot.slane %v5010_v43, 1  ;;  %v6206_v52 = vrot.slane %v6205_v41, 2  ;;  %v6198_v51 = vmax.f32 %v6196_v60, %v6197_v42 }
 0x2d6   : > { %v6506_v48 = vadd.f32 %v15654_v14, %v5019_v55  ;;  %v6187_v7 = vrot.slane %v6186_v39, 1  ;;  %v5031_v4 = vmax.f32 %v5029_v61, %v5030_v15  ;;  %v5023_v2 = vrot.slane %v5022_v26, 2 }
 0x2d7   : > { %v6674_v50 = vadd.f32 %v15654_v14, %v6195_v53  ;;  %v5012_v16 = vmax.f32 %v5010_v43, %v5011_v36  ;;  %v6207_v3 = vmax.f32 %v6205_v41, %v6206_v52  ;;  %v6199_v28 = vrot.slane %v6198_v51, 2 }
 0x2d8   : > { %v7183_v13 = vpack.c.bf16 %v15806_v56, %v15806_v56  ;;  %v6188_v30 = vmax.f32 %v6186_v39, %v6187_v7  ;;  %v5032_v29 = vrot.slane %v5031_v4, 1  ;;  %v5024_v40 = vmax.f32 %v5022_v26, %v5023_v2  ;;  %v15848_v7 = vpop.f32.mrf.mxu1 }
 0x2d9   : > { %v7854_v60 = vrot.slane %v15810_v23, 7  ;;  %v6505_v15 = vadd.f32 %v15654_v14, %v5012_v16  ;;  %v6208_v55 = vrot.slane %v6207_v3, 1  ;;  %v6200_v61 = vmax.f32 %v6198_v51, %v6199_v28 }
 0x2da   : > { %v15841_v53 = vmax.f32 %v6506_v48, 0.0  ;;  %v6673_v41 = vadd.f32 %v15654_v14, %v6188_v30  ;;  %v5033_v43 = vmax.f32 %v5031_v4, %v5032_v29  ;;  %v5025_v42 = vrot.slane %v5024_v40, 1  ;;  %v15853_v48 = vpop.f32.mrf.mxu0 }
 0x2db   : > { %v15844_v36 = vmax.f32 %v6674_v50, 0.0  ;;  %v15846_v52 = vmax.f32 %v6505_v15, 0.0  ;;  %v6209_v39 = vmax.f32 %v6207_v3, %v6208_v55  ;;  %v6201_v26 = vrot.slane %v6200_v61, 1 }
 0x2dc   : > { %20796 = vst [vmem:[#allocation151_spill] sm:$0xff] %v15841_v53  ;;  %v7555_v2 = vunpack.c.l.b16 %v7015_v34  ;;  %v15850_v23 = vmax.f32 %v6673_v41, 0.0  ;;  %v6508_v16 = vadd.f32 %v15654_v14, %v5033_v43  ;;  %v5026_v51 = vmax.f32 %v5024_v40, %v5025_v42  ;;  %v15873_v41 = vpop.f32.mrf.mxu1 }
 0x2dd   : > { %20797 = vst [vmem:[#allocation155_spill] sm:$0xff] %v15844_v36  ;;  %20798 = vst [vmem:[#allocation153_spill] sm:$0xff] %v15846_v52  ;;  %v8148_v28 = vrot.slane %v15829_v32, 7  ;;  %v7017_v4 = vpack.c.bf16 %v15846_v52, %v15846_v52  ;;  %v6676_v50 = vadd.f32 %v15654_v14, %v6209_v39  ;;  %v6202_v3 = vmax.f32 %v6200_v61, %v6201_v26 }
 0x2de   : > { %20799 = vst [vmem:[#allocation196_spill] sm:$0xff] %v15850_v23  ;;  %v7723_v30 = vunpack.c.l.b16 %v7183_v13  ;;  %v7018_v34 = vpack.c.bf16 %v15841_v53, %v15841_v53  ;;  %v7185_v29 = vpack.c.bf16 %v15850_v23, %v15850_v23  ;;  %v6507_v40 = vadd.f32 %v15654_v14, %v5026_v51  ;;  %v15883_v51 = vpop.f32.mrf.mxu0 }
 0x2df   : > { %v7852_v15 = vrot.slane %v15781_v5, 1  ;;  %v7186_v32 = vpack.c.bf16 %v15844_v36, %v15844_v36  ;;  %v15867_v55 = vmax.f32 %v6508_v16, 0.0  ;;  %v20801_v61 = vrot.slane %v15360_v11, 5  ;;  %v13117_v16 = vld [vmem:[%s14044_s22 + $0x3c0] sm:$0xff]   ;;  %v13118_v36 = vld [vmem:[%s14044_s22 + $0x3c8] sm:$0xff]  }
 0x2e0   : > { %v15876_v42 = vunpack.c.l.b16 %v7017_v4  ;;  %v15878_v39 = vmax.f32 %v6676_v50, 0.0  ;;  %v20803_v5 = vrot.slane %v15464_v8, 4  ;;  %v7850_v11 = vrot.slane %v15794_v10, 2  ;;  %12407 = vmatprep.mubr.bf16.mxu0 %v13117_v16 }
 0x2e1   : > { %20800 = vst [vmem:[#allocation197_spill] sm:$0xff] %v15867_v55  ;;  %v7831_v13 = vsel %vm7770_vm2, %v20801_v61, %v15426_v38  ;;  %v15889_v61 = vunpack.c.l.b16 %v7185_v29  ;;  %v6675_v43 = vadd.f32 %v15654_v14, %v6202_v3  ;;  %v15893_v4 = vsel %vm7764_vm0, %v7854_v60, %v7555_v2  ;;  %v20806_v3 = vld [vmem:[#allocation112_spill] sm:$0xff]  ;;  %12408 = vmatmul.mubr.bf16.gmra.mxu0 %v13118_v36  ;;  %v13119_v29 = vld [vmem:[%s14044_s22 + $0x3d0] sm:$0xff]  }
 0x2e2   : > { %20802 = vst [vmem:[#allocation198_spill] sm:$0xff] %v15878_v39  ;;  %v7833_v26 = vsel %vm7773_vm3, %v20803_v5, %v7831_v13  ;;  %v15896_v50 = vsel %vm7764_vm0, %v8148_v28, %v7723_v30  ;;  %v15898_v8 = vunpack.c.l.b16 %v7018_v34  ;;  %v15900_v13 = vmax.f32 %v6507_v40, 0.0  ;;  %v15902_v5 = vpop.f32.mrf.mxu0  ;;  %v15915_v30 = vpop.f32.mrf.mxu1  ;;  %v20814_v34 = vld [vmem:[#allocation162_spill] sm:$0xff]  ;;  %12411 = vmatprep.mubr.bf16.mxu0 %v13119_v29 }
 0x2e3   : > { %v15904_v10 = vunpack.c.l.b16 %v7186_v32  ;;  %v20807_v38 = vrot.slane %v20806_v3, 3  ;;  %v20808_v2 = vrot.slane %v15638_v19, 5  ;;  %v20809_v32 = vrot.slane %v15616_v12, 2  ;;  %v20815_v40 = vld [vmem:[#allocation158_spill] sm:$0xff] }
 0x2e4   : > { %20804 = vst [vmem:[#allocation199_spill] sm:$0xff] %v15900_v13  ;;  %v20810_v3 = vrot.slane %v15748_v58, 4  ;;  %v15929_v19 = vmax.f32 %v6675_v43, 0.0  ;;  %v20813_v36 = vrot.slane %v15727_v33, 3  ;;  %v5041_v12 = vmax.f32 %v20815_v40, %v20814_v34  ;;  %v15952_v58 = vpop.f32.mrf.mxu1 }
 0x2e5   : > { %20805 = vst [vmem:[#allocation200_spill] sm:$0xff] %v15904_v10  ;;  %v7835_v60 = vsel %vm7776_vm4, %v20807_v38, %v7833_v26  ;;  %v7845_v28 = vsel %vm7770_vm2, %v20808_v2, %v15693_v25  ;;  %v15926_v38 = vpop.f32.mrf.mxu0  ;;  %v20818_v33 = vrot.slane %v15523_v22, 1 }
 0x2e6   : > { %v7837_v16 = vsel %vm7779_vm5, %v20809_v32, %v7835_v60  ;;  %v7847_v26 = vsel %vm7773_vm3, %v20810_v3, %v7845_v28  ;;  %20811 = vst [vmem:[#allocation112_spill] sm:$0xff] %v15926_v38  ;;  %20812 = vst [vmem:[#allocation201_spill] sm:$0xff] %v15929_v19  ;;  %v6217_v28 = vmax.f32 %v15528_v35, %v15580_v24  ;;  %v20816_v32 = vld [vmem:[#allocation166_spill] sm:$0xff]  ;;  %v20817_v3 = vld [vmem:[#allocation160_spill] sm:$0xff]  ;;  %v5042_v40 = vrot.slane %v5041_v12, 4  ;;  %v15965_v52 = vpop.f32.mrf.mxu1 }
 0x2e7   : > { %v7849_v2 = vsel %vm7776_vm4, %v20813_v36, %v7847_v26  ;;  %v5034_v43 = vmax.f32 %v20817_v3, %v20816_v32  ;;  %v15944_v25 = vpop.f32.mrf.mxu0  ;;  %v7839_v26 = vsel %vm7782_vm6, %v20818_v33, %v7837_v16  ;;  %v6210_v36 = vmax.f32 %v15557_v27, %v15588_v20  ;;  %v20819_v32 = vld [vmem:[#allocation65_spill] sm:$0xff]  ;;  %v20820_v3 = vld [vmem:[#allocation168_spill] sm:$0xff] }
 0x2e8   : > { %v7851_v60 = vsel %vm7779_vm5, %v7850_v11, %v7849_v2  ;;  %v13120_v11 = vld [vmem:[%s14044_s22 + $0x3d8] sm:$0xff]   ;;  %v6218_v24 = vrot.slane %v6217_v28, 4  ;;  %v5055_v56 = vmax.f32 %v20820_v3, %v20819_v32  ;;  %v5043_v22 = vmax.f32 %v5041_v12, %v5042_v40  ;;  %v20823_v33 = vld [vmem:[#allocation169_spill] sm:$0xff] }
 0x2e9   : > { %v7853_v34 = vsel %vm7782_vm6, %v7852_v15, %v7851_v60  ;;  %v5035_v2 = vrot.slane %v5034_v43, 4  ;;  %v15957_v23 = vpop.f32.mrf.mxu0  ;;  %v6211_v16 = vrot.slane %v6210_v36, 4  ;;  %v6231_v15 = vmax.f32 %v15599_v6, %v15651_v59  ;;  %v20822_v60 = vld [vmem:[#allocation49_spill] sm:$0xff]  ;;  %12412 = vmatmul.mubr.bf16.gmra.mxu0 %v13120_v11 }
 0x2ea   : > { %v8220_v35 = vpack.c.b16 %v7853_v34, %v7839_v26  ;;  %20821 = vst [vmem:[#allocation162_spill] sm:$0xff] %v15957_v23  ;;  %v5048_v20 = vmax.f32 %v20823_v33, %v20822_v60  ;;  %v6219_v27 = vmax.f32 %v6217_v28, %v6218_v24  ;;  %v5056_v53 = vrot.slane %v5055_v56, 4 }
 0x2eb   : > { %v5036_v29 = vmax.f32 %v5034_v43, %v5035_v2  ;;  %v6224_v26 = vmax.f32 %v15622_v63, %v15675_v9  ;;  %v5044_v34 = vrot.slane %v5043_v22, 2  ;;  %v6212_v37 = vmax.f32 %v6210_v36, %v6211_v16 }
 0x2ec   : > { %8383 = vmatmul.mubr.bf16.gmra.mxu1 %v8220_v35  ;;  %v6232_v32 = vrot.slane %v6231_v15, 4  ;;  %v5049_v3 = vrot.slane %v5048_v20, 4  ;;  %v6220_v6 = vrot.slane %v6219_v27, 2  ;;  %v5057_v12 = vmax.f32 %v5055_v56, %v5056_v53  ;;  %v15968_v35 = vpop.f32.mrf.mxu0 }
 0x2ed   : > { %8392 = vmatprep.mubr.bf16.mxu1 %v20690_v17  ;;  %v5037_v59 = vrot.slane %v5036_v29, 2  ;;  %v6225_v40 = vrot.slane %v6224_v26, 4  ;;  %20824 = vst [vmem:[#allocation158_spill] sm:$0xff] %v15968_v35  ;;  %v5045_v28 = vmax.f32 %v5043_v22, %v5044_v34  ;;  %v6213_v43 = vrot.slane %v6212_v37, 2  ;;  %v15970_v17 = vpop.f32.mrf.mxu1 }
 0x2ee   : > { %v6233_v24 = vmax.f32 %v6231_v15, %v6232_v32  ;;  %v5050_v2 = vmax.f32 %v5048_v20, %v5049_v3  ;;  %v6221_v63 = vmax.f32 %v6219_v27, %v6220_v6  ;;  %v5058_v36 = vrot.slane %v5057_v12, 2  ;;  %v15972_v23 = vpop.f32.mrf.mxu0 }
 0x2ef   : > { %v5038_v9 = vmax.f32 %v5036_v29, %v5037_v59  ;;  %v6226_v16 = vmax.f32 %v6224_v26, %v6225_v40  ;;  %v5046_v60 = vrot.slane %v5045_v28, 1  ;;  %v6214_v33 = vmax.f32 %v6212_v37, %v6213_v43  ;;  %20825 = vst [vmem:[#allocation166_spill] sm:$0xff] %v15972_v23  ;;  %v15975_v40 = vpop.f32.mrf.mxu1 }
 0x2f0   : > { %v6234_v18 = vrot.slane %v6233_v24, 2  ;;  %v5051_v21 = vrot.slane %v5050_v2, 2  ;;  %v6222_v11 = vrot.slane %v6221_v63, 1  ;;  %v5059_v56 = vmax.f32 %v5057_v12, %v5058_v36 }
 0x2f1   : > { %v5039_v38 = vrot.slane %v5038_v9, 1  ;;  %v6227_v53 = vrot.slane %v6226_v16, 2  ;;  %v5047_v22 = vmax.f32 %v5045_v28, %v5046_v60  ;;  %v6215_v34 = vrot.slane %v6214_v33, 1  ;;  %v15979_v60 = vpop.f32.mrf.mxu0 }
 0x2f2   : > { %v6235_v15 = vmax.f32 %v6233_v24, %v6234_v18  ;;  %v5052_v20 = vmax.f32 %v5050_v2, %v5051_v21  ;;  %v6223_v27 = vmax.f32 %v6221_v63, %v6222_v11  ;;  %v5060_v32 = vrot.slane %v5059_v56, 1  ;;  %20826 = vst [vmem:[#allocation160_spill] sm:$0xff] %v15979_v60 }
 0x2f3   : > { %v5040_v29 = vmax.f32 %v5038_v9, %v5039_v38  ;;  %v6228_v26 = vmax.f32 %v6226_v16, %v6227_v53  ;;  %v6510_v37 = vadd.f32 %v15654_v14, %v5047_v22  ;;  %v6216_v3 = vmax.f32 %v6214_v33, %v6215_v34 }
 0x2f4   : > { %v6236_v6 = vrot.slane %v6235_v15, 1  ;;  %v5053_v59 = vrot.slane %v5052_v20, 1  ;;  %v6678_v12 = vadd.f32 %v15654_v14, %v6223_v27  ;;  %v5061_v36 = vmax.f32 %v5059_v56, %v5060_v32 }
 0x2f5   : > { %v6509_v43 = vadd.f32 %v15654_v14, %v5040_v29  ;;  %v6229_v28 = vrot.slane %v6228_v26, 1  ;;  %v15981_v18 = vmax.f32 %v6510_v37, 0.0  ;;  %v6677_v21 = vadd.f32 %v15654_v14, %v6216_v3  ;;  %v16013_v37 = vpop.f32.mrf.mxu0  ;;  %v13123_v3 = vld [vmem:[%s14044_s22 + $0x3f0] sm:$0xff]  }
 0x2f6   : > { %v6237_v38 = vmax.f32 %v6235_v15, %v6236_v6  ;;  %v5054_v24 = vmax.f32 %v5052_v20, %v5053_v59  ;;  %v20828_v2 = vpack.c.bf16 %v15867_v55, %v15867_v55  ;;  %v15989_v9 = vmax.f32 %v6678_v12, 0.0  ;;  %v16001_v15 = vpop.f32.mrf.mxu1  ;;  %20835 = vst [vmem:[#allocation203_spill] sm:$0xff] %v16013_v37 }
 0x2f7   : > { %20827 = vst [vmem:[#allocation65_spill] sm:$0xff] %v15981_v18  ;;  %v6512_v16 = vadd.f32 %v15654_v14, %v5061_v36  ;;  %v6230_v33 = vmax.f32 %v6228_v26, %v6229_v28  ;;  %v20830_v11 = vpack.c.bf16 %v15878_v39, %v15878_v39  ;;  %v7187_v53 = vpack.c.bf16 %v15929_v19, %v15929_v19 }
 0x2f8   : > { %v15987_v63 = vunpack.c.l.b16 %v20828_v2  ;;  %20829 = vst [vmem:[#allocation168_spill] sm:$0xff] %v15989_v9  ;;  %v6680_v22 = vadd.f32 %v15654_v14, %v6237_v38  ;;  %v6511_v34 = vadd.f32 %v15654_v14, %v5054_v24  ;;  %v20832_v20 = vpack.c.bf16 %v15900_v13, %v15900_v13  ;;  %v13121_v2 = vld [vmem:[%s14044_s22 + $0x3e0] sm:$0xff]  }
 0x2f9   : > { %v15995_v56 = vunpack.c.l.b16 %v20830_v11  ;;  %v16008_v29 = vmax.f32 %v6509_v43, 0.0  ;;  %v16010_v32 = vmax.f32 %v6512_v16, 0.0  ;;  %v6679_v26 = vadd.f32 %v15654_v14, %v6230_v33  ;;  %v16034_v16 = vpop.f32.mrf.mxu0  ;;  %12415 = vmatprep.mubr.bf16.mxu0 %v13121_v2  ;;  %v20848_v2 = vld [vmem:[#allocation115_spill] sm:$0xff] }
 0x2fa   : > { %v16006_v27 = vunpack.c.l.b16 %v20832_v20  ;;  %v7022_v6 = vpack.c.bf16 %v15981_v18, %v15981_v18  ;;  %v16018_v59 = vmax.f32 %v6677_v21, 0.0  ;;  %v16020_v12 = vmax.f32 %v6680_v22, 0.0  ;;  %20840 = vst [vmem:[#allocation207_spill] sm:$0xff] %v16034_v16  ;;  %v13122_v21 = vld [vmem:[%s14044_s22 + $0x3e8] sm:$0xff]   ;;  %v20846_v20 = vld [vmem:[#allocation106_spill] sm:$0xff] }
 0x2fb   : > { %20831 = vst [vmem:[#allocation49_spill] sm:$0xff] %v15995_v56  ;;  %20833 = vst [vmem:[#allocation169_spill] sm:$0xff] %v16008_v29  ;;  %v20838_v43 = vrot.slane %v15876_v42, 6  ;;  %v7190_v38 = vpack.c.bf16 %v15989_v9, %v15989_v9  ;;  %v16031_v24 = vmax.f32 %v6511_v34, 0.0  ;;  %v20841_v33 = vrot.slane %v15889_v61, 6  ;;  %v16047_v34 = vpop.f32.mrf.mxu1  ;;  %12416 = vmatmul.mubr.bf16.gmra.mxu0 %v13122_v21  ;;  %v20849_v61 = vld [vmem:[#allocation117_spill] sm:$0xff] }
 0x2fc   : > { %20834 = vst [vmem:[#allocation202_spill] sm:$0xff] %v16010_v32  ;;  %20836 = vst [vmem:[#allocation204_spill] sm:$0xff] %v16018_v59  ;;  %v7024_v22 = vpack.c.bf16 %v16010_v32, %v16010_v32  ;;  %v16054_v36 = vmax.f32 %v6679_v26, 0.0  ;;  %v7192_v42 = vpack.c.bf16 %v16020_v12, %v16020_v12  ;;  %v5062_v39 = vmax.f32 %v20849_v61, %v20848_v2  ;;  %v20852_v21 = vld [vmem:[#allocation59_spill] sm:$0xff]  ;;  %v13124_v32 = vld [vmem:[%s14044_s22 + $0x3f8] sm:$0xff]  }
 0x2fd   : > { %20837 = vst [vmem:[#allocation205_spill] sm:$0xff] %v16020_v12  ;;  %v16027_v28 = vsel %vm7767_vm1, %v20838_v43, %v15893_v4  ;;  %20839 = vst [vmem:[#allocation206_spill] sm:$0xff] %v16031_v24  ;;  %v16041_v11 = vsel %vm7767_vm1, %v20841_v33, %v15896_v50  ;;  %v16050_v43 = vunpack.c.l.b16 %v7187_v53  ;;  %v16056_v50 = vpop.f32.mrf.mxu0  ;;  %v16058_v33 = vunpack.c.l.b16 %v7022_v6  ;;  %v16083_v18 = vpop.f32.mrf.mxu1  ;;  %12419 = vmatprep.mubr.bf16.mxu0 %v13123_v3  ;;  %v20854_v3 = vld [vmem:[#allocation173_spill] sm:$0xff]  ;;  %v20855_v56 = vld [vmem:[#allocation123_spill] sm:$0xff] }
 0x2fe   : > { %20842 = vst [vmem:[#allocation208_spill] sm:$0xff] %v16041_v11  ;;  %20844 = vst [vmem:[#allocation210_spill] sm:$0xff] %v16054_v36  ;;  %v5069_v53 = vmax.f32 %v20846_v20, %v15482_v47  ;;  %v16067_v9 = vunpack.c.l.b16 %v7190_v38  ;;  %v6245_v6 = vmax.f32 %v15697_v44, %v15715_v31  ;;  %v16077_v12 = vunpack.c.l.b16 %v7024_v22  ;;  %v20851_v38 = vld [vmem:[#allocation72_spill] sm:$0xff]  ;;  %v20856_v16 = vld [vmem:[#allocation98_spill] sm:$0xff] }
 0x2ff   : > { %20843 = vst [vmem:[#allocation209_spill] sm:$0xff] %v16050_v43  ;;  %20845 = vst [vmem:[#allocation211_spill] sm:$0xff] %v16056_v50  ;;  %v16075_v4 = vpop.f32.mrf.mxu0  ;;  %v6238_v47 = vmax.f32 %v15705_v1, %v15731_v62  ;;  %v5083_v20 = vmax.f32 %v20852_v21, %v20851_v38  ;;  %v5063_v61 = vrot.slane %v5062_v39, 4  ;;  %v6259_v2 = vmax.f32 %v15764_v46, %v15814_v57  ;;  %v16098_v46 = vpop.f32.mrf.mxu1 }
 0x300   : > { %20847 = vst [vmem:[#allocation106_spill] sm:$0xff] %v16067_v9  ;;  %20850 = vst [vmem:[#allocation115_spill] sm:$0xff] %v16075_v4  ;;  %v5070_v19 = vrot.slane %v5069_v53, 4  ;;  %v6246_v31 = vrot.slane %v6245_v6, 4  ;;  %v16091_v26 = vunpack.c.l.b16 %v7192_v42  ;;  %v5076_v10 = vmax.f32 %v20855_v56, %v20854_v3  ;;  %v20885_v9 = vld [vmem:[#allocation146_spill] sm:$0xff] }
 0x301   : > { %v16089_v22 = vpop.f32.mrf.mxu0  ;;  %v6239_v1 = vrot.slane %v6238_v47, 4  ;;  %v5084_v62 = vrot.slane %v5083_v20, 4  ;;  %v5064_v21 = vmax.f32 %v5062_v39, %v5063_v61  ;;  %v6260_v13 = vrot.slane %v6259_v2, 4  ;;  %v16102_v23 = vpop.f32.mrf.mxu1 }
 0x302   : > { %20853 = vst [vmem:[#allocation117_spill] sm:$0xff] %v16089_v22  ;;  %v5071_v55 = vmax.f32 %v5069_v53, %v5070_v19  ;;  %v6247_v38 = vmax.f32 %v6245_v6, %v6246_v31  ;;  %v6252_v57 = vmax.f32 %v20856_v16, %v15823_v54  ;;  %v5077_v53 = vrot.slane %v5076_v10, 4 }
 0x303   : > { %v6240_v11 = vmax.f32 %v6238_v47, %v6239_v1  ;;  %v5085_v50 = vmax.f32 %v5083_v20, %v5084_v62  ;;  %v5065_v22 = vrot.slane %v5064_v21, 2  ;;  %v6261_v19 = vmax.f32 %v6259_v2, %v6260_v13  ;;  %v16100_v4 = vpop.f32.mrf.mxu0  ;;  %12420 = vmatmul.mubr.bf16.gmra.mxu0 %v13124_v32 }
 0x304   : > { %v5072_v44 = vrot.slane %v5071_v55, 2  ;;  %v6248_v42 = vrot.slane %v6247_v38, 2  ;;  %20857 = vst [vmem:[#allocation72_spill] sm:$0xff] %v16100_v4  ;;  %v6253_v61 = vrot.slane %v6252_v57, 4  ;;  %v5078_v20 = vmax.f32 %v5076_v10, %v5077_v53  ;;  %v16107_v53 = vpop.f32.mrf.mxu1 }
 0x305   : > { %v6241_v39 = vrot.slane %v6240_v11, 2  ;;  %v5086_v31 = vrot.slane %v5085_v50, 2  ;;  %v5066_v3 = vmax.f32 %v5064_v21, %v5065_v22  ;;  %v6262_v47 = vrot.slane %v6261_v19, 2  ;;  %v16104_v4 = vpop.f32.mrf.mxu0 }
 0x306   : > { %v5073_v6 = vmax.f32 %v5071_v55, %v5072_v44  ;;  %v6249_v56 = vmax.f32 %v6247_v38, %v6248_v42  ;;  %v6254_v16 = vmax.f32 %v6252_v57, %v6253_v61  ;;  %v5079_v35 = vrot.slane %v5078_v20, 2  ;;  %20858 = vst [vmem:[#allocation59_spill] sm:$0xff] %v16104_v4 }
 0x307   : > { %v6242_v62 = vmax.f32 %v6240_v11, %v6241_v39  ;;  %v5087_v54 = vmax.f32 %v5085_v50, %v5086_v31  ;;  %v5067_v13 = vrot.slane %v5066_v3, 1  ;;  %v6263_v2 = vmax.f32 %v6261_v19, %v6262_v47  ;;  %v16111_v61 = vpop.f32.mrf.mxu0 }
 0x308   : > { %v5074_v1 = vrot.slane %v5073_v6, 1  ;;  %v6250_v37 = vrot.slane %v6249_v56, 1  ;;  %v6255_v32 = vrot.slane %v6254_v16, 2  ;;  %v5080_v10 = vmax.f32 %v5078_v20, %v5079_v35  ;;  %20859 = vst [vmem:[#allocation173_spill] sm:$0xff] %v16111_v61 }
 0x309   : > { %v6243_v44 = vrot.slane %v6242_v62, 1  ;;  %v5088_v60 = vrot.slane %v5087_v54, 1  ;;  %v5068_v22 = vmax.f32 %v5066_v3, %v5067_v13  ;;  %v6264_v21 = vrot.slane %v6263_v2, 1 }
 0x30a   : > { %v5075_v55 = vmax.f32 %v5073_v6, %v5074_v1  ;;  %v6251_v38 = vmax.f32 %v6249_v56, %v6250_v37  ;;  %v6256_v42 = vmax.f32 %v6254_v16, %v6255_v32  ;;  %v5081_v6 = vrot.slane %v5080_v10, 1 }
 0x30b   : > { %v6244_v50 = vmax.f32 %v6242_v62, %v6243_v44  ;;  %v5089_v57 = vmax.f32 %v5087_v54, %v5088_v60  ;;  %v6513_v39 = vadd.f32 %v15654_v14, %v5068_v22  ;;  %v6265_v31 = vmax.f32 %v6263_v2, %v6264_v21 }
 0x30c   : > { %v6514_v11 = vadd.f32 %v15654_v14, %v5075_v55  ;;  %v6682_v19 = vadd.f32 %v15654_v14, %v6251_v38  ;;  %v6257_v56 = vrot.slane %v6256_v42, 1  ;;  %v5082_v1 = vmax.f32 %v5080_v10, %v5081_v6  ;;  %v16133_v55 = vpop.f32.mrf.mxu1  ;;  %v13125_v6 = vld [vmem:[%s14044_s22 + $0x400] sm:$0xff]  }
 0x30d   : > { %v6681_v37 = vadd.f32 %v15654_v14, %v6244_v50  ;;  %v6516_v35 = vadd.f32 %v15654_v14, %v5089_v57  ;;  %v16119_v60 = vmax.f32 %v6513_v39, 0.0  ;;  %v6684_v20 = vadd.f32 %v15654_v14, %v6265_v31  ;;  %12423 = vmatprep.mubr.bf16.mxu0 %v13125_v6 }
 0x30e   : > { %v16113_v47 = vmax.f32 %v6514_v11, 0.0  ;;  %v16117_v3 = vmax.f32 %v6682_v19, 0.0  ;;  %v20863_v62 = vpack.c.bf16 %v16008_v29, %v16008_v29  ;;  %v20866_v44 = vpack.c.bf16 %v16018_v59, %v16018_v59  ;;  %v16144_v11 = vpop.f32.mrf.mxu0  ;;  %v20876_v59 = vld [vmem:[#allocation130_spill] sm:$0xff] }
 0x30f   : > { %20862 = vst [vmem:[#allocation212_spill] sm:$0xff] %v16119_v60  ;;  %v16129_v13 = vmax.f32 %v6681_v37, 0.0  ;;  %v16131_v2 = vmax.f32 %v6516_v35, 0.0  ;;  %v7868_v38 = vrot.slane %v16077_v12, 7  ;;  %v20868_v22 = vpack.c.bf16 %v16031_v24, %v16031_v24  ;;  %20869 = vst [vmem:[#allocation216_spill] sm:$0xff] %v16144_v11  ;;  %v13126_v12 = vld [vmem:[%s14044_s22 + $0x408] sm:$0xff]  }
 0x310   : > { %20860 = vst [vmem:[#allocation123_spill] sm:$0xff] %v16113_v47  ;;  %20861 = vst [vmem:[#allocation98_spill] sm:$0xff] %v16117_v3  ;;  %v16125_v54 = vunpack.c.l.b16 %v20863_v62  ;;  %v7026_v16 = vpack.c.bf16 %v16113_v47, %v16113_v47  ;;  %v16138_v32 = vunpack.c.l.b16 %v20866_v44  ;;  %v6258_v10 = vmax.f32 %v6256_v42, %v6257_v56  ;;  %12424 = vmatmul.mubr.bf16.gmra.mxu0 %v13126_v12  ;;  %v20882_v24 = vld [vmem:[#allocation137_spill] sm:$0xff] }
 0x311   : > { %20864 = vst [vmem:[#allocation213_spill] sm:$0xff] %v16129_v13  ;;  %20865 = vst [vmem:[#allocation214_spill] sm:$0xff] %v16131_v2  ;;  %v7563_v21 = vunpack.c.l.b16 %v20868_v22  ;;  %v8162_v50 = vrot.slane %v16091_v26, 7  ;;  %v20870_v57 = vpack.c.bf16 %v16054_v36, %v16054_v36  ;;  %v7194_v39 = vpack.c.bf16 %v16117_v3, %v16117_v3  ;;  %v16162_v26 = vpop.f32.mrf.mxu0 }
 0x312   : > { %20867 = vst [vmem:[#allocation215_spill] sm:$0xff] %v16138_v32  ;;  %v6515_v31 = vadd.f32 %v15654_v14, %v5082_v1  ;;  %v16156_v35 = vunpack.c.l.b16 %v7026_v16  ;;  %v7025_v42 = vpack.c.bf16 %v16119_v60, %v16119_v60  ;;  %v16160_v56 = vmax.f32 %v6684_v20, 0.0  ;;  %20872 = vst [vmem:[#allocation218_spill] sm:$0xff] %v16162_v26  ;;  %v16170_v16 = vpop.f32.mrf.mxu1  ;;  %v13127_v20 = vld [vmem:[%s14044_s22 + $0x410] sm:$0xff]   ;;  %v20884_v60 = vld [vmem:[#allocation136_spill] sm:$0xff] }
 0x313   : > { %v7731_v19 = vunpack.c.l.b16 %v20870_v57  ;;  %v7193_v1 = vpack.c.bf16 %v16129_v13, %v16129_v13  ;;  %v7028_v22 = vpack.c.bf16 %v16131_v2, %v16131_v2  ;;  %v16175_v37 = vsel %vm7764_vm0, %v7868_v38, %v7563_v21  ;;  %v20875_v13 = vld [vmem:[#allocation174_spill] sm:$0xff]  ;;  %v16187_v2 = vpop.f32.mrf.mxu0  ;;  %12427 = vmatprep.mubr.bf16.mxu0 %v13127_v20 }
 0x314   : > { %20871 = vst [vmem:[#allocation217_spill] sm:$0xff] %v16160_v56  ;;  %v6683_v62 = vadd.f32 %v15654_v14, %v6258_v10  ;;  %v16181_v3 = vunpack.c.l.b16 %v7194_v39  ;;  %v16183_v36 = vmax.f32 %v6515_v31, 0.0  ;;  %v5097_v6 = vmax.f32 %v20876_v59, %v20875_v13  ;;  %20877 = vst [vmem:[#allocation174_spill] sm:$0xff] %v16187_v2  ;;  %v20878_v59 = vld [vmem:[#allocation178_spill] sm:$0xff]  ;;  %v20879_v13 = vld [vmem:[#allocation81_spill] sm:$0xff]  ;;  %v16203_v12 = vpop.f32.mrf.mxu1 }
 0x315   : > { %v16179_v44 = vsel %vm7764_vm0, %v8162_v50, %v7731_v19  ;;  %v16191_v21 = vunpack.c.l.b16 %v7025_v42  ;;  %v6273_v10 = vmax.f32 %v15833_v45, %v15873_v41  ;;  %v16197_v50 = vunpack.c.l.b16 %v7193_v1  ;;  %v20881_v14 = vld [vmem:[#allocation180_spill] sm:$0xff]  ;;  %v13128_v41 = vld [vmem:[%s14044_s22 + $0x418] sm:$0xff]  }
 0x316   : > { %20873 = vst [vmem:[#allocation219_spill] sm:$0xff] %v16181_v3  ;;  %20874 = vst [vmem:[#allocation220_spill] sm:$0xff] %v16183_v36  ;;  %v16199_v19 = vunpack.c.l.b16 %v7028_v22  ;;  %v5098_v39 = vrot.slane %v5097_v6, 4  ;;  %v5090_v31 = vmax.f32 %v20879_v13, %v20878_v59  ;;  %v16205_v38 = vmax.f32 %v6683_v62, 0.0  ;;  %v16216_v13 = vpop.f32.mrf.mxu0  ;;  %v16222_v1 = vpop.f32.mrf.mxu1  ;;  %v20912_v3 = vld [vmem:[#allocation191_spill] sm:$0xff] }
 0x317   : > { %v6274_v42 = vrot.slane %v6273_v10, 4  ;;  %v6266_v57 = vmax.f32 %v15848_v7, %v15915_v30  ;;  %v5111_v45 = vmax.f32 %v20882_v24, %v20881_v14  ;;  %v6287_v59 = vmax.f32 %v15952_v58, %v15970_v17  ;;  %20883 = vst [vmem:[#allocation178_spill] sm:$0xff] %v16216_v13 }
 0x318   : > { %20880 = vst [vmem:[#allocation130_spill] sm:$0xff] %v16205_v38  ;;  %v5099_v22 = vmax.f32 %v5097_v6, %v5098_v39  ;;  %v5091_v47 = vrot.slane %v5090_v31, 4  ;;  %v5104_v7 = vmax.f32 %v20885_v9, %v20884_v60  ;;  %v6280_v14 = vmax.f32 %v15965_v52, %v15975_v40  ;;  %12428 = vmatmul.mubr.bf16.gmra.mxu0 %v13128_v41  ;;  %v16224_v26 = vpop.f32.mrf.mxu0  ;;  %v16226_v11 = vpop.f32.mrf.mxu1 }
 0x319   : > { %v6275_v62 = vmax.f32 %v6273_v10, %v6274_v42  ;;  %v6267_v20 = vrot.slane %v6266_v57, 4  ;;  %v5112_v29 = vrot.slane %v5111_v45, 4  ;;  %v6288_v24 = vrot.slane %v6287_v59, 4  ;;  %20886 = vst [vmem:[#allocation81_spill] sm:$0xff] %v16224_v26 }
 0x31a   : > { %v5100_v30 = vrot.slane %v5099_v22, 2  ;;  %v5092_v32 = vmax.f32 %v5090_v31, %v5091_v47  ;;  %v5105_v17 = vrot.slane %v5104_v7, 4  ;;  %v6281_v2 = vrot.slane %v6280_v14, 4 }
 0x31b   : > { %v6276_v6 = vrot.slane %v6275_v62, 2  ;;  %v6268_v39 = vmax.f32 %v6266_v57, %v6267_v20  ;;  %v5113_v43 = vmax.f32 %v5111_v45, %v5112_v29  ;;  %v6289_v42 = vmax.f32 %v6287_v59, %v6288_v24  ;;  %v16228_v24 = vpop.f32.mrf.mxu0 }
 0x31c   : > { %v5101_v58 = vmax.f32 %v5099_v22, %v5100_v30  ;;  %v5093_v10 = vrot.slane %v5092_v32, 2  ;;  %v5106_v31 = vmax.f32 %v5104_v7, %v5105_v17  ;;  %v6282_v40 = vmax.f32 %v6280_v14, %v6281_v2  ;;  %20887 = vst [vmem:[#allocation180_spill] sm:$0xff] %v16228_v24  ;;  %v16230_v17 = vld [vmem:[#allocation7] ss:$0 sm:$0xff] }
 0x31d   : > { %v6277_v9 = vmax.f32 %v6275_v62, %v6276_v6  ;;  %v6269_v60 = vrot.slane %v6268_v39, 2  ;;  %v5114_v47 = vrot.slane %v5113_v43, 2  ;;  %v6290_v52 = vrot.slane %v6289_v42, 2 }
 0x31e   : > { %v5102_v13 = vrot.slane %v5101_v58, 1  ;;  %v5094_v4 = vmax.f32 %v5092_v32, %v5093_v10  ;;  %v5107_v41 = vrot.slane %v5106_v31, 2  ;;  %v6283_v30 = vrot.slane %v6282_v40, 2 }
 0x31f   : > { %v6278_v57 = vrot.slane %v6277_v9, 1  ;;  %v6270_v29 = vmax.f32 %v6268_v39, %v6269_v60  ;;  %v5115_v45 = vmax.f32 %v5113_v43, %v5114_v47  ;;  %v6291_v59 = vmax.f32 %v6289_v42, %v6290_v52  ;;  %v16233_v39 = vpop.f32.mrf.mxu1  ;;  %v16240_v52 = vpop.f32.mrf.mxu0 }
 0x320   : > { %v5103_v22 = vmax.f32 %v5101_v58, %v5102_v13  ;;  %v5095_v20 = vrot.slane %v5094_v4, 1  ;;  %v5108_v7 = vmax.f32 %v5106_v31, %v5107_v41  ;;  %v6284_v10 = vmax.f32 %v6282_v40, %v6283_v30  ;;  %20889 = vst [vmem:[#allocation136_spill] sm:$0xff] %v16240_v52 }
 0x321   : > { %v6279_v62 = vmax.f32 %v6277_v9, %v6278_v57  ;;  %v6271_v6 = vrot.slane %v6270_v29, 1  ;;  %v5116_v26 = vrot.slane %v5115_v45, 1  ;;  %v6292_v14 = vrot.slane %v6291_v59, 1 }
 0x322   : > { %v6518_v2 = vadd.f32 %v16230_v17, %v5103_v22  ;;  %v5096_v32 = vmax.f32 %v5094_v4, %v5095_v20  ;;  %v7195_v43 = vpack.c.bf16 %v16205_v38, %v16205_v38  ;;  %v5109_v42 = vrot.slane %v5108_v7, 1 }
 0x323   : > { %v6272_v13 = vmax.f32 %v6270_v29, %v6271_v6  ;;  %v5117_v58 = vmax.f32 %v5115_v45, %v5116_v26  ;;  %v6686_v9 = vadd.f32 %v16230_v17, %v6279_v62  ;;  %v6293_v47 = vmax.f32 %v6291_v59, %v6292_v14  ;;  %v16252_v59 = vpop.f32.mrf.mxu1 }
 0x324   : > { %v16237_v60 = vmax.f32 %v6518_v2, 0.0  ;;  %v6285_v31 = vrot.slane %v6284_v10, 1  ;;  %v6517_v4 = vadd.f32 %v16230_v17, %v5096_v32  ;;  %v5110_v41 = vmax.f32 %v5108_v7, %v5109_v42 }
 0x325   : > { %v6685_v40 = vadd.f32 %v16230_v17, %v6272_v13  ;;  %v6520_v57 = vadd.f32 %v16230_v17, %v5117_v58  ;;  %v7870_v22 = vrot.slane %v16191_v21, 6  ;;  %v20890_v26 = vpack.c.bf16 %v16160_v56, %v16160_v56  ;;  %v16270_v13 = vpop.f32.mrf.mxu0 }
 0x326   : > { %20888 = vst [vmem:[#allocation137_spill] sm:$0xff] %v16237_v60  ;;  %v6688_v45 = vadd.f32 %v16230_v17, %v6293_v47  ;;  %v6286_v20 = vmax.f32 %v6284_v10, %v6285_v31  ;;  %v8164_v30 = vrot.slane %v16197_v50, 6  ;;  %v20892_v62 = vpack.c.bf16 %v16183_v36, %v16183_v36  ;;  %20897 = vst [vmem:[#allocation225_spill] sm:$0xff] %v16270_v13  ;;  %v13129_v31 = vld [vmem:[%s14044_s22 + $0x420] sm:$0xff]   ;;  %v20903_v50 = vld [vmem:[#allocation144_spill] sm:$0xff] }
 0x327   : > { %v16249_v29 = vunpack.c.l.b16 %v20890_v26  ;;  %v16260_v7 = vmax.f32 %v6520_v57, 0.0  ;;  %v6519_v21 = vadd.f32 %v16230_v17, %v5110_v41  ;;  %v16263_v2 = vunpack.c.l.b16 %v7195_v43  ;;  %v16289_v26 = vpop.f32.mrf.mxu1  ;;  %12431 = vmatprep.mubr.bf16.mxu0 %v13129_v31 }
 0x328   : > { %v16258_v6 = vunpack.c.l.b16 %v20892_v62  ;;  %v16265_v32 = vmax.f32 %v6686_v9, 0.0  ;;  %v16267_v14 = vmax.f32 %v6688_v45, 0.0  ;;  %v6687_v10 = vadd.f32 %v16230_v17, %v6286_v20  ;;  %v13130_v45 = vld [vmem:[%s14044_s22 + $0x428] sm:$0xff]   ;;  %v20904_v9 = vld [vmem:[#allocation86_spill] sm:$0xff]  ;;  %v20907_v62 = vld [vmem:[#allocation143_spill] sm:$0xff] }
 0x329   : > { %20891 = vst [vmem:[#allocation146_spill] sm:$0xff] %v16249_v29  ;;  %20893 = vst [vmem:[#allocation221_spill] sm:$0xff] %v16260_v7  ;;  %v7030_v58 = vpack.c.bf16 %v16237_v60, %v16237_v60  ;;  %v16275_v42 = vmax.f32 %v6517_v4, 0.0  ;;  %v16277_v47 = vmax.f32 %v6685_v40, 0.0  ;;  %v16282_v43 = vsel %vm7767_vm1, %v7870_v22, %v16175_v37  ;;  %12432 = vmatmul.mubr.bf16.gmra.mxu0 %v13130_v45  ;;  %v20906_v45 = vld [vmem:[#allocation186_spill] sm:$0xff] }
 0x32a   : > { %20894 = vst [vmem:[#allocation222_spill] sm:$0xff] %v16263_v2  ;;  %20895 = vst [vmem:[#allocation223_spill] sm:$0xff] %v16265_v32  ;;  %v7032_v57 = vpack.c.bf16 %v16260_v7, %v16260_v7  ;;  %v16287_v41 = vmax.f32 %v6519_v21, 0.0  ;;  %v16294_v4 = vsel %vm7767_vm1, %v8164_v30, %v16179_v44  ;;  %v7200_v22 = vpack.c.bf16 %v16267_v14, %v16267_v14  ;;  %v16307_v44 = vpop.f32.mrf.mxu0  ;;  %v13131_v30 = vld [vmem:[%s14044_s22 + $0x430] sm:$0xff]   ;;  %v20911_v2 = vld [vmem:[#allocation154_spill] sm:$0xff] }
 0x32b   : > { %20896 = vst [vmem:[#allocation224_spill] sm:$0xff] %v16267_v14  ;;  %20898 = vst [vmem:[#allocation226_spill] sm:$0xff] %v16275_v42  ;;  %v16303_v21 = vmax.f32 %v6687_v10, 0.0  ;;  %v5125_v56 = vmax.f32 %v20904_v9, %v20903_v50  ;;  %v16310_v40 = vunpack.c.l.b16 %v7030_v58  ;;  %v6301_v20 = vmax.f32 %v16001_v15, %v16083_v18  ;;  %v16324_v14 = vpop.f32.mrf.mxu1  ;;  %12435 = vmatprep.mubr.bf16.mxu0 %v13131_v30  ;;  %v20908_v18 = vld [vmem:[#allocation193_spill] sm:$0xff]  ;;  %v13132_v30 = vld [vmem:[%s14044_s22 + $0x438] sm:$0xff]  }
 0x32c   : > { %20899 = vst [vmem:[#allocation227_spill] sm:$0xff] %v16277_v47  ;;  %20900 = vst [vmem:[#allocation228_spill] sm:$0xff] %v16287_v41  ;;  %v16318_v10 = vunpack.c.l.b16 %v7032_v57  ;;  %v5118_v58 = vmax.f32 %v20907_v62, %v20906_v45  ;;  %v16326_v37 = vunpack.c.l.b16 %v7200_v22  ;;  %v6294_v31 = vmax.f32 %v16047_v34, %v16098_v46  ;;  %v20909_v15 = vld [vmem:[#allocation189_spill] sm:$0xff]  ;;  %v16336_v45 = vpop.f32.mrf.mxu0 }
 0x32d   : > { %20901 = vst [vmem:[#allocation229_spill] sm:$0xff] %v16294_v4  ;;  %20902 = vst [vmem:[#allocation230_spill] sm:$0xff] %v16303_v21  ;;  %v5126_v9 = vrot.slane %v5125_v56, 4  ;;  %v6302_v38 = vrot.slane %v6301_v20, 4  ;;  %v5139_v57 = vmax.f32 %v20909_v15, %v20908_v18  ;;  %v6315_v62 = vmax.f32 %v16102_v23, %v16133_v55 }
 0x32e   : > { %20905 = vst [vmem:[#allocation144_spill] sm:$0xff] %v16307_v44  ;;  %v5119_v60 = vrot.slane %v5118_v58, 4  ;;  %20910 = vst [vmem:[#allocation86_spill] sm:$0xff] %v16336_v45  ;;  %v6295_v36 = vrot.slane %v6294_v31, 4  ;;  %v5132_v34 = vmax.f32 %v20912_v3, %v20911_v2  ;;  %v6308_v15 = vmax.f32 %v16107_v53, %v16170_v16  ;;  %v16345_v44 = vpop.f32.mrf.mxu0 }
 0x32f   : > { %v5127_v50 = vmax.f32 %v5125_v56, %v5126_v9  ;;  %v6303_v22 = vmax.f32 %v6301_v20, %v6302_v38  ;;  %v5140_v29 = vrot.slane %v5139_v57, 4  ;;  %v6316_v18 = vrot.slane %v6315_v62, 4  ;;  %v16343_v56 = vpop.f32.mrf.mxu1  ;;  %20913 = vst [vmem:[#allocation186_spill] sm:$0xff] %v16345_v44 }
 0x330   : > { %v5120_v4 = vmax.f32 %v5118_v58, %v5119_v60  ;;  %v6296_v7 = vmax.f32 %v6294_v31, %v6295_v36  ;;  %v5133_v55 = vrot.slane %v5132_v34, 4  ;;  %v6309_v20 = vrot.slane %v6308_v15, 4  ;;  %v16349_v44 = vpop.f32.mrf.mxu0 }
 0x331   : > { %v5128_v46 = vrot.slane %v5127_v50, 2  ;;  %v6304_v9 = vrot.slane %v6303_v22, 2  ;;  %v5141_v23 = vmax.f32 %v5139_v57, %v5140_v29  ;;  %v6317_v38 = vmax.f32 %v6315_v62, %v6316_v18  ;;  %12436 = vmatmul.mubr.bf16.gmra.mxu0 %v13132_v30  ;;  %v16347_v61 = vpop.f32.mrf.mxu1 }
 0x332   : > { %v5121_v52 = vrot.slane %v5120_v4, 2  ;;  %v6297_v2 = vrot.slane %v6296_v7, 2  ;;  %v5134_v58 = vmax.f32 %v5132_v34, %v5133_v55  ;;  %v6310_v16 = vmax.f32 %v6308_v15, %v6309_v20 }
 0x333   : > { %v5129_v45 = vmax.f32 %v5127_v50, %v5128_v46  ;;  %v6305_v3 = vmax.f32 %v6303_v22, %v6304_v9  ;;  %v5142_v60 = vrot.slane %v5141_v23, 2  ;;  %v6318_v53 = vrot.slane %v6317_v38, 2  ;;  %v16352_v20 = vpop.f32.mrf.mxu1 }
 0x334   : > { %v5122_v13 = vmax.f32 %v5120_v4, %v5121_v52  ;;  %v6298_v29 = vmax.f32 %v6296_v7, %v6297_v2  ;;  %v5135_v50 = vrot.slane %v5134_v58, 2  ;;  %v6311_v18 = vrot.slane %v6310_v16, 2 }
 0x335   : > { %v5130_v24 = vrot.slane %v5129_v45, 1  ;;  %v6306_v36 = vrot.slane %v6305_v3, 1  ;;  %v5143_v31 = vmax.f32 %v5141_v23, %v5142_v60  ;;  %v6319_v46 = vmax.f32 %v6317_v38, %v6318_v53  ;;  %v16358_v53 = vpop.f32.mrf.mxu0 }
 0x336   : > { %v5123_v62 = vrot.slane %v5122_v13, 1  ;;  %v6299_v22 = vrot.slane %v6298_v29, 1  ;;  %v5136_v34 = vmax.f32 %v5134_v58, %v5135_v50  ;;  %v6312_v55 = vmax.f32 %v6310_v16, %v6311_v18 }
 0x337   : > { %v5131_v57 = vmax.f32 %v5129_v45, %v5130_v24  ;;  %v6307_v30 = vmax.f32 %v6305_v3, %v6306_v36  ;;  %v5144_v9 = vrot.slane %v5143_v31, 1  ;;  %v6320_v15 = vrot.slane %v6319_v46, 1 }
 0x338   : > { %v5124_v4 = vmax.f32 %v5122_v13, %v5123_v62  ;;  %v6300_v23 = vmax.f32 %v6298_v29, %v6299_v22  ;;  %v5137_v45 = vrot.slane %v5136_v34, 1  ;;  %v6313_v60 = vrot.slane %v6312_v55, 1 }
 0x339   : > { %v6522_v52 = vadd.f32 %v16230_v17, %v5131_v57  ;;  %v6690_v7 = vadd.f32 %v16230_v17, %v6307_v30  ;;  %v5145_v24 = vmax.f32 %v5143_v31, %v5144_v9  ;;  %v6321_v3 = vmax.f32 %v6319_v46, %v6320_v15  ;;  %v16372_v46 = vpop.f32.mrf.mxu1 }
 0x33a   : > { %v6521_v2 = vadd.f32 %v16230_v17, %v5124_v4  ;;  %v6689_v13 = vadd.f32 %v16230_v17, %v6300_v23  ;;  %v5138_v36 = vmax.f32 %v5136_v34, %v5137_v45  ;;  %v20916_v29 = vpack.c.bf16 %v16265_v32, %v16265_v32 }
 0x33b   : > { %v16355_v38 = vmax.f32 %v6522_v52, 0.0  ;;  %v16360_v58 = vmax.f32 %v6690_v7, 0.0  ;;  %v6524_v16 = vadd.f32 %v16230_v17, %v5145_v24  ;;  %v6692_v57 = vadd.f32 %v16230_v17, %v6321_v3  ;;  %v16393_v24 = vpop.f32.mrf.mxu0 }
 0x33c   : > { %v16367_v31 = vunpack.c.l.b16 %v20916_v29  ;;  %v16369_v50 = vmax.f32 %v6521_v2, 0.0  ;;  %v6314_v62 = vmax.f32 %v6312_v55, %v6313_v60  ;;  %v20919_v18 = vpack.c.bf16 %v16275_v42, %v16275_v42 }
 0x33d   : > { %20914 = vst [vmem:[#allocation143_spill] sm:$0xff] %v16355_v38  ;;  %20915 = vst [vmem:[#allocation193_spill] sm:$0xff] %v16360_v58  ;;  %v16377_v22 = vmax.f32 %v6689_v13, 0.0  ;;  %v16379_v9 = vmax.f32 %v6524_v16, 0.0  ;;  %v6523_v34 = vadd.f32 %v16230_v17, %v5138_v36  ;;  %v20922_v52 = vpack.c.bf16 %v16277_v47, %v16277_v47 }
 0x33e   : > { %20917 = vst [vmem:[#allocation189_spill] sm:$0xff] %v16367_v31  ;;  %20918 = vst [vmem:[#allocation154_spill] sm:$0xff] %v16369_v50  ;;  %v7569_v30 = vunpack.c.l.b16 %v20919_v18  ;;  %v7882_v15 = vrot.slane %v16318_v10, 7  ;;  %v20924_v55 = vpack.c.bf16 %v16287_v41, %v16287_v41  ;;  %v7033_v23 = vpack.c.bf16 %v16369_v50, %v16369_v50 }
 0x33f   : > { %20920 = vst [vmem:[#allocation191_spill] sm:$0xff] %v16377_v22  ;;  %20921 = vst [vmem:[#allocation231_spill] sm:$0xff] %v16379_v9  ;;  %v16385_v4 = vunpack.c.l.b16 %v20922_v52  ;;  %v8176_v45 = vrot.slane %v16326_v37, 7  ;;  %v20925_v2 = vpack.c.bf16 %v16303_v21, %v16303_v21  ;;  %v7034_v10 = vpack.c.bf16 %v16355_v38, %v16355_v38  ;;  %v16409_v37 = vpop.f32.mrf.mxu1  ;;  %v13134_v21 = vld [vmem:[%s14044_s22 + $0x448] sm:$0xff]  }
 0x340   : > { %v7571_v7 = vunpack.c.l.b16 %v20924_v55  ;;  %v7202_v60 = vpack.c.bf16 %v16360_v58, %v16360_v58  ;;  %v7880_v13 = vrot.slane %v16310_v40, 1  ;;  %v7201_v16 = vpack.c.bf16 %v16377_v22, %v16377_v22  ;;  %v13133_v58 = vld [vmem:[%s14044_s22 + $0x440] sm:$0xff]  }
 0x341   : > { %20923 = vst [vmem:[#allocation232_spill] sm:$0xff] %v16385_v4  ;;  %v7739_v3 = vunpack.c.l.b16 %v20925_v2  ;;  %v16406_v36 = vmax.f32 %v6692_v57, 0.0  ;;  %v6691_v29 = vadd.f32 %v16230_v17, %v6314_v62  ;;  %v7878_v52 = vrot.slane %v7569_v30, 2  ;;  %v16428_v30 = vpop.f32.mrf.mxu0  ;;  %12439 = vmatprep.mubr.bf16.mxu0 %v13133_v58 }
 0x342   : > { %v7036_v55 = vpack.c.bf16 %v16379_v9, %v16379_v9  ;;  %v16414_v2 = vmax.f32 %v6523_v34, 0.0  ;;  %v16420_v32 = vsel %vm7764_vm0, %v7882_v15, %v7571_v7  ;;  %v16422_v57 = vunpack.c.l.b16 %v7033_v23  ;;  %12440 = vmatmul.mubr.bf16.gmra.mxu0 %v13134_v21 }
 0x343   : > { %20926 = vst [vmem:[#allocation233_spill] sm:$0xff] %v16406_v36  ;;  %v20928_v62 = vrot.slane %v15898_v8, 5  ;;  %v16431_v22 = vsel %vm7764_vm0, %v8176_v45, %v7739_v3  ;;  %v16433_v34 = vunpack.c.l.b16 %v7034_v10  ;;  %v16435_v47 = vunpack.c.l.b16 %v7202_v60  ;;  %v16449_v3 = vpop.f32.mrf.mxu1 }
 0x344   : > { %20927 = vst [vmem:[#allocation234_spill] sm:$0xff] %v16414_v2  ;;  %v20930_v40 = vrot.slane %v16006_v27, 4  ;;  %v16440_v7 = vunpack.c.l.b16 %v7201_v16  ;;  %v20932_v23 = vrot.slane %v15987_v63, 3  ;;  %v16451_v10 = vunpack.c.l.b16 %v7036_v55 }
 0x345   : > { %v7859_v18 = vsel %vm7770_vm2, %v20928_v62, %v16027_v28  ;;  %20929 = vst [vmem:[#allocation235_spill] sm:$0xff] %v16435_v47  ;;  %v16444_v28 = vmax.f32 %v6691_v29, 0.0  ;;  %v20933_v58 = vrot.slane %v16125_v54, 2  ;;  %v20934_v16 = vrot.slane %v16156_v35, 5  ;;  %v16471_v62 = vpop.f32.mrf.mxu0 }
 0x346   : > { %v7861_v15 = vsel %vm7773_vm3, %v20930_v40, %v7859_v18  ;;  %v20935_v18 = vrot.slane %v16058_v33, 1  ;;  %v20936_v55 = vrot.slane %v16258_v6, 4  ;;  %v5153_v54 = vmax.f32 %v15827_v0, %v15853_v48 }
 0x347   : > { %20931 = vst [vmem:[#allocation236_spill] sm:$0xff] %v16444_v28  ;;  %v7863_v45 = vsel %vm7776_vm4, %v20932_v23, %v7861_v15  ;;  %v7873_v29 = vsel %vm7770_vm2, %v20934_v16, %v16282_v43  ;;  %v20937_v15 = vrot.slane %v16199_v19, 3  ;;  %v6329_v43 = vmax.f32 %v16203_v12, %v16226_v11  ;;  %v16487_v19 = vpop.f32.mrf.mxu1 }
 0x348   : > { %v7865_v60 = vsel %vm7779_vm5, %v20933_v58, %v7863_v45  ;;  %v7875_v40 = vsel %vm7773_vm3, %v20936_v55, %v7873_v29  ;;  %v5146_v33 = vmax.f32 %v15837_v49, %v15883_v51  ;;  %v6322_v6 = vmax.f32 %v16222_v1, %v16233_v39  ;;  %v16490_v39 = vpop.f32.mrf.mxu0 }
 0x349   : > { %v7867_v21 = vsel %vm7782_vm6, %v20935_v18, %v7865_v60  ;;  %v7877_v35 = vsel %vm7776_vm4, %v20937_v15, %v7875_v40  ;;  %v5154_v45 = vrot.slane %v5153_v54, 4  ;;  %v5167_v0 = vmax.f32 %v15902_v5, %v15944_v25  ;;  %v20938_v5 = vld [vmem:[#allocation162_spill] sm:$0xff]  ;;  %v20939_v25 = vld [vmem:[#allocation112_spill] sm:$0xff]  ;;  %v16496_v15 = vpop.f32.mrf.mxu1 }
 0x34a   : > { %v7879_v23 = vsel %vm7779_vm5, %v7878_v52, %v7877_v35  ;;  %v6343_v48 = vmax.f32 %v16252_v59, %v16324_v14  ;;  %v6330_v11 = vrot.slane %v6329_v43, 4  ;;  %v5147_v12 = vrot.slane %v5146_v33, 4 }
 0x34b   : > { %v7881_v58 = vsel %vm7782_vm6, %v7880_v13, %v7879_v23  ;;  %v6323_v60 = vrot.slane %v6322_v6, 4  ;;  %v5155_v51 = vmax.f32 %v5153_v54, %v5154_v45  ;;  %v5168_v16 = vrot.slane %v5167_v0, 4 }
 0x34c   : > { %v8221_v49 = vpack.c.b16 %v7881_v58, %v7867_v21  ;;  %v6344_v1 = vrot.slane %v6343_v48, 4  ;;  %v6331_v52 = vmax.f32 %v6329_v43, %v6330_v11  ;;  %v5148_v29 = vmax.f32 %v5146_v33, %v5147_v12  ;;  %v16499_v11 = vpop.f32.mrf.mxu0 }
 0x34d   : > { %v6324_v18 = vmax.f32 %v6322_v6, %v6323_v60  ;;  %v5160_v55 = vmax.f32 %v20939_v25, %v20938_v5  ;;  %v5156_v59 = vrot.slane %v5155_v51, 2  ;;  %v5169_v14 = vmax.f32 %v5167_v0, %v5168_v16 }
 0x34e   : > { %8393 = vmatmul.mubr.bf16.gmra.mxu1 %v8221_v49  ;;  %v6345_v40 = vmax.f32 %v6343_v48, %v6344_v1  ;;  %v6336_v13 = vmax.f32 %v16289_v26, %v16343_v56  ;;  %v6332_v21 = vrot.slane %v6331_v52, 2  ;;  %v5149_v54 = vrot.slane %v5148_v29, 2  ;;  %v16501_v1 = vpop.f32.mrf.mxu1  ;;  %v16503_v41 = vpop.f32.mrf.mxu0 }
 0x34f   : > { %v6325_v35 = vrot.slane %v6324_v18, 2  ;;  %v5161_v23 = vrot.slane %v5160_v55, 4  ;;  %v20940_v45 = vmov 0   ;;  %v5157_v43 = vmax.f32 %v5155_v51, %v5156_v59 }
 0x350   : > { %8402 = vmatprep.mubr.bf16.mxu1 %v20940_v45  ;;  %v5170_v33 = vrot.slane %v5169_v14, 2  ;;  %v6346_v6 = vrot.slane %v6345_v40, 2  ;;  %v6337_v58 = vrot.slane %v6336_v13, 4  ;;  %v6333_v12 = vmax.f32 %v6331_v52, %v6332_v21 }
 0x351   : > { %v5150_v0 = vmax.f32 %v5148_v29, %v5149_v54  ;;  %v6326_v48 = vmax.f32 %v6324_v18, %v6325_v35  ;;  %v5162_v60 = vmax.f32 %v5160_v55, %v5161_v23  ;;  %v5158_v49 = vrot.slane %v5157_v43, 1  ;;  %v16506_v54 = vpop.f32.mrf.mxu1 }
 0x352   : > { %v5171_v26 = vmax.f32 %v5169_v14, %v5170_v33  ;;  %v6347_v56 = vmax.f32 %v6345_v40, %v6346_v6  ;;  %v6338_v16 = vmax.f32 %v6336_v13, %v6337_v58  ;;  %v6334_v5 = vrot.slane %v6333_v12, 1 }
 0x353   : > { %v5151_v25 = vrot.slane %v5150_v0, 1  ;;  %v6327_v63 = vrot.slane %v6326_v48, 1  ;;  %v5163_v27 = vrot.slane %v5162_v60, 2  ;;  %v5159_v51 = vmax.f32 %v5157_v43, %v5158_v49 }
 0x354   : > { %v5172_v59 = vrot.slane %v5171_v26, 1  ;;  %v6348_v8 = vrot.slane %v6347_v56, 1  ;;  %v6339_v9 = vrot.slane %v6338_v16, 2  ;;  %v6335_v52 = vmax.f32 %v6333_v12, %v6334_v5  ;;  %v16515_v12 = vpop.f32.mrf.mxu0  ;;  %v16532_v5 = vpop.f32.mrf.mxu1 }
 0x355   : > { %v5152_v29 = vmax.f32 %v5150_v0, %v5151_v25  ;;  %v6328_v18 = vmax.f32 %v6326_v48, %v6327_v63  ;;  %v5164_v55 = vmax.f32 %v5162_v60, %v5163_v27  ;;  %v6526_v14 = vadd.f32 %v16230_v17, %v5159_v51 }
 0x356   : > { %v5173_v40 = vmax.f32 %v5171_v26, %v5172_v59  ;;  %v6349_v13 = vmax.f32 %v6347_v56, %v6348_v8  ;;  %v6340_v21 = vmax.f32 %v6338_v16, %v6339_v9  ;;  %v6694_v35 = vadd.f32 %v16230_v17, %v6335_v52  ;;  %v16534_v25 = vpop.f32.mrf.mxu0 }
 0x357   : > { %v6525_v23 = vadd.f32 %v16230_v17, %v5152_v29  ;;  %v6693_v43 = vadd.f32 %v16230_v17, %v6328_v18  ;;  %v5165_v33 = vrot.slane %v5164_v55, 1  ;;  %v16511_v6 = vmax.f32 %v6526_v14, 0.0 }
 0x358   : > { %v6528_v58 = vadd.f32 %v16230_v17, %v5173_v40  ;;  %v6696_v27 = vadd.f32 %v16230_v17, %v6349_v13  ;;  %v6341_v63 = vrot.slane %v6340_v21, 1  ;;  %v20942_v9 = vpack.c.bf16 %v16406_v36, %v16406_v36 }
 0x359   : > { %20941 = vst [vmem:[#allocation162_spill] sm:$0xff] %v16511_v6  ;;  %v16522_v0 = vmax.f32 %v6694_v35, 0.0  ;;  %v16524_v48 = vmax.f32 %v6525_v23, 0.0  ;;  %v5166_v60 = vmax.f32 %v5164_v55, %v5165_v33  ;;  %v7203_v49 = vpack.c.bf16 %v16444_v28, %v16444_v28  ;;  %v16558_v33 = vpop.f32.mrf.mxu0  ;;  %v20963_v28 = vld [vmem:[#allocation207_spill] sm:$0xff] }
 0x35a   : > { %v16520_v8 = vunpack.c.l.b16 %v20942_v9  ;;  %v16528_v26 = vmax.f32 %v6528_v58, 0.0  ;;  %v16530_v56 = vmax.f32 %v6696_v27, 0.0  ;;  %v6342_v16 = vmax.f32 %v6340_v21, %v6341_v63  ;;  %20950 = vst [vmem:[#allocation242_spill] sm:$0xff] %v16558_v33  ;;  %v13136_v58 = vld [vmem:[%s14044_s22 + $0x458] sm:$0xff]  }
 0x35b   : > { %20944 = vst [vmem:[#allocation237_spill] sm:$0xff] %v16522_v0  ;;  %20945 = vst [vmem:[#allocation238_spill] sm:$0xff] %v16524_v48  ;;  %v8178_v51 = vrot.slane %v16440_v7, 6  ;;  %v7038_v59 = vpack.c.bf16 %v16511_v6, %v16511_v6  ;;  %v16539_v52 = vmax.f32 %v6693_v43, 0.0  ;;  %v6527_v29 = vadd.f32 %v16230_v17, %v5166_v60  ;;  %v13135_v43 = vld [vmem:[%s14044_s22 + $0x450] sm:$0xff]  }
 0x35c   : > { %20943 = vst [vmem:[#allocation112_spill] sm:$0xff] %v16520_v8  ;;  %20946 = vst [vmem:[#allocation239_spill] sm:$0xff] %v16528_v26  ;;  %v7206_v55 = vpack.c.bf16 %v16522_v0, %v16522_v0  ;;  %v7037_v14 = vpack.c.bf16 %v16524_v48, %v16524_v48  ;;  %v6695_v40 = vadd.f32 %v16230_v17, %v6342_v16  ;;  %v20951_v27 = vrot.slane %v16422_v57, 6  ;;  %v20959_v0 = vld [vmem:[#allocation158_spill] sm:$0xff]  ;;  %v20965_v48 = vld [vmem:[#allocation117_spill] sm:$0xff] }
 0x35d   : > { %20947 = vst [vmem:[#allocation240_spill] sm:$0xff] %v16530_v56  ;;  %20948 = vst [vmem:[#allocation241_spill] sm:$0xff] %v16539_v52  ;;  %v20949_v21 = vpack.c.bf16 %v16414_v2, %v16414_v2  ;;  %v7040_v23 = vpack.c.bf16 %v16528_v26, %v16528_v26  ;;  %v16568_v60 = vunpack.c.l.b16 %v7203_v49  ;;  %v7208_v16 = vpack.c.bf16 %v16530_v56, %v16530_v56  ;;  %v20958_v56 = vld [vmem:[#allocation160_spill] sm:$0xff]  ;;  %v20961_v57 = vld [vmem:[#allocation166_spill] sm:$0xff] }
 0x35e   : > { %v16565_v63 = vsel %vm7767_vm1, %v20951_v27, %v16420_v32  ;;  %v16576_v13 = vsel %vm7767_vm1, %v8178_v51, %v16431_v22  ;;  %v16578_v7 = vunpack.c.l.b16 %v7038_v59  ;;  %v16582_v32 = vmax.f32 %v6527_v29, 0.0  ;;  %12443 = vmatprep.mubr.bf16.mxu0 %v13135_v43  ;;  %v16584_v27 = vpop.f32.mrf.mxu0  ;;  %v20960_v29 = vld [vmem:[#allocation203_spill] sm:$0xff] }
 0x35f   : > { %v16553_v35 = vunpack.c.l.b16 %v20949_v21  ;;  %20952 = vst [vmem:[#allocation243_spill] sm:$0xff] %v16568_v60  ;;  %v16572_v21 = vpop.f32.mrf.mxu1  ;;  %20953 = vst [vmem:[#allocation244_spill] sm:$0xff] %v16576_v13  ;;  %v16586_v49 = vunpack.c.l.b16 %v7206_v55  ;;  %v16588_v9 = vunpack.c.l.b16 %v7037_v14  ;;  %v16590_v18 = vmax.f32 %v6695_v40, 0.0  ;;  %12444 = vmatmul.mubr.bf16.gmra.mxu0 %v13136_v58  ;;  %v20962_v40 = vld [vmem:[#allocation115_spill] sm:$0xff]  ;;  %v20997_v60 = vld [vmem:[#allocation81_spill] sm:$0xff] }
 0x360   : > { %20954 = vst [vmem:[#allocation245_spill] sm:$0xff] %v16582_v32  ;;  %20955 = vst [vmem:[#allocation246_spill] sm:$0xff] %v16584_v27  ;;  %v5181_v22 = vmax.f32 %v20959_v0, %v20958_v56  ;;  %v16594_v51 = vunpack.c.l.b16 %v7040_v23  ;;  %v6357_v59 = vmax.f32 %v16347_v61, %v16372_v46  ;;  %v5174_v43 = vmax.f32 %v20961_v57, %v20960_v29  ;;  %v16610_v23 = vpop.f32.mrf.mxu0  ;;  %v20966_v2 = vld [vmem:[#allocation211_spill] sm:$0xff] }
 0x361   : > { %20956 = vst [vmem:[#allocation247_spill] sm:$0xff] %v16586_v49  ;;  %20957 = vst [vmem:[#allocation248_spill] sm:$0xff] %v16590_v18  ;;  %v6350_v55 = vmax.f32 %v16352_v20, %v16409_v37  ;;  %v16602_v36 = vunpack.c.l.b16 %v7208_v16  ;;  %v5195_v6 = vmax.f32 %v20963_v28, %v20962_v40  ;;  %v6371_v0 = vmax.f32 %v16449_v3, %v16496_v15  ;;  %v16608_v56 = vpop.f32.mrf.mxu1  ;;  %v13137_v8 = vld [vmem:[%s14044_s22 + $0x460] sm:$0xff]   ;;  %v20995_v49 = vld [vmem:[#allocation218_spill] sm:$0xff] }
 0x362   : > { %v5182_v14 = vrot.slane %v5181_v22, 4  ;;  %v6358_v46 = vrot.slane %v6357_v59, 4  ;;  %v5175_v58 = vrot.slane %v5174_v43, 4  ;;  %v16616_v29 = vpop.f32.mrf.mxu0  ;;  %v5188_v26 = vmax.f32 %v20966_v2, %v20965_v48  ;;  %12447 = vmatprep.mubr.bf16.mxu0 %v13137_v8 }
 0x363   : > { %v6351_v57 = vrot.slane %v6350_v55, 4  ;;  %v5196_v16 = vrot.slane %v5195_v6, 4  ;;  %v6372_v28 = vrot.slane %v6371_v0, 4  ;;  %20964 = vst [vmem:[#allocation160_spill] sm:$0xff] %v16616_v29  ;;  %v6364_v20 = vmax.f32 %v16487_v19, %v16501_v1 }
 0x364   : > { %v5183_v37 = vmax.f32 %v5181_v22, %v5182_v14  ;;  %v6359_v3 = vmax.f32 %v6357_v59, %v6358_v46  ;;  %v5176_v15 = vmax.f32 %v5174_v43, %v5175_v58  ;;  %v16622_v22 = vpop.f32.mrf.mxu1  ;;  %v5189_v4 = vrot.slane %v5188_v26, 4  ;;  %v16625_v59 = vpop.f32.mrf.mxu0  ;;  %v13138_v43 = vld [vmem:[%s14044_s22 + $0x468] sm:$0xff]   ;;  %v13139_v58 = vld [vmem:[%s14044_s22 + $0x470] sm:$0xff]  }
 0x365   : > { %v6352_v40 = vmax.f32 %v6350_v55, %v6351_v57  ;;  %v5197_v38 = vmax.f32 %v5195_v6, %v5196_v16  ;;  %v6373_v50 = vmax.f32 %v6371_v0, %v6372_v28  ;;  %20967 = vst [vmem:[#allocation158_spill] sm:$0xff] %v16625_v59  ;;  %v6365_v48 = vrot.slane %v6364_v20, 4 }
 0x366   : > { %v5184_v61 = vrot.slane %v5183_v37, 2  ;;  %v6360_v14 = vrot.slane %v6359_v3, 2  ;;  %v5177_v42 = vrot.slane %v5176_v15, 2  ;;  %v5190_v16 = vmax.f32 %v5188_v26, %v5189_v4  ;;  %v16629_v19 = vpop.f32.mrf.mxu0  ;;  %v16631_v27 = vpop.f32.mrf.mxu1 }
 0x367   : > { %v6353_v31 = vrot.slane %v6352_v40, 2  ;;  %v5198_v46 = vrot.slane %v5197_v38, 2  ;;  %v6374_v2 = vrot.slane %v6373_v50, 2  ;;  %20968 = vst [vmem:[#allocation203_spill] sm:$0xff] %v16629_v19  ;;  %v6366_v13 = vmax.f32 %v6364_v20, %v6365_v48  ;;  %12448 = vmatmul.mubr.bf16.gmra.mxu0 %v13138_v43 }
 0x368   : > { %v5185_v55 = vmax.f32 %v5183_v37, %v5184_v61  ;;  %v6361_v6 = vmax.f32 %v6359_v3, %v6360_v14  ;;  %v5178_v0 = vmax.f32 %v5176_v15, %v5177_v42  ;;  %v5191_v29 = vrot.slane %v5190_v16, 2  ;;  %v16633_v33 = vpop.f32.mrf.mxu0  ;;  %12451 = vmatprep.mubr.bf16.mxu0 %v13139_v58 }
 0x369   : > { %v6354_v57 = vmax.f32 %v6352_v40, %v6353_v31  ;;  %v5199_v28 = vmax.f32 %v5197_v38, %v5198_v46  ;;  %v6375_v47 = vmax.f32 %v6373_v50, %v6374_v2  ;;  %v6367_v8 = vrot.slane %v6366_v13, 2  ;;  %v16638_v46 = vpop.f32.mrf.mxu1  ;;  %v13140_v2 = vld [vmem:[%s14044_s22 + $0x478] sm:$0xff]  }
 0x36a   : > { %v5186_v1 = vrot.slane %v5185_v55, 1  ;;  %v6362_v59 = vrot.slane %v6361_v6, 1  ;;  %v5179_v61 = vrot.slane %v5178_v0, 1  ;;  %v5192_v20 = vmax.f32 %v5190_v16, %v5191_v29  ;;  %v16635_v3 = vpop.f32.mrf.mxu0  ;;  %v13141_v29 = vld [vmem:[%s14044_s22 + $0x480] sm:$0xff]  }
 0x36b   : > { %v6355_v37 = vrot.slane %v6354_v57, 1  ;;  %v5200_v31 = vrot.slane %v5199_v28, 1  ;;  %v6376_v4 = vrot.slane %v6375_v47, 1  ;;  %20969 = vst [vmem:[#allocation166_spill] sm:$0xff] %v16635_v3  ;;  %v6368_v43 = vmax.f32 %v6366_v13, %v6367_v8 }
 0x36c   : > { %v5187_v42 = vmax.f32 %v5185_v55, %v5186_v1  ;;  %v6363_v26 = vmax.f32 %v6361_v6, %v6362_v59  ;;  %v5180_v38 = vmax.f32 %v5178_v0, %v5179_v61  ;;  %v5193_v58 = vrot.slane %v5192_v20, 1  ;;  %v16644_v6 = vpop.f32.mrf.mxu0 }
 0x36d   : > { %v6356_v50 = vmax.f32 %v6354_v57, %v6355_v37  ;;  %v5201_v40 = vmax.f32 %v5199_v28, %v5200_v31  ;;  %v6377_v14 = vmax.f32 %v6375_v47, %v6376_v4  ;;  %20970 = vst [vmem:[#allocation115_spill] sm:$0xff] %v16644_v6  ;;  %v6369_v13 = vrot.slane %v6368_v43, 1 }
 0x36e   : > { %v6530_v15 = vadd.f32 %v16230_v17, %v5187_v42  ;;  %v6698_v55 = vadd.f32 %v16230_v17, %v6363_v26  ;;  %v6529_v48 = vadd.f32 %v16230_v17, %v5180_v38  ;;  %v5194_v61 = vmax.f32 %v5192_v20, %v5193_v58  ;;  %v16657_v37 = vpop.f32.mrf.mxu0  ;;  %v4596_v38 = vpop.f32.mrf.mxu1  ;;  %v13142_v58 = vld [vmem:[%s14044_s22 + $0x488] sm:$0xff]  }
 0x36f   : > { %v6697_v59 = vadd.f32 %v16230_v17, %v6356_v50  ;;  %v6532_v57 = vadd.f32 %v16230_v17, %v5201_v40  ;;  %v6700_v47 = vadd.f32 %v16230_v17, %v6377_v14  ;;  %20975 = vst [vmem:[#allocation250_spill] sm:$0xff] %v16657_v37  ;;  %v20976_v42 = vpack.c.bf16 %v16539_v52, %v16539_v52 }
 0x370   : > { %v16647_v0 = vmax.f32 %v6530_v15, 0.0  ;;  %v16651_v16 = vmax.f32 %v6698_v55, 0.0  ;;  %v16653_v1 = vmax.f32 %v6529_v48, 0.0  ;;  %v7896_v4 = vrot.slane %v16594_v51, 7  ;;  %12452 = vmatmul.mubr.bf16.gmra.mxu0 %v13140_v2  ;;  %v16676_v48 = vpop.f32.mrf.mxu0 }
 0x371   : > { %v16655_v28 = vmax.f32 %v6697_v59, 0.0  ;;  %v16662_v31 = vunpack.c.l.b16 %v20976_v42  ;;  %v16665_v8 = vmax.f32 %v6532_v57, 0.0  ;;  %v16667_v26 = vmax.f32 %v6700_v47, 0.0  ;;  %20982 = vst [vmem:[#allocation254_spill] sm:$0xff] %v16676_v48  ;;  %12455 = vmatprep.mubr.bf16.mxu0 %v13141_v29  ;;  %v13143_v42 = vld [vmem:[%s14044_s22 + $0x490] sm:$0xff]  }
 0x372   : > { %20971 = vst [vmem:[#allocation207_spill] sm:$0xff] %v16647_v0  ;;  %20972 = vst [vmem:[#allocation117_spill] sm:$0xff] %v16651_v16  ;;  %v8190_v50 = vrot.slane %v16602_v36, 7  ;;  %v20980_v20 = vpack.c.bf16 %v16582_v32, %v16582_v32  ;;  %v20981_v40 = vpack.c.bf16 %v16590_v18, %v16590_v18  ;;  %v6370_v55 = vmax.f32 %v6368_v43, %v6369_v13  ;;  %v16691_v47 = vpop.f32.mrf.mxu0  ;;  %v20988_v32 = vld [vmem:[#allocation72_spill] sm:$0xff] }
 0x373   : > { %20973 = vst [vmem:[#allocation211_spill] sm:$0xff] %v16653_v1  ;;  %20974 = vst [vmem:[#allocation249_spill] sm:$0xff] %v16655_v28  ;;  %v7042_v2 = vpack.c.bf16 %v16647_v0, %v16647_v0  ;;  %v7210_v36 = vpack.c.bf16 %v16651_v16, %v16651_v16  ;;  %v6531_v59 = vadd.f32 %v16230_v17, %v5194_v61 }
 0x374   : > { %20977 = vst [vmem:[#allocation251_spill] sm:$0xff] %v16662_v31  ;;  %20978 = vst [vmem:[#allocation252_spill] sm:$0xff] %v16665_v8  ;;  %v7579_v15 = vunpack.c.l.b16 %v20980_v20  ;;  %v7747_v14 = vunpack.c.l.b16 %v20981_v40  ;;  %v7041_v43 = vpack.c.bf16 %v16653_v1, %v16653_v1  ;;  %v7209_v57 = vpack.c.bf16 %v16655_v28, %v16655_v28  ;;  %v16698_v40 = vpop.f32.mrf.mxu1  ;;  %v16709_v28 = vpop.f32.mrf.mxu0 }
 0x375   : > { %20979 = vst [vmem:[#allocation253_spill] sm:$0xff] %v16667_v26  ;;  %v7044_v29 = vpack.c.bf16 %v16665_v8, %v16665_v8  ;;  %20983 = vst [vmem:[#allocation255_spill] sm:$0xff] %v16691_v47  ;;  %v7212_v20 = vpack.c.bf16 %v16667_v26, %v16667_v26  ;;  %v6699_v13 = vadd.f32 %v16230_v17, %v6370_v55  ;;  %v16712_v61 = vunpack.c.l.b16 %v7042_v2  ;;  %v20987_v8 = vld [vmem:[#allocation173_spill] sm:$0xff]  ;;  %v13145_v47 = vld [vmem:[%s14044_s22 + $0x4a0] sm:$0xff]  }
 0x376   : > { %v16703_v18 = vsel %vm7764_vm0, %v7896_v4, %v7579_v15  ;;  %v16706_v16 = vsel %vm7764_vm0, %v8190_v50, %v7747_v14  ;;  %20984 = vst [vmem:[#allocation256_spill] sm:$0xff] %v16709_v28  ;;  %v16714_v52 = vunpack.c.l.b16 %v7210_v36  ;;  %v16716_v26 = vmax.f32 %v6531_v59, 0.0  ;;  %v16728_v14 = vpop.f32.mrf.mxu0  ;;  %v20991_v36 = vld [vmem:[#allocation216_spill] sm:$0xff]  ;;  %v20992_v59 = vld [vmem:[#allocation59_spill] sm:$0xff] }
 0x377   : > { %v5209_v51 = vmax.f32 %v20988_v32, %v20987_v8  ;;  %v16720_v0 = vunpack.c.l.b16 %v7041_v43  ;;  %v16722_v4 = vunpack.c.l.b16 %v7209_v57  ;;  %v16724_v50 = vunpack.c.l.b16 %v7044_v29  ;;  %20989 = vst [vmem:[#allocation173_spill] sm:$0xff] %v16728_v14  ;;  %v16736_v8 = vpop.f32.mrf.mxu1  ;;  %v20994_v29 = vld [vmem:[#allocation178_spill] sm:$0xff] }
 0x378   : > { %20985 = vst [vmem:[#allocation257_spill] sm:$0xff] %v16714_v52  ;;  %20986 = vst [vmem:[#allocation258_spill] sm:$0xff] %v16716_v26  ;;  %v6385_v15 = vmax.f32 %v16506_v54, %v16572_v21  ;;  %v16730_v55 = vunpack.c.l.b16 %v7212_v20  ;;  %v5202_v1 = vmax.f32 %v20992_v59, %v20991_v36  ;;  %v6378_v32 = vmax.f32 %v16532_v5, %v16608_v56  ;;  %v16744_v20 = vpop.f32.mrf.mxu0  ;;  %v20998_v14 = vld [vmem:[#allocation174_spill] sm:$0xff] }
 0x379   : > { %v5210_v2 = vrot.slane %v5209_v51, 4  ;;  %12456 = vmatmul.mubr.bf16.gmra.mxu0 %v13142_v58  ;;  %v16738_v43 = vmax.f32 %v6699_v13, 0.0  ;;  %v5223_v54 = vmax.f32 %v20995_v49, %v20994_v29  ;;  %v6399_v21 = vmax.f32 %v16622_v22, %v16638_v46  ;;  %20996 = vst [vmem:[#allocation59_spill] sm:$0xff] %v16744_v20  ;;  %v16753_v20 = vpop.f32.mrf.mxu1  ;;  %v13144_v36 = vld [vmem:[%s14044_s22 + $0x498] sm:$0xff]  }
 0x37a   : > { %20990 = vst [vmem:[#allocation72_spill] sm:$0xff] %v16730_v55  ;;  %v6386_v57 = vrot.slane %v6385_v15, 4  ;;  %12459 = vmatprep.mubr.bf16.mxu0 %v13143_v42  ;;  %v5203_v56 = vrot.slane %v5202_v1, 4  ;;  %v6379_v59 = vrot.slane %v6378_v32, 4  ;;  %v5216_v49 = vmax.f32 %v20998_v14, %v20997_v60  ;;  %v16750_v29 = vpop.f32.mrf.mxu0 }
 0x37b   : > { %20993 = vst [vmem:[#allocation216_spill] sm:$0xff] %v16738_v43  ;;  %v5211_v5 = vmax.f32 %v5209_v51, %v5210_v2  ;;  %v5224_v13 = vrot.slane %v5223_v54, 4  ;;  %v6400_v31 = vrot.slane %v6399_v21, 4  ;;  %20999 = vst [vmem:[#allocation178_spill] sm:$0xff] %v16750_v29  ;;  %v6392_v42 = vmax.f32 %v16631_v27, %v4596_v38 }
 0x37c   : > { %v6387_v58 = vmax.f32 %v6385_v15, %v6386_v57  ;;  %v5204_v46 = vmax.f32 %v5202_v1, %v5203_v56  ;;  %v6380_v28 = vmax.f32 %v6378_v32, %v6379_v59  ;;  %v5217_v15 = vrot.slane %v5216_v49, 4  ;;  %v16756_v57 = vpop.f32.mrf.mxu0 }
 0x37d   : > { %v5212_v22 = vrot.slane %v5211_v5, 2  ;;  %v5225_v2 = vmax.f32 %v5223_v54, %v5224_v13  ;;  %v6401_v37 = vmax.f32 %v6399_v21, %v6400_v31  ;;  %21000 = vst [vmem:[#allocation218_spill] sm:$0xff] %v16756_v57  ;;  %v6393_v14 = vrot.slane %v6392_v42, 4  ;;  %v16761_v54 = vpop.f32.mrf.mxu1 }
 0x37e   : > { %v6388_v51 = vrot.slane %v6387_v58, 2  ;;  %v5205_v48 = vrot.slane %v5204_v46, 2  ;;  %v6381_v60 = vrot.slane %v6380_v28, 2  ;;  %v5218_v32 = vmax.f32 %v5216_v49, %v5217_v15  ;;  %v16759_v56 = vpop.f32.mrf.mxu0 }
 0x37f   : > { %v5213_v6 = vmax.f32 %v5211_v5, %v5212_v22  ;;  %v5226_v19 = vrot.slane %v5225_v2, 2  ;;  %v6402_v1 = vrot.slane %v6401_v37, 2  ;;  %21001 = vst [vmem:[#allocation81_spill] sm:$0xff] %v16759_v56  ;;  %v6394_v3 = vmax.f32 %v6392_v42, %v6393_v14  ;;  %v13146_v14 = vld [vmem:[%s14044_s22 + $0x4a8] sm:$0xff]  }
 0x380   : > { %v6389_v29 = vmax.f32 %v6387_v58, %v6388_v51  ;;  %v5206_v38 = vmax.f32 %v5204_v46, %v5205_v48  ;;  %v6382_v59 = vmax.f32 %v6380_v28, %v6381_v60  ;;  %v5219_v5 = vrot.slane %v5218_v32, 2  ;;  %v16763_v22 = vpop.f32.mrf.mxu0  ;;  %v16768_v60 = vpop.f32.mrf.mxu1 }
 0x381   : > { %v5214_v27 = vrot.slane %v5213_v6, 1  ;;  %12460 = vmatmul.mubr.bf16.gmra.mxu0 %v13144_v36  ;;  %v5227_v21 = vmax.f32 %v5225_v2, %v5226_v19  ;;  %v6403_v13 = vmax.f32 %v6401_v37, %v6402_v1  ;;  %v6395_v15 = vrot.slane %v6394_v3, 2 }
 0x382   : > { %v6390_v31 = vrot.slane %v6389_v29, 1  ;;  %12463 = vmatprep.mubr.bf16.mxu0 %v13145_v47  ;;  %v5207_v51 = vrot.slane %v5206_v38, 1  ;;  %v6383_v49 = vrot.slane %v6382_v59, 1  ;;  %v5220_v46 = vmax.f32 %v5218_v32, %v5219_v5  ;;  %v16765_v42 = vpop.f32.mrf.mxu0 }
 0x383   : > { %v5215_v58 = vmax.f32 %v5213_v6, %v5214_v27  ;;  %v5228_v48 = vrot.slane %v5227_v21, 1  ;;  %v6404_v28 = vrot.slane %v6403_v13, 1  ;;  %21002 = vst [vmem:[#allocation174_spill] sm:$0xff] %v16765_v42  ;;  %v6396_v2 = vmax.f32 %v6394_v3, %v6395_v15  ;;  %v16781_v3 = vld [vmem:[#allocation7] ss:$0 sm:$0xff] }
 0x384   : > { %v6391_v56 = vmax.f32 %v6389_v29, %v6390_v31  ;;  %v5208_v19 = vmax.f32 %v5206_v38, %v5207_v51  ;;  %v6384_v37 = vmax.f32 %v6382_v59, %v6383_v49  ;;  %v5221_v27 = vrot.slane %v5220_v46, 1  ;;  %v16772_v29 = vpop.f32.mrf.mxu0  ;;  %v13147_v31 = vld [vmem:[%s14044_s22 + $0x4b0] sm:$0xff]  }
 0x385   : > { %v6534_v36 = vadd.f32 %v16230_v17, %v5215_v58  ;;  %v5229_v47 = vmax.f32 %v5227_v21, %v5228_v48  ;;  %v6405_v1 = vmax.f32 %v6403_v13, %v6404_v28  ;;  %21003 = vst [vmem:[#allocation259_spill] sm:$0xff] %v16772_v29  ;;  %v6397_v38 = vrot.slane %v6396_v2, 1  ;;  %v4625_v48 = vpop.f32.mrf.mxu1 }
 0x386   : > { %v6702_v6 = vadd.f32 %v16230_v17, %v6391_v56  ;;  %v6533_v32 = vadd.f32 %v16230_v17, %v5208_v19  ;;  %v6701_v5 = vadd.f32 %v16230_v17, %v6384_v37  ;;  %v5222_v21 = vmax.f32 %v5220_v46, %v5221_v27  ;;  %v16785_v13 = vpop.f32.mrf.mxu0 }
 0x387   : > { %v16775_v57 = vmax.f32 %v6534_v36, 0.0  ;;  %v6536_v58 = vadd.f32 %v16781_v3, %v5229_v47  ;;  %v6704_v56 = vadd.f32 %v16781_v3, %v6405_v1  ;;  %21006 = vst [vmem:[#allocation262_spill] sm:$0xff] %v16785_v13  ;;  %v7898_v51 = vrot.slane %v16720_v0, 6 }
 0x388   : > { %v16779_v59 = vmax.f32 %v6702_v6, 0.0  ;;  %v8192_v49 = vrot.slane %v16722_v4, 6  ;;  %v7211_v15 = vpack.c.bf16 %v16738_v43, %v16738_v43  ;;  %v6398_v17 = vmax.f32 %v6396_v2, %v6397_v38  ;;  %v16801_v0 = vpop.f32.mrf.mxu0  ;;  %v21019_v43 = vld [vmem:[#allocation225_spill] sm:$0xff] }
 0x389   : > { %21004 = vst [vmem:[#allocation260_spill] sm:$0xff] %v16775_v57  ;;  %12464 = vmatmul.mubr.bf16.gmra.mxu0 %v13146_v14  ;;  %v21007_v28 = vpack.c.bf16 %v16716_v26, %v16716_v26  ;;  %v16796_v19 = vmax.f32 %v6536_v58, 0.0  ;;  %v16798_v46 = vmax.f32 %v6704_v56, 0.0  ;;  %v6535_v37 = vadd.f32 %v16781_v3, %v5222_v21  ;;  %21010 = vst [vmem:[#allocation265_spill] sm:$0xff] %v16801_v0  ;;  %v21024_v26 = vld [vmem:[#allocation136_spill] sm:$0xff] }
 0x38a   : > { %21005 = vst [vmem:[#allocation261_spill] sm:$0xff] %v16779_v59  ;;  %12467 = vmatprep.mubr.bf16.mxu0 %v13147_v31  ;;  %v7046_v2 = vpack.c.bf16 %v16775_v57, %v16775_v57  ;;  %v16806_v14 = vmax.f32 %v6533_v32, 0.0  ;;  %v6703_v6 = vadd.f32 %v16781_v3, %v6398_v17  ;;  %v7214_v1 = vpack.c.bf16 %v16779_v59, %v16779_v59  ;;  %v16816_v38 = vpop.f32.mrf.mxu0  ;;  %v12674_v17 = vpop.f32.mrf.mxu1 }
 0x38b   : > { %v16794_v36 = vunpack.c.l.b16 %v21007_v28  ;;  %21008 = vst [vmem:[#allocation263_spill] sm:$0xff] %v16796_v19  ;;  %21009 = vst [vmem:[#allocation264_spill] sm:$0xff] %v16798_v46  ;;  %v16812_v27 = vmax.f32 %v6701_v5, 0.0  ;;  %v7048_v31 = vpack.c.bf16 %v16796_v19, %v16796_v19  ;;  %v16820_v58 = vsel %vm7767_vm1, %v7898_v51, %v16703_v18  ;;  %v13148_v28 = vld [vmem:[%s14044_s22 + $0x4b8] sm:$0xff]   ;;  %v13149_v51 = vld [vmem:[%s14044_s22 + $0x4c0] sm:$0xff]  }
 0x38c   : > { %21011 = vst [vmem:[#allocation266_spill] sm:$0xff] %v16806_v14  ;;  %21013 = vst [vmem:[#allocation268_spill] sm:$0xff] %v16816_v38  ;;  %v7216_v21 = vpack.c.bf16 %v16798_v46, %v16798_v46  ;;  %v16829_v5 = vsel %vm7767_vm1, %v8192_v49, %v16706_v16  ;;  %v16832_v4 = vunpack.c.l.b16 %v7211_v15  ;;  %v16834_v59 = vmax.f32 %v6535_v37, 0.0  ;;  %v16836_v18 = vpop.f32.mrf.mxu0  ;;  %v21020_v19 = vld [vmem:[#allocation180_spill] sm:$0xff]  ;;  %v21025_v15 = vld [vmem:[#allocation86_spill] sm:$0xff] }
 0x38d   : > { %21012 = vst [vmem:[#allocation267_spill] sm:$0xff] %v16812_v27  ;;  %21014 = vst [vmem:[#allocation269_spill] sm:$0xff] %v16829_v5  ;;  %v16839_v32 = vunpack.c.l.b16 %v7046_v2  ;;  %v16843_v46 = vmax.f32 %v6703_v6, 0.0  ;;  %v5237_v16 = vmax.f32 %v21020_v19, %v21019_v43  ;;  %v16847_v49 = vunpack.c.l.b16 %v7214_v1  ;;  %v21023_v6 = vld [vmem:[#allocation144_spill] sm:$0xff]  ;;  %v4628_v19 = vpop.f32.mrf.mxu1  ;;  %v21027_v5 = vld [vmem:[#allocation186_spill] sm:$0xff] }
 0x38e   : > { %21015 = vst [vmem:[#allocation270_spill] sm:$0xff] %v16832_v4  ;;  %21016 = vst [vmem:[#allocation271_spill] sm:$0xff] %v16834_v59  ;;  %v16851_v37 = vunpack.c.l.b16 %v7048_v31  ;;  %v6413_v47 = vmax.f32 %v16698_v40, %v16753_v20  ;;  %v16855_v2 = vpop.f32.mrf.mxu0  ;;  %v16857_v57 = vunpack.c.l.b16 %v7216_v21  ;;  %v5230_v55 = vmax.f32 %v21024_v26, %v21023_v6 }
 0x38f   : > { %21017 = vst [vmem:[#allocation272_spill] sm:$0xff] %v16836_v18  ;;  %21018 = vst [vmem:[#allocation273_spill] sm:$0xff] %v16843_v46  ;;  %v5238_v56 = vrot.slane %v5237_v16, 4  ;;  %v6406_v43 = vmax.f32 %v16736_v8, %v16761_v54  ;;  %v5251_v40 = vmax.f32 %v21025_v15, %v16349_v44  ;;  %v6427_v20 = vmax.f32 %v16768_v60, %v12674_v17 }
 0x390   : > { %21021 = vst [vmem:[#allocation225_spill] sm:$0xff] %v16847_v49  ;;  %21022 = vst [vmem:[#allocation180_spill] sm:$0xff] %v16855_v2  ;;  %v6414_v31 = vrot.slane %v6413_v47, 4  ;;  %v16868_v21 = vpop.f32.mrf.mxu0  ;;  %v5231_v8 = vrot.slane %v5230_v55, 4  ;;  %v5244_v2 = vmax.f32 %v21027_v5, %v16358_v53  ;;  %v6420_v18 = vmax.f32 %v4625_v48, %v4628_v19 }
 0x391   : > { %12468 = vmatmul.mubr.bf16.gmra.mxu0 %v13148_v28  ;;  %21026 = vst [vmem:[#allocation144_spill] sm:$0xff] %v16868_v21  ;;  %v5239_v6 = vmax.f32 %v5237_v16, %v5238_v56  ;;  %v6407_v54 = vrot.slane %v6406_v43, 4  ;;  %v5252_v52 = vrot.slane %v5251_v40, 4  ;;  %v6428_v1 = vrot.slane %v6427_v20, 4  ;;  %v13150_v21 = vld [vmem:[%s14044_s22 + $0x4c8] sm:$0xff]  }
 0x392   : > { %12471 = vmatprep.mubr.bf16.mxu0 %v13149_v51  ;;  %v6415_v28 = vmax.f32 %v6413_v47, %v6414_v31  ;;  %v16874_v44 = vpop.f32.mrf.mxu0  ;;  %v5232_v17 = vmax.f32 %v5230_v55, %v5231_v8  ;;  %v16876_v51 = vpop.f32.mrf.mxu1  ;;  %v5245_v13 = vrot.slane %v5244_v2, 4  ;;  %v13151_v31 = vld [vmem:[%s14044_s22 + $0x4d0] sm:$0xff]   ;;  %v6421_v53 = vrot.slane %v6420_v18, 4 }
 0x393   : > { %21028 = vst [vmem:[#allocation136_spill] sm:$0xff] %v16874_v44  ;;  %v5240_v60 = vrot.slane %v5239_v6, 2  ;;  %v6408_v15 = vmax.f32 %v6406_v43, %v6407_v54  ;;  %v5253_v56 = vmax.f32 %v5251_v40, %v5252_v52  ;;  %v6429_v16 = vmax.f32 %v6427_v20, %v6428_v1 }
 0x394   : > { %v6416_v26 = vrot.slane %v6415_v28, 2  ;;  %v16879_v47 = vpop.f32.mrf.mxu0  ;;  %v5233_v29 = vrot.slane %v5232_v17, 2  ;;  %v5246_v55 = vmax.f32 %v5244_v2, %v5245_v13  ;;  %v6422_v54 = vmax.f32 %v6420_v18, %v6421_v53  ;;  %v16884_v52 = vpop.f32.mrf.mxu1 }
 0x395   : > { %21029 = vst [vmem:[#allocation86_spill] sm:$0xff] %v16879_v47  ;;  %v5241_v38 = vmax.f32 %v5239_v6, %v5240_v60  ;;  %v6409_v0 = vrot.slane %v6408_v15, 2  ;;  %v5254_v44 = vrot.slane %v5253_v56, 2  ;;  %v6430_v42 = vrot.slane %v6429_v16, 2 }
 0x396   : > { %v6417_v5 = vmax.f32 %v6415_v28, %v6416_v26  ;;  %v16882_v43 = vpop.f32.mrf.mxu0  ;;  %v5234_v19 = vmax.f32 %v5232_v17, %v5233_v29  ;;  %v5247_v6 = vrot.slane %v5246_v55, 2  ;;  %v6423_v2 = vrot.slane %v6422_v54, 2 }
 0x397   : > { %21030 = vst [vmem:[#allocation186_spill] sm:$0xff] %v16882_v43  ;;  %v5242_v48 = vrot.slane %v5241_v38, 1  ;;  %v6410_v8 = vmax.f32 %v6408_v15, %v6409_v0  ;;  %v5255_v40 = vmax.f32 %v5253_v56, %v5254_v44  ;;  %v6431_v20 = vmax.f32 %v6429_v16, %v6430_v42  ;;  %v16891_v56 = vpop.f32.mrf.mxu1  ;;  %v13152_v16 = vld [vmem:[%s14044_s22 + $0x4d8] sm:$0xff]  }
 0x398   : > { %v6418_v1 = vrot.slane %v6417_v5, 1  ;;  %v16886_v60 = vpop.f32.mrf.mxu0  ;;  %v5235_v28 = vrot.slane %v5234_v19, 1  ;;  %v5248_v18 = vmax.f32 %v5246_v55, %v5247_v6  ;;  %v6424_v15 = vmax.f32 %v6422_v54, %v6423_v2 }
 0x399   : > { %12472 = vmatmul.mubr.bf16.gmra.mxu0 %v13150_v21  ;;  %v5243_v26 = vmax.f32 %v5241_v38, %v5242_v48  ;;  %v6411_v13 = vrot.slane %v6410_v8, 1  ;;  %v5256_v29 = vrot.slane %v5255_v40, 1  ;;  %v6432_v0 = vrot.slane %v6431_v20, 1 }
 0x39a   : > { %12475 = vmatprep.mubr.bf16.mxu0 %v13151_v31  ;;  %v6419_v43 = vmax.f32 %v6417_v5, %v6418_v1  ;;  %v16888_v17 = vpop.f32.mrf.mxu0  ;;  %v5236_v44 = vmax.f32 %v5234_v19, %v5235_v28  ;;  %v5249_v48 = vrot.slane %v5248_v18, 1  ;;  %v13153_v1 = vld [vmem:[%s14044_s22 + $0x4e0] sm:$0xff]   ;;  %v6425_v19 = vrot.slane %v6424_v15, 1 }
 0x39b   : > { %v6538_v21 = vadd.f32 %v16781_v3, %v5243_v26  ;;  %v6412_v42 = vmax.f32 %v6410_v8, %v6411_v13  ;;  %v5257_v31 = vmax.f32 %v5255_v40, %v5256_v29  ;;  %v6433_v53 = vmax.f32 %v6431_v20, %v6432_v0  ;;  %v4644_v29 = vpop.f32.mrf.mxu1 }
 0x39c   : > { %v6706_v38 = vadd.f32 %v16781_v3, %v6419_v43  ;;  %v16895_v5 = vpop.f32.mrf.mxu0  ;;  %v6537_v55 = vadd.f32 %v16781_v3, %v5236_v44  ;;  %v5250_v43 = vmax.f32 %v5248_v18, %v5249_v48  ;;  %v6426_v2 = vmax.f32 %v6424_v15, %v6425_v19 }
 0x39d   : > { %v16898_v47 = vmax.f32 %v6538_v21, 0.0  ;;  %v6705_v6 = vadd.f32 %v16781_v3, %v6412_v42  ;;  %v6540_v54 = vadd.f32 %v16781_v3, %v5257_v31  ;;  %v6708_v26 = vadd.f32 %v16781_v3, %v6433_v53 }
 0x39e   : > { %v16902_v8 = vmax.f32 %v6706_v38, 0.0  ;;  %v16906_v40 = vpop.f32.mrf.mxu0  ;;  %v16910_v28 = vmax.f32 %v6537_v55, 0.0  ;;  %v21035_v0 = vpack.c.bf16 %v16806_v14, %v16806_v14  ;;  %v21036_v44 = vpack.c.bf16 %v16812_v27, %v16812_v27 }
 0x39f   : > { %21031 = vst [vmem:[#allocation274_spill] sm:$0xff] %v16898_v47  ;;  %v7050_v20 = vpack.c.bf16 %v16898_v47, %v16898_v47  ;;  %v16912_v13 = vmax.f32 %v6705_v6, 0.0  ;;  %v7910_v42 = vrot.slane %v16851_v37, 7  ;;  %v8204_v15 = vrot.slane %v16857_v57, 7  ;;  %v16950_v37 = vpop.f32.mrf.mxu1 }
 0x3a0   : > { %21032 = vst [vmem:[#allocation275_spill] sm:$0xff] %v16902_v8  ;;  %21033 = vst [vmem:[#allocation276_spill] sm:$0xff] %v16910_v28  ;;  %v7585_v21 = vunpack.c.l.b16 %v21035_v0  ;;  %v16920_v18 = vunpack.c.l.b16 %v21036_v44  ;;  %v7218_v38 = vpack.c.bf16 %v16902_v8, %v16902_v8  ;;  %v16925_v31 = vpop.f32.mrf.mxu0  ;;  %v21039_v48 = vpack.c.bf16 %v16843_v46, %v16843_v46 }
 0x3a1   : > { %21034 = vst [vmem:[#allocation277_spill] sm:$0xff] %v16912_v13  ;;  %12476 = vmatmul.mubr.bf16.gmra.mxu0 %v13152_v16  ;;  %v21038_v16 = vpack.c.bf16 %v16834_v59, %v16834_v59  ;;  %v16934_v6 = vmax.f32 %v6540_v54, 0.0  ;;  %v16937_v19 = vunpack.c.l.b16 %v7050_v20  ;;  %v16939_v0 = vmax.f32 %v6708_v26, 0.0  ;;  %v13154_v20 = vld [vmem:[%s14044_s22 + $0x4e8] sm:$0xff]  }
 0x3a2   : > { %21037 = vst [vmem:[#allocation278_spill] sm:$0xff] %v16920_v18  ;;  %12479 = vmatprep.mubr.bf16.mxu0 %v13153_v1  ;;  %v7755_v55 = vunpack.c.l.b16 %v21039_v48  ;;  %v6539_v1 = vadd.f32 %v16781_v3, %v5250_v43  ;;  %v16942_v57 = vpop.f32.mrf.mxu0  ;;  %v7908_v44 = vrot.slane %v16839_v32, 1  ;;  %v7217_v54 = vpack.c.bf16 %v16912_v13, %v16912_v13  ;;  %v13155_v32 = vld [vmem:[%s14044_s22 + $0x4f0] sm:$0xff]  }
 0x3a3   : > { %v7587_v53 = vunpack.c.l.b16 %v21038_v16  ;;  %21040 = vst [vmem:[#allocation279_spill] sm:$0xff] %v16934_v6  ;;  %21041 = vst [vmem:[#allocation280_spill] sm:$0xff] %v16939_v0  ;;  %v7049_v16 = vpack.c.bf16 %v16910_v28, %v16910_v28  ;;  %v6707_v48 = vadd.f32 %v16781_v3, %v6426_v2  ;;  %v7906_v8 = vrot.slane %v7585_v21, 2 }
 0x3a4   : > { %v16955_v46 = vunpack.c.l.b16 %v7218_v38  ;;  %v16957_v27 = vpop.f32.mrf.mxu0  ;;  %v16964_v13 = vsel %vm7764_vm0, %v8204_v15, %v7755_v55  ;;  %v7052_v2 = vpack.c.bf16 %v16934_v6, %v16934_v6  ;;  %v21043_v26 = vrot.slane %v16433_v34, 5  ;;  %v16991_v38 = vpop.f32.mrf.mxu1 }
 0x3a5   : > { %v16961_v47 = vsel %vm7764_vm0, %v7910_v42, %v7587_v53  ;;  %v7220_v43 = vpack.c.bf16 %v16939_v0, %v16939_v0  ;;  %v16975_v59 = vmax.f32 %v6539_v1, 0.0  ;;  %v21045_v42 = vrot.slane %v16553_v35, 4 }
 0x3a6   : > { %21042 = vst [vmem:[#allocation281_spill] sm:$0xff] %v16955_v46  ;;  %v7887_v21 = vsel %vm7770_vm2, %v21043_v26, %v16565_v63  ;;  %v16980_v53 = vpop.f32.mrf.mxu0  ;;  %v16982_v55 = vunpack.c.l.b16 %v7049_v16  ;;  %v16984_v6 = vunpack.c.l.b16 %v7217_v54  ;;  %v16986_v34 = vmax.f32 %v6707_v48, 0.0 }
 0x3a7   : > { %21044 = vst [vmem:[#allocation282_spill] sm:$0xff] %v16975_v59  ;;  %v7889_v15 = vsel %vm7773_vm3, %v21045_v42, %v7887_v21  ;;  %v21047_v63 = vrot.slane %v16451_v10, 3  ;;  %v21048_v35 = vrot.slane %v16588_v9, 2  ;;  %v21049_v16 = vrot.slane %v16712_v61, 5 }
 0x3a8   : > { %21046 = vst [vmem:[#allocation283_spill] sm:$0xff] %v16986_v34  ;;  %v5265_v48 = vmax.f32 %v16393_v24, %v16471_v62  ;;  %v17003_v10 = vpop.f32.mrf.mxu0  ;;  %v17005_v42 = vunpack.c.l.b16 %v7052_v2  ;;  %v6441_v61 = vmax.f32 %v16876_v51, %v16891_v56  ;;  %v5279_v51 = vmax.f32 %v16499_v11, %v16515_v12  ;;  %v17026_v56 = vpop.f32.mrf.mxu1 }
 0x3a9   : > { %v7891_v26 = vsel %vm7776_vm4, %v21047_v63, %v7889_v15  ;;  %12480 = vmatmul.mubr.bf16.gmra.mxu0 %v13154_v20  ;;  %v7901_v54 = vsel %vm7770_vm2, %v21049_v16, %v16820_v58  ;;  %v21050_v20 = vrot.slane %v16578_v7, 1  ;;  %v21051_v15 = vrot.slane %v16794_v36, 4 }
 0x3aa   : > { %v7893_v21 = vsel %vm7779_vm5, %v21048_v35, %v7891_v26  ;;  %12483 = vmatprep.mubr.bf16.mxu0 %v13155_v32  ;;  %v21052_v58 = vrot.slane %v16724_v50, 3  ;;  %v5266_v62 = vrot.slane %v5265_v48, 4  ;;  %v5258_v32 = vmax.f32 %v16428_v30, %v16490_v39  ;;  %v17021_v2 = vpop.f32.mrf.mxu0  ;;  %v13156_v50 = vld [vmem:[%s14044_s22 + $0x4f8] sm:$0xff]   ;;  %v13157_v39 = vld [vmem:[%s14044_s22 + $0x500] sm:$0xff]  }
 0x3ab   : > { %v7895_v9 = vsel %vm7782_vm6, %v21050_v20, %v7893_v21  ;;  %v7903_v63 = vsel %vm7773_vm3, %v21051_v15, %v7901_v54  ;;  %v6434_v7 = vmax.f32 %v16884_v52, %v4644_v29  ;;  %v6442_v26 = vrot.slane %v6441_v61, 4 }
 0x3ac   : > { %v7905_v24 = vsel %vm7776_vm4, %v21052_v58, %v7903_v63  ;;  %v7241_v35 = vlaneseq  ;;  %v5267_v16 = vmax.f32 %v5265_v48, %v5266_v62  ;;  %v5259_v54 = vrot.slane %v5258_v32, 4  ;;  %v17030_v30 = vpop.f32.mrf.mxu0 }
 0x3ad   : > { %v7907_v36 = vsel %vm7779_vm5, %v7906_v8, %v7905_v24  ;;  %v6435_v20 = vrot.slane %v6434_v7, 4  ;;  %v6443_v29 = vmax.f32 %v6441_v61, %v6442_v26  ;;  %v5280_v8 = vrot.slane %v5279_v51, 4 }
 0x3ae   : > { %v7909_v21 = vsel %vm7782_vm6, %v7908_v44, %v7907_v36  ;;  %v17033_v15 = vshrl.u32 %v7241_v35, 7  ;;  %v5268_v63 = vrot.slane %v5267_v16, 2  ;;  %v5260_v58 = vmax.f32 %v5258_v32, %v5259_v54  ;;  %v17037_v12 = vpop.f32.mrf.mxu0 }
 0x3af   : > { %v8222_v52 = vpack.c.b16 %v7909_v21, %v7895_v9  ;;  %v6436_v24 = vmax.f32 %v6434_v7, %v6435_v20  ;;  %v5272_v11 = vmax.f32 %v16503_v41, %v16534_v25  ;;  %v17039_v44 = vunpack.c.l.b16 %v7220_v43  ;;  %v8370_v9 = vpop.f32.mrf.mxu1  ;;  %v7239_v21 = vld [vmem:[#allocation10] sm:$0x3] }
 0x3b0   : > { %21053 = vst [vmem:[#allocation284_spill] sm:$0xff] %v17033_v15  ;;  %v6444_v48 = vrot.slane %v6443_v29, 2  ;;  %v20291_v62 = vsub.s32 1, %v17033_v15  ;;  %v5281_v36 = vmax.f32 %v5279_v51, %v5280_v8  ;;  %v5269_v61 = vmax.f32 %v5267_v16, %v5268_v63  ;;  %v17043_v7 = vpop.f32.mrf.mxu0 }
 0x3b1   : > { %21054 = vst [vmem:[#allocation285_spill] sm:$0xff] %v17039_v44  ;;  %8403 = vmatmul.mubr.bf16.gmra.mxu1 %v8222_v52  ;;  %12484 = vmatmul.mubr.bf16.gmra.mxu0 %v13156_v50  ;;  %v5261_v26 = vrot.slane %v5260_v58, 2  ;;  %v6437_v35 = vrot.slane %v6436_v24, 2  ;;  %v5273_v32 = vrot.slane %v5272_v11, 4  ;;  %v7051_v41 = vpack.c.bf16 %v16975_v59, %v16975_v59 }
 0x3b2   : > { %8412 = vmatprep.mubr.bf16.mxu1 %v20940_v45  ;;  %12487 = vmatprep.mubr.bf16.mxu0 %v13157_v39  ;;  %v6445_v25 = vmax.f32 %v6443_v29, %v6444_v48  ;;  %v17049_v43 = vrot.slane %v7239_v21, %v20291_v62  ;;  %v5282_v51 = vrot.slane %v5281_v36, 2  ;;  %v5270_v50 = vrot.slane %v5269_v61, 1  ;;  %v17052_v52 = vpop.f32.mrf.mxu0  ;;  %v8374_v29 = vpop.f32.mrf.mxu1  ;;  %v13158_v48 = vld [vmem:[%s14044_s22 + $0x508] sm:$0xff]  }
 0x3b3   : > { %v5262_v16 = vmax.f32 %v5260_v58, %v5261_v26  ;;  %v6438_v54 = vmax.f32 %v6436_v24, %v6437_v35  ;;  %v5274_v1 = vmax.f32 %v5272_v11, %v5273_v32  ;;  %v7912_v62 = vrot.slane %v16982_v55, 6  ;;  %v13159_v58 = vld [vmem:[%s14044_s22 + $0x510] sm:$0xff]  }
 0x3b4   : > { %21055 = vst [vmem:[#allocation286_spill] sm:$0xff] %v17049_v43  ;;  %v6446_v8 = vrot.slane %v6445_v25, 1  ;;  %v8367_v39 = vadd.f32 %v16991_v38, %v17049_v43  ;;  %v5283_v63 = vmax.f32 %v5281_v36, %v5282_v51  ;;  %v5271_v0 = vmax.f32 %v5269_v61, %v5270_v50  ;;  %v17058_v14 = vpop.f32.mrf.mxu0  ;;  %v8376_v18 = vpop.f32.mrf.mxu1 }
 0x3b5   : > { %v5263_v59 = vrot.slane %v5262_v16, 1  ;;  %v6439_v28 = vrot.slane %v6438_v54, 1  ;;  %v7219_v24 = vpack.c.bf16 %v16986_v34, %v16986_v34  ;;  %v21056_v32 = vsub.s32 0, %v17033_v15 }
 0x3b6   : > { %v6447_v26 = vmax.f32 %v6445_v25, %v6446_v8  ;;  %v11766_v35 = vmul.f32 -1.442695, %v8367_v39  ;;  %v5284_v20 = vrot.slane %v5283_v63, 1  ;;  %v6542_v38 = vadd.f32 %v16781_v3, %v5271_v0  ;;  %v17068_v55 = vpop.f32.mrf.mxu0  ;;  %v21074_v8 = vld [vmem:[#allocation158_spill] sm:$0xff] }
 0x3b7   : > { %v5264_v36 = vmax.f32 %v5262_v16, %v5263_v59  ;;  %v6440_v11 = vmax.f32 %v6438_v54, %v6439_v28  ;;  %v17066_v51 = vrot.slane %v7239_v21, %v21056_v32  ;;  %21057 = vst [vmem:[#allocation287_spill] sm:$0xff] %v17068_v55  ;;  %v5275_v49 = vrot.slane %v5274_v1, 2 }
 0x3b8   : > { %v6710_v61 = vadd.f32 %v16781_v3, %v6447_v26  ;;  %13197 = vpow2.f32 %v11766_v35  ;;  %v5285_v50 = vmax.f32 %v5283_v63, %v5284_v20  ;;  %v8206_v25 = vrot.slane %v16984_v6, 6  ;;  %v17076_v28 = vpop.f32.mrf.mxu0 }
 0x3b9   : > { %12488 = vmatmul.mubr.bf16.gmra.mxu0 %v13158_v48  ;;  %v17073_v0 = vmax.f32 %v6542_v38, 0.0  ;;  %v6541_v59 = vadd.f32 %v16781_v3, %v5264_v36  ;;  %v6709_v16 = vadd.f32 %v16781_v3, %v6440_v11  ;;  %v5276_v54 = vmax.f32 %v5274_v1, %v5275_v49 }
 0x3ba   : > { %12491 = vmatprep.mubr.bf16.mxu0 %v13159_v58  ;;  %v17078_v21 = vmax.f32 %v6710_v61, 0.0  ;;  %v8371_v20 = vadd.f32 %v8370_v9, %v17049_v43  ;;  %v17084_v6 = vsel %vm7767_vm1, %v7912_v62, %v16961_v47  ;;  %v17087_v63 = vunpack.c.l.b16 %v7051_v41  ;;  %v17091_v26 = vpop.f32.mrf.mxu0  ;;  %v17102_v62 = vpop.f32.mrf.mxu1  ;;  %v13160_v9 = vld [vmem:[%s14044_s22 + $0x518] sm:$0xff]  }
 0x3bb   : > { %21058 = vst [vmem:[#allocation288_spill] sm:$0xff] %v17073_v0  ;;  %v17089_v48 = vunpack.c.l.b16 %v7219_v24  ;;  %21061 = vst [vmem:[#allocation291_spill] sm:$0xff] %v17091_v26  ;;  %v17095_v58 = vadd.f32 %v16950_v37, %v17066_v51  ;;  %v6544_v49 = vadd.f32 %v16781_v3, %v5285_v50  ;;  %v17100_v1 = vadd.f32 %v17026_v56, %v17066_v51  ;;  %v13161_v56 = vld [vmem:[%s14044_s22 + $0x520] sm:$0xff]  }
 0x3bc   : > { %21059 = vst [vmem:[#allocation289_spill] sm:$0xff] %v17078_v21  ;;  %v5277_v47 = vrot.slane %v5276_v54, 1  ;;  %v17107_v41 = vsel %vm7767_vm1, %v8206_v25, %v16964_v13  ;;  %v7054_v24 = vpack.c.bf16 %v17073_v0, %v17073_v0  ;;  %v17111_v35 = vmax.f32 %v6541_v59, 0.0  ;;  %v17116_v38 = vpop.f32.mrf.mxu0  ;;  %v21067_v59 = vld [vmem:[#allocation242_spill] sm:$0xff] }
 0x3bd   : > { %21060 = vst [vmem:[#allocation290_spill] sm:$0xff] %v17089_v48  ;;  %21062 = vst [vmem:[#allocation292_spill] sm:$0xff] %v17107_v41  ;;  %v17114_v37 = vadd.f32 %v8374_v29, %v17066_v51  ;;  %v7222_v36 = vpack.c.bf16 %v17078_v21, %v17078_v21  ;;  %v17121_v11 = vmax.f32 %v6709_v16, 0.0  ;;  %v11767_v32 = vmul.f32 -1.442695, %v8371_v20  ;;  %v8380_v20 = vpop.f32.mrf.mxu1 }
 0x3be   : > { %21063 = vst [vmem:[#allocation293_spill] sm:$0xff] %v17111_v35  ;;  %21065 = vst [vmem:[#allocation295_spill] sm:$0xff] %v17116_v38  ;;  %v8377_v13 = vadd.f32 %v8376_v18, %v17049_v43  ;;  %v5278_v25 = vmax.f32 %v5276_v54, %v5277_v47  ;;  %v5293_v29 = vmax.f32 %v21067_v59, %v16610_v23  ;;  %v17128_v39 = vpop.f32.mrf.mxu0  ;;  %v17131_v34 = vmax.f32 %v6544_v49, 0.0 }
 0x3bf   : > { %21064 = vst [vmem:[#allocation294_spill] sm:$0xff] %v17114_v37  ;;  %21066 = vst [vmem:[#allocation296_spill] sm:$0xff] %v17121_v11  ;;  %v17134_v18 = vunpack.c.l.b16 %v7054_v24  ;;  %v7053_v50 = vpack.c.bf16 %v17111_v35, %v17111_v35  ;;  %v17141_v59 = vunpack.c.l.b16 %v7222_v36  ;;  %13199 = vpow2.f32 %v11767_v32  ;;  %v21076_v36 = vld [vmem:[#allocation166_spill] sm:$0xff]  ;;  %v21077_v35 = vld [vmem:[#allocation203_spill] sm:$0xff] }
 0x3c0   : > { %21068 = vst [vmem:[#allocation242_spill] sm:$0xff] %v17128_v39  ;;  %21069 = vst [vmem:[#allocation297_spill] sm:$0xff] %v17131_v34  ;;  %v11768_v21 = vmul.f32 -1.442695, %v8377_v13  ;;  %v5294_v47 = vrot.slane %v5293_v29, 4  ;;  %v17139_v23 = vpop.f32.mrf.mxu0  ;;  %v21072_v13 = vld [vmem:[#allocation160_spill] sm:$0xff]  ;;  %v6543_v16 = vadd.f32 %v16781_v3, %v5278_v25  ;;  %v8381_v54 = vadd.f32 %v8380_v20, %v17049_v43 }
 0x3c1   : > { %12492 = vmatmul.mubr.bf16.gmra.mxu0 %v13160_v9  ;;  %21070 = vst [vmem:[#allocation298_spill] sm:$0xff] %v17139_v23  ;;  %21071 = vst [vmem:[#allocation299_spill] sm:$0xff] %v17141_v59  ;;  %v21073_v9 = vld [vmem:[#allocation246_spill] sm:$0xff]  ;;  %v5307_v15 = vmax.f32 %v21074_v8, %v16633_v33  ;;  %v5300_v49 = vmax.f32 %v21077_v35, %v21076_v36  ;;  %v21079_v37 = vld [vmem:[#allocation115_spill] sm:$0xff]  ;;  %v17165_v36 = vunpack.c.l.b16 %v7053_v50 }
 0x3c2   : > { %12495 = vmatprep.mubr.bf16.mxu0 %v13161_v56  ;;  %v5286_v24 = vmax.f32 %v21073_v9, %v21072_v13  ;;  %v5295_v61 = vmax.f32 %v5293_v29, %v5294_v47  ;;  %v17151_v0 = vpop.f32.mrf.mxu0  ;;  %13201 = vpow2.f32 %v11768_v21  ;;  %v21078_v32 = vld [vmem:[#allocation254_spill] sm:$0xff]  ;;  %v13162_v13 = vld [vmem:[%s14044_s22 + $0x528] sm:$0xff]   ;;  %v11769_v48 = vmul.f32 -1.442695, %v8381_v54  ;;  %v21080_v47 = vld [vmem:[#allocation255_spill] sm:$0xff] }
 0x3c3   : > { %21075 = vst [vmem:[#allocation160_spill] sm:$0xff] %v17151_v0  ;;  %v5321_v44 = vmax.f32 %v21079_v37, %v21078_v32  ;;  %v5308_v29 = vrot.slane %v5307_v15, 4  ;;  %v21081_v20 = vld [vmem:[#allocation250_spill] sm:$0xff]  ;;  %v13163_v33 = vld [vmem:[%s14044_s22 + $0x530] sm:$0xff]   ;;  %v7056_v21 = vpack.c.bf16 %v17131_v34, %v17131_v34  ;;  %v5301_v35 = vrot.slane %v5300_v49, 4  ;;  %v21086_v50 = vld [vmem:[#allocation59_spill] sm:$0xff] }
 0x3c4   : > { %v5287_v56 = vrot.slane %v5286_v24, 4  ;;  %v5296_v25 = vrot.slane %v5295_v61, 2  ;;  %v5314_v46 = vmax.f32 %v21081_v20, %v21080_v47  ;;  %v17160_v41 = vpop.f32.mrf.mxu0  ;;  %v17169_v54 = vmax.f32 %v6543_v16, 0.0 }
 0x3c5   : > { %v13198_v9 = vpop.eup %13197  ;;  %21082 = vst [vmem:[#allocation246_spill] sm:$0xff] %v17160_v41  ;;  %v5309_v32 = vmax.f32 %v5307_v15, %v5308_v29  ;;  %v5322_v39 = vrot.slane %v5321_v44, 4  ;;  %13203 = vpow2.f32 %v11769_v48  ;;  %v5302_v47 = vmax.f32 %v5300_v49, %v5301_v35  ;;  %v21088_v48 = vld [vmem:[#allocation178_spill] sm:$0xff]  ;;  %v21089_v49 = vld [vmem:[#allocation173_spill] sm:$0xff] }
 0x3c6   : > { %v8651_v8 = vadd.f32 1.0, %v13198_v9  ;;  %v5288_v4 = vmax.f32 %v5286_v24, %v5287_v56  ;;  %v5297_v37 = vmax.f32 %v5295_v61, %v5296_v25  ;;  %v17167_v0 = vpop.f32.mrf.mxu0  ;;  %21084 = vst [vmem:[#allocation166_spill] sm:$0xff] %v17169_v54  ;;  %v5315_v23 = vrot.slane %v5314_v46, 4  ;;  %v21087_v56 = vld [vmem:[#allocation256_spill] sm:$0xff] }
 0x3c7   : > { %21083 = vst [vmem:[#allocation158_spill] sm:$0xff] %v17167_v0  ;;  %v5310_v9 = vrot.slane %v5309_v32, 2  ;;  %v5323_v41 = vmax.f32 %v5321_v44, %v5322_v39  ;;  %v5303_v15 = vrot.slane %v5302_v47, 2  ;;  %v5335_v25 = vmax.f32 %v21087_v56, %v21086_v50 }
 0x3c8   : > { %v5289_v38 = vrot.slane %v5288_v4, 2  ;;  %v5298_v20 = vrot.slane %v5297_v37, 1  ;;  %v17171_v24 = vpop.f32.mrf.mxu0  ;;  %13205 = vrcp.f32 %v8651_v8  ;;  %v5316_v0 = vmax.f32 %v5314_v46, %v5315_v23 }
 0x3c9   : > { %12496 = vmatmul.mubr.bf16.gmra.mxu0 %v13162_v13  ;;  %21085 = vst [vmem:[#allocation203_spill] sm:$0xff] %v17171_v24  ;;  %v5311_v29 = vmax.f32 %v5309_v32, %v5310_v9  ;;  %v5324_v34 = vrot.slane %v5323_v41, 2  ;;  %v5328_v13 = vmax.f32 %v21089_v49, %v21088_v48  ;;  %v5304_v39 = vmax.f32 %v5302_v47, %v5303_v15  ;;  %v13164_v24 = vld [vmem:[%s14044_s22 + $0x538] sm:$0xff]  }
 0x3ca   : > { %12499 = vmatprep.mubr.bf16.mxu0 %v13163_v33  ;;  %v5290_v61 = vmax.f32 %v5288_v4, %v5289_v38  ;;  %v5299_v16 = vmax.f32 %v5297_v37, %v5298_v20  ;;  %v17177_v35 = vpop.f32.mrf.mxu0  ;;  %v5336_v55 = vrot.slane %v5335_v25, 4  ;;  %v7596_v33 = vunpack.c.l.b16 %v7056_v21 }
 0x3cb   : > { %v5312_v38 = vrot.slane %v5311_v29, 1  ;;  %v5325_v8 = vmax.f32 %v5323_v41, %v5324_v34  ;;  %v5305_v32 = vrot.slane %v5304_v39, 1  ;;  %v5317_v20 = vrot.slane %v5316_v0, 2 }
 0x3cc   : > { %v5291_v44 = vrot.slane %v5290_v61, 1  ;;  %v6546_v4 = vadd.f32 %v16781_v3, %v5299_v16  ;;  %v17181_v26 = vpop.f32.mrf.mxu0  ;;  %v5337_v9 = vmax.f32 %v5335_v25, %v5336_v55  ;;  %v13200_v50 = vpop.eup %13199  ;;  %v7055_v56 = vpack.c.bf16 %v17169_v54, %v17169_v54 }
 0x3cd   : > { %v5313_v46 = vmax.f32 %v5311_v29, %v5312_v38  ;;  %v5326_v23 = vrot.slane %v5325_v8, 1  ;;  %v5306_v15 = vmax.f32 %v5304_v39, %v5305_v32  ;;  %v5318_v34 = vmax.f32 %v5316_v0, %v5317_v20 }
 0x3ce   : > { %v5292_v37 = vmax.f32 %v5290_v61, %v5291_v44  ;;  %v17185_v48 = vmax.f32 %v6546_v4, 0.0  ;;  %v17187_v47 = vpop.f32.mrf.mxu0  ;;  %v5329_v41 = vrot.slane %v5328_v13, 4  ;;  %v21092_v55 = vpack.c.bf16 %v17121_v11, %v17121_v11 }
 0x3cf   : > { %21091 = vst [vmem:[#allocation115_spill] sm:$0xff] %v17187_v47  ;;  %v13202_v61 = vpop.eup %13201  ;;  %v17197_v16 = vadd.f32 %v17102_v62, %v17066_v51  ;;  %v5327_v29 = vmax.f32 %v5325_v8, %v5326_v23  ;;  %v5338_v49 = vrot.slane %v5337_v9, 2  ;;  %v7924_v4 = vrot.slane %v7596_v33, 7 }
 0x3d0   : > { %21090 = vst [vmem:[#allocation254_spill] sm:$0xff] %v17185_v48  ;;  %v6545_v21 = vadd.f32 %v16781_v3, %v5292_v37  ;;  %v17193_v25 = vunpack.c.l.b16 %v21092_v55  ;;  %v17199_v44 = vpop.f32.mrf.mxu0  ;;  %v7058_v0 = vpack.c.bf16 %v17185_v48, %v17185_v48  ;;  %v7595_v38 = vunpack.c.l.b16 %v7055_v56 }
 0x3d1   : > { %12500 = vmatmul.mubr.bf16.gmra.mxu0 %v13164_v24  ;;  %21094 = vst [vmem:[#allocation250_spill] sm:$0xff] %v17197_v16  ;;  %v5319_v24 = vrot.slane %v5318_v34, 1  ;;  %v8652_v37 = vadd.f32 1.0, %v13200_v50  ;;  %v6548_v32 = vadd.f32 %v16781_v3, %v5313_v46  ;;  %v6547_v20 = vadd.f32 %v16781_v3, %v5306_v15 }
 0x3d2   : > { %21093 = vst [vmem:[#allocation255_spill] sm:$0xff] %v17193_v25  ;;  %v17203_v39 = vmax.f32 %v6545_v21, 0.0  ;;  %v17207_v55 = vpop.f32.mrf.mxu0  ;;  %v8653_v62 = vadd.f32 1.0, %v13202_v61  ;;  %v5339_v23 = vmax.f32 %v5337_v9, %v5338_v49  ;;  %v5330_v11 = vmax.f32 %v5328_v13, %v5329_v41  ;;  %v13204_v54 = vpop.eup %13203 }
 0x3d3   : > { %v5320_v8 = vmax.f32 %v5318_v34, %v5319_v24  ;;  %v6550_v56 = vadd.f32 %v16781_v3, %v5327_v29  ;;  %v17216_v15 = vunpack.c.l.b16 %v7058_v0  ;;  %13207 = vrcp.f32 %v8652_v37  ;;  %v21102_v37 = vld [vmem:[#allocation218_spill] sm:$0xff] }
 0x3d4   : > { %21095 = vst [vmem:[#allocation59_spill] sm:$0xff] %v17203_v39  ;;  %v17213_v50 = vpop.f32.mrf.mxu0  ;;  %v7057_v13 = vpack.c.bf16 %v17203_v39, %v17203_v39  ;;  %v17223_v34 = vmax.f32 %v6548_v32, 0.0  ;;  %v17225_v41 = vmax.f32 %v6547_v20, 0.0  ;;  %v7925_v24 = vsel %vm7764_vm0, %v7924_v4, %v7595_v38 }
 0x3d5   : > { %21096 = vst [vmem:[#allocation256_spill] sm:$0xff] %v17213_v50  ;;  %v17221_v9 = vpop.eup %13205  ;;  %v6549_v29 = vadd.f32 %v16781_v3, %v5320_v8  ;;  %13209 = vrcp.f32 %v8653_v62  ;;  %v5340_v0 = vrot.slane %v5339_v23, 1  ;;  %v5331_v48 = vrot.slane %v5330_v11, 2 }
 0x3d6   : > { %21097 = vst [vmem:[#allocation178_spill] sm:$0xff] %v17223_v34  ;;  %21098 = vst [vmem:[#allocation173_spill] sm:$0xff] %v17225_v41  ;;  %v17228_v49 = vpop.f32.mrf.mxu0  ;;  %v8654_v61 = vadd.f32 1.0, %v13204_v54  ;;  %v17231_v46 = vmax.f32 %v6550_v56, 0.0  ;;  %v5349_v32 = vmax.f32 %v21102_v37, %v16763_v22  ;;  %v7928_v20 = vrot.slane %v17216_v15, 5  ;;  %v21110_v37 = vld [vmem:[#allocation259_spill] sm:$0xff] }
 0x3d7   : > { %21099 = vst [vmem:[#allocation300_spill] sm:$0xff] %v17228_v49  ;;  %v17233_v33 = vmax.f32 %v6549_v29, 0.0  ;;  %v7597_v8 = vunpack.c.l.b16 %v7057_v13  ;;  %v5341_v39 = vmax.f32 %v5339_v23, %v5340_v0  ;;  %v5332_v16 = vmax.f32 %v5330_v11, %v5331_v48  ;;  %v21107_v48 = vld [vmem:[#allocation174_spill] sm:$0xff]  ;;  %v21109_v0 = vld [vmem:[#allocation265_spill] sm:$0xff] }
 0x3d8   : > { %21100 = vst [vmem:[#allocation301_spill] sm:$0xff] %v17231_v46  ;;  %v17237_v21 = vpop.f32.mrf.mxu0  ;;  %v21104_v4 = vmax.f32 %v17095_v58, 0.0  ;;  %v7060_v54 = vpack.c.bf16 %v17223_v34, %v17223_v34  ;;  %v7059_v62 = vpack.c.bf16 %v17225_v41, %v17225_v41  ;;  %v5350_v11 = vrot.slane %v5349_v32, 4  ;;  %v21108_v58 = vld [vmem:[#allocation81_spill] sm:$0xff]  ;;  %v21111_v34 = vld [vmem:[#allocation268_spill] sm:$0xff]  ;;  %v21112_v41 = vld [vmem:[#allocation262_spill] sm:$0xff] }
 0x3d9   : > { %21101 = vst [vmem:[#allocation302_spill] sm:$0xff] %v17233_v33  ;;  %21103 = vst [vmem:[#allocation218_spill] sm:$0xff] %v17237_v21  ;;  %v7061_v22 = vpack.c.bf16 %v17233_v33, %v17233_v33  ;;  %v6552_v15 = vadd.f32 %v16781_v3, %v5341_v39  ;;  %v5333_v23 = vrot.slane %v5332_v16, 1  ;;  %v5342_v13 = vmax.f32 %v21108_v58, %v21107_v48 }
 0x3da   : > { %v17243_v38 = vmul.f32 %v17221_v9, %v21104_v4  ;;  %v17251_v56 = vpop.f32.mrf.mxu0  ;;  %13211 = vrcp.f32 %v8654_v61  ;;  %v7062_v29 = vpack.c.bf16 %v17231_v46, %v17231_v46  ;;  %v5363_v4 = vmax.f32 %v21110_v37, %v21109_v0 }
 0x3db   : > { %21106 = vst [vmem:[#allocation304_spill] sm:$0xff] %v17251_v56  ;;  %v7926_v59 = vrot.slane %v7597_v8, 6  ;;  %v5334_v25 = vmax.f32 %v5332_v16, %v5333_v23  ;;  %v5351_v39 = vmax.f32 %v5349_v32, %v5350_v11  ;;  %v5343_v49 = vrot.slane %v5342_v13, 4 }
 0x3dc   : > { %21105 = vst [vmem:[#allocation303_spill] sm:$0xff] %v17243_v38  ;;  %v5356_v38 = vmax.f32 %v21112_v41, %v21111_v34  ;;  %v17262_v33 = vpop.f32.mrf.mxu0  ;;  %v7600_v56 = vunpack.c.l.b16 %v7060_v54  ;;  %v7599_v50 = vunpack.c.l.b16 %v7059_v62  ;;  %v5364_v21 = vrot.slane %v5363_v4, 4 }
 0x3dd   : > { %21113 = vst [vmem:[#allocation174_spill] sm:$0xff] %v17262_v33  ;;  %v7601_v58 = vunpack.c.l.b16 %v7061_v22  ;;  %v17266_v46 = vmax.f32 %v6552_v15, 0.0  ;;  %v6551_v0 = vadd.f32 %v16781_v3, %v5334_v25  ;;  %v5352_v37 = vrot.slane %v5351_v39, 2  ;;  %v8384_v33 = vpop.f32.mrf.mxu1 }
 0x3de   : > { %v5357_v48 = vrot.slane %v5356_v38, 4  ;;  %v17264_v61 = vpop.f32.mrf.mxu0  ;;  %v5344_v47 = vmax.f32 %v5342_v13, %v5343_v49  ;;  %v5365_v34 = vmax.f32 %v5363_v4, %v5364_v21  ;;  %v21116_v16 = vrot.slane %v16937_v19, 5 }
 0x3df   : > { %21114 = vst [vmem:[#allocation81_spill] sm:$0xff] %v17264_v61  ;;  %21115 = vst [vmem:[#allocation265_spill] sm:$0xff] %v17266_v46  ;;  %v7927_v54 = vsel %vm7767_vm1, %v7926_v59, %v7925_v24  ;;  %v7602_v62 = vunpack.c.l.b16 %v7062_v29  ;;  %v5353_v22 = vmax.f32 %v5351_v39, %v5352_v37  ;;  %v21117_v15 = vrot.slane %v17087_v63, 4  ;;  %v8386_v37 = vpop.f32.mrf.mxu1 }
 0x3e0   : > { %v5358_v41 = vmax.f32 %v5356_v38, %v5357_v48  ;;  %v7915_v32 = vsel %vm7770_vm2, %v21116_v16, %v17084_v6  ;;  %v17273_v8 = vpop.f32.mrf.mxu0  ;;  %v7930_v23 = vrot.slane %v7599_v50, 4  ;;  %v5345_v49 = vrot.slane %v5344_v47, 2  ;;  %v13208_v13 = vpop.eup %13207 }
 0x3e1   : > { %v7917_v25 = vsel %vm7773_vm3, %v21117_v15, %v7915_v32  ;;  %v5366_v21 = vrot.slane %v5365_v34, 2  ;;  %v7934_v19 = vrot.slane %v7601_v58, 2  ;;  %v7064_v6 = vpack.c.bf16 %v17266_v46, %v17266_v46 }
 0x3e2   : > { %v5359_v38 = vrot.slane %v5358_v41, 2  ;;  %v17279_v11 = vpop.f32.mrf.mxu0  ;;  %v17283_v4 = vmax.f32 %v6551_v0, 0.0  ;;  %v5354_v59 = vrot.slane %v5353_v22, 1  ;;  %v17285_v24 = vpop.eup %13209  ;;  %v5346_v29 = vmax.f32 %v5344_v47, %v5345_v49 }
 0x3e3   : > { %21118 = vst [vmem:[#allocation259_spill] sm:$0xff] %v17279_v11  ;;  %21120 = vst [vmem:[#allocation262_spill] sm:$0xff] %v17285_v24  ;;  %v5367_v63 = vmax.f32 %v5365_v34, %v5366_v21  ;;  %v21121_v50 = vrot.slane %v17005_v42, 3  ;;  %v7932_v32 = vrot.slane %v7600_v56, 3  ;;  %v21122_v15 = vrot.slane %v17165_v36, 2  ;;  %v21123_v56 = vld [vmem:[#allocation144_spill] sm:$0xff] }
 0x3e4   : > { %21119 = vst [vmem:[#allocation268_spill] sm:$0xff] %v17283_v4  ;;  %v5360_v39 = vmax.f32 %v5358_v41, %v5359_v38  ;;  %v17290_v16 = vpop.f32.mrf.mxu0  ;;  %v5355_v58 = vmax.f32 %v5353_v22, %v5354_v59  ;;  %v7929_v46 = vsel %vm7770_vm2, %v7928_v20, %v7927_v54  ;;  %v5347_v61 = vrot.slane %v5346_v29, 1  ;;  %v21124_v22 = vld [vmem:[#allocation272_spill] sm:$0xff]  ;;  %v8388_v59 = vpop.f32.mrf.mxu1 }
 0x3e5   : > { %v7919_v48 = vsel %vm7776_vm4, %v21121_v50, %v7917_v25  ;;  %v5368_v11 = vrot.slane %v5367_v63, 1  ;;  %v7931_v34 = vsel %vm7773_vm3, %v7930_v23, %v7929_v46  ;;  %v7936_v42 = vrot.slane %v7602_v62, 1 }
 0x3e6   : > { %v7921_v0 = vsel %vm7779_vm5, %v21122_v15, %v7919_v48  ;;  %v5361_v47 = vrot.slane %v5360_v39, 1  ;;  %v17297_v41 = vpop.f32.mrf.mxu0  ;;  %v6554_v25 = vadd.f32 %v16781_v3, %v5355_v58  ;;  %v7933_v49 = vsel %vm7776_vm4, %v7932_v32, %v7931_v34 }
 0x3e7   : > { %v5377_v21 = vmax.f32 %v21124_v22, %v21123_v56  ;;  %v7604_v36 = vunpack.c.l.b16 %v7064_v6  ;;  %v7063_v38 = vpack.c.bf16 %v17283_v4, %v17283_v4  ;;  %v5348_v20 = vmax.f32 %v5346_v29, %v5347_v61  ;;  %v17308_v46 = vpop.eup %13211 }
 0x3e8   : > { %v7935_v54 = vsel %vm7779_vm5, %v7934_v19, %v7933_v49  ;;  %v17306_v50 = vpop.f32.mrf.mxu0  ;;  %21125 = vst [vmem:[#allocation144_spill] sm:$0xff] %v17308_v46  ;;  %v17311_v62 = vadd.f32 %v8384_v33, %v17066_v51  ;;  %v21127_v3 = vrot.slane %v17134_v18, 1  ;;  %v17317_v32 = vmax.f32 %v6554_v25, 0.0  ;;  %v21130_v49 = vld [vmem:[#allocation136_spill] sm:$0xff] }
 0x3e9   : > { %v7937_v6 = vsel %vm7782_vm6, %v7936_v42, %v7935_v54  ;;  %v5378_v48 = vrot.slane %v5377_v21, 4  ;;  %v5369_v61 = vmax.f32 %v5367_v63, %v5368_v11  ;;  %v5362_v29 = vmax.f32 %v5360_v39, %v5361_v47  ;;  %v21131_v18 = vld [vmem:[#allocation180_spill] sm:$0xff]  ;;  %v17331_v11 = vld [vmem:[#allocation7] ss:$0 sm:$0xff]  ;;  %v8390_v39 = vpop.f32.mrf.mxu1 }
 0x3ea   : > { %21126 = vst [vmem:[#allocation272_spill] sm:$0xff] %v17311_v62  ;;  %v7923_v23 = vsel %vm7782_vm6, %v21127_v3, %v7921_v0  ;;  %21128 = vst [vmem:[#allocation305_spill] sm:$0xff] %v17317_v32  ;;  %v17319_v58 = vpop.f32.mrf.mxu0  ;;  %v17322_v15 = vsub.f32 1.0, %v17221_v9  ;;  %v8387_v33 = vadd.f32 %v8386_v37, %v17049_v43  ;;  %v5370_v56 = vmax.f32 %v21131_v18, %v21130_v49 }
 0x3eb   : > { %v8223_v19 = vpack.c.b16 %v7937_v6, %v7923_v23  ;;  %v5379_v34 = vmax.f32 %v5377_v21, %v5378_v48  ;;  %v21132_v0 = vmax.f32 %v17100_v1, 0.0  ;;  %v7938_v25 = vrot.slane %v7604_v36, 7 }
 0x3ec   : > { %21129 = vst [vmem:[#allocation306_spill] sm:$0xff] %v17322_v15  ;;  %v7603_v22 = vunpack.c.l.b16 %v7063_v38  ;;  %v6553_v63 = vadd.f32 %v17331_v11, %v5348_v20  ;;  %v17334_v9 = vpop.f32.mrf.mxu0  ;;  %v17336_v47 = vsub.f32 1.0, %v13208_v13  ;;  %v5371_v54 = vrot.slane %v5370_v56, 4 }
 0x3ed   : > { %v17329_v42 = vmul.f32 %v13208_v13, %v21132_v0  ;;  %8413 = vmatmul.mubr.bf16.gmra.mxu1 %v8223_v19  ;;  %v5380_v21 = vrot.slane %v5379_v34, 2  ;;  %v17341_v1 = vsub.f32 1.0, %v17285_v24  ;;  %v7066_v36 = vpack.c.bf16 %v17317_v32, %v17317_v32  ;;  %v21138_v0 = vld [vmem:[#allocation86_spill] sm:$0xff] }
 0x3ee   : > { %21134 = vst [vmem:[#allocation180_spill] sm:$0xff] %v17336_v47  ;;  %8422 = vmatprep.mubr.bf16.mxu1 %v20940_v45  ;;  %v6556_v38 = vadd.f32 %v17331_v11, %v5369_v61  ;;  %v6555_v20 = vadd.f32 %v17331_v11, %v5362_v29  ;;  %v17347_v3 = vpop.f32.mrf.mxu0  ;;  %v11770_v23 = vmul.f32 -1.442695, %v8387_v33  ;;  %v5372_v6 = vmax.f32 %v5370_v56, %v5371_v54  ;;  %v21139_v33 = vld [vmem:[#allocation186_spill] sm:$0xff] }
 0x3ef   : > { %21133 = vst [vmem:[#allocation136_spill] sm:$0xff] %v17329_v42  ;;  %21135 = vst [vmem:[#allocation307_spill] sm:$0xff] %v17341_v1  ;;  %v5381_v13 = vmax.f32 %v5379_v34, %v5380_v21  ;;  %v8391_v48 = vadd.f32 %v8390_v39, %v17049_v43  ;;  %v17351_v19 = vsub.f32 1.0, %v17308_v46  ;;  %v17354_v49 = vsel %vm7764_vm0, %v7938_v25, %v7603_v22  ;;  %v21163_v47 = vld [vmem:[#allocation242_spill] sm:$0xff] }
 0x3f0   : > { %v17356_v18 = vmax.f32 %v6553_v63, 0.0  ;;  %v5391_v61 = vmax.f32 %v21138_v0, %v16886_v60  ;;  %v17360_v37 = vpop.f32.mrf.mxu0  ;;  %v5373_v4 = vrot.slane %v5372_v6, 2  ;;  %v5384_v56 = vmax.f32 %v21139_v33, %v16888_v17 }
 0x3f1   : > { %21136 = vst [vmem:[#allocation308_spill] sm:$0xff] %v17351_v19  ;;  %v5382_v29 = vrot.slane %v5381_v13, 1  ;;  %v11771_v34 = vmul.f32 -1.442695, %v8391_v48  ;;  %v17364_v39 = vmax.f32 %v6556_v38, 0.0  ;;  %v17366_v21 = vmax.f32 %v6555_v20, 0.0 }
 0x3f2   : > { %21137 = vst [vmem:[#allocation309_spill] sm:$0xff] %v17356_v18  ;;  %v17369_v25 = vadd.f32 %v8388_v59, %v17066_v51  ;;  %v5392_v22 = vrot.slane %v5391_v61, 4  ;;  %v17371_v63 = vpop.f32.mrf.mxu0  ;;  %v17373_v54 = vunpack.c.l.b16 %v7066_v36  ;;  %13213 = vpow2.f32 %v11770_v23 }
 0x3f3   : > { %21140 = vst [vmem:[#allocation86_spill] sm:$0xff] %v17364_v39  ;;  %21141 = vst [vmem:[#allocation186_spill] sm:$0xff] %v17366_v21  ;;  %v5383_v60 = vmax.f32 %v5381_v13, %v5382_v29  ;;  %v5385_v0 = vrot.slane %v5384_v56, 4  ;;  %v7065_v48 = vpack.c.bf16 %v17356_v18, %v17356_v18  ;;  %v5405_v17 = vmax.f32 %v16895_v5, %v16925_v31 }
 0x3f4   : > { %21142 = vst [vmem:[#allocation310_spill] sm:$0xff] %v17369_v25  ;;  %v5393_v32 = vmax.f32 %v5391_v61, %v5392_v22  ;;  %v5398_v38 = vmax.f32 %v16906_v40, %v16942_v57  ;;  %v17381_v59 = vpop.f32.mrf.mxu0  ;;  %v5374_v20 = vmax.f32 %v5372_v6, %v5373_v4  ;;  %13215 = vpow2.f32 %v11771_v34 }
 0x3f5   : > { %v5386_v33 = vmax.f32 %v5384_v56, %v5385_v0  ;;  %v5419_v36 = vmax.f32 %v16957_v27, %v17003_v10  ;;  %v5406_v23 = vrot.slane %v5405_v17, 4  ;;  %v5412_v61 = vmax.f32 %v16980_v53, %v17021_v2 }
 0x3f6   : > { %v5394_v13 = vrot.slane %v5393_v32, 2  ;;  %v5399_v29 = vrot.slane %v5398_v38, 4  ;;  %v17387_v22 = vpop.f32.mrf.mxu0  ;;  %v7068_v5 = vpack.c.bf16 %v17364_v39, %v17364_v39  ;;  %v6558_v40 = vadd.f32 %v17331_v11, %v5383_v60 }
 0x3f7   : > { %v5387_v31 = vrot.slane %v5386_v33, 2  ;;  %v5420_v57 = vrot.slane %v5419_v36, 4  ;;  %v5407_v6 = vmax.f32 %v5405_v17, %v5406_v23  ;;  %v5413_v56 = vrot.slane %v5412_v61, 4 }
 0x3f8   : > { %v5395_v4 = vmax.f32 %v5393_v32, %v5394_v13  ;;  %v5400_v34 = vmax.f32 %v5398_v38, %v5399_v29  ;;  %v17392_v27 = vpop.f32.mrf.mxu0  ;;  %v7067_v10 = vpack.c.bf16 %v17366_v21, %v17366_v21  ;;  %v5375_v0 = vrot.slane %v5374_v20, 1 }
 0x3f9   : > { %v5388_v53 = vmax.f32 %v5386_v33, %v5387_v31  ;;  %v5421_v2 = vmax.f32 %v5419_v36, %v5420_v57  ;;  %v5408_v39 = vrot.slane %v5407_v6, 2  ;;  %v7605_v42 = vunpack.c.l.b16 %v7065_v48 }
 0x3fa   : > { %v5396_v62 = vrot.slane %v5395_v4, 1  ;;  %v5401_v46 = vrot.slane %v5400_v34, 2  ;;  %v17397_v60 = vpop.f32.mrf.mxu0  ;;  %v17399_v32 = vmax.f32 %v6558_v40, 0.0  ;;  %v5414_v38 = vmax.f32 %v5412_v61, %v5413_v56 }
 0x3fb   : > { %v5389_v17 = vrot.slane %v5388_v53, 1  ;;  %v5409_v23 = vmax.f32 %v5407_v6, %v5408_v39  ;;  %v5422_v19 = vrot.slane %v5421_v2, 2  ;;  %v17403_v33 = vunpack.c.l.b16 %v7068_v5 }
 0x3fc   : > { %21143 = vst [vmem:[#allocation311_spill] sm:$0xff] %v17399_v32  ;;  %v5397_v13 = vmax.f32 %v5395_v4, %v5396_v62  ;;  %v5402_v29 = vmax.f32 %v5400_v34, %v5401_v46  ;;  %v17401_v21 = vpop.f32.mrf.mxu0  ;;  %v17405_v36 = vunpack.c.l.b16 %v7067_v10  ;;  %v5376_v31 = vmax.f32 %v5374_v20, %v5375_v0 }
 0x3fd   : > { %v5390_v57 = vmax.f32 %v5388_v53, %v5389_v17  ;;  %v5410_v25 = vrot.slane %v5409_v23, 1  ;;  %v5423_v40 = vmax.f32 %v5421_v2, %v5422_v19  ;;  %v7070_v62 = vpack.c.bf16 %v17399_v32, %v17399_v32  ;;  %v21160_v32 = vld [vmem:[#allocation298_spill] sm:$0xff] }
 0x3fe   : > { %v6560_v18 = vadd.f32 %v17331_v11, %v5397_v13  ;;  %v5403_v48 = vrot.slane %v5402_v29, 1  ;;  %v17408_v24 = vpop.f32.mrf.mxu0  ;;  %v5415_v39 = vrot.slane %v5414_v38, 2  ;;  %v5433_v61 = vmax.f32 %v17030_v30, %v17043_v7 }
 0x3ff   : > { %21144 = vst [vmem:[#allocation312_spill] sm:$0xff] %v17408_v24  ;;  %v6559_v46 = vadd.f32 %v17331_v11, %v5390_v57  ;;  %v13214_v5 = vpop.eup %13213  ;;  %v5411_v20 = vmax.f32 %v5409_v23, %v5410_v25  ;;  %v5424_v34 = vrot.slane %v5423_v40, 1  ;;  %v7940_v10 = vrot.slane %v7605_v42, 6 }
 0x400   : > { %v17415_v4 = vmax.f32 %v6560_v18, 0.0  ;;  %v5404_v6 = vmax.f32 %v5402_v29, %v5403_v48  ;;  %v17417_v56 = vpop.f32.mrf.mxu0  ;;  %v5416_v53 = vmax.f32 %v5414_v38, %v5415_v39  ;;  %v6557_v17 = vadd.f32 %v17331_v11, %v5376_v31 }
 0x401   : > { %v13216_v2 = vpop.eup %13215  ;;  %v17424_v7 = vmax.f32 %v6559_v46, 0.0  ;;  %v6562_v18 = vadd.f32 %v17331_v11, %v5411_v20  ;;  %v5434_v29 = vrot.slane %v5433_v61, 4  ;;  %v17431_v57 = vunpack.c.l.b16 %v7070_v62 }
 0x402   : > { %21145 = vst [vmem:[#allocation313_spill] sm:$0xff] %v17415_v4  ;;  %v7072_v30 = vpack.c.bf16 %v17415_v4, %v17415_v4  ;;  %v17427_v25 = vpop.f32.mrf.mxu0  ;;  %v6561_v23 = vadd.f32 %v17331_v11, %v5404_v6  ;;  %v5417_v42 = vrot.slane %v5416_v53, 1  ;;  %v8655_v38 = vadd.f32 1.0, %v13214_v5 }
 0x403   : > { %21146 = vst [vmem:[#allocation314_spill] sm:$0xff] %v17424_v7  ;;  %21147 = vst [vmem:[#allocation315_spill] sm:$0xff] %v17427_v25  ;;  %v17433_v48 = vmax.f32 %v6562_v18, 0.0  ;;  %v5425_v31 = vmax.f32 %v5423_v40, %v5424_v34  ;;  %v17439_v46 = vsel %vm7767_vm1, %v7940_v10, %v17354_v49  ;;  %v5435_v0 = vmax.f32 %v5433_v61, %v5434_v29  ;;  %v21155_v29 = vld [vmem:[#allocation287_spill] sm:$0xff] }
 0x404   : > { %v17435_v39 = vpop.f32.mrf.mxu0  ;;  %v5418_v20 = vmax.f32 %v5416_v53, %v5417_v42  ;;  %v5426_v13 = vmax.f32 %v17037_v12, %v17052_v52  ;;  %v17443_v6 = vmax.f32 %v6557_v17, 0.0  ;;  %v8656_v19 = vadd.f32 1.0, %v13216_v2 }
 0x405   : > { %21148 = vst [vmem:[#allocation316_spill] sm:$0xff] %v17433_v48  ;;  %21149 = vst [vmem:[#allocation317_spill] sm:$0xff] %v17435_v39  ;;  %v17445_v62 = vunpack.c.l.b16 %v7072_v30  ;;  %v7071_v5 = vpack.c.bf16 %v17424_v7, %v17424_v7  ;;  %v17451_v34 = vmax.f32 %v6561_v23, 0.0  ;;  %v5436_v18 = vrot.slane %v5435_v0, 2 }
 0x406   : > { %21150 = vst [vmem:[#allocation318_spill] sm:$0xff] %v17443_v6  ;;  %v17449_v40 = vpop.f32.mrf.mxu0  ;;  %v5427_v49 = vrot.slane %v5426_v13, 4  ;;  %v5447_v61 = vmax.f32 %v17058_v14, %v17076_v28  ;;  %13217 = vrcp.f32 %v8655_v38  ;;  %v7074_v12 = vpack.c.bf16 %v17433_v48, %v17433_v48  ;;  %v21154_v28 = vld [vmem:[#allocation291_spill] sm:$0xff] }
 0x407   : > { %21151 = vst [vmem:[#allocation319_spill] sm:$0xff] %v17449_v40  ;;  %21152 = vst [vmem:[#allocation320_spill] sm:$0xff] %v17451_v34  ;;  %v6564_v52 = vadd.f32 %v17331_v11, %v5425_v31  ;;  %v6563_v2 = vadd.f32 %v17331_v11, %v5418_v20  ;;  %v5437_v17 = vmax.f32 %v5435_v0, %v5436_v18  ;;  %13219 = vrcp.f32 %v8656_v19  ;;  %v21161_v48 = vld [vmem:[#allocation295_spill] sm:$0xff]  ;;  %v21165_v40 = vld [vmem:[#allocation246_spill] sm:$0xff] }
 0x408   : > { %v17459_v53 = vpop.f32.mrf.mxu0  ;;  %v5428_v30 = vmax.f32 %v5426_v13, %v5427_v49  ;;  %v5448_v23 = vrot.slane %v5447_v61, 4  ;;  %v17464_v14 = vunpack.c.l.b16 %v7071_v5  ;;  %v5440_v38 = vmax.f32 %v21155_v29, %v21154_v28 }
 0x409   : > { %21153 = vst [vmem:[#allocation321_spill] sm:$0xff] %v17459_v53  ;;  %v7073_v7 = vpack.c.bf16 %v17451_v34, %v17451_v34  ;;  %v5438_v20 = vrot.slane %v5437_v17, 1  ;;  %v17473_v13 = vunpack.c.l.b16 %v7074_v12  ;;  %v17475_v18 = vmax.f32 %v6564_v52, 0.0  ;;  %v21162_v34 = vld [vmem:[#allocation160_spill] sm:$0xff]  ;;  %v21164_v12 = vld [vmem:[#allocation203_spill] sm:$0xff] }
 0x40a   : > { %v17468_v10 = vpop.f32.mrf.mxu0  ;;  %v5429_v0 = vrot.slane %v5428_v30, 2  ;;  %v5449_v49 = vmax.f32 %v5447_v61, %v5448_v23  ;;  %v5441_v19 = vrot.slane %v5440_v38, 4  ;;  %v17479_v42 = vmax.f32 %v6563_v2, 0.0 }
 0x40b   : > { %21156 = vst [vmem:[#allocation291_spill] sm:$0xff] %v17468_v10  ;;  %21157 = vst [vmem:[#allocation287_spill] sm:$0xff] %v17475_v18  ;;  %v5439_v28 = vmax.f32 %v5437_v17, %v5438_v20  ;;  %v5461_v31 = vmax.f32 %v21161_v48, %v21160_v32  ;;  %v5454_v15 = vmax.f32 %v21163_v47, %v21162_v34  ;;  %v7613_v61 = vunpack.c.l.b16 %v7073_v7 }
 0x40c   : > { %v17477_v5 = vpop.f32.mrf.mxu0  ;;  %21159 = vst [vmem:[#allocation323_spill] sm:$0xff] %v17479_v42  ;;  %v5430_v29 = vmax.f32 %v5428_v30, %v5429_v0  ;;  %v5450_v4 = vrot.slane %v5449_v49, 2  ;;  %v5442_v1 = vmax.f32 %v5440_v38, %v5441_v19  ;;  %v5475_v52 = vmax.f32 %v21165_v40, %v21164_v12 }
 0x40d   : > { %21158 = vst [vmem:[#allocation322_spill] sm:$0xff] %v17477_v5  ;;  %v6566_v23 = vadd.f32 %v17331_v11, %v5439_v28  ;;  %v5462_v5 = vrot.slane %v5461_v31, 4  ;;  %v5455_v20 = vrot.slane %v5454_v15, 4  ;;  %v7076_v48 = vpack.c.bf16 %v17475_v18, %v17475_v18 }
 0x40e   : > { %v17487_v10 = vpop.f32.mrf.mxu0  ;;  %v5431_v2 = vrot.slane %v5430_v29, 1  ;;  %v5451_v17 = vmax.f32 %v5449_v49, %v5450_v4  ;;  %v5443_v30 = vrot.slane %v5442_v1, 2  ;;  %v5476_v0 = vrot.slane %v5475_v52, 4 }
 0x40f   : > { %21166 = vst [vmem:[#allocation298_spill] sm:$0xff] %v17487_v10  ;;  %v7075_v47 = vpack.c.bf16 %v17479_v42, %v17479_v42  ;;  %v5463_v34 = vmax.f32 %v5461_v31, %v5462_v5  ;;  %v5456_v19 = vmax.f32 %v5454_v15, %v5455_v20  ;;  %v17496_v12 = vmax.f32 %v6566_v23, 0.0  ;;  %v21169_v10 = vld [vmem:[#allocation158_spill] sm:$0xff] }
 0x410   : > { %v17490_v32 = vpop.f32.mrf.mxu0  ;;  %v5432_v40 = vmax.f32 %v5430_v29, %v5431_v2  ;;  %v5452_v38 = vrot.slane %v5451_v17, 1  ;;  %v5444_v7 = vmax.f32 %v5442_v1, %v5443_v30  ;;  %v5477_v28 = vmax.f32 %v5475_v52, %v5476_v0 }
 0x411   : > { %21167 = vst [vmem:[#allocation295_spill] sm:$0xff] %v17490_v32  ;;  %21168 = vst [vmem:[#allocation160_spill] sm:$0xff] %v17496_v12  ;;  %v5464_v49 = vrot.slane %v5463_v34, 2  ;;  %v5468_v32 = vmax.f32 %v21169_v10, %v17177_v35  ;;  %v5457_v18 = vrot.slane %v5456_v19, 2  ;;  %v7954_v31 = vrot.slane %v7613_v61, 6  ;;  %v8394_v61 = vpop.f32.mrf.mxu1 }
 0x412   : > { %v6565_v4 = vadd.f32 %v17331_v11, %v5432_v40  ;;  %v5453_v39 = vmax.f32 %v5451_v17, %v5452_v38  ;;  %v5445_v53 = vrot.slane %v5444_v7, 1  ;;  %v5478_v24 = vrot.slane %v5477_v28, 2  ;;  %v17501_v25 = vpop.f32.mrf.mxu0 }
 0x413   : > { %v17503_v29 = vpop.eup %13217  ;;  %v5465_v15 = vmax.f32 %v5463_v34, %v5464_v49  ;;  %v5469_v5 = vrot.slane %v5468_v32, 4  ;;  %v5458_v2 = vmax.f32 %v5456_v19, %v5457_v18  ;;  %v7615_v10 = vunpack.c.l.b16 %v7075_v47 }
 0x414   : > { %21170 = vst [vmem:[#allocation242_spill] sm:$0xff] %v17503_v29  ;;  %v17505_v1 = vmax.f32 %v6565_v4, 0.0  ;;  %v6568_v52 = vadd.f32 %v17331_v11, %v5453_v39  ;;  %v5446_v23 = vmax.f32 %v5444_v7, %v5445_v53  ;;  %v5479_v30 = vmax.f32 %v5477_v28, %v5478_v24  ;;  %v17508_v20 = vpop.f32.mrf.mxu0  ;;  %v17510_v35 = vpop.eup %13219 }
 0x415   : > { %21172 = vst [vmem:[#allocation246_spill] sm:$0xff] %v17508_v20  ;;  %21173 = vst [vmem:[#allocation158_spill] sm:$0xff] %v17510_v35  ;;  %v5466_v0 = vrot.slane %v5465_v15, 1  ;;  %v5470_v40 = vmax.f32 %v5468_v32, %v5469_v5  ;;  %v7078_v34 = vpack.c.bf16 %v17496_v12, %v17496_v12  ;;  %v5459_v39 = vrot.slane %v5458_v2, 1 }
 0x416   : > { %21171 = vst [vmem:[#allocation203_spill] sm:$0xff] %v17505_v1  ;;  %v7077_v17 = vpack.c.bf16 %v17505_v1, %v17505_v1  ;;  %v17516_v38 = vmax.f32 %v6568_v52, 0.0  ;;  %v5480_v53 = vrot.slane %v5479_v30, 1  ;;  %v17518_v18 = vpop.f32.mrf.mxu0  ;;  %v21176_v24 = vpack.c.bf16 %v17443_v6, %v17443_v6 }
 0x417   : > { %21175 = vst [vmem:[#allocation325_spill] sm:$0xff] %v17518_v18  ;;  %v6567_v19 = vadd.f32 %v17331_v11, %v5446_v23  ;;  %v5471_v28 = vrot.slane %v5470_v40, 2  ;;  %v21177_v32 = vrot.slane %v17445_v62, 7  ;;  %v5467_v49 = vmax.f32 %v5465_v15, %v5466_v0 }
 0x418   : > { %21174 = vst [vmem:[#allocation324_spill] sm:$0xff] %v17516_v38  ;;  %v7609_v7 = vunpack.c.l.b16 %v21176_v24  ;;  %v7617_v47 = vunpack.c.l.b16 %v7077_v17  ;;  %v5460_v5 = vmax.f32 %v5458_v2, %v5459_v39  ;;  %v5481_v52 = vmax.f32 %v5479_v30, %v5480_v53  ;;  %v17528_v12 = vpop.f32.mrf.mxu0  ;;  %v8396_v24 = vpop.f32.mrf.mxu1 }
 0x419   : > { %v7953_v4 = vsel %vm7764_vm0, %v21177_v32, %v17464_v14  ;;  %v7616_v42 = vunpack.c.l.b16 %v7076_v48  ;;  %v7958_v18 = vrot.slane %v7615_v10, 4  ;;  %v5472_v6 = vmax.f32 %v5470_v40, %v5471_v28 }
 0x41a   : > { %v7955_v1 = vsel %vm7767_vm1, %v7954_v31, %v7953_v4  ;;  %v7956_v17 = vrot.slane %v17473_v13, 5  ;;  %v7618_v23 = vunpack.c.l.b16 %v7078_v34  ;;  %v7080_v20 = vpack.c.bf16 %v17516_v38, %v17516_v38  ;;  %v17535_v14 = vpop.f32.mrf.mxu0  ;;  %v17554_v28 = vpop.f32.mrf.mxu1 }
 0x41b   : > { %v6569_v62 = vadd.f32 %v17331_v11, %v5460_v5  ;;  %v7948_v15 = vrot.slane %v7609_v7, 2  ;;  %v7962_v2 = vrot.slane %v7617_v47, 2  ;;  %v17537_v30 = vmax.f32 %v6567_v19, 0.0 }
 0x41c   : > { %v5473_v0 = vrot.slane %v5472_v6, 1  ;;  %v6570_v48 = vadd.f32 %v17331_v11, %v5467_v49  ;;  %v6572_v31 = vadd.f32 %v17331_v11, %v5481_v52  ;;  %v21179_v13 = vrot.slane %v17373_v54, 5 }
 0x41d   : > { %21178 = vst [vmem:[#allocation326_spill] sm:$0xff] %v17537_v30  ;;  %v7957_v40 = vsel %vm7770_vm2, %v7956_v17, %v7955_v1  ;;  %v7960_v39 = vrot.slane %v7616_v42, 3  ;;  %v17548_v53 = vmax.f32 %v6569_v62, 0.0  ;;  %v21181_v7 = vrot.slane %v17405_v36, 4 }
 0x41e   : > { %v7943_v10 = vsel %vm7770_vm2, %v21179_v13, %v17439_v46  ;;  %v7959_v19 = vsel %vm7773_vm3, %v7958_v18, %v7957_v40  ;;  %v17557_v32 = vsub.f32 1.0, %v17503_v29  ;;  %v7964_v54 = vrot.slane %v7618_v23, 1 }
 0x41f   : > { %v17546_v34 = vpop.f32.mrf.mxu0  ;;  %21180 = vst [vmem:[#allocation327_spill] sm:$0xff] %v17548_v53  ;;  %v7945_v47 = vsel %vm7773_vm3, %v21181_v7, %v7943_v10  ;;  %v17559_v46 = vunpack.c.l.b16 %v7080_v20  ;;  %v21183_v1 = vrot.slane %v17403_v33, 3  ;;  %v7079_v36 = vpack.c.bf16 %v17537_v30, %v17537_v30 }
 0x420   : > { %21182 = vst [vmem:[#allocation328_spill] sm:$0xff] %v17557_v32  ;;  %v5474_v49 = vmax.f32 %v5472_v6, %v5473_v0  ;;  %v7961_v5 = vsel %vm7776_vm4, %v7960_v39, %v7959_v19  ;;  %v17571_v52 = vsub.f32 1.0, %v17510_v35  ;;  %v17573_v17 = vmax.f32 %v6570_v48, 0.0  ;;  %v8400_v48 = vpop.f32.mrf.mxu1  ;;  %v21189_v19 = vld [vmem:[#allocation115_spill] sm:$0xff] }
 0x421   : > { %v7947_v42 = vsel %vm7776_vm4, %v21183_v1, %v7945_v47  ;;  %v17564_v4 = vpop.f32.mrf.mxu0  ;;  %v17575_v20 = vmax.f32 %v6572_v31, 0.0  ;;  %v7963_v33 = vsel %vm7779_vm5, %v7962_v2, %v7961_v5  ;;  %v7081_v62 = vpack.c.bf16 %v17548_v53, %v17548_v53  ;;  %v21190_v1 = vld [vmem:[#allocation218_spill] sm:$0xff]  ;;  %v21196_v31 = vld [vmem:[#allocation259_spill] sm:$0xff] }
 0x422   : > { %v7949_v18 = vsel %vm7779_vm5, %v7948_v15, %v7947_v42  ;;  %21184 = vst [vmem:[#allocation329_spill] sm:$0xff] %v17571_v52  ;;  %21185 = vst [vmem:[#allocation330_spill] sm:$0xff] %v17573_v17  ;;  %v21187_v6 = vrot.slane %v17431_v57, 1  ;;  %v7965_v0 = vsel %vm7782_vm6, %v7964_v54, %v7963_v33  ;;  %v5489_v13 = vmax.f32 %v17181_v26, %v17199_v44  ;;  %v21191_v42 = vld [vmem:[#allocation256_spill] sm:$0xff] }
 0x423   : > { %21186 = vst [vmem:[#allocation331_spill] sm:$0xff] %v17575_v20  ;;  %v17578_v23 = vpop.f32.mrf.mxu0  ;;  %v17590_v10 = vadd.f32 %v8394_v61, %v17066_v51  ;;  %v8397_v40 = vadd.f32 %v8396_v24, %v17049_v43  ;;  %v17595_v7 = vunpack.c.l.b16 %v7079_v36  ;;  %v6571_v57 = vadd.f32 %v17331_v11, %v5474_v49  ;;  %v21197_v36 = vld [vmem:[#allocation81_spill] sm:$0xff] }
 0x424   : > { %v7951_v15 = vsel %vm7782_vm6, %v21187_v6, %v7949_v18  ;;  %v5490_v47 = vrot.slane %v5489_v13, 4  ;;  %v5482_v54 = vmax.f32 %v21189_v19, %v17207_v55  ;;  %v8401_v61 = vadd.f32 %v8400_v48, %v17049_v43  ;;  %v21195_v19 = vld [vmem:[#allocation174_spill] sm:$0xff] }
 0x425   : > { %21188 = vst [vmem:[#allocation332_spill] sm:$0xff] %v17590_v10  ;;  %v8224_v2 = vpack.c.b16 %v7965_v0, %v7951_v15  ;;  %v17593_v39 = vpop.f32.mrf.mxu0  ;;  %v11772_v44 = vmul.f32 -1.442695, %v8397_v40  ;;  %v5503_v24 = vmax.f32 %v21191_v42, %v21190_v1  ;;  %v17605_v18 = vunpack.c.l.b16 %v7081_v62  ;;  %v21192_v15 = vld [vmem:[#allocation304_spill] sm:$0xff] }
 0x426   : > { %v5491_v49 = vmax.f32 %v5489_v13, %v5490_v47  ;;  %v5483_v5 = vrot.slane %v5482_v54, 4  ;;  %v11773_v33 = vmul.f32 -1.442695, %v8401_v61  ;;  %v21193_v0 = vld [vmem:[#allocation300_spill] sm:$0xff]  ;;  %v5517_v1 = vmax.f32 %v21195_v19, %v17273_v8 }
 0x427   : > { %8423 = vmatmul.mubr.bf16.gmra.mxu1 %v8224_v2  ;;  %v17610_v55 = vpop.f32.mrf.mxu0  ;;  %13221 = vpow2.f32 %v11772_v44  ;;  %v5504_v6 = vrot.slane %v5503_v24, 4  ;;  %v5496_v48 = vmax.f32 %v21193_v0, %v21192_v15  ;;  %v17614_v2 = vmax.f32 %v6571_v57, 0.0 }
 0x428   : > { %8432 = vmatprep.mubr.bf16.mxu1 %v20940_v45  ;;  %v5492_v40 = vrot.slane %v5491_v49, 2  ;;  %v5484_v62 = vmax.f32 %v5482_v54, %v5483_v5  ;;  %13223 = vpow2.f32 %v11773_v33  ;;  %v5510_v44 = vmax.f32 %v21197_v36, %v21196_v31 }
 0x429   : > { %21194 = vst [vmem:[#allocation115_spill] sm:$0xff] %v17614_v2  ;;  %v17618_v42 = vpop.f32.mrf.mxu0  ;;  %v5505_v13 = vmax.f32 %v5503_v24, %v5504_v6  ;;  %v5497_v47 = vrot.slane %v5496_v48, 4  ;;  %v5518_v30 = vrot.slane %v5517_v1, 4  ;;  %v5531_v57 = vmax.f32 %v17290_v16, %v17306_v50 }
 0x42a   : > { %v5493_v61 = vmax.f32 %v5491_v49, %v5492_v40  ;;  %v5485_v26 = vrot.slane %v5484_v62, 2  ;;  %v5511_v0 = vrot.slane %v5510_v44, 4  ;;  %v5524_v8 = vmax.f32 %v17297_v41, %v17319_v58 }
 0x42b   : > { %v17624_v15 = vpop.f32.mrf.mxu0  ;;  %v5506_v54 = vrot.slane %v5505_v13, 2  ;;  %v5498_v5 = vmax.f32 %v5496_v48, %v5497_v47  ;;  %v5519_v6 = vmax.f32 %v5517_v1, %v5518_v30  ;;  %v5532_v19 = vrot.slane %v5531_v57, 4 }
 0x42c   : > { %v5494_v33 = vrot.slane %v5493_v61, 1  ;;  %v5486_v24 = vmax.f32 %v5484_v62, %v5485_v26  ;;  %v5512_v49 = vmax.f32 %v5510_v44, %v5511_v0  ;;  %v5525_v40 = vrot.slane %v5524_v8, 4 }
 0x42d   : > { %v17628_v53 = vpop.f32.mrf.mxu0  ;;  %v5507_v31 = vmax.f32 %v5505_v13, %v5506_v54  ;;  %v5499_v36 = vrot.slane %v5498_v5, 2  ;;  %v5520_v50 = vrot.slane %v5519_v6, 2  ;;  %v5533_v52 = vmax.f32 %v5531_v57, %v5532_v19 }
 0x42e   : > { %v5495_v38 = vmax.f32 %v5493_v61, %v5494_v33  ;;  %v5487_v16 = vrot.slane %v5486_v24, 1  ;;  %v5513_v29 = vrot.slane %v5512_v49, 2  ;;  %v5526_v41 = vmax.f32 %v5524_v8, %v5525_v40 }
 0x42f   : > { %v5508_v48 = vrot.slane %v5507_v31, 1  ;;  %v5500_v47 = vmax.f32 %v5498_v5, %v5499_v36  ;;  %v5521_v26 = vmax.f32 %v5519_v6, %v5520_v50  ;;  %v5534_v62 = vrot.slane %v5533_v52, 2 }
 0x430   : > { %v17630_v35 = vpop.f32.mrf.mxu0  ;;  %v6574_v58 = vadd.f32 %v17331_v11, %v5495_v38  ;;  %v5488_v30 = vmax.f32 %v5486_v24, %v5487_v16  ;;  %v7083_v13 = vpack.c.bf16 %v17614_v2, %v17614_v2  ;;  %v5514_v54 = vmax.f32 %v5512_v49, %v5513_v29 }
 0x431   : > { %v5509_v44 = vmax.f32 %v5507_v31, %v5508_v48  ;;  %v5501_v61 = vrot.slane %v5500_v47, 1  ;;  %v5522_v5 = vrot.slane %v5521_v26, 1  ;;  %v5527_v33 = vrot.slane %v5526_v41, 2 }
 0x432   : > { %v17633_v1 = vpop.f32.mrf.mxu0  ;;  %v17637_v57 = vmax.f32 %v6574_v58, 0.0  ;;  %v6573_v0 = vadd.f32 %v17331_v11, %v5488_v30  ;;  %v5515_v6 = vrot.slane %v5514_v54, 1  ;;  %v5535_v19 = vmax.f32 %v5533_v52, %v5534_v62 }
 0x433   : > { %v6576_v38 = vadd.f32 %v17331_v11, %v5509_v44  ;;  %v5502_v24 = vmax.f32 %v5500_v47, %v5501_v61  ;;  %v21199_v40 = vpack.c.bf16 %v17573_v17, %v17573_v17  ;;  %v21200_v29 = vpack.c.bf16 %v17575_v20, %v17575_v20 }
 0x434   : > { %21198 = vst [vmem:[#allocation218_spill] sm:$0xff] %v17637_v57  ;;  %v17640_v8 = vpop.f32.mrf.mxu0  ;;  %v13222_v36 = vpop.eup %13221  ;;  %v17653_v16 = vmax.f32 %v6573_v0, 0.0  ;;  %v5523_v50 = vmax.f32 %v5521_v26, %v5522_v5  ;;  %v7968_v47 = vrot.slane %v17605_v18, 6  ;;  %v7086_v52 = vpack.c.bf16 %v17637_v57, %v17637_v57 }
 0x435   : > { %v17646_v31 = vunpack.c.l.b16 %v21199_v40  ;;  %v17651_v49 = vunpack.c.l.b16 %v21200_v29  ;;  %v17662_v58 = vadd.f32 %v17554_v28, %v17066_v51  ;;  %v17664_v30 = vmax.f32 %v6576_v38, 0.0  ;;  %v13224_v62 = vpop.eup %13223 }
 0x436   : > { %21201 = vst [vmem:[#allocation256_spill] sm:$0xff] %v17653_v16  ;;  %v17655_v48 = vpop.f32.mrf.mxu0  ;;  %v17666_v44 = vunpack.c.l.b16 %v7083_v13  ;;  %v6575_v61 = vadd.f32 %v17331_v11, %v5502_v24  ;;  %v5516_v0 = vmax.f32 %v5514_v54, %v5515_v6  ;;  %v5528_v26 = vmax.f32 %v5526_v41, %v5527_v33 }
 0x437   : > { %21202 = vst [vmem:[#allocation304_spill] sm:$0xff] %v17662_v58  ;;  %21203 = vst [vmem:[#allocation300_spill] sm:$0xff] %v17664_v30  ;;  %v21204_v18 = vrot.slane %v17559_v46, 7  ;;  %v8657_v28 = vadd.f32 1.0, %v13222_v36  ;;  %v5536_v57 = vrot.slane %v5535_v19, 1  ;;  %v7085_v24 = vpack.c.bf16 %v17653_v16, %v17653_v16 }
 0x438   : > { %v6578_v41 = vadd.f32 %v17331_v11, %v5523_v50  ;;  %v17686_v46 = vunpack.c.l.b16 %v7086_v52  ;;  %v7088_v6 = vpack.c.bf16 %v17664_v30, %v17664_v30  ;;  %v6577_v29 = vadd.f32 %v17331_v11, %v5516_v0 }
 0x439   : > { %v17669_v5 = vpop.f32.mrf.mxu0  ;;  %v7967_v40 = vsel %vm7764_vm0, %v21204_v18, %v17595_v7  ;;  %v17692_v18 = vmax.f32 %v6575_v61, 0.0  ;;  %v5529_v13 = vrot.slane %v5528_v26, 1  ;;  %13225 = vrcp.f32 %v8657_v28 }
 0x43a   : > { %v17684_v33 = vsel %vm7767_vm1, %v7968_v47, %v7967_v40  ;;  %v17697_v38 = vadd.f32 1.0, %v13224_v62  ;;  %v5537_v47 = vmax.f32 %v5535_v19, %v5536_v57  ;;  %v5545_v52 = vmax.f32 %v17334_v9, %v17360_v37 }
 0x43b   : > { %v17681_v54 = vpop.f32.mrf.mxu0  ;;  %21205 = vst [vmem:[#allocation174_spill] sm:$0xff] %v17692_v18  ;;  %v17701_v40 = vunpack.c.l.b16 %v7085_v24  ;;  %v17703_v7 = vmax.f32 %v6578_v41, 0.0  ;;  %v5530_v16 = vmax.f32 %v5528_v26, %v5529_v13  ;;  %v5538_v61 = vmax.f32 %v17347_v3, %v17371_v63 }
 0x43c   : > { %v17710_v20 = vunpack.c.l.b16 %v7088_v6  ;;  %v5546_v62 = vrot.slane %v5545_v52, 4  ;;  %v5559_v57 = vmax.f32 %v17381_v59, %v17392_v27  ;;  %v7087_v9 = vpack.c.bf16 %v17692_v18, %v17692_v18 }
 0x43d   : > { %v17695_v50 = vpop.f32.mrf.mxu0  ;;  %21206 = vst [vmem:[#allocation259_spill] sm:$0xff] %v17703_v7  ;;  %v17716_v37 = vmax.f32 %v6577_v29, 0.0  ;;  %v6579_v19 = vadd.f32 %v17331_v11, %v5530_v16  ;;  %v5539_v26 = vrot.slane %v5538_v61, 4  ;;  %v6580_v3 = vadd.f32 %v17331_v11, %v5537_v47 }
 0x43e   : > { %v5547_v63 = vmax.f32 %v5545_v52, %v5546_v62  ;;  %v5560_v13 = vrot.slane %v5559_v57, 4  ;;  %v5552_v24 = vmax.f32 %v17387_v22, %v17397_v60  ;;  %v5573_v29 = vmax.f32 %v17401_v21, %v17417_v56  ;;  %v21212_v21 = vld [vmem:[#allocation315_spill] sm:$0xff]  ;;  %v21213_v56 = vld [vmem:[#allocation312_spill] sm:$0xff] }
 0x43f   : > { %v17707_v36 = vpop.f32.mrf.mxu0  ;;  %21207 = vst [vmem:[#allocation81_spill] sm:$0xff] %v17716_v37  ;;  %v5540_v27 = vmax.f32 %v5538_v61, %v5539_v26  ;;  %v7089_v62 = vpack.c.bf16 %v17716_v37, %v17716_v37  ;;  %v17734_v22 = vmax.f32 %v6579_v19, 0.0  ;;  %v5566_v2 = vmax.f32 %v21213_v56, %v21212_v21 }
 0x440   : > { %v5548_v0 = vrot.slane %v5547_v63, 2  ;;  %v5561_v47 = vmax.f32 %v5559_v57, %v5560_v13  ;;  %v5553_v52 = vrot.slane %v5552_v24, 4  ;;  %v5574_v41 = vrot.slane %v5573_v29, 4  ;;  %v21214_v57 = vld [vmem:[#allocation321_spill] sm:$0xff] }
 0x441   : > { %v17719_v28 = vpop.f32.mrf.mxu0  ;;  %21210 = vst [vmem:[#allocation335_spill] sm:$0xff] %v17734_v22  ;;  %v5541_v60 = vrot.slane %v5540_v27, 2  ;;  %v7627_v30 = vunpack.c.l.b16 %v7087_v9  ;;  %v21215_v13 = vld [vmem:[#allocation317_spill] sm:$0xff]  ;;  %v17744_v19 = vmax.f32 %v6580_v3, 0.0  ;;  %v7091_v9 = vpack.c.bf16 %v17734_v22, %v17734_v22 }
 0x442   : > { %21208 = vst [vmem:[#allocation333_spill] sm:$0xff] %v17719_v28  ;;  %v5549_v61 = vmax.f32 %v5547_v63, %v5548_v0  ;;  %v5562_v26 = vrot.slane %v5561_v47, 2  ;;  %v5554_v59 = vmax.f32 %v5552_v24, %v5553_v52  ;;  %v5575_v17 = vmax.f32 %v5573_v29, %v5574_v41 }
 0x443   : > { %v17729_v16 = vpop.f32.mrf.mxu0  ;;  %v5542_v6 = vmax.f32 %v5540_v27, %v5541_v60  ;;  %v5587_v58 = vmax.f32 %v21215_v13, %v21214_v57  ;;  %21217 = vst [vmem:[#allocation312_spill] sm:$0xff] %v17744_v19  ;;  %v7629_v28 = vunpack.c.l.b16 %v7089_v62  ;;  %v5567_v24 = vrot.slane %v5566_v2, 4 }
 0x444   : > { %21209 = vst [vmem:[#allocation334_spill] sm:$0xff] %v17729_v16  ;;  %v5550_v37 = vrot.slane %v5549_v61, 1  ;;  %v5563_v32 = vmax.f32 %v5561_v47, %v5562_v26  ;;  %v5555_v16 = vrot.slane %v5554_v59, 2  ;;  %v5576_v63 = vrot.slane %v5575_v17, 2 }
 0x445   : > { %v17736_v18 = vpop.f32.mrf.mxu0  ;;  %v5543_v0 = vrot.slane %v5542_v6, 1  ;;  %v5568_v56 = vmax.f32 %v5566_v2, %v5567_v24  ;;  %v5588_v57 = vrot.slane %v5587_v58, 4  ;;  %13227 = vrcp.f32 %v17697_v38 }
 0x446   : > { %21211 = vst [vmem:[#allocation336_spill] sm:$0xff] %v17736_v18  ;;  %v5551_v41 = vmax.f32 %v5549_v61, %v5550_v37  ;;  %v5564_v27 = vrot.slane %v5563_v32, 1  ;;  %v5556_v29 = vmax.f32 %v5554_v59, %v5555_v16  ;;  %v17750_v60 = vpop.eup %13225  ;;  %v5577_v3 = vmax.f32 %v5575_v17, %v5576_v63 }
 0x447   : > { %v17742_v10 = vpop.f32.mrf.mxu0  ;;  %21219 = vst [vmem:[#allocation317_spill] sm:$0xff] %v17750_v60  ;;  %v5544_v21 = vmax.f32 %v5542_v6, %v5543_v0  ;;  %v5569_v61 = vrot.slane %v5568_v56, 2  ;;  %v5589_v59 = vmax.f32 %v5587_v58, %v5588_v57 }
 0x448   : > { %21216 = vst [vmem:[#allocation315_spill] sm:$0xff] %v17742_v10  ;;  %v6582_v62 = vadd.f32 %v17331_v11, %v5551_v41  ;;  %v5565_v26 = vmax.f32 %v5563_v32, %v5564_v27  ;;  %v5557_v13 = vrot.slane %v5556_v29, 1  ;;  %v21220_v10 = vld [vmem:[#allocation291_spill] sm:$0xff]  ;;  %v5578_v37 = vrot.slane %v5577_v3, 1 }
 0x449   : > { %v17746_v52 = vpop.f32.mrf.mxu0  ;;  %v6581_v22 = vadd.f32 %v17331_v11, %v5544_v21  ;;  %v5570_v24 = vmax.f32 %v5568_v56, %v5569_v61  ;;  %v5590_v41 = vrot.slane %v5589_v59, 2 }
 0x44a   : > { %21218 = vst [vmem:[#allocation321_spill] sm:$0xff] %v17746_v52  ;;  %v21221_v52 = vld [vmem:[#allocation319_spill] sm:$0xff]  ;;  %v17760_v6 = vmax.f32 %v6582_v62, 0.0  ;;  %v6584_v17 = vadd.f32 %v17331_v11, %v5565_v26  ;;  %v5558_v2 = vmax.f32 %v5556_v29, %v5557_v13  ;;  %v5579_v32 = vmax.f32 %v5577_v3, %v5578_v37 }
 0x44b   : > { %v17752_v47 = vpop.f32.mrf.mxu0  ;;  %v5580_v18 = vmax.f32 %v21221_v52, %v21220_v10  ;;  %v17763_v63 = vmax.f32 %v6581_v22, 0.0  ;;  %v7092_v10 = vpack.c.bf16 %v17744_v19, %v17744_v19  ;;  %v5571_v57 = vrot.slane %v5570_v24, 1 }
 0x44c   : > { %21222 = vst [vmem:[#allocation291_spill] sm:$0xff] %v17760_v6  ;;  %v7094_v58 = vpack.c.bf16 %v17760_v6, %v17760_v6  ;;  %v17771_v52 = vmax.f32 %v6584_v17, 0.0  ;;  %v6583_v22 = vadd.f32 %v17331_v11, %v5558_v2  ;;  %v5591_v3 = vmax.f32 %v5589_v59, %v5590_v41 }
 0x44d   : > { %v17758_v16 = vpop.f32.mrf.mxu0  ;;  %v5581_v0 = vrot.slane %v5580_v18, 4  ;;  %21223 = vst [vmem:[#allocation319_spill] sm:$0xff] %v17763_v63  ;;  %v7093_v29 = vpack.c.bf16 %v17763_v63, %v17763_v63  ;;  %v21226_v62 = vpack.c.bf16 %v17703_v7, %v17703_v7  ;;  %v7982_v13 = vrot.slane %v7629_v28, 6 }
 0x44e   : > { %21224 = vst [vmem:[#allocation337_spill] sm:$0xff] %v17771_v52  ;;  %v7631_v37 = vunpack.c.l.b16 %v7091_v9  ;;  %v21227_v17 = vrot.slane %v17710_v20, 7  ;;  %v5572_v6 = vmax.f32 %v5570_v24, %v5571_v57  ;;  %v5592_v63 = vrot.slane %v5591_v3, 1 }
 0x44f   : > { %v17765_v27 = vpop.f32.mrf.mxu0  ;;  %v5582_v21 = vmax.f32 %v5580_v18, %v5581_v0  ;;  %v7630_v26 = vunpack.c.l.b16 %v21226_v62  ;;  %v6586_v0 = vadd.f32 %v17331_v11, %v5579_v32  ;;  %v7632_v59 = vunpack.c.l.b16 %v7092_v10 }
 0x450   : > { %v7981_v18 = vsel %vm7764_vm0, %v21227_v17, %v7627_v30  ;;  %v7634_v41 = vunpack.c.l.b16 %v7094_v58  ;;  %v7633_v19 = vunpack.c.l.b16 %v7093_v29  ;;  %v7096_v62 = vpack.c.bf16 %v17771_v52, %v17771_v52 }
 0x451   : > { %v17776_v56 = vpop.f32.mrf.mxu0  ;;  %v5583_v61 = vrot.slane %v5582_v21, 2  ;;  %v17789_v28 = vmax.f32 %v6583_v22, 0.0  ;;  %v6585_v9 = vadd.f32 %v17331_v11, %v5572_v6  ;;  %v5593_v20 = vmax.f32 %v5591_v3, %v5592_v63 }
 0x452   : > { %21225 = vst [vmem:[#allocation338_spill] sm:$0xff] %v17776_v56  ;;  %v7983_v30 = vsel %vm7767_vm1, %v7982_v13, %v7981_v18  ;;  %v7986_v32 = vrot.slane %v7631_v37, 4  ;;  %v21229_v10 = vrot.slane %v17646_v31, 5  ;;  %v17799_v29 = vmax.f32 %v6586_v0, 0.0 }
 0x453   : > { %v17785_v2 = vpop.f32.mrf.mxu0  ;;  %v5584_v56 = vmax.f32 %v5582_v21, %v5583_v61  ;;  %21228 = vst [vmem:[#allocation339_spill] sm:$0xff] %v17789_v28  ;;  %v7984_v21 = vrot.slane %v7630_v26, 5  ;;  %v17801_v57 = vmax.f32 %v6585_v9, 0.0  ;;  %v21232_v22 = vrot.slane %v17666_v44, 4 }
 0x454   : > { %v7971_v58 = vsel %vm7770_vm2, %v21229_v10, %v17684_v33  ;;  %21230 = vst [vmem:[#allocation340_spill] sm:$0xff] %v17799_v29  ;;  %v7988_v3 = vrot.slane %v7632_v59, 3  ;;  %v7992_v13 = vrot.slane %v7634_v41, 1  ;;  %v7990_v37 = vrot.slane %v7633_v19, 2  ;;  %v21235_v41 = vld [vmem:[#allocation295_spill] sm:$0xff]  ;;  %v21237_v10 = vld [vmem:[#allocation298_spill] sm:$0xff] }
 0x455   : > { %v17792_v7 = vpop.f32.mrf.mxu0  ;;  %v5585_v24 = vrot.slane %v5584_v56, 1  ;;  %21231 = vst [vmem:[#allocation341_spill] sm:$0xff] %v17801_v57  ;;  %v7973_v6 = vsel %vm7773_vm3, %v21232_v22, %v7971_v58  ;;  %v6588_v61 = vadd.f32 %v17331_v11, %v5593_v20  ;;  %v17809_v17 = vunpack.c.l.b16 %v7096_v62  ;;  %v21236_v62 = vld [vmem:[#allocation322_spill] sm:$0xff] }
 0x456   : > { %v7095_v31 = vpack.c.bf16 %v17789_v28, %v17789_v28  ;;  %v21233_v33 = vrot.slane %v17651_v49, 3  ;;  %v7985_v44 = vsel %vm7770_vm2, %v7984_v21, %v7983_v30  ;;  %v21234_v59 = vrot.slane %v17701_v40, 2  ;;  %v21239_v21 = vld [vmem:[#allocation246_spill] sm:$0xff] }
 0x457   : > { %v17806_v63 = vpop.f32.mrf.mxu0  ;;  %v5586_v0 = vmax.f32 %v5584_v56, %v5585_v24  ;;  %v7987_v11 = vsel %vm7773_vm3, %v7986_v32, %v7985_v44  ;;  %v5601_v9 = vmax.f32 %v21236_v62, %v21235_v41  ;;  %v7097_v49 = vpack.c.bf16 %v17801_v57, %v17801_v57 }
 0x458   : > { %v7975_v26 = vsel %vm7776_vm4, %v21233_v33, %v7973_v6  ;;  %v7989_v30 = vsel %vm7776_vm4, %v7988_v3, %v7987_v11  ;;  %v5594_v56 = vmax.f32 %v21237_v10, %v17501_v25  ;;  %v17834_v40 = vmax.f32 %v6588_v61, 0.0 }
 0x459   : > { %v17817_v18 = vpop.f32.mrf.mxu0  ;;  %v7977_v19 = vsel %vm7779_vm5, %v21234_v59, %v7975_v26  ;;  %v7991_v32 = vsel %vm7779_vm5, %v7990_v37, %v7989_v30  ;;  %v5602_v58 = vrot.slane %v5601_v9, 4  ;;  %v5615_v22 = vmax.f32 %v21239_v21, %v17528_v12  ;;  %v17846_v59 = vld [vmem:[#allocation7] ss:$0 sm:$0xff] }
 0x45a   : > { %21238 = vst [vmem:[#allocation295_spill] sm:$0xff] %v17834_v40  ;;  %v21240_v33 = vrot.slane %v17686_v46, 1  ;;  %v7993_v3 = vsel %vm7782_vm6, %v7992_v13, %v7991_v32  ;;  %v5595_v44 = vrot.slane %v5594_v56, 4  ;;  %v6587_v61 = vadd.f32 %v17846_v59, %v5586_v0  ;;  %v21241_v46 = vld [vmem:[#allocation325_spill] sm:$0xff] }
 0x45b   : > { %v17832_v24 = vpop.f32.mrf.mxu0  ;;  %v5603_v11 = vmax.f32 %v5601_v9, %v5602_v58  ;;  %v5616_v41 = vrot.slane %v5615_v22, 4  ;;  %v17849_v62 = vunpack.c.l.b16 %v7095_v31  ;;  %v17851_v12 = vunpack.c.l.b16 %v7097_v49 }
 0x45c   : > { %v7979_v26 = vsel %vm7782_vm6, %v21240_v33, %v7977_v19  ;;  %v5596_v30 = vmax.f32 %v5594_v56, %v5595_v44  ;;  %v5608_v19 = vmax.f32 %v21241_v46, %v17535_v14  ;;  %v5629_v0 = vmax.f32 %v17546_v34, %v17578_v23 }
 0x45d   : > { %v17844_v25 = vpop.f32.mrf.mxu0  ;;  %v8225_v37 = vpack.c.b16 %v7993_v3, %v7979_v26  ;;  %v5604_v32 = vrot.slane %v5603_v11, 2  ;;  %v5617_v21 = vmax.f32 %v5615_v22, %v5616_v41  ;;  %v5622_v49 = vmax.f32 %v17564_v4, %v17593_v39 }
 0x45e   : > { %v5597_v9 = vrot.slane %v5596_v30, 2  ;;  %v5609_v31 = vrot.slane %v5608_v19, 4  ;;  %v5643_v56 = vmax.f32 %v17610_v55, %v17624_v15  ;;  %v17868_v58 = vmax.f32 %v6587_v61, 0.0 }
 0x45f   : > { %v17855_v10 = vpop.f32.mrf.mxu0  ;;  %8433 = vmatmul.mubr.bf16.gmra.mxu1 %v8225_v37  ;;  %v5605_v33 = vmax.f32 %v5603_v11, %v5604_v32  ;;  %v5618_v26 = vrot.slane %v5617_v21, 2  ;;  %v5630_v22 = vrot.slane %v5629_v0, 4  ;;  %v5623_v34 = vrot.slane %v5622_v49, 4 }
 0x460   : > { %8442 = vmatprep.mubr.bf16.mxu1 %v20940_v45  ;;  %21242 = vst [vmem:[#allocation322_spill] sm:$0xff] %v17868_v58  ;;  %v5598_v3 = vmax.f32 %v5596_v30, %v5597_v9  ;;  %v5610_v44 = vmax.f32 %v5608_v19, %v5609_v31  ;;  %v5644_v23 = vrot.slane %v5643_v56, 4  ;;  %v5636_v55 = vmax.f32 %v17618_v42, %v17628_v53 }
 0x461   : > { %v17866_v14 = vpop.f32.mrf.mxu0  ;;  %v5606_v41 = vrot.slane %v5605_v33, 1  ;;  %v5619_v4 = vmax.f32 %v5617_v21, %v5618_v26  ;;  %v5631_v39 = vmax.f32 %v5629_v0, %v5630_v22  ;;  %v5624_v6 = vmax.f32 %v5622_v49, %v5623_v34 }
 0x462   : > { %v5599_v15 = vrot.slane %v5598_v3, 1  ;;  %v5611_v46 = vrot.slane %v5610_v44, 2  ;;  %v5645_v61 = vmax.f32 %v5643_v56, %v5644_v23  ;;  %v5637_v19 = vrot.slane %v5636_v55, 4 }
 0x463   : > { %v17870_v37 = vpop.f32.mrf.mxu0  ;;  %v5607_v11 = vmax.f32 %v5605_v33, %v5606_v41  ;;  %v5620_v32 = vrot.slane %v5619_v4, 1  ;;  %v5632_v30 = vrot.slane %v5631_v39, 2  ;;  %v5625_v20 = vrot.slane %v5624_v6, 2 }
 0x464   : > { %v5600_v9 = vmax.f32 %v5598_v3, %v5599_v15  ;;  %v5612_v31 = vmax.f32 %v5610_v44, %v5611_v46  ;;  %v5646_v28 = vrot.slane %v5645_v61, 2  ;;  %v5638_v42 = vmax.f32 %v5636_v55, %v5637_v19 }
 0x465   : > { %v17874_v13 = vpop.f32.mrf.mxu0  ;;  %v6590_v21 = vadd.f32 %v17846_v59, %v5607_v11  ;;  %v5621_v0 = vmax.f32 %v5619_v4, %v5620_v32  ;;  %v5633_v53 = vmax.f32 %v5631_v39, %v5632_v30  ;;  %v5626_v26 = vmax.f32 %v5624_v6, %v5625_v20 }
 0x466   : > { %v6589_v49 = vadd.f32 %v17846_v59, %v5600_v9  ;;  %v5613_v56 = vrot.slane %v5612_v31, 1  ;;  %v5647_v22 = vmax.f32 %v5645_v61, %v5646_v28  ;;  %v5639_v23 = vrot.slane %v5638_v42, 2 }
 0x467   : > { %v17876_v57 = vpop.f32.mrf.mxu0  ;;  %v17882_v34 = vmax.f32 %v6590_v21, 0.0  ;;  %v6592_v3 = vadd.f32 %v17846_v59, %v5621_v0  ;;  %v5634_v44 = vrot.slane %v5633_v53, 1  ;;  %v5627_v46 = vrot.slane %v5626_v26, 1 }
 0x468   : > { %v17885_v41 = vmax.f32 %v6589_v49, 0.0  ;;  %v5614_v15 = vmax.f32 %v5612_v31, %v5613_v56  ;;  %v5648_v4 = vrot.slane %v5647_v22, 1  ;;  %v7099_v39 = vpack.c.bf16 %v17868_v58, %v17868_v58 }
 0x469   : > { %v17880_v33 = vpop.f32.mrf.mxu0  ;;  %21243 = vst [vmem:[#allocation298_spill] sm:$0xff] %v17882_v34  ;;  %v17889_v55 = vmax.f32 %v6592_v3, 0.0  ;;  %v5635_v20 = vmax.f32 %v5633_v53, %v5634_v44  ;;  %v5640_v28 = vmax.f32 %v5638_v42, %v5639_v23  ;;  %v7102_v6 = vpack.c.bf16 %v17882_v34, %v17882_v34 }
 0x46a   : > { %21244 = vst [vmem:[#allocation246_spill] sm:$0xff] %v17885_v41  ;;  %v6591_v61 = vadd.f32 %v17846_v59, %v5614_v15  ;;  %v5628_v11 = vmax.f32 %v5626_v26, %v5627_v46  ;;  %v5649_v32 = vmax.f32 %v5647_v22, %v5648_v4  ;;  %v7101_v19 = vpack.c.bf16 %v17885_v41, %v17885_v41 }
 0x46b   : > { %21245 = vst [vmem:[#allocation325_spill] sm:$0xff] %v17889_v55  ;;  %v17894_v30 = vpop.f32.mrf.mxu0  ;;  %v7104_v9 = vpack.c.bf16 %v17889_v55, %v17889_v55  ;;  %v6594_v31 = vadd.f32 %v17846_v59, %v5635_v20  ;;  %v5641_v21 = vrot.slane %v5640_v28, 1  ;;  %v21246_v0 = vpack.c.bf16 %v17799_v29, %v17799_v29 }
 0x46c   : > { %v7996_v42 = vrot.slane %v17851_v12, 6  ;;  %v17907_v49 = vmax.f32 %v6591_v61, 0.0  ;;  %v6593_v56 = vadd.f32 %v17846_v59, %v5628_v11  ;;  %v6596_v22 = vadd.f32 %v17846_v59, %v5649_v32 }
 0x46d   : > { %v17904_v53 = vunpack.c.l.b16 %v21246_v0  ;;  %v17911_v26 = vmax.f32 %v6594_v31, 0.0  ;;  %v5642_v3 = vmax.f32 %v5640_v28, %v5641_v21  ;;  %v17915_v44 = vsub.f32 1.0, %v17750_v60  ;;  %v17924_v20 = vpop.f32.mrf.mxu0 }
 0x46e   : > { %21247 = vst [vmem:[#allocation342_spill] sm:$0xff] %v17907_v49  ;;  %v21250_v23 = vpack.c.bf16 %v17834_v40, %v17834_v40  ;;  %v7644_v46 = vunpack.c.l.b16 %v7104_v9  ;;  %v7103_v4 = vpack.c.bf16 %v17907_v49, %v17907_v49  ;;  %v21251_v38 = vrot.slane %v17809_v17, 7 }
 0x46f   : > { %21248 = vst [vmem:[#allocation343_spill] sm:$0xff] %v17911_v26  ;;  %21249 = vst [vmem:[#allocation344_spill] sm:$0xff] %v17915_v44  ;;  %v17930_v61 = vunpack.c.l.b16 %v7099_v39  ;;  %v17932_v11 = vunpack.c.l.b16 %v7102_v6  ;;  %v17934_v32 = vunpack.c.l.b16 %v7101_v19  ;;  %v17940_v0 = vmax.f32 %v6593_v56, 0.0  ;;  %v17953_v31 = vpop.f32.mrf.mxu0 }
 0x470   : > { %v17920_v15 = vunpack.c.l.b16 %v21250_v23  ;;  %v7995_v28 = vsel %vm7764_vm0, %v21251_v38, %v17849_v62  ;;  %v5657_v23 = vmax.f32 %v17630_v35, %v17640_v8  ;;  %v7106_v62 = vpack.c.bf16 %v17911_v26, %v17911_v26 }
 0x471   : > { %v8404_v12 = vpop.f32.mrf.mxu1  ;;  %v17938_v9 = vsel %vm7767_vm1, %v7996_v42, %v7995_v28  ;;  %21252 = vst [vmem:[#allocation345_spill] sm:$0xff] %v17940_v0  ;;  %v17947_v39 = vmax.f32 %v6596_v22, 0.0  ;;  %v6595_v6 = vadd.f32 %v17846_v59, %v5642_v3  ;;  %v8008_v42 = vrot.slane %v7644_v46, 7 }
 0x472   : > { %v7643_v28 = vunpack.c.l.b16 %v7103_v4  ;;  %v5658_v56 = vrot.slane %v5657_v23, 4  ;;  %v17959_v22 = vadd.f32 %v8404_v12, %v17066_v51  ;;  %v7105_v19 = vpack.c.bf16 %v17940_v0, %v17940_v0 }
 0x473   : > { %v8406_v21 = vpop.f32.mrf.mxu1  ;;  %21253 = vst [vmem:[#allocation346_spill] sm:$0xff] %v17947_v39  ;;  %v5650_v46 = vmax.f32 %v17633_v1, %v17655_v48  ;;  %v17966_v26 = vunpack.c.l.b16 %v7106_v62  ;;  %v17970_v8 = vmax.f32 %v6595_v6, 0.0  ;;  %v5664_v48 = vmax.f32 %v17681_v54, %v17707_v36  ;;  %v21254_v62 = vld [vmem:[#allocation336_spill] sm:$0xff] }
 0x474   : > { %v8407_v17 = vadd.f32 %v8406_v21, %v17049_v43  ;;  %v5659_v34 = vmax.f32 %v5657_v23, %v5658_v56  ;;  %v17973_v12 = vsel %vm7764_vm0, %v8008_v42, %v7643_v28  ;;  %v5671_v23 = vmax.f32 %v17669_v5, %v17695_v50  ;;  %v17977_v56 = vpop.f32.mrf.mxu0  ;;  %v21256_v42 = vld [vmem:[#allocation315_spill] sm:$0xff]  ;;  %v21257_v28 = vld [vmem:[#allocation334_spill] sm:$0xff]  ;;  %v21258_v5 = vld [vmem:[#allocation321_spill] sm:$0xff] }
 0x475   : > { %v17951_v38 = vpop.f32.mrf.mxu1  ;;  %v5651_v35 = vrot.slane %v5650_v46, 4  ;;  %v5678_v58 = vmax.f32 %v21257_v28, %v21256_v42  ;;  %v5665_v0 = vrot.slane %v5664_v48, 4  ;;  %v5699_v50 = vmax.f32 %v21258_v5, %v17758_v16 }
 0x476   : > { %v11774_v21 = vmul.f32 -1.442695, %v8407_v17  ;;  %v7108_v17 = vpack.c.bf16 %v17947_v39, %v17947_v39  ;;  %v5660_v49 = vrot.slane %v5659_v34, 2  ;;  %v5672_v40 = vrot.slane %v5671_v23, 4  ;;  %v17989_v52 = vpop.f32.mrf.mxu0 }
 0x477   : > { %v8410_v3 = vpop.f32.mrf.mxu1  ;;  %v5652_v41 = vmax.f32 %v5650_v46, %v5651_v35  ;;  %v5679_v36 = vrot.slane %v5678_v58, 4  ;;  %21259 = vst [vmem:[#allocation336_spill] sm:$0xff] %v17989_v52  ;;  %v5700_v35 = vrot.slane %v5699_v50, 4  ;;  %v5692_v46 = vmax.f32 %v17752_v47, %v17765_v27 }
 0x478   : > { %v8411_v4 = vadd.f32 %v8410_v3, %v17049_v43  ;;  %13229 = vpow2.f32 %v11774_v21  ;;  %v21255_v3 = vld [vmem:[#allocation333_spill] sm:$0xff]  ;;  %v5661_v6 = vmax.f32 %v5659_v34, %v5660_v49  ;;  %v17987_v21 = vpop.eup %13227  ;;  %v5673_v54 = vmax.f32 %v5671_v23, %v5672_v40  ;;  %v17994_v52 = vpop.f32.mrf.mxu0 }
 0x479   : > { %v5685_v39 = vmax.f32 %v21255_v3, %v21254_v62  ;;  %v5653_v29 = vrot.slane %v5652_v41, 2  ;;  %v5666_v34 = vmax.f32 %v5664_v48, %v5665_v0  ;;  %v5680_v42 = vmax.f32 %v5678_v58, %v5679_v36 }
 0x47a   : > { %v11775_v1 = vmul.f32 -1.442695, %v8411_v4  ;;  %v5662_v4 = vrot.slane %v5661_v6, 1  ;;  %v5674_v3 = vrot.slane %v5673_v54, 2  ;;  %v5701_v5 = vmax.f32 %v5699_v50, %v5700_v35 }
 0x47b   : > { %v5686_v55 = vrot.slane %v5685_v39, 4  ;;  %v5654_v62 = vmax.f32 %v5652_v41, %v5653_v29  ;;  %v5667_v28 = vrot.slane %v5666_v34, 2  ;;  %v5693_v60 = vrot.slane %v5692_v46, 4 }
 0x47c   : > { %13231 = vpow2.f32 %v11775_v1  ;;  %v5663_v1 = vmax.f32 %v5661_v6, %v5662_v4  ;;  %v5675_v23 = vmax.f32 %v5673_v54, %v5674_v3  ;;  %v5681_v43 = vrot.slane %v5680_v42, 2  ;;  %v18001_v3 = vpop.f32.mrf.mxu0 }
 0x47d   : > { %v5687_v49 = vmax.f32 %v5685_v39, %v5686_v55  ;;  %v5655_v40 = vrot.slane %v5654_v62, 1  ;;  %v7645_v55 = vunpack.c.l.b16 %v7105_v19  ;;  %v5668_v0 = vmax.f32 %v5666_v34, %v5667_v28 }
 0x47e   : > { %v6598_v44 = vadd.f32 %v17846_v59, %v5663_v1  ;;  %v5702_v48 = vrot.slane %v5701_v5, 2  ;;  %v5676_v27 = vrot.slane %v5675_v23, 1  ;;  %v5682_v29 = vmax.f32 %v5680_v42, %v5681_v43 }
 0x47f   : > { %v5688_v16 = vrot.slane %v5687_v49, 2  ;;  %v5656_v47 = vmax.f32 %v5654_v62, %v5655_v40  ;;  %v5694_v41 = vmax.f32 %v5692_v46, %v5693_v60  ;;  %v5669_v6 = vrot.slane %v5668_v0, 1 }
 0x480   : > { %v17996_v58 = vmax.f32 %v6598_v44, 0.0  ;;  %v5703_v4 = vmax.f32 %v5701_v5, %v5702_v48  ;;  %v17998_v36 = vunpack.c.l.b16 %v7108_v17  ;;  %v5677_v35 = vmax.f32 %v5675_v23, %v5676_v27 }
 0x481   : > { %v5689_v39 = vmax.f32 %v5687_v49, %v5688_v16  ;;  %v6597_v54 = vadd.f32 %v17846_v59, %v5656_v47  ;;  %v5683_v1 = vrot.slane %v5682_v29, 1  ;;  %v7107_v19 = vpack.c.bf16 %v17970_v8, %v17970_v8  ;;  %v18021_v47 = vpop.f32.mrf.mxu0 }
 0x482   : > { %v5670_v34 = vmax.f32 %v5668_v0, %v5669_v6  ;;  %v5704_v43 = vrot.slane %v5703_v4, 1  ;;  %v6600_v46 = vadd.f32 %v17846_v59, %v5677_v35  ;;  %v5695_v17 = vrot.slane %v5694_v41, 2 }
 0x483   : > { %v5690_v50 = vrot.slane %v5689_v39, 1  ;;  %v18005_v44 = vmax.f32 %v6597_v54, 0.0  ;;  %v5684_v62 = vmax.f32 %v5682_v29, %v5683_v1  ;;  %v7110_v42 = vpack.c.bf16 %v17996_v58, %v17996_v58 }
 0x484   : > { %v6599_v28 = vadd.f32 %v17846_v59, %v5670_v34  ;;  %v5705_v5 = vmax.f32 %v5703_v4, %v5704_v43  ;;  %v18014_v23 = vadd.f32 %v17951_v38, %v17066_v51  ;;  %v8010_v29 = vrot.slane %v7645_v55, 6 }
 0x485   : > { %v5691_v49 = vmax.f32 %v5689_v39, %v5690_v50  ;;  %v13230_v60 = vpop.eup %13229  ;;  %v7109_v0 = vpack.c.bf16 %v18005_v44, %v18005_v44  ;;  %v18018_v39 = vmax.f32 %v6600_v46, 0.0  ;;  %v6601_v48 = vadd.f32 %v17846_v59, %v5684_v62 }
 0x486   : > { %v8659_v27 = vadd.f32 1.0, %v13230_v60  ;;  %v7647_v6 = vunpack.c.l.b16 %v7107_v19  ;;  %v18023_v50 = vmax.f32 %v6599_v28, 0.0  ;;  %v8012_v4 = vrot.slane %v17966_v26, 5  ;;  %v18036_v26 = vpop.f32.mrf.mxu0 }
 0x487   : > { %v6602_v16 = vadd.f32 %v17846_v59, %v5691_v49  ;;  %21260 = vst [vmem:[#allocation333_spill] sm:$0xff] %v18018_v39  ;;  %v6604_v38 = vadd.f32 %v17846_v59, %v5705_v5  ;;  %v5696_v35 = vmax.f32 %v5694_v41, %v5695_v17  ;;  %v7650_v34 = vunpack.c.l.b16 %v7110_v42 }
 0x488   : > { %21261 = vst [vmem:[#allocation315_spill] sm:$0xff] %v18023_v50  ;;  %v7649_v49 = vunpack.c.l.b16 %v7109_v0  ;;  %v7112_v43 = vpack.c.bf16 %v18018_v39, %v18018_v39  ;;  %v8016_v46 = vrot.slane %v17998_v36, 3  ;;  %v7111_v55 = vpack.c.bf16 %v18023_v50, %v18023_v50 }
 0x489   : > { %v13232_v40 = vpop.eup %13231  ;;  %v18026_v54 = vmax.f32 %v6602_v16, 0.0  ;;  %v18034_v19 = vmax.f32 %v6601_v48, 0.0  ;;  %v5697_v60 = vrot.slane %v5696_v35, 1  ;;  %13233 = vrcp.f32 %v8659_v27 }
 0x48a   : > { %v8660_v1 = vadd.f32 1.0, %v13232_v40  ;;  %v8011_v41 = vsel %vm7767_vm1, %v8010_v29, %v17973_v12  ;;  %v8014_v62 = vrot.slane %v7647_v6, 4  ;;  %v21264_v17 = vrot.slane %v17904_v53, 5 }
 0x48b   : > { %21262 = vst [vmem:[#allocation334_spill] sm:$0xff] %v18026_v54  ;;  %21263 = vst [vmem:[#allocation321_spill] sm:$0xff] %v18034_v19  ;;  %v7114_v36 = vpack.c.bf16 %v18026_v54, %v18026_v54  ;;  %v18046_v28 = vmax.f32 %v6604_v38, 0.0  ;;  %v5698_v16 = vmax.f32 %v5696_v35, %v5697_v60  ;;  %v21266_v5 = vrot.slane %v17930_v61, 4  ;;  %v18061_v38 = vpop.f32.mrf.mxu0  ;;  %v13165_v61 = vld [vmem:[#allocation11 + $0x70] ss:$8 sps:$4 sm:$0xff]  }
 0x48c   : > { %v7999_v42 = vsel %vm7770_vm2, %v21264_v17, %v17938_v9  ;;  %13235 = vrcp.f32 %v8660_v1  ;;  %v8020_v0 = vrot.slane %v7650_v34, 1  ;;  %v8018_v48 = vrot.slane %v7649_v49, 2  ;;  %v13167_v35 = vld [vmem:[#allocation11 + $0x74] ss:$8 sps:$4 sm:$0xff]  }
 0x48d   : > { %21265 = vst [vmem:[#allocation347_spill] sm:$0xff] %v18046_v28  ;;  %v8001_v40 = vsel %vm7773_vm3, %v21266_v5, %v7999_v42  ;;  %v18051_v12 = vunpack.c.l.b16 %v7112_v43  ;;  %v18053_v27 = vunpack.c.l.b16 %v7111_v55  ;;  %v7113_v53 = vpack.c.bf16 %v18034_v19, %v18034_v19  ;;  %v21269_v55 = vld [vmem:[#allocation338_spill] sm:$0xff]  ;;  %10471 = vmatprep.subr.bf16.mxu1 %v13167_v35 }
 0x48e   : > { %v21267_v9 = vrot.slane %v17920_v15, 3  ;;  %v8013_v6 = vsel %vm7770_vm2, %v8012_v4, %v8011_v41  ;;  %v6603_v1 = vadd.f32 %v17846_v59, %v5698_v16  ;;  %v21268_v34 = vrot.slane %v17934_v32, 2  ;;  %v13170_v15 = vld [vmem:[#allocation11 + $0x64] ss:$8 sps:$4 sm:$0xff]   ;;  %10472 = vmatpush1.bf16.msra.mxu1 %v13165_v61  ;;  %v21429_v19 = vld [vmem:[#allocation50_spill] sm:$0xff] }
 0x48f   : > { %v8015_v43 = vsel %vm7773_vm3, %v8014_v62, %v8013_v6  ;;  %v5713_v60 = vmax.f32 %v21269_v55, %v17792_v7  ;;  %v18070_v17 = vunpack.c.l.b16 %v7114_v36  ;;  %v7116_v4 = vpack.c.bf16 %v18046_v28, %v18046_v28  ;;  %10473 = vmatprep.subr.bf16.mxu1 %v13170_v15  ;;  %v21428_v28 = vld [vmem:[#allocation54_spill] sm:$0xff] }
 0x490   : > { %v8003_v29 = vsel %vm7776_vm4, %v21267_v9, %v8001_v40  ;;  %v8017_v41 = vsel %vm7776_vm4, %v8016_v46, %v8015_v43  ;;  %v5706_v42 = vmax.f32 %v17785_v2, %v17806_v63  ;;  %v5727_v62 = vmax.f32 %v17817_v18, %v17844_v25  ;;  %v18088_v63 = vpop.f32.mrf.mxu0 }
 0x491   : > { %v8005_v49 = vsel %vm7779_vm5, %v21268_v34, %v8003_v29  ;;  %v8019_v32 = vsel %vm7779_vm5, %v8018_v48, %v8017_v41  ;;  %v5714_v16 = vrot.slane %v5713_v60, 4  ;;  %v5720_v7 = vmax.f32 %v17832_v24, %v17855_v10  ;;  %v13168_v48 = vld [vmem:[#allocation11 + $0x60] ss:$8 sps:$4 sm:$0xff]   ;;  %v13173_v10 = vld [vmem:[#allocation11 + $0x54] ss:$8 sps:$4 sm:$0xff]  }
 0x492   : > { %v21270_v36 = vrot.slane %v17932_v11, 1  ;;  %v8021_v46 = vsel %vm7782_vm6, %v8020_v0, %v8019_v32  ;;  %v5707_v40 = vrot.slane %v5706_v42, 4  ;;  %v5741_v2 = vmax.f32 %v17866_v14, %v17874_v13  ;;  %v18099_v55 = vpop.f32.mrf.mxu0  ;;  %10474 = vmatpush1.bf16.msra.mxu1 %v13168_v48 }
 0x493   : > { %v18090_v9 = vmax.f32 %v6603_v1, 0.0  ;;  %v5715_v25 = vmax.f32 %v5713_v60, %v5714_v16  ;;  %v5728_v24 = vrot.slane %v5727_v62, 4  ;;  %v8022_v11 = vrot.slane %v18051_v12, 7  ;;  %v13171_v60 = vld [vmem:[#allocation11 + $0x50] ss:$8 sps:$4 sm:$0xff]   ;;  %10475 = vmatprep.subr.bf16.mxu1 %v13173_v10 }
 0x494   : > { %v8007_v5 = vsel %vm7782_vm6, %v21270_v36, %v8005_v49  ;;  %v5708_v29 = vmax.f32 %v5706_v42, %v5707_v40  ;;  %v5721_v6 = vrot.slane %v5720_v7, 4  ;;  %v5742_v61 = vrot.slane %v5741_v2, 4 }
 0x495   : > { %21271 = vst [vmem:[#allocation338_spill] sm:$0xff] %v18090_v9  ;;  %v8226_v18 = vpack.c.b16 %v8021_v46, %v8007_v5  ;;  %v5716_v0 = vrot.slane %v5715_v25, 2  ;;  %v5729_v35 = vmax.f32 %v5727_v62, %v5728_v24  ;;  %v5734_v13 = vmax.f32 %v17870_v37, %v17876_v57  ;;  %v13176_v37 = vld [vmem:[#allocation11 + $0x44] ss:$8 sps:$4 sm:$0xff]   ;;  %v13174_v24 = vld [vmem:[#allocation11 + $0x40] ss:$8 sps:$4 sm:$0xff]  }
 0x496   : > { %v5755_v14 = vmax.f32 %v17880_v33, %v17924_v20  ;;  %v18097_v1 = vunpack.c.l.b16 %v7113_v53  ;;  %v5709_v34 = vrot.slane %v5708_v29, 2  ;;  %v5722_v49 = vmax.f32 %v5720_v7, %v5721_v6  ;;  %v18104_v33 = vpop.eup %13233  ;;  %10476 = vmatpush1.bf16.msra.mxu1 %v13171_v60 }
 0x497   : > { %8443 = vmatmul.mubr.bf16.gmra.mxu1 %v8226_v18  ;;  %v5743_v43 = vmax.f32 %v5741_v2, %v5742_v61  ;;  %v7115_v15 = vpack.c.bf16 %v18090_v9, %v18090_v9  ;;  %v5717_v41 = vmax.f32 %v5715_v25, %v5716_v0  ;;  %v5730_v42 = vrot.slane %v5729_v35, 2  ;;  %v18110_v25 = vpop.f32.mrf.mxu0  ;;  %10477 = vmatprep.subr.bf16.mxu1 %v13176_v37 }
 0x498   : > { %8452 = vmatprep.mubr.bf16.mxu1 %v20940_v45  ;;  %v5735_v57 = vrot.slane %v5734_v13, 4  ;;  %v5710_v20 = vmax.f32 %v5708_v29, %v5709_v34  ;;  %v5723_v53 = vrot.slane %v5722_v49, 2  ;;  %v5756_v16 = vrot.slane %v5755_v14, 4 }
 0x499   : > { %v5744_v32 = vrot.slane %v5743_v43, 2  ;;  %v5718_v62 = vrot.slane %v5717_v41, 1  ;;  %v5731_v7 = vmax.f32 %v5729_v35, %v5730_v42  ;;  %v5748_v5 = vmax.f32 %v17894_v30, %v17953_v31  ;;  %v18108_v46 = vpop.eup %13235 }
 0x49a   : > { %v5736_v36 = vmax.f32 %v5734_v13, %v5735_v57  ;;  %v5711_v40 = vrot.slane %v5710_v20, 1  ;;  %v5724_v2 = vmax.f32 %v5722_v49, %v5723_v53  ;;  %v5757_v18 = vmax.f32 %v5755_v14, %v5756_v16  ;;  %v12494_v53 = vpop.f32.mrf.mxu0  ;;  %10478 = vmatpush1.bf16.msra.mxu1 %v13174_v24 }
 0x49b   : > { %v5745_v48 = vmax.f32 %v5743_v43, %v5744_v32  ;;  %v5719_v10 = vmax.f32 %v5717_v41, %v5718_v62  ;;  %v5732_v29 = vrot.slane %v5731_v7, 1  ;;  %v5749_v61 = vrot.slane %v5748_v5, 4 }
 0x49c   : > { %v5737_v6 = vrot.slane %v5736_v36, 2  ;;  %v5712_v0 = vmax.f32 %v5710_v20, %v5711_v40  ;;  %v5725_v35 = vrot.slane %v5724_v2, 1  ;;  %v5758_v34 = vrot.slane %v5757_v18, 2  ;;  %v13179_v40 = vld [vmem:[#allocation11 + $0x34] ss:$8 sps:$4 sm:$0xff]  }
 0x49d   : > { %v5746_v13 = vrot.slane %v5745_v48, 1  ;;  %v6606_v30 = vadd.f32 %v17846_v59, %v5719_v10  ;;  %v5733_v31 = vmax.f32 %v5731_v7, %v5732_v29  ;;  %v5750_v49 = vmax.f32 %v5748_v5, %v5749_v61  ;;  %v13177_v5 = vld [vmem:[#allocation11 + $0x30] ss:$8 sps:$4 sm:$0xff]   ;;  %v18134_v61 = vpop.f32.mrf.mxu0  ;;  %10479 = vmatprep.subr.bf16.mxu1 %v13179_v40 }
 0x49e   : > { %v5738_v42 = vmax.f32 %v5736_v36, %v5737_v6  ;;  %v6605_v14 = vadd.f32 %v17846_v59, %v5712_v0  ;;  %v5726_v43 = vmax.f32 %v5724_v2, %v5725_v35  ;;  %v5759_v60 = vmax.f32 %v5757_v18, %v5758_v34  ;;  %10480 = vmatpush1.bf16.msra.mxu1 %v13177_v5  ;;  %v21277_v5 = vld [vmem:[#allocation336_spill] sm:$0xff] }
 0x49f   : > { %v5747_v57 = vmax.f32 %v5745_v48, %v5746_v13  ;;  %v18117_v41 = vunpack.c.l.b16 %v7116_v4  ;;  %v6608_v37 = vadd.f32 %v17846_v59, %v5733_v31  ;;  %v5751_v32 = vrot.slane %v5750_v49, 2 }
 0x4a0   : > { %v5739_v20 = vrot.slane %v5738_v42, 1  ;;  %v18120_v16 = vmax.f32 %v6606_v30, 0.0  ;;  %v6607_v62 = vadd.f32 %v17846_v59, %v5726_v43  ;;  %v5760_v36 = vrot.slane %v5759_v60, 1 }
 0x4a1   : > { %v6610_v7 = vadd.f32 %v17846_v59, %v5747_v57  ;;  %v18124_v2 = vmax.f32 %v6605_v14, 0.0  ;;  %v18126_v48 = vmax.f32 %v6608_v37, 0.0  ;;  %v5752_v4 = vmax.f32 %v5750_v49, %v5751_v32 }
 0x4a2   : > { %21272 = vst [vmem:[#allocation348_spill] sm:$0xff] %v18120_v16  ;;  %v5740_v18 = vmax.f32 %v5738_v42, %v5739_v20  ;;  %v18129_v24 = vsub.f32 1.0, %v17987_v21  ;;  %v8024_v10 = vrot.slane %v18097_v1, 6  ;;  %v18132_v29 = vunpack.c.l.b16 %v7115_v15 }
 0x4a3   : > { %21273 = vst [vmem:[#allocation349_spill] sm:$0xff] %v18124_v2  ;;  %21274 = vst [vmem:[#allocation350_spill] sm:$0xff] %v18126_v48  ;;  %v5761_v6 = vmax.f32 %v5759_v60, %v5760_v36  ;;  %v18138_v13 = vmax.f32 %v6607_v62, 0.0  ;;  %v18140_v34 = vmax.f32 %v6610_v7, 0.0  ;;  %v8023_v1 = vsel %vm7764_vm0, %v8022_v11, %v18053_v27  ;;  %v18163_v60 = vpop.f32.mrf.mxu0 }
 0x4a4   : > { %v7120_v30 = vpack.c.bf16 %v18126_v48, %v18126_v48  ;;  %v5753_v31 = vrot.slane %v5752_v4, 1  ;;  %v7118_v49 = vpack.c.bf16 %v18120_v16, %v18120_v16  ;;  %v7117_v14 = vpack.c.bf16 %v18124_v2, %v18124_v2 }
 0x4a5   : > { %21275 = vst [vmem:[#allocation351_spill] sm:$0xff] %v18138_v13  ;;  %21276 = vst [vmem:[#allocation352_spill] sm:$0xff] %v18140_v34  ;;  %v6609_v43 = vadd.f32 %v17846_v59, %v5740_v18  ;;  %v18156_v12 = vsub.f32 1.0, %v18104_v33  ;;  %v18159_v27 = vsel %vm7767_vm1, %v8024_v10, %v8023_v1  ;;  %v6612_v57 = vadd.f32 %v17846_v59, %v5761_v6 }
 0x4a6   : > { %v18166_v37 = vsub.f32 1.0, %v18108_v46  ;;  %v7119_v20 = vpack.c.bf16 %v18138_v13, %v18138_v13  ;;  %v7122_v32 = vpack.c.bf16 %v18140_v34, %v18140_v34  ;;  %v5769_v62 = vmax.f32 %v17977_v56, %v17994_v52  ;;  %v18188_v56 = vpop.f32.mrf.mxu0  ;;  %v21281_v13 = vld [vmem:[#allocation286_spill] sm:$0xff] }
 0x4a7   : > { %v7660_v7 = vunpack.c.l.b16 %v7120_v30  ;;  %v5754_v36 = vmax.f32 %v5752_v4, %v5753_v31  ;;  %v5762_v40 = vmax.f32 %v21277_v5, %v18001_v3  ;;  %v5783_v18 = vmax.f32 %v18021_v47, %v18061_v38 }
 0x4a8   : > { %v18178_v10 = vunpack.c.l.b16 %v7118_v49  ;;  %v18180_v6 = vunpack.c.l.b16 %v7117_v14  ;;  %v18182_v1 = vmax.f32 %v6609_v43, 0.0  ;;  %v5770_v35 = vrot.slane %v5769_v62, 4 }
 0x4a9   : > { %v18184_v0 = vmax.f32 %v6612_v57, 0.0  ;;  %v5763_v42 = vrot.slane %v5762_v40, 4  ;;  %v5784_v11 = vrot.slane %v5783_v18, 4  ;;  %v5776_v52 = vmax.f32 %v18036_v26, %v18088_v63 }
 0x4aa   : > { %21278 = vst [vmem:[#allocation336_spill] sm:$0xff] %v18182_v1  ;;  %v7659_v4 = vunpack.c.l.b16 %v7119_v20  ;;  %v18192_v47 = vunpack.c.l.b16 %v7122_v32  ;;  %v5771_v38 = vmax.f32 %v5769_v62, %v5770_v35  ;;  %v5797_v30 = vmax.f32 %v18099_v55, %v12494_v53  ;;  %v12498_v53 = vpop.f32.mrf.mxu0 }
 0x4ab   : > { %21279 = vst [vmem:[#allocation353_spill] sm:$0xff] %v18184_v0  ;;  %v8036_v31 = vrot.slane %v7660_v7, 7  ;;  %v6611_v49 = vadd.f32 %v17846_v59, %v5754_v36  ;;  %v5764_v14 = vmax.f32 %v5762_v40, %v5763_v42  ;;  %v5785_v43 = vmax.f32 %v5783_v18, %v5784_v11 }
 0x4ac   : > { %v5772_v63 = vrot.slane %v5771_v38, 2  ;;  %v5777_v15 = vrot.slane %v5776_v52, 4  ;;  %v7121_v20 = vpack.c.bf16 %v18182_v1, %v18182_v1  ;;  %v7124_v35 = vpack.c.bf16 %v18184_v0, %v18184_v0 }
 0x4ad   : > { %v18190_v3 = vpop.f32.mrf.mxu1  ;;  %v5765_v32 = vrot.slane %v5764_v14, 2  ;;  %v5786_v55 = vrot.slane %v5785_v43, 2  ;;  %v5798_v7 = vrot.slane %v5797_v30, 4  ;;  %v8037_v40 = vsel %vm7764_vm0, %v8036_v31, %v7659_v4 }
 0x4ae   : > { %v5773_v42 = vmax.f32 %v5771_v38, %v5772_v63  ;;  %v5778_v11 = vmax.f32 %v5776_v52, %v5777_v15  ;;  %v18206_v18 = vmax.f32 %v6611_v49, 0.0  ;;  %v5790_v0 = vmax.f32 %v18110_v25, %v18134_v61  ;;  %v3924_v52 = vpop.f32.mrf.mxu0 }
 0x4af   : > { %v8416_v5 = vpop.f32.mrf.mxu1  ;;  %v5766_v57 = vmax.f32 %v5764_v14, %v5765_v32  ;;  %v5787_v26 = vmax.f32 %v5785_v43, %v5786_v55  ;;  %v5799_v48 = vmax.f32 %v5797_v30, %v5798_v7  ;;  %v7661_v62 = vunpack.c.l.b16 %v7121_v20 }
 0x4b0   : > { %21280 = vst [vmem:[#allocation354_spill] sm:$0xff] %v18206_v18  ;;  %v5774_v34 = vrot.slane %v5773_v42, 1  ;;  %v5779_v1 = vrot.slane %v5778_v11, 2  ;;  %v8417_v16 = vadd.f32 %v8416_v5, %v21281_v13  ;;  %v18211_v38 = vunpack.c.l.b16 %v7124_v35 }
 0x4b1   : > { %v18203_v36 = vpop.f32.mrf.mxu1  ;;  %v5767_v15 = vrot.slane %v5766_v57, 1  ;;  %v5788_v2 = vrot.slane %v5787_v26, 1  ;;  %v5800_v31 = vrot.slane %v5799_v48, 2  ;;  %v7123_v14 = vpack.c.bf16 %v18206_v18, %v18206_v18 }
 0x4b2   : > { %v5775_v63 = vmax.f32 %v5773_v42, %v5774_v34  ;;  %v5780_v4 = vmax.f32 %v5778_v11, %v5779_v1  ;;  %v5791_v30 = vrot.slane %v5790_v0, 4  ;;  %v5811_v32 = vmax.f32 %v18163_v60, %v12498_v53  ;;  %v12501_v1 = vpop.f32.mrf.mxu0 }
 0x4b3   : > { %v8420_v49 = vpop.f32.mrf.mxu1  ;;  %v5768_v43 = vmax.f32 %v5766_v57, %v5767_v15  ;;  %v5789_v61 = vmax.f32 %v5787_v26, %v5788_v2  ;;  %v5801_v20 = vmax.f32 %v5799_v48, %v5800_v31  ;;  %v11776_v35 = vmul.f32 -1.442695, %v8417_v16 }
 0x4b4   : > { %v6614_v25 = vadd.f32 %v17846_v59, %v5775_v63  ;;  %v5781_v5 = vrot.slane %v5780_v4, 1  ;;  %v5792_v34 = vmax.f32 %v5790_v0, %v5791_v30  ;;  %v5812_v42 = vrot.slane %v5811_v32, 4 }
 0x4b5   : > { %v6613_v55 = vadd.f32 %v17846_v59, %v5768_v43  ;;  %v8421_v11 = vadd.f32 %v8420_v49, %v21281_v13  ;;  %v6616_v57 = vadd.f32 %v17846_v59, %v5789_v61  ;;  %v5802_v15 = vrot.slane %v5801_v20, 1  ;;  %v3937_v43 = vpop.f32.mrf.mxu0 }
 0x4b6   : > { %v18219_v7 = vmax.f32 %v6614_v25, 0.0  ;;  %v5793_v60 = vrot.slane %v5792_v34, 2  ;;  %v5813_v53 = vmax.f32 %v5811_v32, %v5812_v42  ;;  %v5804_v2 = vmax.f32 %v18188_v56, %v3924_v52 }
 0x4b7   : > { %v18222_v18 = vmax.f32 %v6613_v55, 0.0  ;;  %v8038_v48 = vrot.slane %v7661_v62, 6  ;;  %v7663_v16 = vunpack.c.l.b16 %v7123_v14  ;;  %v18225_v26 = vmax.f32 %v6616_v57, 0.0  ;;  %v12502_v57 = vpop.f32.mrf.mxu0 }
 0x4b8   : > { %21282 = vst [vmem:[#allocation286_spill] sm:$0xff] %v18219_v7  ;;  %v5782_v0 = vmax.f32 %v5780_v4, %v5781_v5  ;;  %13237 = vpow2.f32 %v11776_v35  ;;  %v5794_v63 = vmax.f32 %v5792_v34, %v5793_v60  ;;  %v5814_v31 = vrot.slane %v5813_v53, 2 }
 0x4b9   : > { %21283 = vst [vmem:[#allocation355_spill] sm:$0xff] %v18222_v18  ;;  %21284 = vst [vmem:[#allocation356_spill] sm:$0xff] %v18225_v26  ;;  %v5805_v49 = vrot.slane %v5804_v2, 4  ;;  %v11777_v30 = vmul.f32 -1.442695, %v8421_v11  ;;  %v7126_v25 = vpack.c.bf16 %v18219_v7, %v18219_v7  ;;  %v7125_v61 = vpack.c.bf16 %v18222_v18, %v18222_v18  ;;  %v21427_v7 = vld [vmem:[#allocation44_spill] sm:$0xff] }
 0x4ba   : > { %v5803_v32 = vmax.f32 %v5801_v20, %v5802_v15  ;;  %v18233_v56 = vadd.f32 %v18190_v3, %v17066_v51  ;;  %v5795_v62 = vrot.slane %v5794_v63, 1  ;;  %v5815_v52 = vmax.f32 %v5813_v53, %v5814_v31 }
 0x4bb   : > { %v5806_v4 = vmax.f32 %v5804_v2, %v5805_v49  ;;  %v8039_v14 = vsel %vm7767_vm1, %v8038_v48, %v8037_v40  ;;  %v8044_v5 = vrot.slane %v18211_v38, 3  ;;  %v7128_v35 = vpack.c.bf16 %v18225_v26, %v18225_v26 }
 0x4bc   : > { %v6615_v55 = vadd.f32 %v17846_v59, %v5782_v0  ;;  %v8042_v34 = vrot.slane %v7663_v16, 4  ;;  %v5796_v42 = vmax.f32 %v5794_v63, %v5795_v62  ;;  %v5816_v11 = vrot.slane %v5815_v52, 1  ;;  %v13182_v62 = vld [vmem:[#allocation11 + $0x24] ss:$8 sps:$4 sm:$0xff]  }
 0x4bd   : > { %v5807_v20 = vrot.slane %v5806_v4, 2  ;;  %13239 = vpow2.f32 %v11777_v30  ;;  %v7666_v3 = vunpack.c.l.b16 %v7126_v25  ;;  %v7665_v15 = vunpack.c.l.b16 %v7125_v61  ;;  %10481 = vmatprep.subr.bf16.mxu1 %v13182_v62  ;;  %v21297_v62 = vld [vmem:[#allocation35_spill] sm:$0xff] }
 0x4be   : > { %v6618_v60 = vadd.f32 %v17846_v59, %v5803_v32  ;;  %v6617_v53 = vadd.f32 %v17846_v59, %v5796_v42  ;;  %v5817_v40 = vmax.f32 %v5815_v52, %v5816_v11  ;;  %v21285_v38 = vrot.slane %v18070_v17, 5  ;;  %v3940_v32 = vpop.f32.mrf.mxu0 }
 0x4bf   : > { %v5808_v2 = vmax.f32 %v5806_v4, %v5807_v20  ;;  %v18248_v16 = vadd.f32 %v18203_v36, %v17066_v51  ;;  %v18250_v0 = vunpack.c.l.b16 %v7128_v35  ;;  %v18252_v63 = vmax.f32 %v6615_v55, 0.0  ;;  %v13180_v36 = vld [vmem:[#allocation11 + $0x20] ss:$8 sps:$4 sm:$0xff]  }
 0x4c0   : > { %v8027_v48 = vsel %vm7770_vm2, %v21285_v38, %v18159_v27  ;;  %v21287_v31 = vrot.slane %v18132_v29, 4  ;;  %v18257_v30 = vmax.f32 %v6617_v53, 0.0  ;;  %v6620_v25 = vadd.f32 %v17846_v59, %v5817_v40  ;;  %10482 = vmatpush1.bf16.msra.mxu1 %v13180_v36  ;;  %v13183_v40 = vld [vmem:[#allocation11 + $0x10] ss:$8 sps:$4 sm:$0xff]  }
 0x4c1   : > { %21286 = vst [vmem:[#allocation357_spill] sm:$0xff] %v18252_v63  ;;  %v5809_v61 = vrot.slane %v5808_v2, 1  ;;  %v21289_v17 = vrot.slane %v18192_v47, 5  ;;  %v8046_v52 = vrot.slane %v7665_v15, 2  ;;  %v18263_v4 = vmax.f32 %v6618_v60, 0.0  ;;  %v21296_v36 = vld [vmem:[#allocation38_spill] sm:$0xff] }
 0x4c2   : > { %v8029_v49 = vsel %vm7773_vm3, %v21287_v31, %v8027_v48  ;;  %21288 = vst [vmem:[#allocation358_spill] sm:$0xff] %v18257_v30  ;;  %v5825_v29 = vmax.f32 %v12501_v1, %v12502_v57  ;;  %v8048_v55 = vrot.slane %v7666_v3, 1  ;;  %v7129_v42 = vpack.c.bf16 %v18257_v30, %v18257_v30  ;;  %v21426_v30 = vld [vmem:[#allocation39_spill] sm:$0xff] }
 0x4c3   : > { %v8041_v27 = vsel %vm7770_vm2, %v21289_v17, %v8039_v14  ;;  %21290 = vst [vmem:[#allocation359_spill] sm:$0xff] %v18263_v4  ;;  %v5810_v11 = vmax.f32 %v5808_v2, %v5809_v61  ;;  %v21291_v20 = vrot.slane %v18117_v41, 3  ;;  %v7127_v14 = vpack.c.bf16 %v18252_v63, %v18252_v63  ;;  %v13185_v2 = vld [vmem:[#allocation11 + $0x14] ss:$8 sps:$4 sm:$0xff]  }
 0x4c4   : > { %v8043_v35 = vsel %vm7773_vm3, %v8042_v34, %v8041_v27  ;;  %v21292_v15 = vrot.slane %v18180_v6, 2  ;;  %v5826_v53 = vrot.slane %v5825_v29, 4  ;;  %v5818_v34 = vmax.f32 %v3937_v43, %v3940_v32  ;;  %v13188_v43 = vld [vmem:[#allocation11 + $0x4] ss:$8 sps:$4 sm:$0xff]   ;;  %10483 = vmatprep.subr.bf16.mxu1 %v13185_v2 }
 0x4c5   : > { %v8031_v47 = vsel %vm7776_vm4, %v21291_v20, %v8029_v49  ;;  %v8050_v1 = vrot.slane %v18250_v0, 7  ;;  %v18277_v57 = vmax.f32 %v6620_v25, 0.0  ;;  %v6619_v3 = vadd.f32 %v17846_v59, %v5810_v11  ;;  %v13238_v38 = vpop.eup %13237  ;;  %10484 = vmatpush1.bf16.msra.mxu1 %v13183_v40  ;;  %v21301_v2 = vld [vmem:[#allocation69_spill] sm:$0xff] }
 0x4c6   : > { %v8033_v60 = vsel %vm7779_vm5, %v21292_v15, %v8031_v47  ;;  %v8045_v41 = vsel %vm7776_vm4, %v8044_v5, %v8043_v35  ;;  %v7130_v48 = vpack.c.bf16 %v18263_v4, %v18263_v4  ;;  %v5827_v31 = vmax.f32 %v5825_v29, %v5826_v53  ;;  %v13186_v29 = vld [vmem:[#allocation11] ss:$8 sps:$4 sm:$0xff]   ;;  %10485 = vmatprep.subr.bf16.mxu1 %v13188_v43 }
 0x4c7   : > { %21293 = vst [vmem:[#allocation360_spill] sm:$0xff] %v18277_v57  ;;  %v8047_v6 = vsel %vm7779_vm5, %v8046_v52, %v8045_v41  ;;  %v5819_v49 = vrot.slane %v5818_v34, 4  ;;  %v7669_v61 = vunpack.c.l.b16 %v7129_v42  ;;  %v18284_v17 = vmax.f32 %v6619_v3, 0.0 }
 0x4c8   : > { %v21295_v0 = vrot.slane %v18178_v10, 1  ;;  %v8049_v5 = vsel %vm7782_vm6, %v8048_v55, %v8047_v6  ;;  %v5828_v27 = vrot.slane %v5827_v31, 2  ;;  %v21298_v35 = vrot.slane %v21297_v62, 5 }
 0x4c9   : > { %21294 = vst [vmem:[#allocation361_spill] sm:$0xff] %v18284_v17  ;;  %v5820_v32 = vmax.f32 %v5818_v34, %v5819_v49  ;;  %v8661_v42 = vadd.f32 1.0, %v13238_v38  ;;  %v7667_v11 = vunpack.c.l.b16 %v7127_v14  ;;  %v7132_v10 = vpack.c.bf16 %v18277_v57, %v18277_v57  ;;  %v21299_v14 = vld [vmem:[#allocation40_spill] sm:$0xff]  ;;  %v21302_v38 = vld [vmem:[#allocation63_spill] sm:$0xff]  ;;  %10486 = vmatpush1.bf16.msra.mxu1 %v13186_v29  ;;  %v21421_v57 = vld [vmem:[#allocation26_spill] sm:$0xff] }
 0x4ca   : > { %v8035_v59 = vsel %vm7782_vm6, %v21295_v0, %v8033_v60  ;;  %v8069_v52 = vsel %vm7770_vm2, %v21298_v35, %v21296_v36  ;;  %v7131_v20 = vpack.c.bf16 %v18284_v17, %v18284_v17  ;;  %v5829_v15 = vmax.f32 %v5827_v31, %v5828_v27  ;;  %v13240_v53 = vpop.eup %13239  ;;  %v21305_v31 = vld [vmem:[#allocation104_spill] sm:$0xff]  ;;  %v21307_v36 = vld [vmem:[#allocation73_spill] sm:$0xff]  ;;  %v21423_v17 = vld [vmem:[#allocation34_spill] sm:$0xff] }
 0x4cb   : > { %v8227_v25 = vpack.c.b16 %v8049_v5, %v8035_v59  ;;  %v5821_v60 = vrot.slane %v5820_v32, 2  ;;  %v7670_v34 = vunpack.c.l.b16 %v7130_v48  ;;  %v8052_v3 = vrot.slane %v7669_v61, 6  ;;  %v21304_v5 = vld [vmem:[#allocation110_spill] sm:$0xff] }
 0x4cc   : > { %v21300_v41 = vrot.slane %v21299_v14, 4  ;;  %v21303_v6 = vrot.slane %v21302_v38, 5  ;;  %v7671_v43 = vunpack.c.l.b16 %v7131_v20  ;;  %v5830_v0 = vrot.slane %v5829_v15, 1 }
 0x4cd   : > { %8453 = vmatmul.mubr.bf16.gmra.mxu1 %v8227_v25  ;;  %v5822_v59 = vmax.f32 %v5820_v32, %v5821_v60  ;;  %v21306_v25 = vrot.slane %v21305_v31, 5  ;;  %13241 = vrcp.f32 %v8661_v42  ;;  %v8051_v61 = vsel %vm7764_vm0, %v8050_v1, %v7667_v11  ;;  %v21311_v60 = vld [vmem:[#allocation90_spill] sm:$0xff]  ;;  %v21314_v11 = vld [vmem:[#allocation116_spill] sm:$0xff] }
 0x4ce   : > { %8462 = vmatprep.mubr.bf16.mxu1 %v20940_v45  ;;  %v8071_v40 = vsel %vm7773_vm3, %v21300_v41, %v8069_v52  ;;  %v8083_v49 = vsel %vm7770_vm2, %v21303_v6, %v21301_v2  ;;  %v7672_v27 = vunpack.c.l.b16 %v7132_v10  ;;  %v21308_v62 = vrot.slane %v21307_v36, 4  ;;  %v21309_v41 = vld [vmem:[#allocation37_spill] sm:$0xff] }
 0x4cf   : > { %v8097_v48 = vsel %vm7770_vm2, %v21306_v25, %v21304_v5  ;;  %v5831_v52 = vmax.f32 %v5829_v15, %v5830_v0  ;;  %v5823_v14 = vrot.slane %v5822_v59, 1  ;;  %v21310_v20 = vrot.slane %v21309_v41, 3  ;;  %v21312_v2 = vld [vmem:[#allocation141_spill] sm:$0xff]  ;;  %v13460_v0 = vld [vmem:[#allocation7] ss:$0 sm:$0xff]  ;;  %v21316_v25 = vld [vmem:[#allocation66_spill] sm:$0xff] }
 0x4d0   : > { %v8085_v35 = vsel %vm7773_vm3, %v21308_v62, %v8083_v49  ;;  %v21313_v38 = vrot.slane %v21312_v2, 5  ;;  %v18323_v29 = vadd.f32 1.0, %v13240_v53  ;;  %v8054_v42 = vrot.slane %v7670_v34, 5  ;;  %v21318_v41 = vld [vmem:[#allocation48_spill] sm:$0xff]  ;;  %v21320_v34 = vld [vmem:[#allocation147_spill] sm:$0xff] }
 0x4d1   : > { %v8073_v32 = vsel %vm7776_vm4, %v21310_v20, %v8071_v40  ;;  %v8053_v1 = vsel %vm7767_vm1, %v8052_v3, %v8051_v61  ;;  %v21315_v10 = vrot.slane %v21314_v11, 4  ;;  %v8056_v15 = vrot.slane %v7671_v43, 4  ;;  %v21322_v61 = vld [vmem:[#allocation107_spill] sm:$0xff] }
 0x4d2   : > { %v8111_v6 = vsel %vm7770_vm2, %v21313_v38, %v21311_v60  ;;  %v6622_v5 = vadd.f32 %v13460_v0, %v5831_v52  ;;  %v5824_v31 = vmax.f32 %v5822_v59, %v5823_v14  ;;  %v21317_v40 = vrot.slane %v21316_v25, 3  ;;  %v21323_v2 = vld [vmem:[#allocation167_spill] sm:$0xff]  ;;  %v21326_v14 = vld [vmem:[#allocation108_spill] sm:$0xff] }
 0x4d3   : > { %v8099_v49 = vsel %vm7773_vm3, %v21315_v10, %v8097_v48  ;;  %v8058_v62 = vrot.slane %v7672_v27, 3  ;;  %v21319_v20 = vrot.slane %v21318_v41, 2  ;;  %v21321_v60 = vrot.slane %v21320_v34, 4  ;;  %v21330_v25 = vld [vmem:[#allocation87_spill] sm:$0xff]  ;;  %v21332_v41 = vld [vmem:[#allocation89_spill] sm:$0xff] }
 0x4d4   : > { %v8087_v36 = vsel %vm7776_vm4, %v21317_v40, %v8085_v35  ;;  %v21324_v48 = vrot.slane %v21323_v2, 5  ;;  %v18342_v52 = vmax.f32 %v6622_v5, 0.0  ;;  %v6621_v59 = vadd.f32 %v13460_v0, %v5824_v31  ;;  %v21328_v35 = vld [vmem:[#allocation114_spill] sm:$0xff]  ;;  %v21334_v34 = vld [vmem:[#allocation187_spill] sm:$0xff] }
 0x4d5   : > { %v8075_v53 = vsel %vm7779_vm5, %v21319_v20, %v8073_v32  ;;  %v8113_v3 = vsel %vm7773_vm3, %v21321_v60, %v8111_v6  ;;  %v21327_v38 = vrot.slane %v21326_v14, 3  ;;  %v21329_v11 = vrot.slane %v21328_v35, 4  ;;  %v21335_v0 = vld [vmem:[#allocation134_spill] sm:$0xff] }
 0x4d6   : > { %v8125_v43 = vsel %vm7770_vm2, %v21324_v48, %v21322_v61  ;;  %21325 = vst [vmem:[#allocation38_spill] sm:$0xff] %v18342_v52  ;;  %v8055_v10 = vsel %vm7770_vm2, %v8054_v42, %v8053_v1  ;;  %v21331_v6 = vrot.slane %v21330_v25, 2  ;;  %v21333_v20 = vrot.slane %v21332_v41, 3  ;;  %v21338_v1 = vld [vmem:[#allocation47_spill] sm:$0xff]  ;;  %v21340_v48 = vld [vmem:[#allocation129_spill] sm:$0xff]  ;;  %v21342_v14 = vld [vmem:[#allocation170_spill] sm:$0xff] }
 0x4d7   : > { %v8101_v27 = vsel %vm7776_vm4, %v21327_v38, %v8099_v49  ;;  %v8127_v32 = vsel %vm7773_vm3, %v21329_v11, %v8125_v43  ;;  %v21336_v31 = vrot.slane %v21335_v0, 5  ;;  %v7134_v49 = vpack.c.bf16 %v18342_v52, %v18342_v52  ;;  %v21344_v11 = vld [vmem:[#allocation208_spill] sm:$0xff]  ;;  %v21347_v41 = vld [vmem:[#allocation229_spill] sm:$0xff] }
 0x4d8   : > { %v8089_v40 = vsel %vm7779_vm5, %v21331_v6, %v8087_v36  ;;  %v8115_v5 = vsel %vm7776_vm4, %v21333_v20, %v8113_v3  ;;  %v18363_v61 = vmax.f32 %v6621_v59, 0.0  ;;  %v8057_v42 = vsel %vm7773_vm3, %v8056_v15, %v8055_v10  ;;  %v21345_v25 = vld [vmem:[#allocation200_spill] sm:$0xff]  ;;  %v21348_v20 = vld [vmem:[#allocation219_spill] sm:$0xff] }
 0x4d9   : > { %v8139_v60 = vsel %vm7770_vm2, %v21336_v31, %v21334_v34  ;;  %v21339_v2 = vrot.slane %v21338_v1, 1  ;;  %v21341_v43 = vrot.slane %v21340_v48, 2  ;;  %v21343_v38 = vrot.slane %v21342_v14, 3  ;;  %v21350_v34 = vld [vmem:[#allocation79_spill] sm:$0xff]  ;;  %v21352_v31 = vld [vmem:[#allocation156_spill] sm:$0xff] }
 0x4da   : > { %21337 = vst [vmem:[#allocation35_spill] sm:$0xff] %v18363_v61  ;;  %v21346_v6 = vrot.slane %v21345_v25, 5  ;;  %v21349_v15 = vrot.slane %v21348_v20, 5  ;;  %v21351_v0 = vrot.slane %v21350_v34, 1  ;;  %v7674_v14 = vunpack.c.l.b16 %v7134_v49  ;;  %v21365_v49 = vld [vmem:[#allocation177_spill] sm:$0xff] }
 0x4db   : > { %v8077_v36 = vsel %vm7782_vm6, %v21339_v2, %v8075_v53  ;;  %v8103_v3 = vsel %vm7779_vm5, %v21341_v43, %v8101_v27  ;;  %v8129_v35 = vsel %vm7776_vm4, %v21343_v38, %v8127_v32  ;;  %v7133_v53 = vpack.c.bf16 %v18363_v61, %v18363_v61  ;;  %v21354_v2 = vld [vmem:[#allocation188_spill] sm:$0xff]  ;;  %v21356_v38 = vld [vmem:[#allocation209_spill] sm:$0xff] }
 0x4dc   : > { %v8153_v59 = vsel %vm7770_vm2, %v21346_v6, %v21344_v11  ;;  %v8167_v10 = vsel %vm7770_vm2, %v21349_v15, %v21347_v41  ;;  %v18388_v27 = vsel %vm7782_vm6, %v21351_v0, %v8089_v40  ;;  %v21353_v32 = vrot.slane %v21352_v31, 2  ;;  %v21358_v6 = vld [vmem:[#allocation222_spill] sm:$0xff]  ;;  %v21360_v15 = vld [vmem:[#allocation244_spill] sm:$0xff]  ;;  %v21361_v40 = vld [vmem:[#allocation235_spill] sm:$0xff] }
 0x4dd   : > { %v21355_v48 = vrot.slane %v21354_v2, 4  ;;  %v21357_v11 = vrot.slane %v21356_v38, 4  ;;  %v21359_v41 = vrot.slane %v21358_v6, 4  ;;  %v21362_v34 = vrot.slane %v21361_v40, 5  ;;  %v21367_v38 = vld [vmem:[#allocation183_spill] sm:$0xff]  ;;  %v21369_v6 = vld [vmem:[#allocation49_spill] sm:$0xff] }
 0x4de   : > { %v8117_v1 = vsel %vm7779_vm5, %v21353_v32, %v8115_v5  ;;  %v7673_v31 = vunpack.c.l.b16 %v7133_v53  ;;  %v8059_v5 = vsel %vm7776_vm4, %v8058_v62, %v8057_v42  ;;  %v21363_v32 = vld [vmem:[#allocation125_spill] sm:$0xff]  ;;  %v21371_v53 = vld [vmem:[#allocation243_spill] sm:$0xff]  ;;  %13243 = vrcp.f32 %v18323_v29 }
 0x4df   : > { %v8141_v43 = vsel %vm7773_vm3, %v21355_v48, %v8139_v60  ;;  %v8155_v25 = vsel %vm7773_vm3, %v21357_v11, %v8153_v59  ;;  %v8169_v20 = vsel %vm7773_vm3, %v21359_v41, %v8167_v10  ;;  %v8181_v0 = vsel %vm7770_vm2, %v21362_v34, %v21360_v15  ;;  %v21373_v42 = vld [vmem:[#allocation269_spill] sm:$0xff] }
 0x4e0   : > { %v21364_v2 = vrot.slane %v21363_v32, 1  ;;  %v21366_v48 = vrot.slane %v21365_v49, 2  ;;  %v21368_v11 = vrot.slane %v21367_v38, 3  ;;  %v21370_v41 = vrot.slane %v21369_v6, 3  ;;  %v21374_v34 = vld [vmem:[#allocation257_spill] sm:$0xff]  ;;  %v21376_v49 = vld [vmem:[#allocation99_spill] sm:$0xff] }
 0x4e1   : > { %v21372_v40 = vrot.slane %v21371_v53, 4  ;;  %v21378_v38 = vld [vmem:[#allocation146_spill] sm:$0xff]  ;;  %v21380_v6 = vld [vmem:[#allocation112_spill] sm:$0xff]  ;;  %v8062_v53 = vrot.slane %v7674_v14, 1 }
 0x4e2   : > { %v18410_v60 = vsel %vm7782_vm6, %v21364_v2, %v8103_v3  ;;  %v8131_v59 = vsel %vm7779_vm5, %v21366_v48, %v8129_v35  ;;  %v8143_v10 = vsel %vm7776_vm4, %v21368_v11, %v8141_v43  ;;  %v8157_v15 = vsel %vm7776_vm4, %v21370_v41, %v8155_v25  ;;  %v18428_v2 = vpop.eup %13241 }
 0x4e3   : > { %v8183_v62 = vsel %vm7773_vm3, %v21372_v40, %v8181_v0  ;;  %v21375_v3 = vrot.slane %v21374_v34, 5  ;;  %v8060_v35 = vrot.slane %v7673_v31, 2  ;;  %v21377_v48 = vrot.slane %v21376_v49, 1  ;;  %v21382_v40 = vld [vmem:[#allocation127_spill] sm:$0xff]  ;;  %v21384_v31 = vld [vmem:[#allocation270_spill] sm:$0xff] }
 0x4e4   : > { %v21379_v11 = vrot.slane %v21378_v38, 3  ;;  %v21381_v41 = vrot.slane %v21380_v6, 3  ;;  %v21383_v34 = vrot.slane %v21382_v40, 1  ;;  %v21393_v40 = vld [vmem:[#allocation72_spill] sm:$0xff] }
 0x4e5   : > { %v8195_v32 = vsel %vm7770_vm2, %v21375_v3, %v21373_v42  ;;  %v18433_v43 = vsel %vm7782_vm6, %v21377_v48, %v8117_v1  ;;  %v21385_v3 = vrot.slane %v21384_v31, 4  ;;  %v21386_v1 = vld [vmem:[#allocation292_spill] sm:$0xff]  ;;  %v21387_v48 = vld [vmem:[#allocation281_spill] sm:$0xff] }
 0x4e6   : > { %v8171_v25 = vsel %vm7776_vm4, %v21379_v11, %v8169_v20  ;;  %v8185_v0 = vsel %vm7776_vm4, %v21381_v41, %v8183_v62  ;;  %v18444_v42 = vsel %vm7782_vm6, %v21383_v34, %v8131_v59  ;;  %v21388_v47 = vrot.slane %v21387_v48, 5  ;;  %v21389_v11 = vld [vmem:[#allocation96_spill] sm:$0xff]  ;;  %v21391_v62 = vld [vmem:[#allocation215_spill] sm:$0xff] }
 0x4e7   : > { %v8197_v49 = vsel %vm7773_vm3, %v21385_v3, %v8195_v32  ;;  %v8061_v20 = vsel %vm7779_vm5, %v8060_v35, %v8059_v5  ;;  %v21390_v6 = vrot.slane %v21389_v11, 2  ;;  %v21392_v41 = vrot.slane %v21391_v62, 2  ;;  %v21395_v3 = vld [vmem:[#allocation232_spill] sm:$0xff]  ;;  %v21399_v11 = vld [vmem:[#allocation290_spill] sm:$0xff] }
 0x4e8   : > { %v8209_v38 = vsel %vm7770_vm2, %v21388_v47, %v21386_v1  ;;  %v21394_v34 = vrot.slane %v21393_v40, 3  ;;  %v8063_v32 = vsel %vm7782_vm6, %v8062_v53, %v8061_v20  ;;  %v21396_v48 = vrot.slane %v21395_v3, 2  ;;  %v21397_v1 = vld [vmem:[#allocation251_spill] sm:$0xff]  ;;  %v21401_v62 = vld [vmem:[#allocation278_spill] sm:$0xff] }
 0x4e9   : > { %v8145_v14 = vsel %vm7779_vm5, %v21390_v6, %v8143_v10  ;;  %v8159_v59 = vsel %vm7779_vm5, %v21392_v41, %v8157_v15  ;;  %v21398_v5 = vrot.slane %v21397_v1, 2  ;;  %v21400_v10 = vrot.slane %v21399_v11, 4  ;;  %v21403_v41 = vld [vmem:[#allocation192_spill] sm:$0xff] }
 0x4ea   : > { %v8199_v31 = vsel %vm7776_vm4, %v21394_v34, %v8197_v49  ;;  %v8173_v47 = vsel %vm7779_vm5, %v21396_v48, %v8171_v25  ;;  %v8228_v15 = vpack.c.b16 %v8077_v36, %v8063_v32  ;;  %v8229_v49 = vpack.c.b16 %v18410_v60, %v18388_v27  ;;  %v21405_v34 = vld [vmem:[#allocation306_spill] sm:$0xff]  ;;  %v21408_v60 = vld [vmem:[#allocation189_spill] sm:$0xff]  ;;  %v21410_v48 = vld [vmem:[#allocation247_spill] sm:$0xff] }
 0x4eb   : > { %v8187_v35 = vsel %vm7779_vm5, %v21398_v5, %v8185_v0  ;;  %v8211_v6 = vsel %vm7773_vm3, %v21400_v10, %v8209_v38  ;;  %v21402_v53 = vrot.slane %v21401_v62, 2  ;;  %v21404_v40 = vrot.slane %v21403_v41, 1  ;;  %v21406_v36 = vld [vmem:[#allocation106_spill] sm:$0xff]  ;;  %v21412_v5 = vld [vmem:[#allocation285_spill] sm:$0xff] }
 0x4ec   : > { %v8843_v38 = vrot.slane %v21405_v34, 1  ;;  %v8844_v29 = vrot.slane %v21405_v34, 2  ;;  %8463 = vmatmul.mubr.bf16.gmra.mxu1 %v8228_v15  ;;  %v21407_v32 = vrot.slane %v21406_v36, 1  ;;  %v21411_v1 = vrot.slane %v21410_v48, 1  ;;  %v21414_v15 = vld [vmem:[#allocation225_spill] sm:$0xff]  ;;  %v21416_v36 = vld [vmem:[#allocation180_spill] sm:$0xff] }
 0x4ed   : > { %v8201_v20 = vsel %vm7779_vm5, %v21402_v53, %v8199_v31  ;;  %v18484_v0 = vsel %vm7782_vm6, %v21404_v40, %v8145_v14  ;;  %v21409_v31 = vrot.slane %v21408_v60, 1  ;;  %v21413_v11 = vrot.slane %v21412_v5, 3  ;;  %8472 = vmatprep.mubr.bf16.mxu1 %v20940_v45  ;;  %v21417_v60 = vld [vmem:[#allocation255_spill] sm:$0xff] }
 0x4ee   : > { %v18491_v27 = vsel %vm7782_vm6, %v21407_v32, %v8159_v59  ;;  %v18501_v14 = vsel %vm7782_vm6, %v21411_v1, %v8187_v35  ;;  %v21415_v62 = vrot.slane %v21414_v15, 1  ;;  %v8845_v53 = vrot.slane %v21405_v34, 3  ;;  %v21419_v1 = vld [vmem:[#allocation24_spill] sm:$0xff] }
 0x4ef   : > { %v18496_v3 = vsel %vm7782_vm6, %v21409_v31, %v8173_v47  ;;  %v8213_v10 = vsel %vm7776_vm4, %v21413_v11, %v8211_v6  ;;  %v8846_v47 = vrot.slane %v21405_v34, 4  ;;  %v8847_v41 = vrot.slane %v21405_v34, 5  ;;  %v21420_v11 = vld [vmem:[#allocation30_spill] sm:$0xff] }
 0x4f0   : > { %v18510_v59 = vsel %vm7782_vm6, %v21415_v62, %v8201_v20  ;;  %v8848_v35 = vrot.slane %v21405_v34, 6  ;;  %v8849_v40 = vrot.slane %v21405_v34, 7  ;;  %v8850_v32 = vrot.slane %v21416_v36, 1  ;;  %v18525_v62 = vpop.f32.mrf.mxu1 }
 0x4f1   : > { %v8851_v6 = vrot.slane %v21416_v36, 2  ;;  %v21418_v31 = vrot.slane %v21417_v60, 2  ;;  %v8852_v20 = vrot.slane %v21416_v36, 3  ;;  %v9324_v5 = vmul.f32 %v8843_v38, %v21419_v1  ;;  %v21424_v38 = vld [vmem:[#allocation32_spill] sm:$0xff] }
 0x4f2   : > { %v9325_v15 = vmul.f32 %v8844_v29, %v21420_v11  ;;  %v8853_v55 = vrot.slane %v21416_v36, 4  ;;  %v8854_v25 = vrot.slane %v21416_v36, 5  ;;  %v8855_v52 = vrot.slane %v21416_v36, 6  ;;  %v8426_v29 = vpop.f32.mrf.mxu1  ;;  %v21425_v11 = vld [vmem:[#allocation42_spill] sm:$0xff] }
 0x4f3   : > { %v8215_v48 = vsel %vm7779_vm5, %v21418_v31, %v8213_v10  ;;  %v8856_v61 = vrot.slane %v21416_v36, 7  ;;  %v9323_v60 = vmul.f32 %v21405_v34, %v21421_v57  ;;  %v21422_v10 = vld [vmem:[#allocation28_spill] sm:$0xff]  ;;  %v9327_v63 = vmul.f32 %v8846_v47, %v21423_v17  ;;  %v21430_v17 = vld [vmem:[#allocation53_spill] sm:$0xff] }
 0x4f4   : > { %v9326_v31 = vmul.f32 %v8845_v53, %v21422_v10  ;;  %v9328_v1 = vmul.f32 %v8847_v41, %v21424_v38  ;;  %v9329_v4 = vmul.f32 %v8848_v35, %v21425_v11  ;;  %v9330_v26 = vmul.f32 %v8849_v40, %v21426_v30  ;;  %v18543_v10 = vpop.f32.mrf.mxu1  ;;  %8473 = vmatmul.mubr.bf16.gmra.mxu1 %v8229_v49  ;;  %v21431_v41 = vld [vmem:[#allocation62_spill] sm:$0xff]  ;;  %v21432_v38 = vld [vmem:[#allocation60_spill] sm:$0xff]  ;;  %v18553_v11 = vpop.eup %13243 }
 0x4f5   : > { %v9332_v18 = vmul.f32 %v8850_v32, %v21427_v7  ;;  %v9333_v9 = vmul.f32 %v8851_v6, %v21428_v28  ;;  %v8427_v54 = vadd.f32 %v8426_v29, %v21281_v13  ;;  %v9331_v57 = vmul.f32 %v21416_v36, %v21429_v19  ;;  %v21433_v40 = vld [vmem:[#allocation76_spill] sm:$0xff]  ;;  %8482 = vmatprep.mubr.bf16.mxu1 %v20940_v45  ;;  %v21434_v28 = vld [vmem:[#allocation70_spill] sm:$0xff] }
 0x4f6   : > { %v9835_v34 = vrot.slane %v9324_v5, 7  ;;  %v9837_v53 = vrot.slane %v9325_v15, 6  ;;  %v9334_v47 = vmul.f32 %v8852_v20, %v21430_v17  ;;  %v9335_v35 = vmul.f32 %v8853_v55, %v21431_v41  ;;  %v8430_v5 = vpop.f32.mrf.mxu1 }
 0x4f7   : > { %v9336_v30 = vmul.f32 %v8854_v25, %v21432_v38  ;;  %v9337_v7 = vmul.f32 %v8855_v52, %v21433_v40  ;;  %v11778_v32 = vmul.f32 -1.442695, %v8427_v54  ;;  %v9338_v6 = vmul.f32 %v8856_v61, %v21434_v28 }
 0x4f8   : > { %v9836_v19 = vsel %vm7764_vm0, %v9835_v34, %v9323_v60  ;;  %v9839_v36 = vrot.slane %v9326_v31, 5  ;;  %v9841_v49 = vrot.slane %v9327_v63, 4  ;;  %v9849_v29 = vrot.slane %v9332_v18, 7  ;;  %v21435_v63 = vld [vmem:[#allocation299_spill] sm:$0xff] }
 0x4f9   : > { %v9838_v15 = vsel %vm7767_vm1, %v9837_v53, %v9836_v19  ;;  %v9851_v20 = vrot.slane %v9333_v9, 6  ;;  %v8431_v55 = vadd.f32 %v8430_v5, %v21281_v13  ;;  %v9843_v54 = vrot.slane %v9328_v1, 3 }
 0x4fa   : > { %v9840_v52 = vsel %vm7770_vm2, %v9839_v36, %v9838_v15  ;;  %v9845_v25 = vrot.slane %v9329_v4, 2  ;;  %13245 = vpow2.f32 %v11778_v32  ;;  %v9850_v60 = vsel %vm7764_vm0, %v9849_v29, %v9331_v57  ;;  %v21441_v29 = vld [vmem:[#allocation262_spill] sm:$0xff] }
 0x4fb   : > { %v9842_v61 = vsel %vm7773_vm3, %v9841_v49, %v9840_v52  ;;  %v9853_v31 = vrot.slane %v9334_v47, 5  ;;  %v11779_v34 = vmul.f32 -1.442695, %v8431_v55  ;;  %v9852_v18 = vsel %vm7767_vm1, %v9851_v20, %v9850_v60 }
 0x4fc   : > { %v9844_v53 = vsel %vm7776_vm4, %v9843_v54, %v9842_v61  ;;  %v9855_v9 = vrot.slane %v9335_v35, 4  ;;  %v21436_v17 = vrot.slane %v21435_v63, 1  ;;  %v9857_v38 = vrot.slane %v9336_v30, 3  ;;  %v21442_v54 = vld [vmem:[#allocation308_spill] sm:$0xff] }
 0x4fd   : > { %v9846_v1 = vsel %vm7779_vm5, %v9845_v25, %v9844_v53  ;;  %v9854_v4 = vsel %vm7770_vm2, %v9853_v31, %v9852_v18  ;;  %13247 = vpow2.f32 %v11779_v34  ;;  %v9847_v40 = vrot.slane %v9330_v26, 1  ;;  %v21445_v53 = vld [vmem:[#allocation80_spill] sm:$0xff] }
 0x4fe   : > { %v18564_v41 = vsel %vm7782_vm6, %v21436_v17, %v8215_v48  ;;  %v9856_v57 = vsel %vm7773_vm3, %v9855_v9, %v9854_v4  ;;  %v9859_v47 = vrot.slane %v9337_v7, 2  ;;  %v18570_v32 = vsub.f32 1.0, %v18428_v2  ;;  %v21438_v7 = vld [vmem:[#allocation307_spill] sm:$0xff]  ;;  %v21447_v17 = vld [vmem:[#allocation136_spill] sm:$0xff] }
 0x4ff   : > { %v18573_v35 = vsub.f32 1.0, %v18553_v11  ;;  %v21437_v48 = vpack.c.b16 %v18444_v42, %v18433_v43  ;;  %v9858_v28 = vsel %vm7776_vm4, %v9857_v38, %v9856_v57  ;;  %v9861_v19 = vrot.slane %v9338_v6, 1  ;;  %v21439_v6 = vld [vmem:[#allocation294_spill] sm:$0xff]  ;;  %v21446_v9 = vld [vmem:[#allocation95_spill] sm:$0xff] }
 0x500   : > { %v9848_v26 = vsel %vm7782_vm6, %v9847_v40, %v9846_v1  ;;  %v9860_v30 = vsel %vm7779_vm5, %v9859_v47, %v9858_v28  ;;  %v8857_v36 = vrot.slane %v21438_v7, 1  ;;  %v8858_v5 = vrot.slane %v21438_v7, 2  ;;  %v21449_v47 = vld [vmem:[#allocation93_spill] sm:$0xff]  ;;  %v21450_v28 = vld [vmem:[#allocation118_spill] sm:$0xff] }
 0x501   : > { %8483 = vmatmul.mubr.bf16.gmra.mxu1 %v21437_v48  ;;  %v8231_v15 = vpack.c.b16 %v18491_v27, %v18484_v0  ;;  %v8232_v43 = vpack.c.b16 %v18501_v14, %v18496_v3  ;;  %v21440_v49 = vmax.f32 %v21439_v6, 0.0  ;;  %v9862_v55 = vsel %vm7782_vm6, %v9861_v19, %v9860_v30  ;;  %v21443_v0 = vld [vmem:[#allocation303_spill] sm:$0xff]  ;;  %v21453_v6 = vld [vmem:[#allocation109_spill] sm:$0xff] }
 0x502   : > { %8492 = vmatprep.mubr.bf16.mxu1 %v20940_v45  ;;  %v8859_v52 = vrot.slane %v21438_v7, 3  ;;  %v8864_v25 = vrot.slane %v21442_v54, 1  ;;  %v8865_v61 = vrot.slane %v21442_v54, 2  ;;  %v18600_v27 = vadd.f32 %v9848_v26, %v21443_v0  ;;  %v21451_v26 = vld [vmem:[#allocation75_spill] sm:$0xff] }
 0x503   : > { %v18593_v20 = vmul.f32 %v21441_v29, %v21440_v49  ;;  %v8860_v3 = vrot.slane %v21438_v7, 4  ;;  %v8861_v14 = vrot.slane %v21438_v7, 5  ;;  %v8862_v60 = vrot.slane %v21438_v7, 6  ;;  %v21454_v29 = vld [vmem:[#allocation101_spill] sm:$0xff]  ;;  %v21455_v0 = vld [vmem:[#allocation119_spill] sm:$0xff] }
 0x504   : > { %21444 = vst [vmem:[#allocation40_spill] sm:$0xff] %v18600_v27  ;;  %v8863_v31 = vrot.slane %v21438_v7, 7  ;;  %v8866_v34 = vrot.slane %v21442_v54, 3  ;;  %v9340_v18 = vmul.f32 %v8857_v36, %v21445_v53  ;;  %v9341_v63 = vmul.f32 %v8858_v5, %v21446_v9  ;;  %v21452_v36 = vld [vmem:[#allocation85_spill] sm:$0xff] }
 0x505   : > { %v18610_v1 = vadd.f32 %v9862_v55, %v21447_v17  ;;  %v8867_v4 = vrot.slane %v21442_v54, 4  ;;  %v8868_v38 = vrot.slane %v21442_v54, 5  ;;  %v8869_v40 = vrot.slane %v21442_v54, 6  ;;  %v21456_v17 = vld [vmem:[#allocation64_spill] sm:$0xff] }
 0x506   : > { %v8870_v57 = vrot.slane %v21442_v54, 7  ;;  %v9342_v48 = vmul.f32 %v8859_v52, %v21449_v47  ;;  %v9348_v19 = vmul.f32 %v8864_v25, %v21450_v28  ;;  %v9349_v30 = vmul.f32 %v8865_v61, %v21451_v26  ;;  %v21457_v52 = vld [vmem:[#allocation131_spill] sm:$0xff]  ;;  %v21458_v61 = vld [vmem:[#allocation78_spill] sm:$0xff]  ;;  %v21459_v26 = vld [vmem:[#allocation56_spill] sm:$0xff] }
 0x507   : > { %21448 = vst [vmem:[#allocation69_spill] sm:$0xff] %v18610_v1  ;;  %v9339_v5 = vmul.f32 %v21438_v7, %v21452_v36  ;;  %v9343_v49 = vmul.f32 %v8860_v3, %v21453_v6  ;;  %v9344_v55 = vmul.f32 %v8861_v14, %v21454_v29  ;;  %v9345_v53 = vmul.f32 %v8862_v60, %v21455_v0  ;;  %v13246_v9 = vpop.eup %13245  ;;  %v21460_v36 = vld [vmem:[#allocation138_spill] sm:$0xff] }
 0x508   : > { %v9346_v42 = vmul.f32 %v8863_v31, %v21456_v17  ;;  %v9350_v47 = vmul.f32 %v8866_v34, %v21457_v52  ;;  %v9863_v25 = vrot.slane %v9340_v18, 7  ;;  %v9865_v28 = vrot.slane %v9341_v63, 6  ;;  %v21461_v6 = vld [vmem:[#allocation150_spill] sm:$0xff]  ;;  %v21462_v17 = vld [vmem:[#allocation97_spill] sm:$0xff] }
 0x509   : > { %8493 = vmatmul.mubr.bf16.gmra.mxu1 %v8231_v15  ;;  %v9347_v15 = vmul.f32 %v21442_v54, %v21458_v61  ;;  %v9351_v7 = vmul.f32 %v8867_v4, %v21459_v26  ;;  %v9352_v3 = vmul.f32 %v8868_v38, %v21460_v36  ;;  %v9353_v14 = vmul.f32 %v8869_v40, %v21461_v6  ;;  %v21466_v36 = vld [vmem:[#allocation328_spill] sm:$0xff] }
 0x50a   : > { %8502 = vmatprep.mubr.bf16.mxu1 %v20940_v45  ;;  %v9864_v60 = vsel %vm7764_vm0, %v9863_v25, %v9339_v5  ;;  %v9867_v29 = vrot.slane %v9342_v48, 5  ;;  %v9877_v0 = vrot.slane %v9348_v19, 7  ;;  %v9879_v39 = vrot.slane %v9349_v30, 6  ;;  %v13248_v50 = vpop.eup %13247 }
 0x50b   : > { %v8663_v31 = vadd.f32 1.0, %v13246_v9  ;;  %v9354_v34 = vmul.f32 %v8870_v57, %v21462_v17  ;;  %v9866_v18 = vsel %vm7767_vm1, %v9865_v28, %v9864_v60  ;;  %v9869_v63 = vrot.slane %v9343_v49, 4  ;;  %v21463_v49 = vld [vmem:[#allocation250_spill] sm:$0xff]  ;;  %v21465_v28 = vld [vmem:[#allocation144_spill] sm:$0xff] }
 0x50c   : > { %v9868_v54 = vsel %vm7770_vm2, %v9867_v29, %v9866_v18  ;;  %v9871_v52 = vrot.slane %v9344_v55, 3  ;;  %v9878_v4 = vsel %vm7764_vm0, %v9877_v0, %v9347_v15  ;;  %v9881_v38 = vrot.slane %v9350_v47, 5  ;;  %v21469_v0 = vld [vmem:[#allocation242_spill] sm:$0xff] }
 0x50d   : > { %v9870_v40 = vsel %vm7773_vm3, %v9869_v63, %v9868_v54  ;;  %v9873_v61 = vrot.slane %v9345_v53, 2  ;;  %v9880_v48 = vsel %vm7767_vm1, %v9879_v39, %v9878_v4  ;;  %v9883_v19 = vrot.slane %v9351_v7, 4  ;;  %v21470_v17 = vld [vmem:[#allocation310_spill] sm:$0xff] }
 0x50e   : > { %v8664_v30 = vadd.f32 1.0, %v13248_v50  ;;  %v9872_v5 = vsel %vm7776_vm4, %v9871_v52, %v9870_v40  ;;  %v9882_v57 = vsel %vm7770_vm2, %v9881_v38, %v9880_v48  ;;  %v9885_v9 = vrot.slane %v9352_v3, 3  ;;  %v21473_v52 = vld [vmem:[#allocation329_spill] sm:$0xff] }
 0x50f   : > { %v21464_v25 = vmax.f32 %v21463_v49, 0.0  ;;  %v9874_v15 = vsel %vm7779_vm5, %v9873_v61, %v9872_v5  ;;  %v9884_v47 = vsel %vm7773_vm3, %v9883_v19, %v9882_v57  ;;  %v9887_v26 = vrot.slane %v9353_v14, 2  ;;  %v21467_v14 = vld [vmem:[#allocation272_spill] sm:$0xff]  ;;  %v21475_v49 = vld [vmem:[#allocation161_spill] sm:$0xff] }
 0x510   : > { %13249 = vrcp.f32 %v8663_v31  ;;  %v10347_v39 = vpack.c.bf16 %v18610_v1, %v18600_v27  ;;  %v9875_v50 = vrot.slane %v9346_v42, 1  ;;  %v9886_v53 = vsel %vm7776_vm4, %v9885_v9, %v9884_v47  ;;  %v21472_v42 = vld [vmem:[#allocation158_spill] sm:$0xff]  ;;  %v21474_v57 = vld [vmem:[#allocation148_spill] sm:$0xff]  ;;  %v21487_v1 = vld [vmem:[#allocation91_spill] sm:$0xff] }
 0x511   : > { %8503 = vmatmul.mubr.bf16.gmra.mxu1 %v8232_v43  ;;  %v8750_v55 = vmul.f32 %v21465_v28, %v21464_v25  ;;  %v9888_v43 = vsel %vm7779_vm5, %v9887_v26, %v9886_v53  ;;  %v9889_v7 = vrot.slane %v9354_v34, 1  ;;  %v8871_v3 = vrot.slane %v21466_v36, 1  ;;  %v21478_v53 = vld [vmem:[#allocation102_spill] sm:$0xff] }
 0x512   : > { %8512 = vmatprep.mubr.bf16.mxu1 %v20940_v45  ;;  %v8872_v6 = vrot.slane %v21466_v36, 2  ;;  %13251 = vrcp.f32 %v8664_v30  ;;  %v9876_v60 = vsel %vm7782_vm6, %v9875_v50, %v9874_v15  ;;  %v21468_v29 = vmax.f32 %v21467_v14, 0.0 }
 0x513   : > { %v21471_v18 = vmax.f32 %v21470_v17, 0.0  ;;  %v9890_v54 = vsel %vm7782_vm6, %v9889_v7, %v9888_v43  ;;  %v8873_v34 = vrot.slane %v21466_v36, 3  ;;  %v8878_v4 = vrot.slane %v21473_v52, 1  ;;  %v21479_v7 = vld [vmem:[#allocation157_spill] sm:$0xff] }
 0x514   : > { %v18657_v31 = vmul.f32 %v21469_v0, %v21468_v29  ;;  %v8879_v38 = vrot.slane %v21473_v52, 2  ;;  %v8874_v40 = vrot.slane %v21466_v36, 4  ;;  %v8875_v61 = vrot.slane %v21466_v36, 5  ;;  %v21482_v0 = vld [vmem:[#allocation171_spill] sm:$0xff] }
 0x515   : > { %v18662_v63 = vmul.f32 %v21472_v42, %v21471_v18  ;;  %v8876_v48 = vrot.slane %v21466_v36, 6  ;;  %v8880_v19 = vrot.slane %v21473_v52, 3  ;;  %v8877_v30 = vrot.slane %v21466_v36, 7  ;;  %v21483_v18 = vld [vmem:[#allocation164_spill] sm:$0xff] }
 0x516   : > { %v8881_v5 = vrot.slane %v21473_v52, 4  ;;  %v9356_v9 = vmul.f32 %v8871_v3, %v21474_v57  ;;  %v9357_v25 = vmul.f32 %v8872_v6, %v21475_v49  ;;  %v18676_v28 = vadd.f32 %v9890_v54, %v8750_v55  ;;  %v21480_v3 = vld [vmem:[#allocation103_spill] sm:$0xff]  ;;  %v21484_v54 = vld [vmem:[#allocation126_spill] sm:$0xff]  ;;  %v21485_v49 = vld [vmem:[#allocation133_spill] sm:$0xff] }
 0x517   : > { %v8882_v15 = vrot.slane %v21473_v52, 5  ;;  %v8883_v47 = vrot.slane %v21473_v52, 6  ;;  %v8884_v26 = vrot.slane %v21473_v52, 7  ;;  %v21477_v50 = vpack.c.b16 %v18564_v41, %v18510_v59  ;;  %v21481_v6 = vld [vmem:[#allocation175_spill] sm:$0xff]  ;;  %v21486_v41 = vld [vmem:[#allocation77_spill] sm:$0xff] }
 0x518   : > { %21476 = vst [vmem:[#allocation63_spill] sm:$0xff] %v18676_v28  ;;  %v9355_v43 = vmul.f32 %v21466_v36, %v21478_v53  ;;  %v9358_v14 = vmul.f32 %v8873_v34, %v21479_v7  ;;  %v9364_v29 = vmul.f32 %v8878_v4, %v21480_v3  ;;  %v9365_v55 = vmul.f32 %v8879_v38, %v21481_v6  ;;  %v21488_v7 = vld [vmem:[#allocation124_spill] sm:$0xff]  ;;  %v21489_v38 = vld [vmem:[#allocation179_spill] sm:$0xff] }
 0x519   : > { %8513 = vmatmul.mubr.bf16.gmra.mxu1 %v21477_v50  ;;  %v9359_v17 = vmul.f32 %v8874_v40, %v21482_v0  ;;  %v9360_v42 = vmul.f32 %v8875_v61, %v21483_v18  ;;  %v9361_v57 = vmul.f32 %v8876_v48, %v21484_v54  ;;  %v9366_v59 = vmul.f32 %v8880_v19, %v21485_v49  ;;  %v21490_v6 = vld [vmem:[#allocation184_spill] sm:$0xff]  ;;  %v21491_v0 = vld [vmem:[#allocation181_spill] sm:$0xff] }
 0x51a   : > { %10503 = vmatprep.mubr.bf16.mxu1 %v20940_v45  ;;  %v9362_v50 = vmul.f32 %v8877_v30, %v21486_v41  ;;  %v9367_v36 = vmul.f32 %v8881_v5, %v21487_v1  ;;  %v9891_v53 = vrot.slane %v9356_v9, 7  ;;  %v9893_v34 = vrot.slane %v9357_v25, 6 }
 0x51b   : > { %v9363_v4 = vmul.f32 %v21473_v52, %v21488_v7  ;;  %v9368_v3 = vmul.f32 %v8882_v15, %v21489_v38  ;;  %v9369_v27 = vmul.f32 %v8883_v47, %v21490_v6  ;;  %v9905_v40 = vrot.slane %v9364_v29, 7  ;;  %v21493_v7 = vld [vmem:[#allocation344_spill] sm:$0xff] }
 0x51c   : > { %v9370_v61 = vmul.f32 %v8884_v26, %v21491_v0  ;;  %v9892_v48 = vsel %vm7764_vm0, %v9891_v53, %v9355_v43  ;;  %v9895_v18 = vrot.slane %v9358_v14, 5  ;;  %v9907_v19 = vrot.slane %v9365_v55, 6 }
 0x51d   : > { %v9894_v30 = vsel %vm7767_vm1, %v9893_v34, %v9892_v48  ;;  %v9897_v54 = vrot.slane %v9359_v17, 4  ;;  %v9906_v1 = vsel %vm7764_vm0, %v9905_v40, %v9363_v4  ;;  %v9909_v5 = vrot.slane %v9366_v59, 5  ;;  %v18704_v9 = vpop.eup %13249 }
 0x51e   : > { %v9896_v52 = vsel %vm7770_vm2, %v9895_v18, %v9894_v30  ;;  %v9899_v25 = vrot.slane %v9360_v42, 3  ;;  %v9908_v15 = vsel %vm7767_vm1, %v9907_v19, %v9906_v1  ;;  %v9911_v47 = vrot.slane %v9367_v36, 4 }
 0x51f   : > { %v9898_v26 = vsel %vm7773_vm3, %v9897_v54, %v9896_v52  ;;  %v9901_v29 = vrot.slane %v9361_v57, 2  ;;  %v9910_v43 = vsel %vm7770_vm2, %v9909_v5, %v9908_v15  ;;  %v9913_v14 = vrot.slane %v9368_v3, 3  ;;  %v18710_v55 = vpop.eup %13251  ;;  %v21496_v54 = vld [vmem:[#allocation52_spill] sm:$0xff]  ;;  %v21497_v5 = vld [vmem:[#allocation153_spill] sm:$0xff] }
 0x520   : > { %v9900_v17 = vsel %vm7776_vm4, %v9899_v25, %v9898_v26  ;;  %v9903_v49 = vrot.slane %v9362_v50, 1  ;;  %v9912_v59 = vsel %vm7773_vm3, %v9911_v47, %v9910_v43  ;;  %v9915_v41 = vrot.slane %v9369_v27, 2  ;;  %v21498_v47 = vld [vmem:[#allocation194_spill] sm:$0xff] }
 0x521   : > { %10504 = vmatmul.mubr.bf16.vlgmr.msra.gmra.mxu1 %v10347_v39  ;;  %v18716_v42 = vadd.f32 %v9876_v60, %v18593_v20  ;;  %v9902_v36 = vsel %vm7779_vm5, %v9901_v29, %v9900_v17  ;;  %v9914_v57 = vsel %vm7776_vm4, %v9913_v14, %v9912_v59  ;;  %v9917_v53 = vrot.slane %v9370_v61, 1  ;;  %v21499_v29 = vld [vmem:[#allocation151_spill] sm:$0xff] }
 0x522   : > { %10513 = vmatprep.mubr.bf16.mxu1 %v20940_v45  ;;  %v9904_v34 = vsel %vm7782_vm6, %v9903_v49, %v9902_v36  ;;  %v9916_v39 = vsel %vm7779_vm5, %v9915_v41, %v9914_v57  ;;  %v8885_v4 = vrot.slane %v21493_v7, 1  ;;  %v8886_v50 = vrot.slane %v21493_v7, 2  ;;  %v21500_v14 = vld [vmem:[#allocation199_spill] sm:$0xff]  ;;  %v21501_v49 = vld [vmem:[#allocation202_spill] sm:$0xff]  ;;  %v21502_v41 = vld [vmem:[#allocation212_spill] sm:$0xff] }
 0x523   : > { %21492 = vst [vmem:[#allocation110_spill] sm:$0xff] %v18716_v42  ;;  %v10348_v27 = vpack.c.bf16 %v18676_v28, %v18716_v42  ;;  %v9918_v38 = vsel %vm7782_vm6, %v9917_v53, %v9916_v39  ;;  %v8887_v20 = vrot.slane %v21493_v7, 3  ;;  %v8888_v60 = vrot.slane %v21493_v7, 4  ;;  %v21503_v57 = vld [vmem:[#allocation197_spill] sm:$0xff] }
 0x524   : > { %v18730_v3 = vadd.f32 %v9918_v38, %v18662_v63  ;;  %v8889_v6 = vrot.slane %v21493_v7, 5  ;;  %v8892_v40 = vrot.slane %v18129_v24, 1  ;;  %v8893_v0 = vrot.slane %v18129_v24, 2  ;;  %v21506_v38 = vld [vmem:[#allocation123_spill] sm:$0xff] }
 0x525   : > { %v18736_v61 = vadd.f32 %v9904_v34, %v18657_v31  ;;  %v8890_v48 = vrot.slane %v21493_v7, 6  ;;  %v8891_v18 = vrot.slane %v21493_v7, 7  ;;  %v8894_v19 = vrot.slane %v18129_v24, 3  ;;  %v21504_v34 = vld [vmem:[#allocation169_spill] sm:$0xff] }
 0x526   : > { %21494 = vst [vmem:[#allocation104_spill] sm:$0xff] %v18730_v3  ;;  %v8895_v30 = vrot.slane %v18129_v24, 4  ;;  %v8896_v63 = vrot.slane %v18129_v24, 5  ;;  %v9372_v1 = vmul.f32 %v8885_v4, %v21496_v54  ;;  %v9373_v52 = vmul.f32 %v8886_v50, %v21497_v5  ;;  %v21505_v4 = vld [vmem:[#allocation65_spill] sm:$0xff] }
 0x527   : > { %21495 = vst [vmem:[#allocation73_spill] sm:$0xff] %v18736_v61  ;;  %v10349_v25 = vpack.c.bf16 %v18730_v3, %v18736_v61  ;;  %v8897_v31 = vrot.slane %v18129_v24, 6  ;;  %v8898_v15 = vrot.slane %v18129_v24, 7  ;;  %v9371_v26 = vmul.f32 %v21493_v7, %v21498_v47  ;;  %v21507_v7 = vld [vmem:[#allocation206_spill] sm:$0xff]  ;;  %v21641_v61 = vld [vmem:[#allocation29_spill] sm:$0xff] }
 0x528   : > { %v9374_v43 = vmul.f32 %v8887_v20, %v21499_v29  ;;  %v9375_v17 = vmul.f32 %v8888_v60, %v21500_v14  ;;  %v9380_v59 = vmul.f32 %v8892_v40, %v21501_v49  ;;  %v9381_v36 = vmul.f32 %v8893_v0, %v21502_v41  ;;  %v21508_v20 = vld [vmem:[#allocation220_spill] sm:$0xff]  ;;  %v21509_v40 = vld [vmem:[#allocation214_spill] sm:$0xff]  ;;  %v21511_v49 = vld [vmem:[#allocation137_spill] sm:$0xff] }
 0x529   : > { %10514 = vmatmul.mubr.bf16.gmra.mxu1 %v10348_v27  ;;  %v9376_v53 = vmul.f32 %v8889_v6, %v21503_v57  ;;  %v9377_v39 = vmul.f32 %v8890_v48, %v21504_v34  ;;  %v9378_v50 = vmul.f32 %v8891_v18, %v21505_v4  ;;  %v9382_v54 = vmul.f32 %v8894_v19, %v21506_v38  ;;  %v21510_v0 = vld [vmem:[#allocation226_spill] sm:$0xff]  ;;  %v18766_v57 = vpop.f32.mrf.mxu1 }
 0x52a   : > { %10523 = vmatprep.mubr.bf16.mxu1 %v20940_v45  ;;  %v9379_v27 = vmul.f32 %v18129_v24, %v21507_v7  ;;  %v9383_v5 = vmul.f32 %v8895_v30, %v21508_v20  ;;  %v9919_v60 = vrot.slane %v9372_v1, 7  ;;  %v9921_v47 = vrot.slane %v9373_v52, 6 }
 0x52b   : > { %v9384_v29 = vmul.f32 %v8896_v63, %v21509_v40  ;;  %v9385_v14 = vmul.f32 %v8897_v31, %v21510_v0  ;;  %v9386_v41 = vmul.f32 %v8898_v15, %v21511_v49  ;;  %v9933_v6 = vrot.slane %v9380_v59, 7  ;;  %v8436_v52 = vpop.f32.mrf.mxu1  ;;  %v21512_v40 = vld [vmem:[#allocation332_spill] sm:$0xff]  ;;  %v21514_v0 = vld [vmem:[#allocation317_spill] sm:$0xff] }
 0x52c   : > { %v9920_v48 = vsel %vm7764_vm0, %v9919_v60, %v9371_v26  ;;  %v9923_v18 = vrot.slane %v9374_v43, 5  ;;  %v9925_v19 = vrot.slane %v9375_v17, 4  ;;  %v9935_v34 = vrot.slane %v9381_v36, 6 }
 0x52d   : > { %v9922_v24 = vsel %vm7767_vm1, %v9921_v47, %v9920_v48  ;;  %v9927_v4 = vrot.slane %v9376_v53, 3  ;;  %v9934_v30 = vsel %vm7764_vm0, %v9933_v6, %v9379_v27  ;;  %v9937_v1 = vrot.slane %v9382_v54, 5  ;;  %v18776_v36 = vpop.f32.mrf.mxu1 }
 0x52e   : > { %v9924_v63 = vsel %vm7770_vm2, %v9923_v18, %v9922_v24  ;;  %v9929_v31 = vrot.slane %v9377_v39, 2  ;;  %v9936_v15 = vsel %vm7767_vm1, %v9935_v34, %v9934_v30  ;;  %v9939_v59 = vrot.slane %v9383_v5, 4 }
 0x52f   : > { %v8437_v38 = vadd.f32 %v8436_v52, %v21281_v13  ;;  %v9926_v26 = vsel %vm7773_vm3, %v9925_v19, %v9924_v63  ;;  %v9938_v43 = vsel %vm7770_vm2, %v9937_v1, %v9936_v15  ;;  %v9941_v17 = vrot.slane %v9384_v29, 3  ;;  %v8440_v47 = vpop.f32.mrf.mxu1 }
 0x530   : > { %v9928_v53 = vsel %vm7776_vm4, %v9927_v4, %v9926_v26  ;;  %v9931_v54 = vrot.slane %v9378_v50, 1  ;;  %v9940_v7 = vsel %vm7773_vm3, %v9939_v59, %v9938_v43  ;;  %v9943_v27 = vrot.slane %v9385_v14, 2 }
 0x531   : > { %10524 = vmatmul.mubr.bf16.gmra.mxu1 %v10349_v25  ;;  %v11780_v39 = vmul.f32 -1.442695, %v8437_v38  ;;  %v9930_v20 = vsel %vm7779_vm5, %v9929_v31, %v9928_v53  ;;  %v9942_v5 = vsel %vm7776_vm4, %v9941_v17, %v9940_v7  ;;  %v9945_v60 = vrot.slane %v9386_v41, 1  ;;  %v21515_v25 = vld [vmem:[#allocation304_spill] sm:$0xff]  ;;  %v21520_v7 = vld [vmem:[#allocation221_spill] sm:$0xff] }
 0x532   : > { %10533 = vmatprep.mubr.bf16.mxu1 %v20940_v45  ;;  %v21513_v29 = vmax.f32 %v21512_v40, 0.0  ;;  %v21516_v6 = vmax.f32 %v21515_v25, 0.0  ;;  %v9932_v48 = vsel %vm7782_vm6, %v9931_v54, %v9930_v20  ;;  %v9944_v14 = vsel %vm7779_vm5, %v9943_v27, %v9942_v5 }
 0x533   : > { %v18793_v18 = vadd.f32 %v18525_v62, %v17066_v51  ;;  %13253 = vpow2.f32 %v11780_v39  ;;  %v8441_v41 = vadd.f32 %v8440_v47, %v21281_v13  ;;  %v9946_v19 = vsel %vm7782_vm6, %v9945_v60, %v9944_v14  ;;  %v21521_v39 = vld [vmem:[#allocation154_spill] sm:$0xff]  ;;  %v21522_v47 = vld [vmem:[#allocation143_spill] sm:$0xff] }
 0x534   : > { %v8753_v49 = vmul.f32 %v21514_v0, %v21513_v29  ;;  %v8754_v50 = vmul.f32 %v17987_v21, %v21516_v6  ;;  %v8899_v4 = vrot.slane %v18156_v12, 1  ;;  %v8900_v21 = vrot.slane %v18156_v12, 2  ;;  %v21523_v29 = vld [vmem:[#allocation239_spill] sm:$0xff]  ;;  %v21525_v6 = vld [vmem:[#allocation228_spill] sm:$0xff] }
 0x535   : > { %v18804_v30 = vsub.f32 1.0, %v18704_v9  ;;  %v18808_v62 = vadd.f32 %v18543_v10, %v17066_v51  ;;  %v18811_v1 = vsub.f32 1.0, %v18710_v55  ;;  %v11781_v52 = vmul.f32 -1.442695, %v8441_v41  ;;  %v21527_v41 = vld [vmem:[#allocation231_spill] sm:$0xff] }
 0x536   : > { %v18797_v34 = vadd.f32 %v9932_v48, %v8753_v49  ;;  %v18799_v24 = vadd.f32 %v9946_v19, %v8754_v50  ;;  %v8901_v31 = vrot.slane %v18156_v12, 3  ;;  %v8906_v15 = vrot.slane %v18166_v37, 1  ;;  %v21524_v49 = vld [vmem:[#allocation211_spill] sm:$0xff]  ;;  %v21526_v48 = vld [vmem:[#allocation234_spill] sm:$0xff] }
 0x537   : > { %v8907_v59 = vrot.slane %v18166_v37, 2  ;;  %v21519_v38 = vmax.f32 %v17959_v22, 0.0  ;;  %v8902_v10 = vrot.slane %v18156_v12, 4  ;;  %v8903_v43 = vrot.slane %v18156_v12, 5 }
 0x538   : > { %21517 = vst [vmem:[#allocation37_spill] sm:$0xff] %v18797_v34  ;;  %21518 = vst [vmem:[#allocation90_spill] sm:$0xff] %v18799_v24  ;;  %v10350_v63 = vpack.c.bf16 %v18799_v24, %v18797_v34  ;;  %v8904_v17 = vrot.slane %v18156_v12, 6  ;;  %v8905_v53 = vrot.slane %v18156_v12, 7  ;;  %v8908_v54 = vrot.slane %v18166_v37, 3 }
 0x539   : > { %v18821_v26 = vmul.f32 %v18104_v33, %v21519_v38  ;;  %v9388_v27 = vmul.f32 %v8899_v4, %v21520_v7  ;;  %v9389_v20 = vmul.f32 %v8900_v21, %v21521_v39  ;;  %13255 = vpow2.f32 %v11781_v52  ;;  %v21528_v4 = vld [vmem:[#allocation238_spill] sm:$0xff]  ;;  %v21530_v38 = vld [vmem:[#allocation207_spill] sm:$0xff] }
 0x53a   : > { %10534 = vmatmul.mubr.bf16.gmra.mxu1 %v10350_v63  ;;  %v8909_v22 = vrot.slane %v18166_v37, 4  ;;  %v8910_v33 = vrot.slane %v18166_v37, 5  ;;  %v8911_v5 = vrot.slane %v18166_v37, 6  ;;  %v8912_v60 = vrot.slane %v18166_v37, 7  ;;  %v21529_v52 = vld [vmem:[#allocation162_spill] sm:$0xff] }
 0x53b   : > { %10543 = vmatprep.mubr.bf16.mxu1 %v20940_v45  ;;  %v9390_v40 = vmul.f32 %v8901_v31, %v21522_v47  ;;  %v9396_v0 = vmul.f32 %v8906_v15, %v21523_v29  ;;  %v9397_v25 = vmul.f32 %v8907_v59, %v21524_v49  ;;  %v9387_v50 = vmul.f32 %v18156_v12, %v21525_v6  ;;  %v21531_v31 = vld [vmem:[#allocation245_spill] sm:$0xff]  ;;  %v21532_v47 = vld [vmem:[#allocation258_spill] sm:$0xff]  ;;  %v21533_v29 = vld [vmem:[#allocation252_spill] sm:$0xff] }
 0x53c   : > { %v9391_v14 = vmul.f32 %v8902_v10, %v21526_v48  ;;  %v9392_v19 = vmul.f32 %v8903_v43, %v21527_v41  ;;  %v9393_v21 = vmul.f32 %v8904_v17, %v21528_v4  ;;  %v9394_v63 = vmul.f32 %v8905_v53, %v21529_v52  ;;  %v21534_v12 = vld [vmem:[#allocation266_spill] sm:$0xff]  ;;  %v21535_v41 = vld [vmem:[#allocation260_spill] sm:$0xff] }
 0x53d   : > { %v9398_v7 = vmul.f32 %v8908_v54, %v21530_v38  ;;  %v9947_v39 = vrot.slane %v9388_v27, 7  ;;  %v9949_v34 = vrot.slane %v9389_v20, 6  ;;  %v9395_v15 = vmul.f32 %v18166_v37, %v21531_v31 }
 0x53e   : > { %v9399_v59 = vmul.f32 %v8909_v22, %v21532_v47  ;;  %v9400_v49 = vmul.f32 %v8910_v33, %v21533_v29  ;;  %v9401_v6 = vmul.f32 %v8911_v5, %v21534_v12  ;;  %v9951_v43 = vrot.slane %v9390_v40, 5 }
 0x53f   : > { %v9948_v10 = vsel %vm7764_vm0, %v9947_v39, %v9387_v50  ;;  %v9961_v48 = vrot.slane %v9396_v0, 7  ;;  %v9963_v17 = vrot.slane %v9397_v25, 6  ;;  %v9402_v53 = vmul.f32 %v8912_v60, %v21535_v41 }
 0x540   : > { %v9950_v54 = vsel %vm7767_vm1, %v9949_v34, %v9948_v10  ;;  %v9953_v27 = vrot.slane %v9391_v14, 4  ;;  %v9955_v20 = vrot.slane %v9392_v19, 3  ;;  %v13254_v4 = vpop.eup %13253  ;;  %v9957_v52 = vrot.slane %v9393_v21, 2 }
 0x541   : > { %v9952_v37 = vsel %vm7770_vm2, %v9951_v43, %v9950_v54  ;;  %v9962_v22 = vsel %vm7764_vm0, %v9961_v48, %v9395_v15  ;;  %v9965_v33 = vrot.slane %v9398_v7, 5  ;;  %v9959_v38 = vrot.slane %v9394_v63, 1 }
 0x542   : > { %v9954_v5 = vsel %vm7773_vm3, %v9953_v27, %v9952_v37  ;;  %v9964_v40 = vsel %vm7767_vm1, %v9963_v17, %v9962_v22  ;;  %v9967_v0 = vrot.slane %v9399_v59, 4  ;;  %v8665_v25 = vadd.f32 1.0, %v13254_v4  ;;  %v21542_v37 = vld [vmem:[#allocation276_spill] sm:$0xff] }
 0x543   : > { %v9956_v60 = vsel %vm7776_vm4, %v9955_v20, %v9954_v5  ;;  %v9966_v34 = vsel %vm7770_vm2, %v9965_v33, %v9964_v40  ;;  %v9969_v50 = vrot.slane %v9400_v49, 3  ;;  %v21536_v14 = vmax.f32 %v18014_v23, 0.0  ;;  %v21541_v20 = vld [vmem:[#allocation263_spill] sm:$0xff] }
 0x544   : > { %v9958_v21 = vsel %vm7779_vm5, %v9957_v52, %v9956_v60  ;;  %v9968_v7 = vsel %vm7773_vm3, %v9967_v0, %v9966_v34  ;;  %v9971_v39 = vrot.slane %v9401_v6, 2  ;;  %v9973_v15 = vrot.slane %v9402_v53, 1  ;;  %v21543_v40 = vld [vmem:[#allocation271_spill] sm:$0xff]  ;;  %v21545_v34 = vld [vmem:[#allocation297_spill] sm:$0xff] }
 0x545   : > { %v8756_v19 = vmul.f32 %v18108_v46, %v21536_v14  ;;  %v9960_v63 = vsel %vm7782_vm6, %v9959_v38, %v9958_v21  ;;  %v9970_v31 = vsel %vm7776_vm4, %v9969_v50, %v9968_v7  ;;  %v21537_v47 = vmax.f32 %v18233_v56, 0.0  ;;  %v21546_v14 = vld [vmem:[#allocation59_spill] sm:$0xff]  ;;  %v21547_v21 = vld [vmem:[#allocation282_spill] sm:$0xff] }
 0x546   : > { %v9972_v29 = vsel %vm7779_vm5, %v9971_v39, %v9970_v31  ;;  %v21538_v23 = vmax.f32 %v18248_v16, 0.0  ;;  %v8913_v49 = vrot.slane %v18570_v32, 1  ;;  %v8914_v12 = vrot.slane %v18570_v32, 2  ;;  %v13256_v6 = vpop.eup %13255  ;;  %v21548_v39 = vld [vmem:[#allocation279_spill] sm:$0xff]  ;;  %v21549_v31 = vld [vmem:[#allocation293_spill] sm:$0xff] }
 0x547   : > { %v18869_v59 = vmul.f32 %v18428_v2, %v21537_v47  ;;  %13257 = vrcp.f32 %v8665_v25  ;;  %v9974_v10 = vsel %vm7782_vm6, %v9973_v15, %v9972_v29  ;;  %v8915_v56 = vrot.slane %v18570_v32, 3  ;;  %v21544_v25 = vld [vmem:[#allocation274_spill] sm:$0xff] }
 0x548   : > { %v18875_v46 = vmul.f32 %v18553_v11, %v21538_v23  ;;  %v8916_v2 = vrot.slane %v18570_v32, 4  ;;  %v18883_v43 = vadd.f32 %v9960_v63, %v18821_v26  ;;  %v18885_v48 = vadd.f32 %v9974_v10, %v8756_v19  ;;  %v21550_v47 = vld [vmem:[#allocation254_spill] sm:$0xff]  ;;  %v21551_v23 = vld [vmem:[#allocation288_spill] sm:$0xff] }
 0x549   : > { %v8920_v16 = vrot.slane %v18573_v35, 1  ;;  %v8921_v11 = vrot.slane %v18573_v35, 2  ;;  %v8917_v17 = vrot.slane %v18570_v32, 5  ;;  %v8918_v41 = vrot.slane %v18570_v32, 6 }
 0x54a   : > { %21539 = vst [vmem:[#allocation141_spill] sm:$0xff] %v18883_v43  ;;  %21540 = vst [vmem:[#allocation116_spill] sm:$0xff] %v18885_v48  ;;  %v8919_v53 = vrot.slane %v18570_v32, 7  ;;  %v8922_v54 = vrot.slane %v18573_v35, 3  ;;  %v10351_v27 = vpack.c.bf16 %v18885_v48, %v18883_v43  ;;  %v8923_v26 = vrot.slane %v18573_v35, 4 }
 0x54b   : > { %v9404_v4 = vmul.f32 %v8913_v49, %v21541_v20  ;;  %v9405_v52 = vmul.f32 %v8914_v12, %v21542_v37  ;;  %v8666_v22 = vadd.f32 1.0, %v13256_v6  ;;  %v8924_v33 = vrot.slane %v18573_v35, 5  ;;  %v21552_v12 = vld [vmem:[#allocation173_spill] sm:$0xff]  ;;  %v21555_v20 = vld [vmem:[#allocation302_spill] sm:$0xff] }
 0x54c   : > { %v8925_v5 = vrot.slane %v18573_v35, 6  ;;  %v8926_v38 = vrot.slane %v18573_v35, 7  ;;  %10544 = vmatmul.mubr.bf16.gmra.mxu1 %v10351_v27  ;;  %v9403_v0 = vmul.f32 %v18570_v32, %v21543_v40  ;;  %v9406_v60 = vmul.f32 %v8915_v56, %v21544_v25  ;;  %v21553_v56 = vld [vmem:[#allocation166_spill] sm:$0xff]  ;;  %v21556_v40 = vld [vmem:[#allocation301_spill] sm:$0xff] }
 0x54d   : > { %v9412_v50 = vmul.f32 %v8920_v16, %v21545_v34  ;;  %v9413_v19 = vmul.f32 %v8921_v11, %v21546_v14  ;;  %10553 = vmatprep.mubr.bf16.mxu1 %v20940_v45  ;;  %v9407_v7 = vmul.f32 %v8916_v2, %v21547_v21  ;;  %v9408_v63 = vmul.f32 %v8917_v17, %v21548_v39  ;;  %v21554_v11 = vld [vmem:[#allocation178_spill] sm:$0xff] }
 0x54e   : > { %v9409_v15 = vmul.f32 %v8918_v41, %v21549_v31  ;;  %v9414_v29 = vmul.f32 %v8922_v54, %v21550_v47  ;;  %v9410_v49 = vmul.f32 %v8919_v53, %v21551_v23  ;;  %v9415_v32 = vmul.f32 %v8923_v26, %v21552_v12 }
 0x54f   : > { %v9975_v6 = vrot.slane %v9404_v4, 7  ;;  %v9977_v10 = vrot.slane %v9405_v52, 6  ;;  %v9411_v16 = vmul.f32 %v18573_v35, %v21553_v56  ;;  %v9416_v27 = vmul.f32 %v8924_v33, %v21554_v11 }
 0x550   : > { %v9417_v37 = vmul.f32 %v8925_v5, %v21555_v20  ;;  %v9989_v2 = vrot.slane %v9412_v50, 7  ;;  %v9418_v17 = vmul.f32 %v8926_v38, %v21556_v40  ;;  %v9979_v25 = vrot.slane %v9406_v60, 5  ;;  %v21559_v40 = vld [vmem:[#allocation265_spill] sm:$0xff] }
 0x551   : > { %v9976_v41 = vsel %vm7764_vm0, %v9975_v6, %v9403_v0  ;;  %v9991_v54 = vrot.slane %v9413_v19, 6  ;;  %v9981_v34 = vrot.slane %v9407_v7, 4  ;;  %v9993_v4 = vrot.slane %v9414_v29, 5 }
 0x552   : > { %v9978_v53 = vsel %vm7767_vm1, %v9977_v10, %v9976_v41  ;;  %v9990_v26 = vsel %vm7764_vm0, %v9989_v2, %v9411_v16  ;;  %v9983_v35 = vrot.slane %v9408_v63, 3  ;;  %v9995_v14 = vrot.slane %v9415_v32, 4  ;;  %v21560_v41 = vld [vmem:[#allocation309_spill] sm:$0xff] }
 0x553   : > { %v9980_v52 = vsel %vm7770_vm2, %v9979_v25, %v9978_v53  ;;  %v9992_v33 = vsel %vm7767_vm1, %v9991_v54, %v9990_v26  ;;  %v9985_v50 = vrot.slane %v9409_v15, 2  ;;  %v9997_v0 = vrot.slane %v9416_v27, 3 }
 0x554   : > { %v9982_v5 = vsel %vm7773_vm3, %v9981_v34, %v9980_v52  ;;  %v9994_v38 = vsel %vm7770_vm2, %v9993_v4, %v9992_v33  ;;  %v18925_v60 = vpop.eup %13257  ;;  %v9987_v21 = vrot.slane %v9410_v49, 1  ;;  %v9999_v39 = vrot.slane %v9417_v37, 2  ;;  %v21561_v4 = vld [vmem:[#allocation305_spill] sm:$0xff] }
 0x555   : > { %v9984_v19 = vsel %vm7776_vm4, %v9983_v35, %v9982_v5  ;;  %v9996_v7 = vsel %vm7773_vm3, %v9995_v14, %v9994_v38  ;;  %13259 = vrcp.f32 %v8666_v22  ;;  %v10001_v47 = vrot.slane %v9418_v17, 1  ;;  %v21562_v35 = vld [vmem:[#allocation313_spill] sm:$0xff]  ;;  %v21563_v14 = vld [vmem:[#allocation320_spill] sm:$0xff] }
 0x556   : > { %v9986_v63 = vsel %vm7779_vm5, %v9985_v50, %v9984_v19  ;;  %v9998_v31 = vsel %vm7776_vm4, %v9997_v0, %v9996_v7  ;;  %v8927_v23 = vrot.slane %v18804_v30, 1  ;;  %v8928_v12 = vrot.slane %v18804_v30, 2  ;;  %v21564_v38 = vld [vmem:[#allocation268_spill] sm:$0xff]  ;;  %v21565_v19 = vld [vmem:[#allocation186_spill] sm:$0xff] }
 0x557   : > { %v9988_v29 = vsel %vm7782_vm6, %v9987_v21, %v9986_v63  ;;  %v10000_v15 = vsel %vm7779_vm5, %v9999_v39, %v9998_v31  ;;  %v8535_v32 = vmax.f32 %v18793_v18, 0.0  ;;  %v8536_v49 = vmax.f32 %v18808_v62, 0.0  ;;  %v21566_v7 = vld [vmem:[#allocation86_spill] sm:$0xff] }
 0x558   : > { %v10002_v6 = vsel %vm7782_vm6, %v10001_v47, %v10000_v15  ;;  %v8929_v22 = vrot.slane %v18804_v30, 3  ;;  %v18940_v10 = vadd.f32 %v9988_v29, %v18869_v59  ;;  %v8934_v16 = vrot.slane %v18811_v1, 1  ;;  %v21567_v63 = vld [vmem:[#allocation318_spill] sm:$0xff]  ;;  %v21568_v47 = vld [vmem:[#allocation316_spill] sm:$0xff] }
 0x559   : > { %v18943_v56 = vadd.f32 %v10002_v6, %v18875_v46  ;;  %v8935_v11 = vrot.slane %v18811_v1, 2  ;;  %v18949_v27 = vadd.f32 %v18766_v57, %v17066_v51  ;;  %v8930_v20 = vrot.slane %v18804_v30, 4 }
 0x55a   : > { %21557 = vst [vmem:[#allocation66_spill] sm:$0xff] %v18940_v10  ;;  %v8931_v37 = vrot.slane %v18804_v30, 5  ;;  %v8932_v2 = vrot.slane %v18804_v30, 6  ;;  %v8936_v46 = vrot.slane %v18811_v1, 3  ;;  %v9420_v17 = vmul.f32 %v8927_v23, %v21559_v40  ;;  %v21572_v40 = vld [vmem:[#allocation287_spill] sm:$0xff] }
 0x55b   : > { %21558 = vst [vmem:[#allocation48_spill] sm:$0xff] %v18943_v56  ;;  %v10352_v59 = vpack.c.bf16 %v18943_v56, %v18940_v10  ;;  %v9421_v25 = vmul.f32 %v8928_v12, %v21560_v41  ;;  %v18960_v54 = vsub.f32 1.0, %v18925_v60  ;;  %v8933_v57 = vrot.slane %v18804_v30, 7  ;;  %v21569_v12 = vld [vmem:[#allocation311_spill] sm:$0xff] }
 0x55c   : > { %v8937_v53 = vrot.slane %v18811_v1, 4  ;;  %v8938_v34 = vrot.slane %v18811_v1, 5  ;;  %v8939_v26 = vrot.slane %v18811_v1, 6  ;;  %v9422_v52 = vmul.f32 %v8929_v22, %v21561_v4  ;;  %v21570_v22 = vld [vmem:[#allocation314_spill] sm:$0xff]  ;;  %v21627_v10 = vld [vmem:[#allocation355_spill] sm:$0xff] }
 0x55d   : > { %10554 = vmatmul.mubr.bf16.gmra.mxu1 %v10352_v59  ;;  %v9428_v33 = vmul.f32 %v8934_v16, %v21562_v35  ;;  %v9429_v5 = vmul.f32 %v8935_v11, %v21563_v14  ;;  %v8940_v50 = vrot.slane %v18811_v1, 7  ;;  %v9419_v0 = vmul.f32 %v18804_v30, %v21564_v38  ;;  %v21571_v11 = vld [vmem:[#allocation323_spill] sm:$0xff]  ;;  %v21574_v14 = vld [vmem:[#allocation160_spill] sm:$0xff] }
 0x55e   : > { %10563 = vmatprep.mubr.bf16.mxu1 %v20940_v45  ;;  %v9423_v21 = vmul.f32 %v8930_v20, %v21565_v19  ;;  %v9424_v39 = vmul.f32 %v8931_v37, %v21566_v7  ;;  %v9425_v31 = vmul.f32 %v8932_v2, %v21567_v63  ;;  %v9430_v29 = vmul.f32 %v8936_v46, %v21568_v47  ;;  %v21573_v35 = vld [vmem:[#allocation203_spill] sm:$0xff]  ;;  %v18995_v63 = vpop.f32.mrf.mxu1 }
 0x55f   : > { %v10003_v15 = vrot.slane %v9420_v17, 7  ;;  %v10005_v23 = vrot.slane %v9421_v25, 6  ;;  %v9426_v6 = vmul.f32 %v8933_v57, %v21569_v12  ;;  %v9427_v16 = vmul.f32 %v18811_v1, %v21570_v22 }
 0x560   : > { %v9431_v59 = vmul.f32 %v8937_v53, %v21571_v11  ;;  %v9432_v41 = vmul.f32 %v8938_v34, %v21572_v40  ;;  %v10007_v20 = vrot.slane %v9422_v52, 5  ;;  %v10017_v4 = vrot.slane %v9428_v33, 7 }
 0x561   : > { %v10004_v30 = vsel %vm7764_vm0, %v10003_v15, %v9419_v0  ;;  %v10019_v37 = vrot.slane %v9429_v5, 6  ;;  %v9433_v2 = vmul.f32 %v8939_v26, %v21573_v35  ;;  %v9434_v46 = vmul.f32 %v8940_v50, %v21574_v14 }
 0x562   : > { %v10006_v17 = vsel %vm7767_vm1, %v10005_v23, %v10004_v30  ;;  %v10009_v25 = vrot.slane %v9423_v21, 4  ;;  %v18986_v57 = vpop.eup %13259  ;;  %v10011_v38 = vrot.slane %v9424_v39, 3  ;;  %v10018_v53 = vsel %vm7764_vm0, %v10017_v4, %v9427_v16 }
 0x563   : > { %v10008_v1 = vsel %vm7770_vm2, %v10007_v20, %v10006_v17  ;;  %v10021_v34 = vrot.slane %v9430_v29, 5  ;;  %v10013_v52 = vrot.slane %v9425_v31, 2  ;;  %v10020_v33 = vsel %vm7767_vm1, %v10019_v37, %v10018_v53  ;;  %v21578_v53 = vld [vmem:[#allocation327_spill] sm:$0xff] }
 0x564   : > { %v10010_v0 = vsel %vm7773_vm3, %v10009_v25, %v10008_v1  ;;  %v10023_v5 = vrot.slane %v9431_v59, 4  ;;  %v10015_v50 = vrot.slane %v9426_v6, 1  ;;  %v10025_v21 = vrot.slane %v9432_v41, 3  ;;  %v8446_v59 = vpop.f32.mrf.mxu1  ;;  %v21577_v1 = vld [vmem:[#allocation324_spill] sm:$0xff] }
 0x565   : > { %v10012_v26 = vsel %vm7776_vm4, %v10011_v38, %v10010_v0  ;;  %v10022_v19 = vsel %vm7770_vm2, %v10021_v34, %v10020_v33  ;;  %v8537_v7 = vmax.f32 %v18949_v27, 0.0  ;;  %v10027_v29 = vrot.slane %v9433_v2, 2 }
 0x566   : > { %v10014_v39 = vsel %vm7779_vm5, %v10013_v52, %v10012_v26  ;;  %v10024_v47 = vsel %vm7773_vm3, %v10023_v5, %v10022_v19  ;;  %v8794_v31 = vsub.f32 1.0, %v18986_v57  ;;  %v10029_v12 = vrot.slane %v9434_v46, 1 }
 0x567   : > { %v10016_v15 = vsel %vm7782_vm6, %v10015_v50, %v10014_v39  ;;  %v10026_v23 = vsel %vm7776_vm4, %v10025_v21, %v10024_v47  ;;  %v19004_v6 = vadd.f32 %v18776_v36, %v17066_v51  ;;  %v8759_v22 = vmul.f32 %v18704_v9, %v8535_v32  ;;  %v19021_v9 = vpop.f32.mrf.mxu1  ;;  %v21579_v50 = vld [vmem:[#allocation330_spill] sm:$0xff]  ;;  %v21580_v21 = vld [vmem:[#allocation300_spill] sm:$0xff]  ;;  %v21581_v47 = vld [vmem:[#allocation81_spill] sm:$0xff] }
 0x568   : > { %v8760_v16 = vmul.f32 %v18710_v55, %v8536_v49  ;;  %v10028_v11 = vsel %vm7779_vm5, %v10027_v29, %v10026_v23  ;;  %v8447_v41 = vadd.f32 %v8446_v59, %v21281_v13  ;;  %v8941_v30 = vrot.slane %v18960_v54, 1  ;;  %v21585_v59 = vld [vmem:[#allocation256_spill] sm:$0xff] }
 0x569   : > { %v10030_v40 = vsel %vm7782_vm6, %v10029_v12, %v10028_v11  ;;  %v8942_v36 = vrot.slane %v18960_v54, 2  ;;  %v19017_v20 = vadd.f32 %v10016_v15, %v8759_v22  ;;  %v8943_v62 = vrot.slane %v18960_v54, 3  ;;  %v8450_v2 = vpop.f32.mrf.mxu1  ;;  %v21582_v15 = vld [vmem:[#allocation326_spill] sm:$0xff]  ;;  %v21583_v12 = vld [vmem:[#allocation115_spill] sm:$0xff] }
 0x56a   : > { %v19019_v18 = vadd.f32 %v10030_v40, %v8760_v16  ;;  %v8944_v55 = vrot.slane %v18960_v54, 4  ;;  %v11782_v32 = vmul.f32 -1.442695, %v8447_v41  ;;  %v8945_v49 = vrot.slane %v18960_v54, 5  ;;  %v21584_v16 = vld [vmem:[#allocation331_spill] sm:$0xff] }
 0x56b   : > { %21575 = vst [vmem:[#allocation147_spill] sm:$0xff] %v19017_v20  ;;  %v8948_v4 = vrot.slane %v8794_v31, 1  ;;  %v8949_v37 = vrot.slane %v8794_v31, 2  ;;  %v8946_v14 = vrot.slane %v18960_v54, 6  ;;  %v8947_v46 = vrot.slane %v18960_v54, 7  ;;  %v21586_v41 = vld [vmem:[#allocation259_spill] sm:$0xff] }
 0x56c   : > { %21576 = vst [vmem:[#allocation107_spill] sm:$0xff] %v19019_v18  ;;  %v10353_v35 = vpack.c.bf16 %v19019_v18, %v19017_v20  ;;  %v8950_v17 = vrot.slane %v8794_v31, 3  ;;  %13261 = vpow2.f32 %v11782_v32  ;;  %v8451_v25 = vadd.f32 %v8450_v2, %v21281_v13  ;;  %v21588_v2 = vld [vmem:[#allocation174_spill] sm:$0xff] }
 0x56d   : > { %v9436_v38 = vmul.f32 %v8941_v30, %v21577_v1  ;;  %v9437_v34 = vmul.f32 %v8942_v36, %v21578_v53  ;;  %v8951_v0 = vrot.slane %v8794_v31, 4  ;;  %v8952_v52 = vrot.slane %v8794_v31, 5  ;;  %v21590_v1 = vld [vmem:[#allocation312_spill] sm:$0xff] }
 0x56e   : > { %10564 = vmatmul.mubr.bf16.gmra.mxu1 %v10353_v35  ;;  %v8953_v33 = vrot.slane %v8794_v31, 6  ;;  %v8954_v5 = vrot.slane %v8794_v31, 7  ;;  %v11783_v26 = vmul.f32 -1.442695, %v8451_v25  ;;  %v9438_v19 = vmul.f32 %v8943_v62, %v21579_v50  ;;  %v21587_v35 = vld [vmem:[#allocation218_spill] sm:$0xff]  ;;  %v21589_v25 = vld [vmem:[#allocation335_spill] sm:$0xff] }
 0x56f   : > { %10573 = vmatprep.mubr.bf16.mxu1 %v20940_v45  ;;  %v9444_v39 = vmul.f32 %v8948_v4, %v21580_v21  ;;  %v9445_v29 = vmul.f32 %v8949_v37, %v21581_v47  ;;  %v9435_v23 = vmul.f32 %v18960_v54, %v21582_v15  ;;  %v9439_v22 = vmul.f32 %v8944_v55, %v21583_v12  ;;  %v21591_v21 = vld [vmem:[#allocation319_spill] sm:$0xff] }
 0x570   : > { %v9440_v11 = vmul.f32 %v8945_v49, %v21584_v16  ;;  %v9441_v40 = vmul.f32 %v8946_v14, %v21585_v59  ;;  %13263 = vpow2.f32 %v11783_v26  ;;  %v9446_v30 = vmul.f32 %v8950_v17, %v21586_v41  ;;  %v21592_v26 = vld [vmem:[#allocation291_spill] sm:$0xff] }
 0x571   : > { %v10031_v36 = vrot.slane %v9436_v38, 7  ;;  %v10033_v32 = vrot.slane %v9437_v34, 6  ;;  %v9442_v62 = vmul.f32 %v8947_v46, %v21587_v35  ;;  %v9443_v4 = vmul.f32 %v8794_v31, %v21588_v2 }
 0x572   : > { %v9447_v37 = vmul.f32 %v8951_v0, %v21589_v25  ;;  %v9448_v53 = vmul.f32 %v8952_v52, %v21590_v1  ;;  %v10035_v55 = vrot.slane %v9438_v19, 5  ;;  %v10045_v50 = vrot.slane %v9444_v39, 7 }
 0x573   : > { %v10032_v54 = vsel %vm7764_vm0, %v10031_v36, %v9435_v23  ;;  %v10047_v49 = vrot.slane %v9445_v29, 6  ;;  %v9449_v14 = vmul.f32 %v8953_v33, %v21591_v21  ;;  %v9450_v47 = vmul.f32 %v8954_v5, %v21592_v26 }
 0x574   : > { %v10034_v17 = vsel %vm7767_vm1, %v10033_v32, %v10032_v54  ;;  %v10037_v38 = vrot.slane %v9439_v22, 4  ;;  %v10039_v34 = vrot.slane %v9440_v11, 3  ;;  %v10046_v31 = vsel %vm7764_vm0, %v10045_v50, %v9443_v4 }
 0x575   : > { %v10036_v46 = vsel %vm7770_vm2, %v10035_v55, %v10034_v17  ;;  %v10049_v0 = vrot.slane %v9446_v30, 5  ;;  %v10041_v15 = vrot.slane %v9441_v40, 2  ;;  %v10048_v19 = vsel %vm7767_vm1, %v10047_v49, %v10046_v31 }
 0x576   : > { %v10038_v52 = vsel %vm7773_vm3, %v10037_v38, %v10036_v46  ;;  %v10051_v39 = vrot.slane %v9447_v37, 4  ;;  %v10043_v33 = vrot.slane %v9442_v62, 1  ;;  %v10053_v23 = vrot.slane %v9448_v53, 3  ;;  %v21595_v38 = vld [vmem:[#allocation337_spill] sm:$0xff] }
 0x577   : > { %v10040_v29 = vsel %vm7776_vm4, %v10039_v34, %v10038_v52  ;;  %v10050_v5 = vsel %vm7770_vm2, %v10049_v0, %v10048_v19  ;;  %v8538_v12 = vmax.f32 %v19004_v6, 0.0  ;;  %v10055_v11 = vrot.slane %v9449_v14, 2 }
 0x578   : > { %v10042_v22 = vsel %vm7779_vm5, %v10041_v15, %v10040_v29  ;;  %v10052_v16 = vsel %vm7773_vm3, %v10051_v39, %v10050_v5  ;;  %v10057_v41 = vrot.slane %v9450_v47, 1  ;;  %v8761_v36 = vmul.f32 %v18925_v60, %v8537_v7 }
 0x579   : > { %v10044_v59 = vsel %vm7782_vm6, %v10043_v33, %v10042_v22  ;;  %v10054_v40 = vsel %vm7776_vm4, %v10053_v23, %v10052_v16  ;;  %v13262_v30 = vpop.eup %13261  ;;  %v8762_v32 = vmul.f32 %v18986_v57, %v8538_v12  ;;  %v19079_v27 = vadd.f32 %v18995_v63, %v17066_v51  ;;  %v21596_v63 = vld [vmem:[#allocation341_spill] sm:$0xff]  ;;  %v21597_v33 = vld [vmem:[#allocation339_spill] sm:$0xff]  ;;  %v21598_v23 = vld [vmem:[#allocation340_spill] sm:$0xff] }
 0x57a   : > { %v10056_v35 = vsel %vm7779_vm5, %v10055_v11, %v10054_v40  ;;  %v8667_v6 = vadd.f32 1.0, %v13262_v30  ;;  %v19068_v2 = vadd.f32 %v10044_v59, %v8761_v36  ;;  %v8449_v50 = vadd.f32 %v19021_v9, %v17066_v51  ;;  %v21599_v22 = vld [vmem:[#allocation325_spill] sm:$0xff]  ;;  %v21601_v40 = vld [vmem:[#allocation322_spill] sm:$0xff]  ;;  %v21602_v30 = vld [vmem:[#allocation295_spill] sm:$0xff] }
 0x57b   : > { %v10058_v62 = vsel %vm7782_vm6, %v10057_v41, %v10056_v35  ;;  %v8539_v55 = vmax.f32 %v19079_v27, 0.0  ;;  %v21600_v11 = vld [vmem:[#allocation345_spill] sm:$0xff] }
 0x57c   : > { %21593 = vst [vmem:[#allocation167_spill] sm:$0xff] %v19068_v2  ;;  %v19070_v4 = vadd.f32 %v10058_v62, %v8762_v32  ;;  %13265 = vrcp.f32 %v8667_v6  ;;  %v8540_v19 = vmax.f32 %v8449_v50, 0.0  ;;  %v21603_v32 = vld [vmem:[#allocation246_spill] sm:$0xff]  ;;  %v21604_v6 = vld [vmem:[#allocation343_spill] sm:$0xff] }
 0x57d   : > { %v13264_v25 = vpop.eup %13263  ;;  %v21607_v50 = vld [vmem:[#allocation346_spill] sm:$0xff] }
 0x57e   : > { %21594 = vst [vmem:[#allocation108_spill] sm:$0xff] %v19070_v4  ;;  %v10354_v37 = vpack.c.bf16 %v19070_v4, %v19068_v2  ;;  %v8668_v1 = vadd.f32 1.0, %v13264_v25  ;;  %v21605_v25 = vld [vmem:[#allocation298_spill] sm:$0xff] }
 0x57f   : > { %v21622_v4 = vld [vmem:[#allocation350_spill] sm:$0xff] }
 0x580   : > { %10574 = vmatmul.mubr.bf16.gmra.mxu1 %v10354_v37  ;;  %13267 = vrcp.f32 %v8668_v1 }
 0x581   : > { %10583 = vmatprep.mubr.bf16.mxu1 %v20940_v45 }
 0x589   : > { %v19075_v60 = vpop.eup %13265 }
 0x58a   : > { %v8795_v57 = vsub.f32 1.0, %v19075_v60 }
 0x58c   : > { %v8955_v7 = vrot.slane %v8795_v57, 1  ;;  %v8956_v53 = vrot.slane %v8795_v57, 2  ;;  %v8957_v21 = vrot.slane %v8795_v57, 3  ;;  %v8958_v14 = vrot.slane %v8795_v57, 4 }
 0x58d   : > { %v13268_v54 = vpop.eup %13267  ;;  %v8959_v26 = vrot.slane %v8795_v57, 5  ;;  %v8960_v47 = vrot.slane %v8795_v57, 6  ;;  %v8961_v17 = vrot.slane %v8795_v57, 7  ;;  %v9451_v5 = vmul.f32 %v8795_v57, %v21597_v33 }
 0x58e   : > { %v8796_v49 = vsub.f32 1.0, %v13268_v54  ;;  %v9452_v46 = vmul.f32 %v8955_v7, %v21595_v38  ;;  %v9453_v34 = vmul.f32 %v8956_v53, %v21596_v63  ;;  %v9454_v12 = vmul.f32 %v8957_v21, %v21598_v23  ;;  %v21606_v7 = vld [vmem:[#allocation342_spill] sm:$0xff] }
 0x58f   : > { %v9455_v41 = vmul.f32 %v8958_v14, %v21601_v40  ;;  %v9456_v36 = vmul.f32 %v8959_v26, %v21602_v30  ;;  %v9457_v35 = vmul.f32 %v8960_v47, %v21603_v32  ;;  %v9458_v37 = vmul.f32 %v8961_v17, %v21605_v25 }
 0x590   : > { %v8962_v31 = vrot.slane %v8796_v49, 1  ;;  %v8963_v0 = vrot.slane %v8796_v49, 2  ;;  %v8964_v52 = vrot.slane %v8796_v49, 3  ;;  %v8965_v15 = vrot.slane %v8796_v49, 4 }
 0x591   : > { %v8966_v39 = vrot.slane %v8796_v49, 5  ;;  %v8967_v29 = vrot.slane %v8796_v49, 6  ;;  %v8968_v9 = vrot.slane %v8796_v49, 7  ;;  %v10059_v27 = vrot.slane %v9452_v46, 7 }
 0x592   : > { %v9460_v16 = vmul.f32 %v8962_v31, %v21599_v22  ;;  %v9461_v59 = vmul.f32 %v8963_v0, %v21600_v11  ;;  %v9462_v62 = vmul.f32 %v8964_v52, %v21604_v6  ;;  %v9463_v1 = vmul.f32 %v8965_v15, %v17970_v8  ;;  %v8454_v11 = vpop.f32.mrf.mxu1 }
 0x593   : > { %v10061_v57 = vrot.slane %v9453_v34, 6  ;;  %v9459_v53 = vmul.f32 %v8796_v49, %v21606_v7  ;;  %v9464_v21 = vmul.f32 %v8966_v39, %v21607_v50  ;;  %v9465_v38 = vmul.f32 %v8967_v29, %v18005_v44 }
 0x594   : > { %v10073_v63 = vrot.slane %v9460_v16, 7  ;;  %v9466_v14 = vmul.f32 %v8968_v9, %v17996_v58  ;;  %v10060_v26 = vsel %vm7764_vm0, %v10059_v27, %v9451_v5  ;;  %v10063_v47 = vrot.slane %v9454_v12, 5  ;;  %v8456_v32 = vpop.f32.mrf.mxu1 }
 0x595   : > { %v10075_v31 = vrot.slane %v9461_v59, 6  ;;  %v10062_v0 = vsel %vm7767_vm1, %v10061_v57, %v10060_v26  ;;  %v10065_v17 = vrot.slane %v9455_v41, 4  ;;  %v10077_v46 = vrot.slane %v9462_v62, 5 }
 0x596   : > { %v10074_v8 = vsel %vm7764_vm0, %v10073_v63, %v9459_v53  ;;  %v10064_v34 = vsel %vm7770_vm2, %v10063_v47, %v10062_v0  ;;  %v10067_v49 = vrot.slane %v9456_v36, 3  ;;  %v10079_v15 = vrot.slane %v9463_v1, 4  ;;  %v8458_v25 = vpop.f32.mrf.mxu1 }
 0x597   : > { %v10076_v52 = vsel %vm7767_vm1, %v10075_v31, %v10074_v8  ;;  %v10066_v44 = vsel %vm7773_vm3, %v10065_v17, %v10064_v34  ;;  %v10069_v39 = vrot.slane %v9457_v35, 2  ;;  %v10081_v29 = vrot.slane %v9464_v21, 3  ;;  %v13190_v21 = vld [vmem:[#allocation14 + $0x30] sm:$0xff]  }
 0x598   : > { %v10078_v58 = vsel %vm7770_vm2, %v10077_v46, %v10076_v52  ;;  %v10068_v33 = vsel %vm7776_vm4, %v10067_v49, %v10066_v44  ;;  %v10071_v5 = vrot.slane %v9458_v37, 1  ;;  %v10083_v23 = vrot.slane %v9465_v38, 2  ;;  %v13191_v46 = vld [vmem:[#allocation14 + $0x28] sm:$0xff]  }
 0x599   : > { %v10080_v9 = vsel %vm7773_vm3, %v10079_v15, %v10078_v58  ;;  %v10070_v12 = vsel %vm7779_vm5, %v10069_v39, %v10068_v33  ;;  %v10085_v16 = vrot.slane %v9466_v14, 1  ;;  %v8763_v59 = vmul.f32 %v19075_v60, %v8539_v55  ;;  %v8460_v60 = vpop.f32.mrf.mxu1 }
 0x59a   : > { %v10082_v22 = vsel %vm7776_vm4, %v10081_v29, %v10080_v9  ;;  %v8764_v40 = vmul.f32 %v13268_v54, %v8540_v19  ;;  %v10072_v41 = vsel %vm7782_vm6, %v10071_v5, %v10070_v12  ;;  %v8457_v62 = vadd.f32 %v8456_v32, %v21281_v13  ;;  %v13189_v19 = vld [vmem:[#allocation14 + $0x38] sm:$0xff]  }
 0x59b   : > { %v10084_v30 = vsel %vm7779_vm5, %v10083_v23, %v10082_v22  ;;  %v19116_v35 = vadd.f32 %v10072_v41, %v8763_v59  ;;  %v8461_v54 = vadd.f32 %v8460_v60, %v21281_v13  ;;  %12679 = vmatprep.subr.bf16.mxu1 %v13189_v19  ;;  %v19138_v58 = vadd.f32 %v8454_v11, %v17066_v51  ;;  %v10379_v5 = vld [vmem:[#allocation13] sm:$0x3]  ;;  %v21620_v11 = vld [vmem:[#allocation348_spill] sm:$0xff] }
 0x59c   : > { %v10086_v36 = vsel %vm7782_vm6, %v10085_v16, %v10084_v30  ;;  %v11784_v1 = vmul.f32 -1.442695, %v8457_v62  ;;  %12680 = vmatpush3.bf16.msra.mxu1 %v13189_v19  ;;  %v21610_v16 = vld [vmem:[#allocation284_spill] sm:$0xff] }
 0x59d   : > { %21608 = vst [vmem:[#allocation114_spill] sm:$0xff] %v19116_v35  ;;  %v19118_v6 = vadd.f32 %v10086_v36, %v8764_v40  ;;  %v11785_v55 = vmul.f32 -1.442695, %v8461_v54  ;;  %12681 = vmatprep.subr.bf16.mxu1 %v13190_v21  ;;  %v21611_v59 = vsub.s32 0, %v21610_v16  ;;  %v21612_v62 = vsub.s32 1, %v21610_v16  ;;  %v13192_v19 = vld [vmem:[#allocation14 + $0x20] sm:$0xff]  }
 0x59e   : > { %13269 = vpow2.f32 %v11784_v1  ;;  %v19161_v1 = vadd.f32 %v8458_v25, %v17066_v51 }
 0x59f   : > { %21609 = vst [vmem:[#allocation87_spill] sm:$0xff] %v19118_v6  ;;  %v10355_v37 = vpack.c.bf16 %v19118_v6, %v19116_v35  ;;  %13271 = vpow2.f32 %v11785_v55  ;;  %v19148_v40 = vrot.slane %v10379_v5, %v21611_v59  ;;  %v21621_v35 = vld [vmem:[#allocation351_spill] sm:$0xff] }
 0x5a0   : > { %12682 = vmatpush3.bf16.msra.mxu1 %v13190_v21 }
 0x5a1   : > { %10584 = vmatmul.mubr.bf16.gmra.mxu1 %v10355_v37  ;;  %12683 = vmatprep.subr.bf16.mxu1 %v13191_v46  ;;  %v19158_v37 = vrot.slane %v10379_v5, %v21612_v62 }
 0x5a2   : > { %10593 = vmatprep.mubr.bf16.mxu1 %v20940_v45 }
 0x5a4   : > { %12684 = vmatpush3.bf16.msra.mxu1 %v13191_v46  ;;  %v21614_v46 = vld [vmem:[#allocation333_spill] sm:$0xff] }
 0x5a5   : > { %12685 = vmatprep.subr.bf16.mxu1 %v13192_v19 }
 0x5a8   : > { %12686 = vmatpush3.bf16.msra.mxu1 %v13192_v19 }
 0x5ab   : > { %v13270_v27 = vpop.eup %13269 }
 0x5ac   : > { %v8669_v57 = vadd.f32 1.0, %v13270_v27  ;;  %v8464_v7 = vpop.f32.mrf.mxu1  ;;  %v13272_v53 = vpop.eup %13271 }
 0x5ad   : > { %v8670_v38 = vadd.f32 1.0, %v13272_v53  ;;  %v19164_v60 = vadd.f32 %v8464_v7, %v17066_v51 }
 0x5ae   : > { %13273 = vrcp.f32 %v8669_v57  ;;  %v8466_v50 = vpop.f32.mrf.mxu1 }
 0x5af   : > { %v8467_v63 = vadd.f32 %v8466_v50, %v21281_v13  ;;  %13275 = vrcp.f32 %v8670_v38 }
 0x5b0   : > { %v19126_v14 = vpop.f32.mrf.mxu1 }
 0x5b1   : > { %v11786_v26 = vmul.f32 -1.442695, %v8467_v63 }
 0x5b2   : > { %v8470_v47 = vpop.f32.mrf.mxu1 }
 0x5b3   : > { %13277 = vpow2.f32 %v11786_v26  ;;  %v8471_v31 = vadd.f32 %v8470_v47, %v21281_v13  ;;  %v21613_v47 = vld [vmem:[#allocation315_spill] sm:$0xff] }
 0x5b4   : > { %v19129_v0 = vpop.f32.mrf.mxu1 }
 0x5b5   : > { %v11787_v17 = vmul.f32 -1.442695, %v8471_v31 }
 0x5b6   : > { %v8476_v8 = vpop.f32.mrf.mxu1 }
 0x5b7   : > { %13279 = vpow2.f32 %v11787_v17  ;;  %v8477_v34 = vadd.f32 %v8476_v8, %v21281_v13 }
 0x5b8   : > { %v19132_v49 = vpop.f32.mrf.mxu1 }
 0x5b9   : > { %v11788_v52 = vmul.f32 -1.442695, %v8477_v34 }
 0x5ba   : > { %v8480_v44 = vpop.f32.mrf.mxu1 }
 0x5bb   : > { %v19134_v15 = vpop.eup %13273  ;;  %13281 = vpow2.f32 %v11788_v52  ;;  %v8481_v39 = vadd.f32 %v8480_v44, %v21281_v13 }
 0x5bc   : > { %v8797_v29 = vsub.f32 1.0, %v19134_v15  ;;  %v19143_v23 = vpop.eup %13275 }
 0x5bd   : > { %v11789_v9 = vmul.f32 -1.442695, %v8481_v39  ;;  %v19152_v30 = vsub.f32 1.0, %v19143_v23 }
 0x5be   : > { %v8969_v32 = vrot.slane %v8797_v29, 1  ;;  %v8970_v55 = vrot.slane %v8797_v29, 2  ;;  %v8971_v53 = vrot.slane %v8797_v29, 3  ;;  %v8972_v50 = vrot.slane %v8797_v29, 4 }
 0x5bf   : > { %13283 = vpow2.f32 %v11789_v9  ;;  %v8973_v21 = vrot.slane %v8797_v29, 5  ;;  %v8974_v63 = vrot.slane %v8797_v29, 6  ;;  %v8975_v26 = vrot.slane %v8797_v29, 7 }
 0x5c0   : > { %v13278_v41 = vpop.eup %13277  ;;  %v9467_v31 = vmul.f32 %v8797_v29, %v21613_v47  ;;  %v8976_v7 = vrot.slane %v19152_v30, 1  ;;  %v8977_v8 = vrot.slane %v19152_v30, 2  ;;  %v9468_v34 = vmul.f32 %v8969_v32, %v21614_v46  ;;  %v21616_v32 = vld [vmem:[#allocation334_spill] sm:$0xff] }
 0x5c1   : > { %v19141_v33 = vpop.f32.mrf.mxu1  ;;  %v8671_v27 = vadd.f32 1.0, %v13278_v41  ;;  %v8978_v44 = vrot.slane %v19152_v30, 3  ;;  %v8979_v39 = vrot.slane %v19152_v30, 4  ;;  %v8980_v5 = vrot.slane %v19152_v30, 5 }
 0x5c2   : > { %v8982_v41 = vrot.slane %v19152_v30, 7  ;;  %v9470_v62 = vmul.f32 %v8971_v53, %v21616_v32  ;;  %v9474_v6 = vmul.f32 %v8975_v26, %v21620_v11  ;;  %v9476_v2 = vmul.f32 %v8976_v7, %v21622_v4  ;;  %v13193_v53 = vld [vmem:[#allocation14 + $0x18] sm:$0xff]   ;;  %v21626_v11 = vld [vmem:[#allocation353_spill] sm:$0xff] }
 0x5c3   : > { %v8486_v12 = vpop.f32.mrf.mxu1  ;;  %v9480_v26 = vmul.f32 %v8980_v5, %v21626_v11  ;;  %12687 = vmatprep.subr.bf16.mxu1 %v13193_v53 }
 0x5c4   : > { %v8487_v22 = vadd.f32 %v8486_v12, %v21281_v13  ;;  %v13280_v25 = vpop.eup %13279  ;;  %v8981_v12 = vrot.slane %v19152_v30, 6  ;;  %12688 = vmatpush3.bf16.msra.mxu1 %v13193_v53 }
 0x5c5   : > { %v19154_v36 = vpop.f32.mrf.mxu1  ;;  %v8672_v52 = vadd.f32 1.0, %v13280_v25  ;;  %v21618_v25 = vld [vmem:[#allocation347_spill] sm:$0xff] }
 0x5c6   : > { %v11790_v54 = vmul.f32 -1.442695, %v8487_v22  ;;  %v21615_v22 = vld [vmem:[#allocation321_spill] sm:$0xff]  ;;  %v9472_v46 = vmul.f32 %v8973_v21, %v21618_v25  ;;  %v21624_v21 = vld [vmem:[#allocation352_spill] sm:$0xff] }
 0x5c7   : > { %v8490_v57 = vpop.f32.mrf.mxu1  ;;  %v9469_v16 = vmul.f32 %v8970_v55, %v21615_v22  ;;  %v9475_v55 = vmul.f32 %v19152_v30, %v21621_v35  ;;  %v9478_v25 = vmul.f32 %v8978_v44, %v21624_v21  ;;  %v9481_v35 = vmul.f32 %v8981_v12, %v21627_v10 }
 0x5c8   : > { %v8491_v38 = vadd.f32 %v8490_v57, %v21281_v13  ;;  %13285 = vpow2.f32 %v11790_v54  ;;  %v21617_v54 = vld [vmem:[#allocation338_spill] sm:$0xff]  ;;  %v13282_v57 = vpop.eup %13281 }
 0x5c9   : > { %v19168_v17 = vpop.f32.mrf.mxu1  ;;  %13287 = vrcp.f32 %v8671_v27  ;;  %v9471_v19 = vmul.f32 %v8972_v50, %v21617_v54  ;;  %v21619_v27 = vld [vmem:[#allocation349_spill] sm:$0xff]  ;;  %v21623_v50 = vld [vmem:[#allocation336_spill] sm:$0xff]  ;;  %v10087_v54 = vrot.slane %v9468_v34, 7  ;;  %v10089_v18 = vrot.slane %v9469_v16, 6 }
 0x5ca   : > { %v11791_v29 = vmul.f32 -1.442695, %v8491_v38  ;;  %v9473_v38 = vmul.f32 %v8974_v63, %v21619_v27  ;;  %13289 = vrcp.f32 %v8672_v52  ;;  %v9477_v32 = vmul.f32 %v8977_v8, %v21623_v50  ;;  %v21625_v63 = vld [vmem:[#allocation354_spill] sm:$0xff] }
 0x5cb   : > { %v8496_v9 = vpop.f32.mrf.mxu1  ;;  %v9479_v27 = vmul.f32 %v8979_v39, %v21625_v63  ;;  %v21628_v52 = vld [vmem:[#allocation286_spill] sm:$0xff]  ;;  %v10088_v7 = vsel %vm7764_vm0, %v10087_v54, %v9467_v31  ;;  %v10093_v44 = vrot.slane %v9471_v19, 4  ;;  %v10101_v39 = vrot.slane %v9476_v2, 7 }
 0x5cc   : > { %v8497_v59 = vadd.f32 %v8496_v9, %v21281_v13  ;;  %v8673_v9 = vadd.f32 1.0, %v13282_v57  ;;  %13291 = vpow2.f32 %v11791_v29  ;;  %v13284_v30 = vpop.eup %13283  ;;  %v9482_v4 = vmul.f32 %v8982_v41, %v21628_v52 }
 0x5cd   : > { %v19182_v47 = vpop.f32.mrf.mxu1  ;;  %v10091_v29 = vrot.slane %v9470_v62, 5  ;;  %v10090_v34 = vsel %vm7767_vm1, %v10089_v18, %v10088_v7  ;;  %v10095_v16 = vrot.slane %v9472_v46, 3  ;;  %v10097_v10 = vrot.slane %v9473_v38, 2 }
 0x5ce   : > { %v11792_v22 = vmul.f32 -1.442695, %v8497_v59  ;;  %13293 = vrcp.f32 %v8673_v9  ;;  %v10103_v12 = vrot.slane %v9477_v32, 6  ;;  %v8674_v57 = vadd.f32 1.0, %v13284_v30 }
 0x5cf   : > { %v8500_v20 = vpop.f32.mrf.mxu1  ;;  %v10092_v5 = vsel %vm7770_vm2, %v10091_v29, %v10090_v34  ;;  %v10102_v31 = vsel %vm7764_vm0, %v10101_v39, %v9475_v55  ;;  %v10105_v62 = vrot.slane %v9478_v25, 5  ;;  %v8542_v9 = vmax.f32 %v19161_v1, 0.0  ;;  %v13194_v39 = vld [vmem:[#allocation14 + $0x10] sm:$0xff]  }
 0x5d0   : > { %13295 = vpow2.f32 %v11792_v22  ;;  %v10094_v41 = vsel %vm7773_vm3, %v10093_v44, %v10092_v5  ;;  %v10104_v18 = vsel %vm7767_vm1, %v10103_v12, %v10102_v31  ;;  %v10107_v19 = vrot.slane %v9479_v27, 4  ;;  %12689 = vmatprep.subr.bf16.mxu1 %v13194_v39 }
 0x5d1   : > { %v19197_v8 = vpop.f32.mrf.mxu1  ;;  %v10096_v22 = vsel %vm7776_vm4, %v10095_v16, %v10094_v41  ;;  %v10099_v38 = vrot.slane %v9474_v6, 1  ;;  %v10106_v50 = vsel %vm7770_vm2, %v10105_v62, %v10104_v18  ;;  %v10109_v32 = vrot.slane %v9480_v26, 3  ;;  %12690 = vmatpush3.bf16.msra.mxu1 %v13194_v39 }
 0x5d2   : > { %v10098_v46 = vsel %vm7779_vm5, %v10097_v10, %v10096_v22  ;;  %v8543_v54 = vmax.f32 %v19164_v60, 0.0  ;;  %v10108_v55 = vsel %vm7773_vm3, %v10107_v19, %v10106_v50  ;;  %v10111_v21 = vrot.slane %v9481_v35, 2 }
 0x5d3   : > { %v8506_v59 = vpop.f32.mrf.mxu1  ;;  %v8501_v1 = vadd.f32 %v8500_v20, %v21281_v13  ;;  %13297 = vrcp.f32 %v8674_v57  ;;  %v10100_v27 = vsel %vm7782_vm6, %v10099_v38, %v10098_v46  ;;  %v10110_v11 = vsel %vm7776_vm4, %v10109_v32, %v10108_v55 }
 0x5d4   : > { %v10113_v30 = vrot.slane %v9482_v4, 1  ;;  %v21629_v52 = vmax.f32 %v19138_v58, 0.0  ;;  %v8766_v7 = vmul.f32 %v19143_v23, %v8542_v9  ;;  %v10112_v35 = vsel %vm7779_vm5, %v10111_v21, %v10110_v11  ;;  %v21634_v21 = vld [vmem:[#allocation359_spill] sm:$0xff] }
 0x5d5   : > { %v8508_v2 = vpop.f32.mrf.mxu1  ;;  %v13286_v53 = vpop.eup %13285  ;;  %v8469_v20 = vadd.f32 %v19126_v14, %v17066_v51  ;;  %v19224_v34 = vadd.f32 %v19129_v0, %v17066_v51  ;;  %v8507_v4 = vadd.f32 %v8506_v59, %v21281_v13  ;;  %v11793_v16 = vmul.f32 -1.442695, %v8501_v1 }
 0x5d6   : > { %v19211_v63 = vpop.eup %13287  ;;  %v8675_v6 = vadd.f32 1.0, %v13286_v53  ;;  %v8765_v26 = vmul.f32 %v19134_v15, %v21629_v52  ;;  %v10114_v44 = vsel %vm7782_vm6, %v10113_v30, %v10112_v35  ;;  %v19230_v15 = vadd.f32 %v19132_v49, %v17066_v51 }
 0x5d7   : > { %v8510_v25 = vpop.f32.mrf.mxu1  ;;  %v13290_v58 = vpop.eup %13289  ;;  %v19234_v5 = vadd.f32 %v10114_v44, %v8766_v7  ;;  %v19238_v0 = vadd.f32 %v19141_v33, %v17066_v51  ;;  %v19242_v12 = vadd.f32 %v19154_v36, %v17066_v51  ;;  %v19246_v59 = vadd.f32 %v19168_v17, %v17066_v51  ;;  %v21637_v17 = vld [vmem:[#allocation360_spill] sm:$0xff] }
 0x5d8   : > { %v19232_v23 = vadd.f32 %v10100_v27, %v8765_v26  ;;  %v8511_v49 = vadd.f32 %v8510_v25, %v21281_v13  ;;  %13299 = vrcp.f32 %v8675_v6  ;;  %v19251_v57 = vadd.f32 %v19182_v47, %v17066_v51  ;;  %v13195_v6 = vld [vmem:[#allocation14 + $0x8] sm:$0xff]  }
 0x5d9   : > { %v8514_v29 = vpop.f32.mrf.mxu1  ;;  %21631 = vst [vmem:[#allocation187_spill] sm:$0xff] %v19234_v5  ;;  %v13292_v10 = vpop.eup %13291  ;;  %v8544_v62 = vmax.f32 %v8469_v20, 0.0  ;;  %v19261_v9 = vadd.f32 %v19197_v8, %v17066_v51  ;;  %v11794_v22 = vmul.f32 -1.442695, %v8507_v4  ;;  %13301 = vpow2.f32 %v11793_v16  ;;  %12691 = vmatprep.subr.bf16.mxu1 %v13195_v6 }
 0x5da   : > { %21630 = vst [vmem:[#allocation89_spill] sm:$0xff] %v19232_v23  ;;  %v10356_v33 = vpack.c.bf16 %v19234_v5, %v19232_v23  ;;  %v8676_v19 = vadd.f32 1.0, %v13292_v10  ;;  %v19265_v53 = vadd.f32 %v8508_v2, %v17066_v51  ;;  %v11795_v55 = vmul.f32 -1.442695, %v8511_v49  ;;  %12692 = vmatpush3.bf16.msra.mxu1 %v13195_v6  ;;  %v21639_v23 = vld [vmem:[#allocation25_spill] sm:$0xff] }
 0x5db   : > { %v8516_v14 = vpop.f32.mrf.mxu1  ;;  %v19256_v36 = vpop.eup %13293  ;;  %v19272_v8 = vsub.f32 1.0, %v19211_v63  ;;  %v19276_v1 = vadd.f32 %v8514_v29, %v17066_v51  ;;  %13303 = vpow2.f32 %v11794_v22  ;;  %v19283_v52 = vsub.f32 1.0, %v13290_v58 }
 0x5dc   : > { %v8517_v41 = vadd.f32 %v8516_v14, %v21281_v13  ;;  %10594 = vmatmul.mubr.bf16.gmra.mxu1 %v10356_v33  ;;  %13305 = vrcp.f32 %v8676_v19  ;;  %v19287_v29 = vsub.f32 1.0, %v19256_v36  ;;  %v19292_v20 = vmul.f32 %v19211_v63, %v8543_v54 }
 0x5dd   : > { %v8518_v31 = vpop.f32.mrf.mxu1  ;;  %v13296_v18 = vpop.eup %13295  ;;  %10603 = vmatprep.mubr.bf16.mxu1 %v20940_v45  ;;  %13307 = vpow2.f32 %v11795_v55  ;;  %v8983_v39 = vrot.slane %v19272_v8, 1  ;;  %v8984_v16 = vrot.slane %v19272_v8, 2  ;;  %v8985_v63 = vrot.slane %v19272_v8, 3 }
 0x5de   : > { %v11796_v2 = vmul.f32 -1.442695, %v8517_v41  ;;  %v19280_v11 = vadd.f32 %v8518_v31, %v17066_v51  ;;  %v8677_v26 = vadd.f32 1.0, %v13296_v18  ;;  %v19294_v51 = vmul.f32 %v13290_v58, %v8544_v62 }
 0x5df   : > { %v8520_v46 = vpop.f32.mrf.mxu1  ;;  %v8986_v49 = vrot.slane %v19272_v8, 4  ;;  %v8987_v33 = vrot.slane %v19272_v8, 5  ;;  %v8988_v62 = vrot.slane %v19272_v8, 6  ;;  %v8989_v22 = vrot.slane %v19272_v8, 7 }
 0x5e0   : > { %v8521_v30 = vadd.f32 %v8520_v46, %v21281_v13  ;;  %v19296_v13 = vpop.eup %13297  ;;  %13309 = vpow2.f32 %v11796_v2  ;;  %v8990_v19 = vrot.slane %v19283_v52, 1  ;;  %v8991_v46 = vrot.slane %v19283_v52, 2  ;;  %v21632_v2 = vld [vmem:[#allocation356_spill] sm:$0xff] }
 0x5e1   : > { %v10505_v25 = vpop.f32.mrf.mxu1  ;;  %13311 = vrcp.f32 %v8677_v26  ;;  %v19310_v41 = vsub.f32 1.0, %v19296_v13  ;;  %v8992_v55 = vrot.slane %v19283_v52, 3  ;;  %v8993_v26 = vrot.slane %v19283_v52, 4 }
 0x5e2   : > { %v11797_v60 = vmul.f32 -1.442695, %v8521_v30  ;;  %v19305_v58 = vadd.f32 %v10505_v25, %v19148_v40  ;;  %v9484_v25 = vmul.f32 %v8983_v39, %v21632_v2  ;;  %v8994_v7 = vrot.slane %v19283_v52, 5  ;;  %v21635_v2 = vld [vmem:[#allocation357_spill] sm:$0xff] }
 0x5e3   : > { %v10507_v35 = vpop.f32.mrf.mxu1  ;;  %v8995_v27 = vrot.slane %v19283_v52, 6  ;;  %v9486_v32 = vmul.f32 %v8985_v63, %v21634_v21  ;;  %v8996_v39 = vrot.slane %v19283_v52, 7  ;;  %v9488_v5 = vmul.f32 %v8987_v33, %v21637_v17  ;;  %v21638_v63 = vld [vmem:[#allocation35_spill] sm:$0xff] }
 0x5e4   : > { %v10508_v54 = vadd.f32 %v10507_v35, %v19158_v37  ;;  %13313 = vpow2.f32 %v11797_v60  ;;  %v21633_v35 = vld [vmem:[#allocation358_spill] sm:$0xff]  ;;  %v9483_v60 = vmul.f32 %v19272_v8, %v21635_v2  ;;  %v10115_v21 = vrot.slane %v9484_v25, 7 }
 0x5e5   : > { %v10509_v4 = vpop.f32.mrf.mxu1  ;;  %v19321_v30 = vpop.eup %13299  ;;  %v9492_v56 = vmul.f32 %v8990_v19, %v21639_v23  ;;  %v10119_v24 = vrot.slane %v9486_v32, 5  ;;  %v9494_v17 = vmul.f32 %v8992_v55, %v21641_v61  ;;  %v21642_v23 = vld [vmem:[#allocation38_spill] sm:$0xff]  ;;  %v21644_v32 = vld [vmem:[#allocation27_spill] sm:$0xff] }
 0x5e6   : > { %v11814_v6 = vmul.f32 -1.442695, %v10508_v54  ;;  %v13302_v50 = vpop.eup %13301  ;;  %v21636_v54 = vld [vmem:[#allocation361_spill] sm:$0xff]  ;;  %v10116_v43 = vsel %vm7764_vm0, %v10115_v21, %v9483_v60  ;;  %v9490_v19 = vmul.f32 %v8989_v22, %v21642_v23  ;;  %v9491_v21 = vmul.f32 %v19283_v52, %v21644_v32 }
 0x5e7   : > { %v10511_v10 = vpop.f32.mrf.mxu1  ;;  %v9487_v47 = vmul.f32 %v8986_v49, %v21636_v54  ;;  %v8678_v2 = vadd.f32 1.0, %v13302_v50  ;;  %v21640_v49 = vld [vmem:[#allocation31_spill] sm:$0xff]  ;;  %v10129_v55 = vrot.slane %v9492_v56, 7 }
 0x5e8   : > { %v10512_v31 = vadd.f32 %v10511_v10, %v19158_v37  ;;  %v9485_v10 = vmul.f32 %v8984_v16, %v21633_v35  ;;  %v19334_v16 = vsub.f32 1.0, %v19321_v30  ;;  %v19337_v35 = vadd.f32 %v10509_v4, %v19148_v40  ;;  %v13304_v8 = vpop.eup %13303 }
 0x5e9   : > { %v19315_v18 = vpop.f32.mrf.mxu1  ;;  %13315 = vpow2.f32 %v11814_v6  ;;  %v9493_v54 = vmul.f32 %v8991_v46, %v21640_v49  ;;  %v19346_v3 = vpop.eup %13305  ;;  %v10121_v25 = vrot.slane %v9487_v47, 4  ;;  %v21645_v49 = vld [vmem:[#allocation33_spill] sm:$0xff]  ;;  %v10130_v52 = vsel %vm7764_vm0, %v10129_v55, %v9491_v21 }
 0x5ea   : > { %v11815_v38 = vmul.f32 -1.442695, %v10512_v31  ;;  %v9489_v31 = vmul.f32 %v8988_v62, %v21638_v63  ;;  %v10117_v48 = vrot.slane %v9485_v10, 6  ;;  %v13196_v62 = vld [vmem:[#allocation14] sm:$0xff]   ;;  %v13308_v6 = vpop.eup %13307  ;;  %v10123_v63 = vrot.slane %v9488_v5, 3 }
 0x5eb   : > { %v10517_v44 = vpop.f32.mrf.mxu1  ;;  %v21643_v10 = vld [vmem:[#allocation36_spill] sm:$0xff]  ;;  %12693 = vmatprep.subr.bf16.mxu1 %v13196_v62  ;;  %v10131_v23 = vrot.slane %v9493_v54, 6  ;;  %v8679_v5 = vadd.f32 1.0, %v13304_v8  ;;  %v10127_v54 = vrot.slane %v9490_v19, 1 }
 0x5ec   : > { %13317 = vpow2.f32 %v11815_v38  ;;  %v10118_v33 = vsel %vm7767_vm1, %v10117_v48, %v10116_v43  ;;  %v9495_v50 = vmul.f32 %v8993_v26, %v21643_v10  ;;  %v9496_v38 = vmul.f32 %v8994_v7, %v21645_v49  ;;  %v21646_v43 = vld [vmem:[#allocation43_spill] sm:$0xff]  ;;  %12694 = vmatpush3.bf16.msra.mxu1 %v13196_v62 }
 0x5ed   : > { %v19339_v14 = vpop.f32.mrf.mxu1  ;;  %v10120_v46 = vsel %vm7770_vm2, %v10119_v24, %v10118_v33  ;;  %v13310_v60 = vpop.eup %13309  ;;  %v9497_v48 = vmul.f32 %v8995_v27, %v21646_v43  ;;  %v10125_v22 = vrot.slane %v9489_v31, 2  ;;  %v21647_v33 = vld [vmem:[#allocation41_spill] sm:$0xff]  ;;  %v10133_v7 = vrot.slane %v9494_v17, 5 }
 0x5ee   : > { %v10122_v61 = vsel %vm7773_vm3, %v10121_v25, %v10120_v46  ;;  %v19359_v24 = vpop.eup %13311  ;;  %v9498_v10 = vmul.f32 %v8996_v39, %v21647_v33  ;;  %v10518_v25 = vadd.f32 %v10517_v44, %v19158_v37  ;;  %v10132_v27 = vsel %vm7767_vm1, %v10131_v23, %v10130_v52 }
 0x5ef   : > { %v10521_v4 = vpop.f32.mrf.mxu1  ;;  %v10124_v47 = vsel %vm7776_vm4, %v10123_v63, %v10122_v61  ;;  %v10135_v46 = vrot.slane %v9495_v50, 4  ;;  %v19368_v31 = vadd.f32 %v19315_v18, %v19148_v40  ;;  %v10134_v62 = vsel %vm7770_vm2, %v10133_v7, %v10132_v27  ;;  %v21662_v18 = vld [vmem:[#allocation71_spill] sm:$0xff] }
 0x5f0   : > { %v10126_v56 = vsel %vm7779_vm5, %v10125_v22, %v10124_v47  ;;  %v10137_v8 = vrot.slane %v9496_v38, 3  ;;  %v8680_v39 = vadd.f32 1.0, %v13308_v6  ;;  %v10139_v17 = vrot.slane %v9497_v48, 2 }
 0x5f1   : > { %v10525_v26 = vpop.f32.mrf.mxu1  ;;  %21648 = vst [vmem:[#allocation134_spill] sm:$0xff] %v19368_v31  ;;  %v13314_v63 = vpop.eup %13313  ;;  %v10136_v32 = vsel %vm7773_vm3, %v10135_v46, %v10134_v62  ;;  %v10522_v44 = vadd.f32 %v10521_v4, %v19158_v37  ;;  %v8681_v49 = vadd.f32 1.0, %v13310_v60  ;;  %v10128_v61 = vsel %vm7782_vm6, %v10127_v54, %v10126_v56 }
 0x5f2   : > { %v10138_v50 = vsel %vm7776_vm4, %v10137_v8, %v10136_v32  ;;  %v10141_v55 = vrot.slane %v9498_v10, 1  ;;  %13319 = vrcp.f32 %v8678_v2  ;;  %v11816_v19 = vmul.f32 -1.442695, %v10518_v25  ;;  %v21653_v32 = vld [vmem:[#allocation45_spill] sm:$0xff] }
 0x5f3   : > { %v10527_v21 = vpop.f32.mrf.mxu1  ;;  %v10140_v38 = vsel %vm7779_vm5, %v10139_v17, %v10138_v50  ;;  %13321 = vrcp.f32 %v8679_v5  ;;  %v8682_v6 = vadd.f32 1.0, %v13314_v63  ;;  %v19380_v60 = vadd.f32 %v10128_v61, %v19292_v20 }
 0x5f4   : > { %v10142_v43 = vsel %vm7782_vm6, %v10141_v55, %v10140_v38  ;;  %v10528_v48 = vadd.f32 %v10527_v21, %v19158_v37  ;;  %13323 = vrcp.f32 %v8680_v39  ;;  %v11817_v2 = vmul.f32 -1.442695, %v10522_v44  ;;  %v21654_v44 = vld [vmem:[#allocation58_spill] sm:$0xff]  ;;  %v21655_v38 = vld [vmem:[#allocation55_spill] sm:$0xff] }
 0x5f5   : > { %21649 = vst [vmem:[#allocation47_spill] sm:$0xff] %v19380_v60  ;;  %v19383_v47 = vadd.f32 %v10142_v43, %v19294_v51  ;;  %v19386_v22 = vsub.f32 1.0, %v19346_v3  ;;  %13325 = vrcp.f32 %v8681_v49  ;;  %v19391_v5 = vadd.f32 %v19339_v14, %v19148_v40  ;;  %v19395_v10 = vpop.f32.mrf.mxu1  ;;  %v21656_v43 = vld [vmem:[#allocation83_spill] sm:$0xff] }
 0x5f6   : > { %v13316_v4 = vpop.eup %13315  ;;  %13327 = vpow2.f32 %v11816_v19  ;;  %v8997_v51 = vrot.slane %v19287_v29, 1  ;;  %v8998_v52 = vrot.slane %v19287_v29, 2  ;;  %v19402_v25 = vadd.f32 %v10525_v26, %v19148_v40 }
 0x5f7   : > { %21650 = vst [vmem:[#allocation129_spill] sm:$0xff] %v19383_v47  ;;  %21651 = vst [vmem:[#allocation170_spill] sm:$0xff] %v19391_v5  ;;  %v10357_v20 = vpack.c.bf16 %v19383_v47, %v19380_v60  ;;  %13329 = vrcp.f32 %v8682_v6  ;;  %v19399_v7 = vadd.f32 1.0, %v13316_v4  ;;  %v11818_v56 = vmul.f32 -1.442695, %v10528_v48  ;;  %v10531_v49 = vpop.f32.mrf.mxu1  ;;  %v21657_v4 = vld [vmem:[#allocation57_spill] sm:$0xff] }
 0x5f8   : > { %21652 = vst [vmem:[#allocation208_spill] sm:$0xff] %v19402_v25  ;;  %13331 = vpow2.f32 %v11817_v2  ;;  %v8999_v14 = vrot.slane %v19287_v29, 3  ;;  %v9004_v27 = vrot.slane %v19310_v41, 1  ;;  %v9005_v46 = vrot.slane %v19310_v41, 2  ;;  %v21663_v60 = vld [vmem:[#allocation94_spill] sm:$0xff] }
 0x5f9   : > { %v13318_v33 = vpop.eup %13317  ;;  %10604 = vmatmul.mubr.bf16.gmra.mxu1 %v10357_v20  ;;  %v9000_v62 = vrot.slane %v19287_v29, 4  ;;  %v9001_v8 = vrot.slane %v19287_v29, 5  ;;  %v9002_v26 = vrot.slane %v19287_v29, 6  ;;  %v9003_v63 = vrot.slane %v19287_v29, 7 }
 0x5fa   : > { %v19407_v54 = vadd.f32 1.0, %v13318_v33  ;;  %10613 = vmatprep.mubr.bf16.mxu1 %v20940_v45  ;;  %v9006_v39 = vrot.slane %v19310_v41, 3  ;;  %v9500_v17 = vmul.f32 %v8997_v51, %v21653_v32  ;;  %v9501_v21 = vmul.f32 %v8998_v52, %v21654_v44  ;;  %v21658_v33 = vld [vmem:[#allocation51_spill] sm:$0xff]  ;;  %v21661_v44 = vld [vmem:[#allocation82_spill] sm:$0xff] }
 0x5fb   : > { %13333 = vpow2.f32 %v11818_v56  ;;  %v9007_v61 = vrot.slane %v19310_v41, 4  ;;  %v9008_v50 = vrot.slane %v19310_v41, 5  ;;  %v9009_v55 = vrot.slane %v19310_v41, 6  ;;  %v21659_v51 = vld [vmem:[#allocation67_spill] sm:$0xff]  ;;  %v21660_v56 = vld [vmem:[#allocation61_spill] sm:$0xff] }
 0x5fc   : > { %v9010_v19 = vrot.slane %v19310_v41, 7  ;;  %v9502_v6 = vmul.f32 %v8999_v14, %v21655_v38  ;;  %v9508_v48 = vmul.f32 %v9004_v27, %v21656_v43  ;;  %v9509_v2 = vmul.f32 %v9005_v46, %v21657_v4  ;;  %v19431_v14 = vpop.f32.mrf.mxu1  ;;  %v21664_v46 = vld [vmem:[#allocation88_spill] sm:$0xff] }
 0x5fd   : > { %v9499_v20 = vmul.f32 %v19287_v29, %v21658_v33  ;;  %v9503_v52 = vmul.f32 %v9000_v62, %v21659_v51  ;;  %v9504_v32 = vmul.f32 %v9001_v8, %v21660_v56  ;;  %v9505_v23 = vmul.f32 %v9002_v26, %v21661_v44  ;;  %v21665_v29 = vld [vmem:[#allocation111_spill] sm:$0xff]  ;;  %v21666_v62 = vld [vmem:[#allocation105_spill] sm:$0xff]  ;;  %v21667_v8 = vld [vmem:[#allocation120_spill] sm:$0xff] }
 0x5fe   : > { %v9506_v47 = vmul.f32 %v9003_v63, %v21662_v18  ;;  %v9510_v42 = vmul.f32 %v9006_v39, %v21663_v60  ;;  %v10143_v31 = vrot.slane %v9500_v17, 7  ;;  %v10145_v28 = vrot.slane %v9501_v21, 6  ;;  %v21668_v21 = vld [vmem:[#allocation113_spill] sm:$0xff] }
 0x5ff   : > { %v19433_v27 = vpop.eup %13319  ;;  %v9507_v38 = vmul.f32 %v19310_v41, %v21664_v46  ;;  %v9511_v43 = vmul.f32 %v9007_v61, %v21665_v29  ;;  %v9512_v4 = vmul.f32 %v9008_v50, %v21666_v62  ;;  %v9513_v33 = vmul.f32 %v9009_v55, %v21667_v8 }
 0x600   : > { %v19440_v26 = vpop.eup %13321  ;;  %v10144_v18 = vsel %vm7764_vm0, %v10143_v31, %v9499_v20  ;;  %v10147_v60 = vrot.slane %v9502_v6, 5  ;;  %v10157_v63 = vrot.slane %v9508_v48, 7  ;;  %v10159_v39 = vrot.slane %v9509_v2, 6  ;;  %v10537_v31 = vpop.f32.mrf.mxu1 }
 0x601   : > { %v19443_v17 = vpop.eup %13323  ;;  %v9514_v51 = vmul.f32 %v9010_v19, %v21668_v21  ;;  %v10146_v56 = vsel %vm7767_vm1, %v10145_v28, %v10144_v18  ;;  %v10149_v41 = vrot.slane %v9503_v52, 4  ;;  %v10151_v44 = vrot.slane %v9504_v32, 3 }
 0x602   : > { %v19447_v61 = vpop.eup %13325  ;;  %v10148_v50 = vsel %vm7770_vm2, %v10147_v60, %v10146_v56  ;;  %v10153_v55 = vrot.slane %v9505_v23, 2  ;;  %v10158_v46 = vsel %vm7764_vm0, %v10157_v63, %v9507_v38  ;;  %v10161_v29 = vrot.slane %v9510_v42, 5 }
 0x603   : > { %v13328_v6 = vpop.eup %13327  ;;  %v10150_v48 = vsel %vm7773_vm3, %v10149_v41, %v10148_v50  ;;  %v10155_v2 = vrot.slane %v9506_v47, 1  ;;  %v10160_v20 = vsel %vm7767_vm1, %v10159_v39, %v10158_v46  ;;  %v10163_v19 = vrot.slane %v9511_v43, 4 }
 0x604   : > { %v19453_v62 = vpop.eup %13329  ;;  %v10152_v28 = vsel %vm7776_vm4, %v10151_v44, %v10150_v48  ;;  %v10162_v52 = vsel %vm7770_vm2, %v10161_v29, %v10160_v20  ;;  %v10165_v32 = vrot.slane %v9512_v4, 3  ;;  %v10532_v23 = vadd.f32 %v10531_v49, %v19158_v37 }
 0x605   : > { %v13332_v8 = vpop.eup %13331  ;;  %v10154_v42 = vsel %vm7779_vm5, %v10153_v55, %v10152_v28  ;;  %v10164_v38 = vsel %vm7773_vm3, %v10163_v19, %v10162_v52  ;;  %v10167_v18 = vrot.slane %v9513_v33, 2  ;;  %v10538_v47 = vadd.f32 %v10537_v31, %v19158_v37  ;;  %v21683_v55 = vld [vmem:[#allocation92_spill] sm:$0xff] }
 0x606   : > { %v10794_v60 = vadd.f32 1.0, %v13328_v6  ;;  %v10156_v43 = vsel %vm7782_vm6, %v10155_v2, %v10154_v42  ;;  %v10166_v63 = vsel %vm7776_vm4, %v10165_v32, %v10164_v38  ;;  %v10169_v39 = vrot.slane %v9514_v51, 1  ;;  %v19493_v6 = vpop.f32.mrf.mxu1  ;;  %v21675_v38 = vld [vmem:[#allocation135_spill] sm:$0xff] }
 0x607   : > { %v21669_v21 = vmax.f32 %v19224_v34, 0.0  ;;  %v21670_v49 = vmax.f32 %v19230_v15, 0.0  ;;  %v10168_v41 = vsel %vm7779_vm5, %v10167_v18, %v10166_v63  ;;  %v11819_v44 = vmul.f32 -1.442695, %v10532_v23  ;;  %21673 = vst [vmem:[#allocation219_spill] sm:$0xff] %v19493_v6 }
 0x608   : > { %v13334_v33 = vpop.eup %13333  ;;  %v19471_v50 = vsub.f32 1.0, %v19359_v24  ;;  %13335 = vrcp.f32 %v19399_v7  ;;  %v10170_v51 = vsel %vm7782_vm6, %v10169_v39, %v10168_v41  ;;  %v9011_v46 = vrot.slane %v19334_v16, 1  ;;  %v10541_v39 = vpop.f32.mrf.mxu1 }
 0x609   : > { %v8769_v4 = vmul.f32 %v19256_v36, %v21669_v21  ;;  %v8770_v56 = vmul.f32 %v19296_v13, %v21670_v49  ;;  %13337 = vrcp.f32 %v19407_v54  ;;  %v11820_v36 = vmul.f32 -1.442695, %v10538_v47 }
 0x60a   : > { %13339 = vrcp.f32 %v10794_v60  ;;  %v19483_v13 = vadd.f32 %v19395_v10, %v19148_v40  ;;  %v9012_v7 = vrot.slane %v19334_v16, 2  ;;  %v19488_v29 = vsub.f32 1.0, %v19433_v27 }
 0x60b   : > { %v19477_v34 = vadd.f32 %v10156_v43, %v8769_v4  ;;  %v19479_v15 = vadd.f32 %v10170_v51, %v8770_v56  ;;  %13341 = vpow2.f32 %v11819_v44  ;;  %v19495_v48 = vadd.f32 1.0, %v13332_v8  ;;  %v21674_v8 = vld [vmem:[#allocation122_spill] sm:$0xff]  ;;  %v21677_v56 = vld [vmem:[#allocation149_spill] sm:$0xff]  ;;  %v21678_v44 = vld [vmem:[#allocation163_spill] sm:$0xff] }
 0x60c   : > { %v9013_v10 = vrot.slane %v19334_v16, 3  ;;  %v9018_v2 = vrot.slane %v19386_v22, 1  ;;  %v9019_v20 = vrot.slane %v19386_v22, 2  ;;  %13343 = vpow2.f32 %v11820_v36  ;;  %v21676_v4 = vld [vmem:[#allocation74_spill] sm:$0xff]  ;;  %v21679_v36 = vld [vmem:[#allocation128_spill] sm:$0xff] }
 0x60d   : > { %21671 = vst [vmem:[#allocation200_spill] sm:$0xff] %v19477_v34  ;;  %21672 = vst [vmem:[#allocation229_spill] sm:$0xff] %v19479_v15  ;;  %v10358_v54 = vpack.c.bf16 %v19479_v15, %v19477_v34  ;;  %v9014_v19 = vrot.slane %v19334_v16, 4  ;;  %v9015_v28 = vrot.slane %v19334_v16, 5  ;;  %v9016_v52 = vrot.slane %v19334_v16, 6  ;;  %v21684_v34 = vld [vmem:[#allocation159_spill] sm:$0xff] }
 0x60e   : > { %v9017_v32 = vrot.slane %v19334_v16, 7  ;;  %v9020_v23 = vrot.slane %v19386_v22, 3  ;;  %v9516_v42 = vmul.f32 %v9011_v46, %v21674_v8  ;;  %v9517_v18 = vmul.f32 %v9012_v7, %v21675_v38  ;;  %v21682_v38 = vld [vmem:[#allocation152_spill] sm:$0xff] }
 0x60f   : > { %10614 = vmatmul.mubr.bf16.gmra.mxu1 %v10358_v54  ;;  %v19508_v47 = vadd.f32 1.0, %v13334_v33  ;;  %v9021_v60 = vrot.slane %v19386_v22, 4  ;;  %v9022_v43 = vrot.slane %v19386_v22, 5  ;;  %v9023_v63 = vrot.slane %v19386_v22, 6  ;;  %v21680_v33 = vld [vmem:[#allocation145_spill] sm:$0xff]  ;;  %v21681_v54 = vld [vmem:[#allocation142_spill] sm:$0xff] }
 0x610   : > { %10623 = vmatprep.mubr.bf16.mxu1 %v20940_v45  ;;  %v9024_v21 = vrot.slane %v19386_v22, 7  ;;  %v9518_v49 = vmul.f32 %v9013_v10, %v21676_v4  ;;  %v9524_v41 = vmul.f32 %v9018_v2, %v21677_v56  ;;  %v9525_v51 = vmul.f32 %v9019_v20, %v21678_v44  ;;  %v21685_v10 = vld [vmem:[#allocation100_spill] sm:$0xff]  ;;  %v21686_v4 = vld [vmem:[#allocation46_spill] sm:$0xff]  ;;  %v21687_v56 = vld [vmem:[#allocation165_spill] sm:$0xff] }
 0x611   : > { %v9515_v46 = vmul.f32 %v19334_v16, %v21679_v36  ;;  %v9519_v7 = vmul.f32 %v9014_v19, %v21680_v33  ;;  %v9520_v8 = vmul.f32 %v9015_v28, %v21681_v54  ;;  %v9521_v31 = vmul.f32 %v9016_v52, %v21682_v38  ;;  %v21688_v16 = vld [vmem:[#allocation121_spill] sm:$0xff]  ;;  %v19529_v19 = vpop.f32.mrf.mxu1 }
 0x612   : > { %v9522_v15 = vmul.f32 %v9017_v32, %v21683_v55  ;;  %v9526_v25 = vmul.f32 %v9020_v23, %v21684_v34  ;;  %v10171_v5 = vrot.slane %v9516_v42, 7  ;;  %v10173_v6 = vrot.slane %v9517_v18, 6  ;;  %v21689_v34 = vld [vmem:[#allocation68_spill] sm:$0xff] }
 0x613   : > { %v9523_v2 = vmul.f32 %v19386_v22, %v21685_v10  ;;  %v9527_v20 = vmul.f32 %v9021_v60, %v21686_v4  ;;  %v9528_v44 = vmul.f32 %v9022_v43, %v21687_v56  ;;  %v9529_v36 = vmul.f32 %v9023_v63, %v21688_v16 }
 0x614   : > { %v10172_v28 = vsel %vm7764_vm0, %v10171_v5, %v9515_v46  ;;  %v10175_v52 = vrot.slane %v9518_v49, 5  ;;  %v10185_v33 = vrot.slane %v9524_v41, 7  ;;  %v10187_v55 = vrot.slane %v9525_v51, 6  ;;  %v10547_v46 = vpop.f32.mrf.mxu1 }
 0x615   : > { %v19532_v32 = vpop.eup %13335  ;;  %v9530_v23 = vmul.f32 %v9024_v21, %v21689_v34  ;;  %v10174_v42 = vsel %vm7767_vm1, %v10173_v6, %v10172_v28  ;;  %v10177_v22 = vrot.slane %v9519_v7, 4  ;;  %v10179_v18 = vrot.slane %v9520_v8, 3 }
 0x616   : > { %v19536_v60 = vpop.eup %13337  ;;  %v10176_v43 = vsel %vm7770_vm2, %v10175_v52, %v10174_v42  ;;  %v10181_v63 = vrot.slane %v9521_v31, 2  ;;  %v10186_v54 = vsel %vm7764_vm0, %v10185_v33, %v9523_v2  ;;  %v10189_v38 = vrot.slane %v9526_v25, 5  ;;  %v21705_v42 = vld [vmem:[#allocation155_spill] sm:$0xff] }
 0x617   : > { %v19540_v5 = vpop.eup %13339  ;;  %v10178_v49 = vsel %vm7773_vm3, %v10177_v22, %v10176_v43  ;;  %v10183_v41 = vrot.slane %v9522_v15, 1  ;;  %v10188_v51 = vsel %vm7767_vm1, %v10187_v55, %v10186_v54  ;;  %v10191_v21 = vrot.slane %v9527_v20, 4  ;;  %v19576_v54 = vpop.f32.mrf.mxu1 }
 0x618   : > { %v13342_v6 = vpop.eup %13341  ;;  %v10180_v7 = vsel %vm7776_vm4, %v10179_v18, %v10178_v49  ;;  %v10190_v8 = vsel %vm7770_vm2, %v10189_v38, %v10188_v51  ;;  %v10193_v10 = vrot.slane %v9528_v44, 3  ;;  %v10542_v31 = vadd.f32 %v10541_v39, %v19158_v37 }
 0x619   : > { %v10182_v2 = vsel %vm7779_vm5, %v10181_v63, %v10180_v7  ;;  %v10192_v25 = vsel %vm7773_vm3, %v10191_v21, %v10190_v8  ;;  %v10195_v4 = vrot.slane %v9529_v36, 2  ;;  %v10197_v56 = vrot.slane %v9530_v23, 1  ;;  %v13344_v16 = vpop.eup %13343 }
 0x61a   : > { %v10184_v15 = vsel %vm7782_vm6, %v10183_v41, %v10182_v2  ;;  %v10194_v20 = vsel %vm7776_vm4, %v10193_v10, %v10192_v25  ;;  %v11821_v28 = vmul.f32 -1.442695, %v10542_v31  ;;  %v10548_v52 = vadd.f32 %v10547_v46, %v19158_v37  ;;  %v21694_v10 = vld [vmem:[#allocation132_spill] sm:$0xff] }
 0x61b   : > { %v10797_v33 = vadd.f32 1.0, %v13342_v6  ;;  %v21690_v55 = vmax.f32 %v19238_v0, 0.0  ;;  %v21691_v39 = vmax.f32 %v19242_v12, 0.0  ;;  %v10196_v36 = vsel %vm7779_vm5, %v10195_v4, %v10194_v20  ;;  %v21695_v2 = vld [vmem:[#allocation176_spill] sm:$0xff] }
 0x61c   : > { %v19560_v23 = vsub.f32 1.0, %v19440_v26  ;;  %v10198_v22 = vsel %vm7782_vm6, %v10197_v56, %v10196_v36  ;;  %13345 = vpow2.f32 %v11821_v28  ;;  %v9025_v12 = vrot.slane %v19471_v50, 1  ;;  %v21696_v56 = vld [vmem:[#allocation172_spill] sm:$0xff]  ;;  %v21701_v36 = vld [vmem:[#allocation190_spill] sm:$0xff] }
 0x61d   : > { %v8771_v44 = vmul.f32 %v19321_v30, %v21690_v55  ;;  %v8772_v34 = vmul.f32 %v19346_v3, %v21691_v39  ;;  %13347 = vrcp.f32 %v19495_v48  ;;  %v11822_v30 = vmul.f32 -1.442695, %v10548_v52  ;;  %v21698_v28 = vld [vmem:[#allocation84_spill] sm:$0xff]  ;;  %v21700_v39 = vld [vmem:[#allocation185_spill] sm:$0xff] }
 0x61e   : > { %13349 = vrcp.f32 %v19508_v47  ;;  %v19570_v3 = vadd.f32 1.0, %v13344_v16  ;;  %v9026_v43 = vrot.slane %v19471_v50, 2  ;;  %v9027_v48 = vrot.slane %v19471_v50, 3  ;;  %v21699_v55 = vld [vmem:[#allocation140_spill] sm:$0xff] }
 0x61f   : > { %v19565_v18 = vadd.f32 %v10184_v15, %v8771_v44  ;;  %v19567_v0 = vadd.f32 %v10198_v22, %v8772_v34  ;;  %13351 = vrcp.f32 %v10797_v33  ;;  %v9028_v38 = vrot.slane %v19471_v50, 4  ;;  %v21697_v15 = vld [vmem:[#allocation139_spill] sm:$0xff]  ;;  %v10551_v33 = vpop.f32.mrf.mxu1 }
 0x620   : > { %v9029_v49 = vrot.slane %v19471_v50, 5  ;;  %v9030_v47 = vrot.slane %v19471_v50, 6  ;;  %v9032_v41 = vrot.slane %v19488_v29, 1  ;;  %v9033_v51 = vrot.slane %v19488_v29, 2 }
 0x621   : > { %21692 = vst [vmem:[#allocation79_spill] sm:$0xff] %v19565_v18  ;;  %21693 = vst [vmem:[#allocation156_spill] sm:$0xff] %v19567_v0  ;;  %v10359_v63 = vpack.c.bf16 %v19567_v0, %v19565_v18  ;;  %13353 = vpow2.f32 %v11822_v30  ;;  %v9031_v21 = vrot.slane %v19471_v50, 7  ;;  %v9034_v46 = vrot.slane %v19488_v29, 3  ;;  %v21702_v30 = vld [vmem:[#allocation196_spill] sm:$0xff] }
 0x622   : > { %v9035_v6 = vrot.slane %v19488_v29, 4  ;;  %v9036_v7 = vrot.slane %v19488_v29, 5  ;;  %v9037_v8 = vrot.slane %v19488_v29, 6  ;;  %v9532_v31 = vmul.f32 %v9025_v12, %v21694_v10  ;;  %v21704_v10 = vld [vmem:[#allocation195_spill] sm:$0xff]  ;;  %v21708_v0 = vld [vmem:[#allocation204_spill] sm:$0xff] }
 0x623   : > { %10624 = vmatmul.mubr.bf16.gmra.mxu1 %v10359_v63  ;;  %v9533_v25 = vmul.f32 %v9026_v43, %v21695_v2  ;;  %v9038_v4 = vrot.slane %v19488_v29, 7  ;;  %v9531_v16 = vmul.f32 %v19471_v50, %v21696_v56  ;;  %v9534_v20 = vmul.f32 %v9027_v48, %v21697_v15  ;;  %v21703_v63 = vld [vmem:[#allocation182_spill] sm:$0xff]  ;;  %v21706_v48 = vld [vmem:[#allocation201_spill] sm:$0xff]  ;;  %v21727_v18 = vld [vmem:[#allocation236_spill] sm:$0xff] }
 0x624   : > { %10633 = vmatprep.mubr.bf16.mxu1 %v20940_v45  ;;  %v9535_v52 = vmul.f32 %v9028_v38, %v21698_v28  ;;  %v9536_v44 = vmul.f32 %v9029_v49, %v21699_v55  ;;  %v9537_v34 = vmul.f32 %v9030_v47, %v21700_v39  ;;  %v9540_v22 = vmul.f32 %v9032_v41, %v21701_v36  ;;  %v21707_v38 = vld [vmem:[#allocation198_spill] sm:$0xff]  ;;  %v21709_v47 = vld [vmem:[#allocation168_spill] sm:$0xff] }
 0x625   : > { %v9541_v12 = vmul.f32 %v9033_v51, %v21702_v30  ;;  %v9538_v43 = vmul.f32 %v9031_v21, %v21703_v63  ;;  %v9539_v2 = vmul.f32 %v19488_v29, %v21704_v10  ;;  %v9542_v50 = vmul.f32 %v9034_v46, %v21705_v42  ;;  %v19610_v21 = vpop.f32.mrf.mxu1 }
 0x626   : > { %v10199_v56 = vrot.slane %v9532_v31, 7  ;;  %v9543_v15 = vmul.f32 %v9035_v6, %v21706_v48  ;;  %v9544_v28 = vmul.f32 %v9036_v7, %v21707_v38  ;;  %v9545_v49 = vmul.f32 %v9037_v8, %v21708_v0 }
 0x627   : > { %v10201_v55 = vrot.slane %v9533_v25, 6  ;;  %v9546_v39 = vmul.f32 %v9038_v4, %v21709_v47  ;;  %v10203_v51 = vrot.slane %v9534_v20, 5  ;;  %v10213_v36 = vrot.slane %v9540_v22, 7  ;;  %v10557_v10 = vpop.f32.mrf.mxu1 }
 0x628   : > { %v10200_v41 = vsel %vm7764_vm0, %v10199_v56, %v9531_v16  ;;  %v10205_v30 = vrot.slane %v9535_v52, 4  ;;  %v10207_v42 = vrot.slane %v9536_v44, 3  ;;  %v10215_v46 = vrot.slane %v9541_v12, 6 }
 0x629   : > { %v10202_v29 = vsel %vm7767_vm1, %v10201_v55, %v10200_v41  ;;  %v13346_v31 = vpop.eup %13345  ;;  %v10209_v7 = vrot.slane %v9537_v34, 2  ;;  %v10214_v0 = vsel %vm7764_vm0, %v10213_v36, %v9539_v2  ;;  %v10217_v8 = vrot.slane %v9542_v50, 5 }
 0x62a   : > { %v10204_v6 = vsel %vm7770_vm2, %v10203_v51, %v10202_v29  ;;  %v19615_v25 = vpop.eup %13347  ;;  %v10211_v16 = vrot.slane %v9538_v43, 1  ;;  %v10216_v20 = vsel %vm7767_vm1, %v10215_v46, %v10214_v0  ;;  %v10219_v22 = vrot.slane %v9543_v15, 4 }
 0x62b   : > { %v10206_v4 = vsel %vm7773_vm3, %v10205_v30, %v10204_v6  ;;  %v19619_v63 = vpop.eup %13349  ;;  %v10218_v44 = vsel %vm7770_vm2, %v10217_v8, %v10216_v20  ;;  %v10221_v12 = vrot.slane %v9544_v28, 3  ;;  %v10552_v34 = vadd.f32 %v10551_v33, %v19158_v37 }
 0x62c   : > { %v10208_v52 = vsel %vm7776_vm4, %v10207_v42, %v10206_v4  ;;  %v19624_v2 = vpop.eup %13351  ;;  %v10799_v50 = vadd.f32 1.0, %v13346_v31  ;;  %v10220_v43 = vsel %vm7773_vm3, %v10219_v22, %v10218_v44  ;;  %v10223_v48 = vrot.slane %v9545_v49, 2 }
 0x62d   : > { %v10210_v56 = vsel %vm7779_vm5, %v10209_v7, %v10208_v52  ;;  %v10222_v38 = vsel %vm7776_vm4, %v10221_v12, %v10220_v43  ;;  %v10225_v55 = vrot.slane %v9546_v39, 1  ;;  %v11823_v47 = vmul.f32 -1.442695, %v10552_v34  ;;  %v21715_v43 = vld [vmem:[#allocation205_spill] sm:$0xff] }
 0x62e   : > { %v10212_v15 = vsel %vm7782_vm6, %v10211_v16, %v10210_v56  ;;  %v13354_v41 = vpop.eup %13353  ;;  %v21710_v28 = vmax.f32 %v19246_v59, 0.0  ;;  %v21711_v51 = vmax.f32 %v19251_v57, 0.0  ;;  %v10224_v29 = vsel %vm7779_vm5, %v10223_v48, %v10222_v38 }
 0x62f   : > { %v10558_v30 = vadd.f32 %v10557_v10, %v19158_v37  ;;  %v8808_v49 = vsub.f32 1.0, %v19443_v17  ;;  %v19640_v42 = vsub.f32 1.0, %v19447_v61  ;;  %v10226_v39 = vsel %vm7782_vm6, %v10225_v55, %v10224_v29  ;;  %v21721_v29 = vld [vmem:[#allocation227_spill] sm:$0xff] }
 0x630   : > { %v8773_v33 = vmul.f32 %v19359_v24, %v21710_v28  ;;  %v8774_v36 = vmul.f32 %v19433_v27, %v21711_v51  ;;  %13355 = vpow2.f32 %v11823_v47  ;;  %v19648_v27 = vpop.f32.mrf.mxu1  ;;  %v19650_v46 = vadd.f32 1.0, %v13354_v41  ;;  %v21717_v47 = vld [vmem:[#allocation210_spill] sm:$0xff]  ;;  %v21720_v51 = vld [vmem:[#allocation217_spill] sm:$0xff] }
 0x631   : > { %13357 = vrcp.f32 %v19570_v3  ;;  %v11824_v57 = vmul.f32 -1.442695, %v10558_v30  ;;  %v9039_v31 = vrot.slane %v19560_v23, 1  ;;  %v9040_v6 = vrot.slane %v19560_v23, 2  ;;  %v21718_v41 = vld [vmem:[#allocation98_spill] sm:$0xff] }
 0x632   : > { %v19644_v59 = vadd.f32 %v10212_v15, %v8773_v33  ;;  %v19646_v24 = vadd.f32 %v10226_v39, %v8774_v36  ;;  %13359 = vrcp.f32 %v10799_v50  ;;  %v9041_v3 = vrot.slane %v19560_v23, 3  ;;  %v10561_v10 = vpop.f32.mrf.mxu1  ;;  %v21716_v15 = vld [vmem:[#allocation213_spill] sm:$0xff]  ;;  %v21719_v28 = vld [vmem:[#allocation130_spill] sm:$0xff]  ;;  %v21722_v39 = vld [vmem:[#allocation224_spill] sm:$0xff] }
 0x633   : > { %13361 = vpow2.f32 %v11824_v57  ;;  %v9042_v0 = vrot.slane %v19560_v23, 4  ;;  %v9043_v8 = vrot.slane %v19560_v23, 5  ;;  %v9044_v4 = vrot.slane %v19560_v23, 6 }
 0x634   : > { %21712 = vst [vmem:[#allocation188_spill] sm:$0xff] %v19644_v59  ;;  %21713 = vst [vmem:[#allocation209_spill] sm:$0xff] %v19646_v24  ;;  %v10360_v7 = vpack.c.bf16 %v19646_v24, %v19644_v59  ;;  %v9046_v16 = vrot.slane %v8808_v49, 1  ;;  %v9047_v20 = vrot.slane %v8808_v49, 2  ;;  %v21714_v22 = vmax.f32 %v19261_v9, 0.0  ;;  %v21724_v24 = vld [vmem:[#allocation223_spill] sm:$0xff] }
 0x635   : > { %v9045_v44 = vrot.slane %v19560_v23, 7  ;;  %v9048_v12 = vrot.slane %v8808_v49, 3  ;;  %v9049_v34 = vrot.slane %v8808_v49, 4  ;;  %v9050_v50 = vrot.slane %v8808_v49, 5 }
 0x636   : > { %10634 = vmatmul.mubr.bf16.gmra.mxu1 %v10360_v7  ;;  %v19663_v52 = vmul.f32 %v19440_v26, %v21714_v22  ;;  %v9051_v56 = vrot.slane %v8808_v49, 6  ;;  %v9548_v48 = vmul.f32 %v9039_v31, %v21715_v43  ;;  %v9549_v38 = vmul.f32 %v9040_v6, %v21716_v15  ;;  %v21723_v7 = vld [vmem:[#allocation191_spill] sm:$0xff]  ;;  %v21725_v43 = vld [vmem:[#allocation230_spill] sm:$0xff]  ;;  %v21726_v15 = vld [vmem:[#allocation193_spill] sm:$0xff] }
 0x637   : > { %10643 = vmatprep.mubr.bf16.mxu1 %v20940_v45  ;;  %v9052_v55 = vrot.slane %v8808_v49, 7  ;;  %v9547_v9 = vmul.f32 %v19560_v23, %v21717_v47  ;;  %v9550_v26 = vmul.f32 %v9041_v3, %v21718_v41  ;;  %v9551_v33 = vmul.f32 %v9042_v0, %v21719_v28  ;;  %v19681_v47 = vpop.f32.mrf.mxu1  ;;  %v21728_v3 = vld [vmem:[#allocation233_spill] sm:$0xff] }
 0x638   : > { %v9552_v36 = vmul.f32 %v9043_v8, %v21720_v51  ;;  %v9553_v30 = vmul.f32 %v9044_v4, %v21721_v29  ;;  %v9556_v57 = vmul.f32 %v9046_v16, %v21722_v39  ;;  %v9557_v22 = vmul.f32 %v9047_v20, %v21723_v7  ;;  %v21729_v41 = vld [vmem:[#allocation241_spill] sm:$0xff] }
 0x639   : > { %v9554_v31 = vmul.f32 %v9045_v44, %v21724_v24  ;;  %v9555_v6 = vmul.f32 %v8808_v49, %v21725_v43  ;;  %v9558_v59 = vmul.f32 %v9048_v12, %v21726_v15  ;;  %v9559_v23 = vmul.f32 %v9049_v34, %v21727_v18  ;;  %v21730_v51 = vld [vmem:[#allocation237_spill] sm:$0xff] }
 0x63a   : > { %v9560_v0 = vmul.f32 %v9050_v50, %v21728_v3  ;;  %v9561_v8 = vmul.f32 %v9051_v56, %v21729_v41  ;;  %v10227_v28 = vrot.slane %v9548_v48, 7  ;;  %v10229_v4 = vrot.slane %v9549_v38, 6  ;;  %v10567_v56 = vpop.f32.mrf.mxu1 }
 0x63b   : > { %v9562_v16 = vmul.f32 %v9052_v55, %v21730_v51  ;;  %v10231_v29 = vrot.slane %v9550_v26, 5  ;;  %v10233_v20 = vrot.slane %v9551_v33, 4  ;;  %v10241_v39 = vrot.slane %v9556_v57, 7 }
 0x63c   : > { %v10228_v24 = vsel %vm7764_vm0, %v10227_v28, %v9547_v9  ;;  %v10235_v49 = vrot.slane %v9552_v36, 3  ;;  %v10237_v44 = vrot.slane %v9553_v30, 2  ;;  %v10243_v12 = vrot.slane %v9557_v22, 6 }
 0x63d   : > { %v13356_v7 = vpop.eup %13355  ;;  %v10230_v18 = vsel %vm7767_vm1, %v10229_v4, %v10228_v24  ;;  %v10239_v34 = vrot.slane %v9554_v31, 1  ;;  %v10242_v50 = vsel %vm7764_vm0, %v10241_v39, %v9555_v6  ;;  %v10245_v43 = vrot.slane %v9558_v59, 5 }
 0x63e   : > { %v19689_v48 = vpop.eup %13357  ;;  %v10232_v38 = vsel %vm7770_vm2, %v10231_v29, %v10230_v18  ;;  %v10244_v55 = vsel %vm7767_vm1, %v10243_v12, %v10242_v50  ;;  %v10247_v26 = vrot.slane %v9559_v23, 4  ;;  %v10249_v33 = vrot.slane %v9560_v0, 3 }
 0x63f   : > { %v19693_v9 = vpop.eup %13359  ;;  %v10234_v36 = vsel %vm7773_vm3, %v10233_v20, %v10232_v38  ;;  %v10246_v30 = vsel %vm7770_vm2, %v10245_v43, %v10244_v55  ;;  %v10251_v57 = vrot.slane %v9561_v8, 2  ;;  %v10562_v22 = vadd.f32 %v10561_v10, %v19158_v37 }
 0x640   : > { %v13362_v31 = vpop.eup %13361  ;;  %v10801_v59 = vadd.f32 1.0, %v13356_v7  ;;  %v10236_v6 = vsel %vm7776_vm4, %v10235_v49, %v10234_v36  ;;  %v10248_v15 = vsel %vm7773_vm3, %v10247_v26, %v10246_v30  ;;  %v10568_v3 = vadd.f32 %v10567_v56, %v19158_v37  ;;  %v19720_v49 = vpop.f32.mrf.mxu1  ;;  %v21735_v30 = vld [vmem:[#allocation249_spill] sm:$0xff] }
 0x641   : > { %v10238_v23 = vsel %vm7779_vm5, %v10237_v44, %v10236_v6  ;;  %v10250_v0 = vsel %vm7776_vm4, %v10249_v33, %v10248_v15  ;;  %v10253_v41 = vrot.slane %v9562_v16, 1  ;;  %v11825_v28 = vmul.f32 -1.442695, %v10562_v22  ;;  %v21736_v6 = vld [vmem:[#allocation117_spill] sm:$0xff] }
 0x642   : > { %v10802_v4 = vadd.f32 1.0, %v13362_v31  ;;  %v21731_v51 = vmax.f32 %v19265_v53, 0.0  ;;  %v10240_v10 = vsel %vm7782_vm6, %v10239_v34, %v10238_v23  ;;  %v10252_v29 = vsel %vm7779_vm5, %v10251_v57, %v10250_v0  ;;  %v19742_v26 = vpop.f32.mrf.mxu1  ;;  %v21738_v0 = vld [vmem:[#allocation216_spill] sm:$0xff] }
 0x643   : > { %v8810_v20 = vsub.f32 1.0, %v19453_v62  ;;  %v19711_v39 = vadd.f32 %v19431_v14, %v19148_v40  ;;  %13363 = vrcp.f32 %v19650_v46  ;;  %v10254_v16 = vsel %vm7782_vm6, %v10253_v41, %v10252_v29  ;;  %v21742_v29 = vld [vmem:[#allocation267_spill] sm:$0xff] }
 0x644   : > { %v8776_v8 = vmul.f32 %v19443_v17, %v21731_v51  ;;  %v19716_v24 = vadd.f32 %v10240_v10, %v19663_v52  ;;  %13365 = vpow2.f32 %v11825_v28  ;;  %v11826_v17 = vmul.f32 -1.442695, %v10568_v3  ;;  %v21737_v3 = vld [vmem:[#allocation248_spill] sm:$0xff]  ;;  %v21740_v51 = vld [vmem:[#allocation277_spill] sm:$0xff] }
 0x645   : > { %v10923_v44 = vsub.f32 1.0, %v19615_v25  ;;  %13367 = vrcp.f32 %v10801_v59  ;;  %v9053_v12 = vrot.slane %v19640_v42, 1  ;;  %v9054_v14 = vrot.slane %v19640_v42, 2  ;;  %v21739_v28 = vld [vmem:[#allocation264_spill] sm:$0xff] }
 0x646   : > { %v19718_v53 = vadd.f32 %v10254_v16, %v8776_v8  ;;  %13369 = vrcp.f32 %v10802_v4  ;;  %v21732_v52 = vmax.f32 %v19276_v1, 0.0  ;;  %v9055_v18 = vrot.slane %v19640_v42, 3  ;;  %v21741_v8 = vld [vmem:[#allocation253_spill] sm:$0xff] }
 0x647   : > { %v21733_v34 = vmax.f32 %v19280_v11, 0.0  ;;  %v9056_v43 = vrot.slane %v19640_v42, 4  ;;  %v9060_v56 = vrot.slane %v8810_v20, 1  ;;  %v9061_v38 = vrot.slane %v8810_v20, 2 }
 0x648   : > { %v10361_v46 = vpack.c.bf16 %v19718_v53, %v19716_v24  ;;  %v19730_v7 = vmul.f32 %v19447_v61, %v21732_v52  ;;  %13371 = vpow2.f32 %v11826_v17  ;;  %v9057_v55 = vrot.slane %v19640_v42, 5  ;;  %v21743_v17 = vld [vmem:[#allocation261_spill] sm:$0xff]  ;;  %v19757_v52 = vpop.f32.mrf.mxu1 }
 0x649   : > { %v19736_v50 = vmul.f32 %v19453_v62, %v21733_v34  ;;  %v9058_v1 = vrot.slane %v19640_v42, 6  ;;  %v9059_v61 = vrot.slane %v19640_v42, 7  ;;  %v9062_v11 = vrot.slane %v8810_v20, 3  ;;  %v21734_v62 = vld [vmem:[#allocation240_spill] sm:$0xff] }
 0x64a   : > { %10644 = vmatmul.mubr.bf16.gmra.mxu1 %v10361_v46  ;;  %v9063_v33 = vrot.slane %v8810_v20, 4  ;;  %v9564_v36 = vmul.f32 %v9053_v12, %v21734_v62  ;;  %v9565_v57 = vmul.f32 %v9054_v14, %v21735_v30  ;;  %v9064_v22 = vrot.slane %v8810_v20, 5  ;;  %v21744_v14 = vld [vmem:[#allocation273_spill] sm:$0xff]  ;;  %v21746_v62 = vld [vmem:[#allocation283_spill] sm:$0xff] }
 0x64b   : > { %10653 = vmatprep.mubr.bf16.mxu1 %v20940_v45  ;;  %v9065_v31 = vrot.slane %v8810_v20, 6  ;;  %v9066_v59 = vrot.slane %v8810_v20, 7  ;;  %v9566_v15 = vmul.f32 %v9055_v18, %v21736_v6  ;;  %v9563_v23 = vmul.f32 %v19640_v42, %v21737_v3  ;;  %v21745_v18 = vld [vmem:[#allocation275_spill] sm:$0xff]  ;;  %v21747_v6 = vld [vmem:[#allocation280_spill] sm:$0xff] }
 0x64c   : > { %v9567_v41 = vmul.f32 %v9056_v43, %v21738_v0  ;;  %v9572_v4 = vmul.f32 %v9060_v56, %v21739_v28  ;;  %v9573_v45 = vmul.f32 %v9061_v38, %v21740_v51  ;;  %v9568_v10 = vmul.f32 %v9057_v55, %v21741_v8  ;;  %v21748_v3 = vld [vmem:[#allocation296_spill] sm:$0xff]  ;;  %v21749_v0 = vld [vmem:[#allocation289_spill] sm:$0xff] }
 0x64d   : > { %v9569_v16 = vmul.f32 %v9058_v1, %v21742_v29  ;;  %v9570_v12 = vmul.f32 %v9059_v61, %v21743_v17  ;;  %v9571_v46 = vmul.f32 %v8810_v20, %v21744_v14  ;;  %v9574_v34 = vmul.f32 %v9062_v11, %v21745_v18 }
 0x64e   : > { %v9575_v42 = vmul.f32 %v9063_v33, %v21746_v62  ;;  %v10255_v30 = vrot.slane %v9564_v36, 7  ;;  %v10257_v43 = vrot.slane %v9565_v57, 6  ;;  %v9576_v56 = vmul.f32 %v9064_v22, %v21747_v6  ;;  %v10577_v57 = vpop.f32.mrf.mxu1 }
 0x64f   : > { %v9577_v38 = vmul.f32 %v9065_v31, %v21748_v3  ;;  %v9578_v55 = vmul.f32 %v9066_v59, %v21749_v0  ;;  %v10259_v28 = vrot.slane %v9566_v15, 5  ;;  %v10261_v61 = vrot.slane %v9567_v41, 4  ;;  %v21750_v0 = vld [vmem:[#allocation40_spill] sm:$0xff] }
 0x650   : > { %v10256_v1 = vsel %vm7764_vm0, %v10255_v30, %v9563_v23  ;;  %v10269_v51 = vrot.slane %v9572_v4, 7  ;;  %v10271_v20 = vrot.slane %v9573_v45, 6  ;;  %v19765_v8 = vpop.eup %13363  ;;  %v10263_v29 = vrot.slane %v9568_v10, 3  ;;  %v19782_v30 = vpop.f32.mrf.mxu1 }
 0x651   : > { %v10258_v11 = vsel %vm7767_vm1, %v10257_v43, %v10256_v1  ;;  %v10265_v33 = vrot.slane %v9569_v16, 2  ;;  %v10267_v36 = vrot.slane %v9570_v12, 1  ;;  %v13366_v17 = vpop.eup %13365  ;;  %v10273_v59 = vrot.slane %v9574_v34, 5 }
 0x652   : > { %v10260_v22 = vsel %vm7770_vm2, %v10259_v28, %v10258_v11  ;;  %v10270_v31 = vsel %vm7764_vm0, %v10269_v51, %v9571_v46  ;;  %v10275_v15 = vrot.slane %v9575_v42, 4  ;;  %v19770_v14 = vpop.eup %13367  ;;  %v10803_v23 = vadd.f32 1.0, %v13366_v17  ;;  %v21752_v51 = vld [vmem:[#allocation69_spill] sm:$0xff] }
 0x653   : > { %v10262_v41 = vsel %vm7773_vm3, %v10261_v61, %v10260_v22  ;;  %v10272_v4 = vsel %vm7767_vm1, %v10271_v20, %v10270_v31  ;;  %v10277_v45 = vrot.slane %v9576_v56, 3  ;;  %v19774_v18 = vpop.eup %13369  ;;  %v10279_v12 = vrot.slane %v9577_v38, 2 }
 0x654   : > { %v10264_v10 = vsel %vm7776_vm4, %v10263_v29, %v10262_v41  ;;  %v10274_v16 = vsel %vm7770_vm2, %v10273_v59, %v10272_v4  ;;  %v10920_v62 = vsub.f32 1.0, %v19532_v32  ;;  %13373 = vrcp.f32 %v10803_v23  ;;  %v10581_v59 = vpop.f32.mrf.mxu1  ;;  %v21755_v4 = vld [vmem:[#allocation63_spill] sm:$0xff] }
 0x655   : > { %v10266_v46 = vsel %vm7779_vm5, %v10265_v33, %v10264_v10  ;;  %v10276_v34 = vsel %vm7773_vm3, %v10275_v15, %v10274_v16  ;;  %v10921_v42 = vsub.f32 1.0, %v19536_v60  ;;  %v13372_v43 = vpop.eup %13371  ;;  %v10281_v3 = vrot.slane %v9578_v55, 1 }
 0x656   : > { %v10268_v6 = vsel %vm7782_vm6, %v10267_v36, %v10266_v46  ;;  %v10278_v56 = vsel %vm7776_vm4, %v10277_v45, %v10276_v34  ;;  %v10952_v28 = vmul.f32 %v10920_v62, %v21750_v0  ;;  %v21751_v1 = vmax.f32 %v19337_v35, 0.0  ;;  %v21758_v45 = vld [vmem:[#allocation170_spill] sm:$0xff] }
 0x657   : > { %v10280_v38 = vsel %vm7779_vm5, %v10279_v12, %v10278_v56  ;;  %v10953_v20 = vmul.f32 %v10921_v42, %v21752_v51  ;;  %v10572_v11 = vadd.f32 %v19742_v26, %v19158_v37  ;;  %v10922_v29 = vsub.f32 1.0, %v19540_v5  ;;  %v21754_v26 = vld [vmem:[#allocation219_spill] sm:$0xff]  ;;  %v21765_v51 = vld [vmem:[#allocation104_spill] sm:$0xff] }
 0x658   : > { %v10889_v61 = vmul.f32 %v19536_v60, %v21751_v1  ;;  %v10282_v33 = vsel %vm7782_vm6, %v10281_v3, %v10280_v38  ;;  %v21753_v36 = vmax.f32 %v19305_v58, 0.0  ;;  %v10578_v17 = vadd.f32 %v10577_v57, %v19158_v37  ;;  %v21764_v1 = vld [vmem:[#allocation73_spill] sm:$0xff] }
 0x659   : > { %v19801_v22 = vadd.f32 %v10268_v6, %v19730_v7  ;;  %v19804_v35 = vadd.f32 %v10282_v33, %v19736_v50  ;;  %v11827_v31 = vmul.f32 -1.442695, %v10572_v11  ;;  %v10540_v15 = vadd.f32 %v21754_v26, %v19148_v40 }
 0x65a   : > { %v10888_v55 = vmul.f32 %v19532_v32, %v21753_v36  ;;  %v10985_v60 = vadd.f32 %v10953_v20, %v10889_v61  ;;  %v11828_v41 = vmul.f32 -1.442695, %v10578_v17  ;;  %v10955_v58 = vmul.f32 %v10923_v44, %v21755_v4  ;;  %v21756_v32 = vld [vmem:[#allocation134_spill] sm:$0xff] }
 0x65b   : > { %v21757_v57 = vmax.f32 %v21756_v32, 0.0  ;;  %v21759_v10 = vmax.f32 %v21758_v45, 0.0  ;;  %v10362_v16 = vpack.c.bf16 %v19804_v35, %v19801_v22  ;;  %13375 = vpow2.f32 %v11827_v31 }
 0x65c   : > { %v10984_v23 = vadd.f32 %v10952_v28, %v10888_v55  ;;  %v10546_v12 = vadd.f32 %v19529_v19, %v19148_v40  ;;  %13377 = vpow2.f32 %v11828_v41  ;;  %v10582_v46 = vadd.f32 %v10581_v59, %v19158_v37  ;;  %v21761_v19 = vld [vmem:[#allocation208_spill] sm:$0xff] }
 0x65d   : > { %v10890_v7 = vmul.f32 %v19540_v5, %v21757_v57  ;;  %v10891_v50 = vmul.f32 %v19615_v25, %v21759_v10  ;;  %v10550_v44 = vadd.f32 %v19576_v54, %v19148_v40  ;;  %10654 = vmatmul.mubr.bf16.gmra.mxu1 %v10362_v16  ;;  %v21760_v5 = vld [vmem:[#allocation110_spill] sm:$0xff]  ;;  %v10924_v42 = vsub.f32 1.0, %v19619_v63  ;;  %v21767_v57 = vld [vmem:[#allocation37_spill] sm:$0xff] }
 0x65e   : > { %v11016_v62 = vpack.c.bf16 %v10985_v60, %v10984_v23  ;;  %v10954_v34 = vmul.f32 %v10922_v29, %v21760_v5  ;;  %v10925_v25 = vsub.f32 1.0, %v19624_v2  ;;  %v11829_v3 = vmul.f32 -1.442695, %v10582_v46 }
 0x65f   : > { %v10987_v56 = vadd.f32 %v10955_v58, %v10891_v50  ;;  %v21762_v0 = vmax.f32 %v21761_v19, 0.0  ;;  %v21763_v38 = vmax.f32 %v19483_v13, 0.0  ;;  %v10956_v61 = vmul.f32 %v10924_v42, %v21764_v1  ;;  %v21766_v13 = vld [vmem:[#allocation90_spill] sm:$0xff]  ;;  %v21768_v50 = vld [vmem:[#allocation141_spill] sm:$0xff]  ;;  %v21770_v1 = vld [vmem:[#allocation48_spill] sm:$0xff] }
 0x660   : > { %12695 = vmatprep.mubr.bf16.mxu1 %v11016_v62  ;;  %v10957_v20 = vmul.f32 %v10925_v25, %v21765_v51  ;;  %v10926_v11 = vsub.f32 1.0, %v19689_v48  ;;  %v10927_v29 = vsub.f32 1.0, %v19693_v9  ;;  %v10671_v36 = vmax.f32 %v10540_v15, 0.0  ;;  %v21769_v62 = vld [vmem:[#allocation116_spill] sm:$0xff] }
 0x661   : > { %v19827_v6 = vpop.f32.mrf.mxu1  ;;  %v10892_v28 = vmul.f32 %v19619_v63, %v21762_v0  ;;  %v10893_v54 = vmul.f32 %v19624_v2, %v21763_v38  ;;  %v10804_v55 = vadd.f32 1.0, %v13372_v43  ;;  %13379 = vpow2.f32 %v11829_v3  ;;  %v13374_v26 = vpop.eup %13373 }
 0x662   : > { %v10928_v17 = vsub.f32 1.0, %v19765_v8  ;;  %v10986_v60 = vadd.f32 %v10954_v34, %v10890_v7  ;;  %v10959_v59 = vmul.f32 %v10927_v29, %v21766_v13  ;;  %v10670_v23 = vmax.f32 %v19711_v39, 0.0  ;;  %v21771_v29 = vld [vmem:[#allocation66_spill] sm:$0xff] }
 0x663   : > { %v10587_v33 = vpop.f32.mrf.mxu1  ;;  %v10988_v63 = vadd.f32 %v10956_v61, %v10892_v28  ;;  %v10989_v31 = vadd.f32 %v10957_v20, %v10893_v54  ;;  %v10672_v41 = vmax.f32 %v10546_v12, 0.0  ;;  %v10673_v4 = vmax.f32 %v10550_v44, 0.0 }
 0x664   : > { %v10929_v58 = vsub.f32 1.0, %v19770_v14  ;;  %v11017_v32 = vpack.c.bf16 %v10987_v56, %v10986_v60  ;;  %v10895_v43 = vmul.f32 %v19693_v9, %v10671_v36  ;;  %v10958_v45 = vmul.f32 %v10926_v11, %v21767_v57  ;;  %v21772_v57 = vld [vmem:[#allocation147_spill] sm:$0xff] }
 0x665   : > { %v19841_v2 = vpop.f32.mrf.mxu1  ;;  %v11018_v15 = vpack.c.bf16 %v10989_v31, %v10988_v63  ;;  %v10560_v7 = vadd.f32 %v19648_v27, %v19148_v40  ;;  %v10897_v10 = vmul.f32 %v19770_v14, %v10673_v4  ;;  %v10960_v16 = vmul.f32 %v10928_v17, %v21768_v50 }
 0x666   : > { %v10961_v46 = vmul.f32 %v10929_v58, %v21769_v62  ;;  %13381 = vrcp.f32 %v10804_v55  ;;  %12696 = vmatmul.mubr.bf16.vlgmr.msra.gmra.mxu1 %v11017_v32  ;;  %v10894_v12 = vmul.f32 %v19689_v48, %v10670_v23  ;;  %v10991_v44 = vadd.f32 %v10959_v59, %v10895_v43  ;;  %v21773_v62 = vld [vmem:[#allocation107_spill] sm:$0xff] }
 0x667   : > { %v10591_v39 = vpop.f32.mrf.mxu1  ;;  %v10931_v5 = vsub.f32 1.0, %v13374_v26  ;;  %12699 = vmatprep.mubr.bf16.mxu1 %v11018_v15  ;;  %v10896_v9 = vmul.f32 %v19765_v8, %v10672_v41  ;;  %v10588_v42 = vadd.f32 %v10587_v33, %v19158_v37  ;;  %v10556_v27 = vadd.f32 %v19610_v21, %v19148_v40 }
 0x668   : > { %v10993_v34 = vadd.f32 %v10961_v46, %v10897_v10  ;;  %v10990_v14 = vadd.f32 %v10958_v45, %v10894_v12  ;;  %v10930_v25 = vsub.f32 1.0, %v19774_v18  ;;  %v10592_v56 = vadd.f32 %v10591_v39, %v19158_v37  ;;  %v13376_v3 = vpop.eup %13375 }
 0x669   : > { %v10675_v19 = vmax.f32 %v10560_v7, 0.0  ;;  %v10992_v0 = vadd.f32 %v10960_v16, %v10896_v9  ;;  %v11830_v48 = vmul.f32 -1.442695, %v10588_v42  ;;  %v13378_v28 = vpop.eup %13377  ;;  %v10805_v38 = vadd.f32 1.0, %v13376_v3 }
 0x66a   : > { %v11019_v54 = vpack.c.bf16 %v10991_v44, %v10990_v14  ;;  %v10963_v8 = vmul.f32 %v10931_v5, %v21770_v1  ;;  %v11831_v61 = vmul.f32 -1.442695, %v10592_v56  ;;  %v10806_v51 = vadd.f32 1.0, %v13378_v28 }
 0x66b   : > { %v11020_v20 = vpack.c.bf16 %v10993_v34, %v10992_v0  ;;  %13383 = vpow2.f32 %v11830_v48  ;;  %v10674_v11 = vmax.f32 %v10556_v27, 0.0  ;;  %v10899_v21 = vmul.f32 %v13374_v26, %v10675_v19  ;;  %v21774_v27 = vld [vmem:[#allocation167_spill] sm:$0xff] }
 0x66c   : > { %13385 = vrcp.f32 %v10805_v38  ;;  %v10962_v33 = vmul.f32 %v10930_v25, %v21771_v29  ;;  %v10566_v59 = vadd.f32 %v19681_v47, %v19148_v40  ;;  %v10570_v26 = vadd.f32 %v19720_v49, %v19148_v40 }
 0x66d   : > { %13387 = vrcp.f32 %v10806_v51  ;;  %v10898_v55 = vmul.f32 %v19774_v18, %v10674_v11  ;;  %v10995_v17 = vadd.f32 %v10963_v8, %v10899_v21  ;;  %v10576_v10 = vadd.f32 %v19757_v52, %v19148_v40  ;;  %v21776_v11 = vld [vmem:[#allocation114_spill] sm:$0xff] }
 0x66e   : > { %v13380_v36 = vpop.eup %13379  ;;  %12700 = vmatmul.mubr.bf16.gmra.mxu1 %v11019_v54  ;;  %13389 = vpow2.f32 %v11831_v61  ;;  %v10676_v32 = vmax.f32 %v10566_v59, 0.0  ;;  %v10677_v15 = vmax.f32 %v10570_v26, 0.0  ;;  %v10580_v47 = vadd.f32 %v19782_v30, %v19148_v40  ;;  %v21775_v30 = vld [vmem:[#allocation108_spill] sm:$0xff] }
 0x66f   : > { %v10807_v60 = vadd.f32 1.0, %v13380_v36  ;;  %12703 = vmatprep.mubr.bf16.mxu1 %v11020_v20  ;;  %v10994_v63 = vadd.f32 %v10962_v33, %v10898_v55  ;;  %v10678_v9 = vmax.f32 %v10576_v10, 0.0  ;;  %v10586_v38 = vadd.f32 %v19827_v6, %v19148_v40  ;;  %v21777_v36 = vld [vmem:[#allocation87_spill] sm:$0xff] }
 0x670   : > { %v10679_v34 = vmax.f32 %v10580_v47, 0.0  ;;  %v10590_v54 = vadd.f32 %v19841_v2, %v19148_v40 }
 0x671   : > { %13391 = vrcp.f32 %v10807_v60  ;;  %v11021_v31 = vpack.c.bf16 %v10995_v17, %v10994_v63  ;;  %v10680_v61 = vmax.f32 %v10586_v38, 0.0 }
 0x672   : > { %v10681_v51 = vmax.f32 %v10590_v54, 0.0 }
 0x673   : > { %v13382_v13 = vpop.eup %13381 }
 0x674   : > { %v10932_v23 = vsub.f32 1.0, %v13382_v13  ;;  %v10900_v49 = vmul.f32 %v13382_v13, %v10676_v32 }
 0x676   : > { %12704 = vmatmul.mubr.bf16.gmra.mxu1 %v11021_v31  ;;  %v10964_v45 = vmul.f32 %v10932_v23, %v21772_v57 }
 0x678   : > { %v13384_v41 = vpop.eup %13383  ;;  %v10996_v44 = vadd.f32 %v10964_v45, %v10900_v49 }
 0x679   : > { %v13386_v4 = vpop.eup %13385  ;;  %v10808_v58 = vadd.f32 1.0, %v13384_v41 }
 0x67a   : > { %v13388_v18 = vpop.eup %13387  ;;  %v10933_v43 = vsub.f32 1.0, %v13386_v4  ;;  %v10901_v16 = vmul.f32 %v13386_v4, %v10677_v15 }
 0x67b   : > { %v13390_v7 = vpop.eup %13389  ;;  %v10934_v50 = vsub.f32 1.0, %v13388_v18  ;;  %13393 = vrcp.f32 %v10808_v58  ;;  %v10902_v25 = vmul.f32 %v13388_v18, %v10678_v9  ;;  %v21778_v9 = vld [vmem:[#allocation89_spill] sm:$0xff] }
 0x67c   : > { %v10965_v46 = vmul.f32 %v10933_v43, %v21773_v62  ;;  %v10809_v39 = vadd.f32 1.0, %v13390_v7 }
 0x67d   : > { %v10966_v14 = vmul.f32 %v10934_v50, %v21774_v27 }
 0x67e   : > { %v13392_v12 = vpop.eup %13391  ;;  %v10997_v5 = vadd.f32 %v10965_v46, %v10901_v16  ;;  %13395 = vrcp.f32 %v10809_v39 }
 0x67f   : > { %v10935_v42 = vsub.f32 1.0, %v13392_v12  ;;  %v10903_v56 = vmul.f32 %v13392_v12, %v10679_v34  ;;  %v10998_v19 = vadd.f32 %v10966_v14, %v10902_v25  ;;  %v21779_v14 = vld [vmem:[#allocation187_spill] sm:$0xff] }
 0x680   : > { %v11022_v52 = vpack.c.bf16 %v10997_v5, %v10996_v44 }
 0x681   : > { %v10967_v3 = vmul.f32 %v10935_v42, %v21775_v30 }
 0x682   : > { %12707 = vmatprep.mubr.bf16.mxu1 %v11022_v52 }
 0x683   : > { %v10999_v0 = vadd.f32 %v10967_v3, %v10903_v56 }
 0x685   : > { %v11023_v48 = vpack.c.bf16 %v10999_v0, %v10998_v19 }
 0x687   : > { %12708 = vmatmul.mubr.bf16.gmra.mxu1 %v11023_v48 }
 0x688   : > { %v13394_v28 = vpop.eup %13393 }
 0x689   : > { %v10936_v1 = vsub.f32 1.0, %v13394_v28  ;;  %v10904_v29 = vmul.f32 %v13394_v28, %v10680_v61 }
 0x68b   : > { %v13396_v8 = vpop.eup %13395  ;;  %v10968_v21 = vmul.f32 %v10936_v1, %v21776_v11 }
 0x68c   : > { %v10937_v20 = vsub.f32 1.0, %v13396_v8  ;;  %v10905_v33 = vmul.f32 %v13396_v8, %v10681_v51 }
 0x68d   : > { %v11000_v17 = vadd.f32 %v10968_v21, %v10904_v29 }
 0x68e   : > { %v10969_v55 = vmul.f32 %v10937_v20, %v21777_v36 }
 0x690   : > { %v11001_v60 = vadd.f32 %v10969_v55, %v10905_v33 }
 0x692   : > { %v11024_v63 = vpack.c.bf16 %v11001_v60, %v11000_v17 }
 0x694   : > { %12711 = vmatprep.mubr.bf16.mxu1 %v11024_v63 }
 0x69c   : > { %v10595_v31 = vpop.f32.mrf.mxu1 }
 0x69d   : > { %v10596_v7 = vadd.f32 %v10595_v31, %v19148_v40 }
 0x69e   : > { %v10597_v6 = vpop.f32.mrf.mxu1 }
 0x69f   : > { %v10598_v13 = vadd.f32 %v10597_v6, %v19158_v37  ;;  %v10682_v39 = vmax.f32 %v10596_v7, 0.0  ;;  %v21780_v6 = vld [vmem:[#allocation47_spill] sm:$0xff] }
 0x6a0   : > { %v10599_v2 = vpop.f32.mrf.mxu1 }
 0x6a1   : > { %v11832_v59 = vmul.f32 -1.442695, %v10598_v13  ;;  %v10600_v47 = vadd.f32 %v10599_v2, %v19148_v40 }
 0x6a2   : > { %v10601_v26 = vpop.f32.mrf.mxu1 }
 0x6a3   : > { %13397 = vpow2.f32 %v11832_v59  ;;  %v10602_v23 = vadd.f32 %v10601_v26, %v19158_v37  ;;  %v10683_v12 = vmax.f32 %v10600_v47, 0.0 }
 0x6a5   : > { %v11833_v41 = vmul.f32 -1.442695, %v10602_v23 }
 0x6a7   : > { %13399 = vpow2.f32 %v11833_v41  ;;  %v21781_v41 = vld [vmem:[#allocation129_spill] sm:$0xff] }
 0x6b0   : > { %v13398_v4 = vpop.eup %13397 }
 0x6b1   : > { %v10810_v58 = vadd.f32 1.0, %v13398_v4 }
 0x6b3   : > { %13401 = vrcp.f32 %v10810_v58 }
 0x6b4   : > { %v13400_v18 = vpop.eup %13399 }
 0x6b5   : > { %v10811_v32 = vadd.f32 1.0, %v13400_v18 }
 0x6b7   : > { %13403 = vrcp.f32 %v10811_v32 }
 0x6b9   : > { %v10605_v15 = vpop.f32.mrf.mxu1 }
 0x6ba   : > { %v10606_v21 = vadd.f32 %v10605_v15, %v19148_v40 }
 0x6bb   : > { %v10607_v43 = vpop.f32.mrf.mxu1 }
 0x6bc   : > { %v10608_v57 = vadd.f32 %v10607_v43, %v19158_v37  ;;  %v10684_v17 = vmax.f32 %v10606_v21, 0.0 }
 0x6bd   : > { %v10609_v10 = vpop.f32.mrf.mxu1 }
 0x6be   : > { %v11834_v50 = vmul.f32 -1.442695, %v10608_v57  ;;  %v10610_v29 = vadd.f32 %v10609_v10, %v19148_v40 }
 0x6bf   : > { %v10611_v16 = vpop.f32.mrf.mxu1 }
 0x6c0   : > { %v13402_v45 = vpop.eup %13401  ;;  %13405 = vpow2.f32 %v11834_v50  ;;  %v10612_v62 = vadd.f32 %v10611_v16, %v19158_v37  ;;  %v10685_v60 = vmax.f32 %v10610_v29, 0.0 }
 0x6c1   : > { %v10938_v49 = vsub.f32 1.0, %v13402_v45  ;;  %v10906_v42 = vmul.f32 %v13402_v45, %v10682_v39 }
 0x6c2   : > { %v11835_v44 = vmul.f32 -1.442695, %v10612_v62 }
 0x6c3   : > { %v10970_v34 = vmul.f32 %v10938_v49, %v21778_v9 }
 0x6c4   : > { %v13404_v46 = vpop.eup %13403  ;;  %13407 = vpow2.f32 %v11835_v44 }
 0x6c5   : > { %v10939_v5 = vsub.f32 1.0, %v13404_v46  ;;  %v10907_v27 = vmul.f32 %v13404_v46, %v10683_v12  ;;  %v11002_v25 = vadd.f32 %v10970_v34, %v10906_v42 }
 0x6c7   : > { %v10971_v52 = vmul.f32 %v10939_v5, %v21779_v14 }
 0x6c9   : > { %v11003_v56 = vadd.f32 %v10971_v52, %v10907_v27  ;;  %v21782_v27 = vld [vmem:[#allocation200_spill] sm:$0xff] }
 0x6cb   : > { %v11025_v30 = vpack.c.bf16 %v11003_v56, %v11002_v25 }
 0x6cd   : > { %12712 = vmatmul.mubr.bf16.gmra.mxu1 %v11025_v30  ;;  %v13406_v3 = vpop.eup %13405 }
 0x6ce   : > { %v10812_v19 = vadd.f32 1.0, %v13406_v3 }
 0x6cf   : > { %v10615_v0 = vpop.f32.mrf.mxu1 }
 0x6d0   : > { %13409 = vrcp.f32 %v10812_v19  ;;  %v10616_v16 = vadd.f32 %v10615_v0, %v19148_v40  ;;  %v21783_v19 = vld [vmem:[#allocation229_spill] sm:$0xff] }
 0x6d1   : > { %v10617_v48 = vpop.f32.mrf.mxu1  ;;  %v13408_v28 = vpop.eup %13407 }
 0x6d2   : > { %v10618_v38 = vadd.f32 %v10617_v48, %v19158_v37  ;;  %v10813_v54 = vadd.f32 1.0, %v13408_v28  ;;  %v10686_v5 = vmax.f32 %v10616_v16, 0.0 }
 0x6d3   : > { %v10619_v1 = vpop.f32.mrf.mxu1 }
 0x6d4   : > { %v11836_v8 = vmul.f32 -1.442695, %v10618_v38  ;;  %13411 = vrcp.f32 %v10813_v54  ;;  %v10620_v62 = vadd.f32 %v10619_v1, %v19148_v40 }
 0x6d5   : > { %v10621_v61 = vpop.f32.mrf.mxu1 }
 0x6d6   : > { %13413 = vpow2.f32 %v11836_v8  ;;  %v10622_v51 = vadd.f32 %v10621_v61, %v19158_v37  ;;  %v10687_v9 = vmax.f32 %v10620_v62, 0.0 }
 0x6d8   : > { %v11837_v20 = vmul.f32 -1.442695, %v10622_v51 }
 0x6da   : > { %13415 = vpow2.f32 %v11837_v20 }
 0x6dd   : > { %v13410_v11 = vpop.eup %13409 }
 0x6de   : > { %v10940_v33 = vsub.f32 1.0, %v13410_v11  ;;  %v10908_v26 = vmul.f32 %v13410_v11, %v10684_v17 }
 0x6e0   : > { %v10972_v13 = vmul.f32 %v10940_v33, %v21780_v6 }
 0x6e1   : > { %v13412_v36 = vpop.eup %13411 }
 0x6e2   : > { %v10941_v31 = vsub.f32 1.0, %v13412_v36  ;;  %v10909_v23 = vmul.f32 %v13412_v36, %v10685_v60  ;;  %v11004_v15 = vadd.f32 %v10972_v13, %v10908_v26  ;;  %v21784_v26 = vld [vmem:[#allocation79_spill] sm:$0xff] }
 0x6e3   : > { %v13414_v55 = vpop.eup %13413  ;;  %v10625_v63 = vpop.f32.mrf.mxu1 }
 0x6e4   : > { %v10814_v2 = vadd.f32 1.0, %v13414_v55  ;;  %v10973_v4 = vmul.f32 %v10941_v31, %v21781_v41  ;;  %v10626_v11 = vadd.f32 %v10625_v63, %v19148_v40 }
 0x6e5   : > { %v10627_v59 = vpop.f32.mrf.mxu1 }
 0x6e6   : > { %13417 = vrcp.f32 %v10814_v2  ;;  %v10628_v58 = vadd.f32 %v10627_v59, %v19158_v37  ;;  %v11005_v43 = vadd.f32 %v10973_v4, %v10909_v23  ;;  %v10688_v60 = vmax.f32 %v10626_v11, 0.0 }
 0x6e7   : > { %v13416_v18 = vpop.eup %13415  ;;  %v10629_v32 = vpop.f32.mrf.mxu1 }
 0x6e8   : > { %v10815_v57 = vadd.f32 1.0, %v13416_v18  ;;  %v11838_v45 = vmul.f32 -1.442695, %v10628_v58  ;;  %v11026_v10 = vpack.c.bf16 %v11005_v43, %v11004_v15  ;;  %v10630_v29 = vadd.f32 %v10629_v32, %v19148_v40  ;;  %v21785_v32 = vld [vmem:[#allocation156_spill] sm:$0xff] }
 0x6e9   : > { %v10631_v7 = vpop.f32.mrf.mxu1 }
 0x6ea   : > { %13419 = vrcp.f32 %v10815_v57  ;;  %v10632_v47 = vadd.f32 %v10631_v7, %v19158_v37  ;;  %12715 = vmatprep.mubr.bf16.mxu1 %v11026_v10  ;;  %v10689_v13 = vmax.f32 %v10630_v29, 0.0 }
 0x6eb   : > { %13421 = vpow2.f32 %v11838_v45 }
 0x6ec   : > { %v11839_v50 = vmul.f32 -1.442695, %v10632_v47 }
 0x6ee   : > { %13423 = vpow2.f32 %v11839_v50 }
 0x6f3   : > { %v13418_v49 = vpop.eup %13417 }
 0x6f4   : > { %v10942_v46 = vsub.f32 1.0, %v13418_v49  ;;  %v10910_v30 = vmul.f32 %v13418_v49, %v10686_v5 }
 0x6f6   : > { %v10635_v39 = vpop.f32.mrf.mxu1  ;;  %v10974_v14 = vmul.f32 %v10942_v46, %v21782_v27 }
 0x6f7   : > { %v13420_v12 = vpop.eup %13419  ;;  %v10636_v16 = vadd.f32 %v10635_v39, %v19148_v40 }
 0x6f8   : > { %v13422_v44 = vpop.eup %13421  ;;  %v10637_v34 = vpop.f32.mrf.mxu1  ;;  %v10943_v42 = vsub.f32 1.0, %v13420_v12  ;;  %v10911_v3 = vmul.f32 %v13420_v12, %v10687_v9  ;;  %v11006_v1 = vadd.f32 %v10974_v14, %v10910_v30 }
 0x6f9   : > { %v10816_v52 = vadd.f32 1.0, %v13422_v44  ;;  %v10638_v25 = vadd.f32 %v10637_v34, %v19158_v37  ;;  %v10690_v34 = vmax.f32 %v10636_v16, 0.0 }
 0x6fa   : > { %v10639_v56 = vpop.f32.mrf.mxu1  ;;  %v10975_v0 = vmul.f32 %v10943_v42, %v21783_v19 }
 0x6fb   : > { %v13424_v48 = vpop.eup %13423  ;;  %13425 = vrcp.f32 %v10816_v52  ;;  %v11840_v28 = vmul.f32 -1.442695, %v10638_v25  ;;  %v10640_v62 = vadd.f32 %v10639_v56, %v19148_v40  ;;  %v21786_v52 = vld [vmem:[#allocation188_spill] sm:$0xff] }
 0x6fc   : > { %v10817_v38 = vadd.f32 1.0, %v13424_v48  ;;  %v10641_v54 = vpop.f32.mrf.mxu1  ;;  %v11007_v8 = vadd.f32 %v10975_v0, %v10911_v3  ;;  %v21787_v0 = vld [vmem:[#allocation209_spill] sm:$0xff] }
 0x6fd   : > { %13427 = vpow2.f32 %v11840_v28  ;;  %v10642_v61 = vadd.f32 %v10641_v54, %v19158_v37  ;;  %v10691_v42 = vmax.f32 %v10640_v62, 0.0 }
 0x6fe   : > { %13429 = vrcp.f32 %v10817_v38  ;;  %v11027_v51 = vpack.c.bf16 %v11007_v8, %v11006_v1  ;;  %v19922_v1 = vld [vmem:[#allocation16] ss:$0 sm:$0xff] }
 0x6ff   : > { %v11841_v20 = vmul.f32 -1.442695, %v10642_v61 }
 0x700   : > { %12716 = vmatmul.mubr.bf16.gmra.mxu1 %v11027_v51 }
 0x701   : > { %13431 = vpow2.f32 %v11841_v20 }
 0x708   : > { %v13426_v21 = vpop.eup %13425 }
 0x709   : > { %v10944_v36 = vsub.f32 1.0, %v13426_v21  ;;  %v10912_v58 = vmul.f32 %v13426_v21, %v10688_v60 }
 0x70a   : > { %v19904_v33 = vpop.f32.mrf.mxu1  ;;  %v13428_v55 = vpop.eup %13427 }
 0x70b   : > { %v13430_v17 = vpop.eup %13429  ;;  %v10818_v31 = vadd.f32 1.0, %v13428_v55  ;;  %v10976_v23 = vmul.f32 %v10944_v36, %v21784_v26 }
 0x70c   : > { %v10647_v6 = vpop.f32.mrf.mxu1  ;;  %v10945_v59 = vsub.f32 1.0, %v13430_v17  ;;  %v10913_v18 = vmul.f32 %v13430_v17, %v10689_v13  ;;  %v10646_v13 = vadd.f32 %v19904_v33, %v19148_v40 }
 0x70d   : > { %v10648_v2 = vadd.f32 %v10647_v6, %v19158_v37  ;;  %13433 = vrcp.f32 %v10818_v31  ;;  %v11008_v7 = vadd.f32 %v10976_v23, %v10912_v58 }
 0x70e   : > { %v19908_v41 = vpop.f32.mrf.mxu1  ;;  %v13432_v63 = vpop.eup %13431  ;;  %v10977_v15 = vmul.f32 %v10945_v59, %v21785_v32 }
 0x70f   : > { %v11842_v4 = vmul.f32 -1.442695, %v10648_v2  ;;  %v10819_v43 = vadd.f32 1.0, %v13432_v63  ;;  %v10650_v59 = vadd.f32 %v19908_v41, %v19148_v40 }
 0x710   : > { %v10651_v57 = vpop.f32.mrf.mxu1  ;;  %v11009_v10 = vadd.f32 %v10977_v15, %v10913_v18  ;;  %v10692_v18 = vmax.f32 %v10646_v13, 0.0 }
 0x711   : > { %13435 = vpow2.f32 %v11842_v4  ;;  %v10652_v45 = vadd.f32 %v10651_v57, %v19158_v37 }
 0x712   : > { %13437 = vrcp.f32 %v10819_v43  ;;  %v11028_v50 = vpack.c.bf16 %v11009_v10, %v11008_v7  ;;  %v10693_v43 = vmax.f32 %v10650_v59, 0.0 }
 0x713   : > { %v11843_v47 = vmul.f32 -1.442695, %v10652_v45 }
 0x714   : > { %12719 = vmatprep.mubr.bf16.mxu1 %v11028_v50 }
 0x715   : > { %13439 = vpow2.f32 %v11843_v47 }
 0x71a   : > { %v13434_v49 = vpop.eup %13433 }
 0x71b   : > { %v10946_v46 = vsub.f32 1.0, %v13434_v49  ;;  %v10914_v56 = vmul.f32 %v13434_v49, %v10690_v34 }
 0x71d   : > { %v19914_v44 = vpop.f32.mrf.mxu1  ;;  %v10978_v25 = vmul.f32 %v10946_v46, %v21786_v52 }
 0x71e   : > { %v13436_v12 = vpop.eup %13435 }
 0x71f   : > { %v13438_v5 = vpop.eup %13437  ;;  %v10820_v9 = vadd.f32 1.0, %v13436_v12  ;;  %v10657_v27 = vpop.f32.mrf.mxu1  ;;  %v11010_v8 = vadd.f32 %v10978_v25, %v10914_v56 }
 0x720   : > { %v10947_v14 = vsub.f32 1.0, %v13438_v5  ;;  %v10658_v30 = vadd.f32 %v10657_v27, %v19158_v37  ;;  %v10915_v19 = vmul.f32 %v13438_v5, %v10691_v42 }
 0x721   : > { %13441 = vrcp.f32 %v10820_v9  ;;  %v19918_v39 = vpop.f32.mrf.mxu1 }
 0x722   : > { %v13440_v3 = vpop.eup %13439  ;;  %v10979_v48 = vmul.f32 %v10947_v14, %v21787_v0  ;;  %v11844_v38 = vmul.f32 -1.442695, %v10658_v30  ;;  %v10656_v30 = vadd.f32 %v19914_v44, %v19148_v40 }
 0x723   : > { %v10821_v28 = vadd.f32 1.0, %v13440_v3  ;;  %v10661_v54 = vpop.f32.mrf.mxu1  ;;  %v10660_v3 = vadd.f32 %v19918_v39, %v19148_v40 }
 0x724   : > { %v11011_v61 = vadd.f32 %v10979_v48, %v10915_v19  ;;  %v10662_v51 = vadd.f32 %v10661_v54, %v19158_v37  ;;  %v10694_v0 = vmax.f32 %v10656_v30, 0.0 }
 0x725   : > { %13443 = vrcp.f32 %v10821_v28  ;;  %v10695_v48 = vmax.f32 %v10660_v3, 0.0 }
 0x726   : > { %13445 = vpow2.f32 %v11844_v38  ;;  %v12697_v20 = vpop.f32.mrf.mxu1  ;;  %v11029_v11 = vpack.c.bf16 %v11011_v61, %v11010_v8  ;;  %v11845_v21 = vmul.f32 -1.442695, %v10662_v51 }
 0x727   : > { %v11146_v29 = vadd.f32 %v12697_v20, %v19922_v1 }
 0x728   : > { %v11137_v36 = vpop.f32.mrf.mxu1  ;;  %12720 = vmatmul.mubr.bf16.gmra.mxu1 %v11029_v11  ;;  %13447 = vpow2.f32 %v11845_v21 }
 0x729   : > { %11266 = vst [vmem:[%s19926_s16 + $0x10] sm:$0xff] %v11146_v29  ;;  %v11138_v55 = vadd.f32 %v19922_v1, %v11137_v36 }
 0x72a   : > { %v12698_v37 = vpop.f32.mrf.mxu1 }
 0x72b   : > { %11264 = vst [vmem:[%s19926_s16] sm:$0xff] %v11138_v55  ;;  %v11149_v17 = vadd.f32 %v12698_v37, %v19922_v1 }
 0x72c   : > { %v11140_v60 = vpop.f32.mrf.mxu1 }
 0x72d   : > { %11267 = vst [vmem:[%s19926_s16 + $0x18] sm:$0xff] %v11149_v17  ;;  %v11141_v31 = vadd.f32 %v19922_v1, %v11140_v60 }
 0x72e   : > { %v13442_v6 = vpop.eup %13441  ;;  %v12701_v2 = vpop.f32.mrf.mxu1 }
 0x72f   : > { %11265 = vst [vmem:[%s19926_s16 + $0x8] sm:$0xff] %v11141_v31  ;;  %v11162_v26 = vadd.f32 %v12701_v2, %v19922_v1  ;;  %v10948_v23 = vsub.f32 1.0, %v13442_v6  ;;  %v10916_v47 = vmul.f32 %v13442_v6, %v10692_v18 }
 0x730   : > { %v11153_v63 = vpop.f32.mrf.mxu1 }
 0x731   : > { %11270 = vst [vmem:[%s19926_s16 + $0x30] sm:$0xff] %v11162_v26  ;;  %v11154_v4 = vadd.f32 %v19922_v1, %v11153_v63  ;;  %v10980_v41 = vmul.f32 %v10948_v23, %v19716_v24 }
 0x732   : > { %v13444_v58 = vpop.eup %13443  ;;  %v12702_v32 = vpop.f32.mrf.mxu1 }
 0x733   : > { %v13446_v15 = vpop.eup %13445  ;;  %11268 = vst [vmem:[%s19926_s16 + $0x20] sm:$0xff] %v11154_v4  ;;  %v11165_v33 = vadd.f32 %v12702_v32, %v19922_v1  ;;  %v10949_v57 = vsub.f32 1.0, %v13444_v58  ;;  %v10917_v50 = vmul.f32 %v13444_v58, %v10693_v43  ;;  %v11012_v12 = vadd.f32 %v10980_v41, %v10916_v47 }
 0x734   : > { %v10822_v45 = vadd.f32 1.0, %v13446_v15  ;;  %v11156_v7 = vpop.f32.mrf.mxu1 }
 0x735   : > { %11271 = vst [vmem:[%s19926_s16 + $0x38] sm:$0xff] %v11165_v33  ;;  %v11157_v10 = vadd.f32 %v19922_v1, %v11156_v7  ;;  %v10981_v49 = vmul.f32 %v10949_v57, %v19718_v53  ;;  %v13448_v16 = vpop.eup %13447 }
 0x736   : > { %13449 = vrcp.f32 %v10822_v45  ;;  %v12705_v62 = vpop.f32.mrf.mxu1  ;;  %v10823_v46 = vadd.f32 1.0, %v13448_v16 }
 0x737   : > { %11269 = vst [vmem:[%s19926_s16 + $0x28] sm:$0xff] %v11157_v10  ;;  %v11178_v24 = vadd.f32 %v12705_v62, %v19922_v1  ;;  %v11013_v5 = vadd.f32 %v10981_v49, %v10917_v50 }
 0x738   : > { %v11169_v9 = vpop.f32.mrf.mxu1  ;;  %13451 = vrcp.f32 %v10823_v46 }
 0x739   : > { %11274 = vst [vmem:[%s19926_s16 + $0x50] sm:$0xff] %v11178_v24  ;;  %v11170_v34 = vadd.f32 %v19922_v1, %v11169_v9  ;;  %v11030_v42 = vpack.c.bf16 %v11013_v5, %v11012_v12 }
 0x73a   : > { %v12706_v27 = vpop.f32.mrf.mxu1 }
 0x73b   : > { %11272 = vst [vmem:[%s19926_s16 + $0x40] sm:$0xff] %v11170_v34  ;;  %v11181_v53 = vadd.f32 %v12706_v27, %v19922_v1  ;;  %12723 = vmatprep.mubr.bf16.mxu1 %v11030_v42 }
 0x73c   : > { %v11172_v14 = vpop.f32.mrf.mxu1 }
 0x73d   : > { %11275 = vst [vmem:[%s19926_s16 + $0x58] sm:$0xff] %v11181_v53  ;;  %v11173_v52 = vadd.f32 %v19922_v1, %v11172_v14 }
 0x73f   : > { %11273 = vst [vmem:[%s19926_s16 + $0x48] sm:$0xff] %v11173_v52 }
 0x743   : > { %v13450_v25 = vpop.eup %13449 }
 0x744   : > { %v10950_v56 = vsub.f32 1.0, %v13450_v25  ;;  %v10918_v61 = vmul.f32 %v13450_v25, %v10694_v0 }
 0x745   : > { %v13452_v19 = vpop.eup %13451 }
 0x746   : > { %v10951_v28 = vsub.f32 1.0, %v13452_v19  ;;  %v10982_v38 = vmul.f32 %v10950_v56, %v19801_v22  ;;  %v10919_v51 = vmul.f32 %v13452_v19, %v10695_v48 }
 0x747   : > { %v12709_v54 = vpop.f32.mrf.mxu1 }
 0x748   : > { %v11194_v8 = vadd.f32 %v12709_v54, %v19922_v1  ;;  %v10983_v44 = vmul.f32 %v10951_v28, %v19804_v35  ;;  %v11014_v39 = vadd.f32 %v10982_v38, %v10918_v61 }
 0x749   : > { %v11185_v20 = vpop.f32.mrf.mxu1 }
 0x74a   : > { %11278 = vst [vmem:[%s19926_s16 + $0x70] sm:$0xff] %v11194_v8  ;;  %v11186_v40 = vadd.f32 %v19922_v1, %v11185_v20  ;;  %v11015_v11 = vadd.f32 %v10983_v44, %v10919_v51 }
 0x74b   : > { %v12710_v21 = vpop.f32.mrf.mxu1 }
 0x74c   : > { %11276 = vst [vmem:[%s19926_s16 + $0x60] sm:$0xff] %v11186_v40  ;;  %v11197_v22 = vadd.f32 %v12710_v21, %v19922_v1  ;;  %v11031_v29 = vpack.c.bf16 %v11015_v11, %v11014_v39 }
 0x74d   : > { %v11188_v36 = vpop.f32.mrf.mxu1 }
 0x74e   : > { %11279 = vst [vmem:[%s19926_s16 + $0x78] sm:$0xff] %v11197_v22  ;;  %v11189_v55 = vadd.f32 %v19922_v1, %v11188_v36  ;;  %12724 = vmatmul.mubr.bf16.gmra.mxu1 %v11031_v29 }
 0x750   : > { %11277 = vst [vmem:[%s19926_s16 + $0x68] sm:$0xff] %v11189_v55 }
 0x78d   : > { %v12713_v35 = vpop.f32.mrf.mxu1 }
 0x78e   : > { %v11210_v37 = vadd.f32 %v12713_v35, %v19922_v1 }
 0x78f   : > { %v11201_v17 = vpop.f32.mrf.mxu1 }
 0x790   : > { %11282 = vst [vmem:[%s19926_s16 + $0x90] sm:$0xff] %v11210_v37  ;;  %v11202_v60 = vadd.f32 %v19922_v1, %v11201_v17 }
 0x791   : > { %v12714_v31 = vpop.f32.mrf.mxu1 }
 0x792   : > { %11280 = vst [vmem:[%s19926_s16 + $0x80] sm:$0xff] %v11202_v60  ;;  %v11213_v6 = vadd.f32 %v12714_v31, %v19922_v1 }
 0x793   : > { %v11204_v13 = vpop.f32.mrf.mxu1 }
 0x794   : > { %11283 = vst [vmem:[%s19926_s16 + $0x98] sm:$0xff] %v11213_v6  ;;  %v11205_v2 = vadd.f32 %v19922_v1, %v11204_v13 }
 0x796   : > { %11281 = vst [vmem:[%s19926_s16 + $0x88] sm:$0xff] %v11205_v2 }
 0x7c0   : > { %v12717_v59 = vpop.f32.mrf.mxu1 }
 0x7c1   : > { %v11226_v26 = vadd.f32 %v12717_v59, %v19922_v1 }
 0x7c2   : > { %v11217_v23 = vpop.f32.mrf.mxu1 }
 0x7c3   : > { %11286 = vst [vmem:[%s19926_s16 + $0xb0] sm:$0xff] %v11226_v26  ;;  %v11218_v63 = vadd.f32 %v19922_v1, %v11217_v23 }
 0x7c4   : > { %v12718_v4 = vpop.f32.mrf.mxu1 }
 0x7c5   : > { %11284 = vst [vmem:[%s19926_s16 + $0xa0] sm:$0xff] %v11218_v63  ;;  %v11229_v58 = vadd.f32 %v12718_v4, %v19922_v1 }
 0x7c6   : > { %v11220_v18 = vpop.f32.mrf.mxu1 }
 0x7c7   : > { %11287 = vst [vmem:[%s19926_s16 + $0xb8] sm:$0xff] %v11229_v58  ;;  %v11221_v32 = vadd.f32 %v19922_v1, %v11220_v18 }
 0x7c9   : > { %11285 = vst [vmem:[%s19926_s16 + $0xa8] sm:$0xff] %v11221_v32 }
 0x7e8   : > { %v12721_v15 = vpop.f32.mrf.mxu1 }
 0x7e9   : > { %v11242_v43 = vadd.f32 %v12721_v15, %v19922_v1 }
 0x7ea   : > { %v11233_v33 = vpop.f32.mrf.mxu1 }
 0x7eb   : > { %11290 = vst [vmem:[%s19926_s16 + $0xd0] sm:$0xff] %v11242_v43  ;;  %v11234_v57 = vadd.f32 %v19922_v1, %v11233_v33 }
 0x7ec   : > { %v12722_v41 = vpop.f32.mrf.mxu1 }
 0x7ed   : > { %11288 = vst [vmem:[%s19926_s16 + $0xc0] sm:$0xff] %v11234_v57  ;;  %v11245_v45 = vadd.f32 %v12722_v41, %v19922_v1 }
 0x7ee   : > { %v11236_v7 = vpop.f32.mrf.mxu1 }
 0x7ef   : > { %11291 = vst [vmem:[%s19926_s16 + $0xd8] sm:$0xff] %v11245_v45  ;;  %v11237_v10 = vadd.f32 %v19922_v1, %v11236_v7 }
 0x7f1   : > { %11289 = vst [vmem:[%s19926_s16 + $0xc8] sm:$0xff] %v11237_v10 }
 0x80e   : > { %v12725_v47 = vpop.f32.mrf.mxu1 }
 0x80f   : > { %v11258_v50 = vadd.f32 %v12725_v47, %v19922_v1 }
 0x810   : > { %v11249_v49 = vpop.f32.mrf.mxu1 }
 0x811   : > { %11294 = vst [vmem:[%s19926_s16 + $0xf0] sm:$0xff] %v11258_v50  ;;  %v11250_v16 = vadd.f32 %v19922_v1, %v11249_v49 }
 0x812   : > { %v12726_v62 = vpop.f32.mrf.mxu1 }
 0x813   : > { %11292 = vst [vmem:[%s19926_s16 + $0xe0] sm:$0xff] %v11250_v16  ;;  %v11261_v46 = vadd.f32 %v12726_v62, %v19922_v1 }
 0x814   : > { %v11252_v24 = vpop.f32.mrf.mxu1 }
 0x815   : > { %11295 = vst [vmem:[%s19926_s16 + $0xf8] sm:$0xff] %v11261_v46  ;;  %v11253_v12 = vadd.f32 %v19922_v1, %v11252_v24 }
 0x817   : > { %11293 = vst [vmem:[%s19926_s16 + $0xe8] sm:$0xff] %v11253_v12 }
 0x818   : > { %13710 = shalt.err (!%p13707_p13)
}
 0x819   : > { %s13711_s3 = scalar_lea.hbm %s20005_s20, 4096  ;;  %s13715_s1 = scalar_lea.hbm %s20062_s9, 8192 }
 0x81a   : > { %p13712_p1 = scmp.ne.s32.totalorder %s20005_s20, %s13711_s3  ;;  %p13716_p5 = scmp.lt.s32.totalorder %s20005_s20, %s20062_s9 }
 0x81b   : > { %p13717_p8 = scmp.lt.s32.totalorder %s13715_s1, %s13711_s3 }
 0x81c   : > { %p13713_p0 = pnand %p13712_p1, %p21788_p11 }
 0x81d   : > { %p13718_p9 = por %p13717_p8, %p13716_p5 }
 0x81e   : > { %p13714_p2 = pneg %p13713_p0 }
 0x820   : > { %p13719_p10 = pnand %p13718_p9, %p13714_p2 }
 0x822   : > { %13722 = shalt.err (!%p13719_p10)
}
 0x823   : > { %s13794_s23 = smov 128   ;;  %s13795_s13 = smov 8  }
 0x824   : > { %12777 = dma.vmem_to_hbm [thread:$0]  (%p21788_p11), %s20007_s25, 4096, %s20005_s20, %s11297_s15, %s13794_s23, %s13794_s23, %s13795_s13  }
 0x825 PF: > { %s11325_s26 = sand.u32 1, %s13765_s30   ;;  %p21789_p3 = scmp.ne.s32.totalorder %s20452_s18, 0 }
 0x826   : > { %p21790_p7 = scmp.ge.s32.totalorder %s13777_s12, 2  ;;  %s11326_s21 = scalar_lea.sflag [#allocation4], %s11325_s26 }
 0x828   : > { %p12809_p4 = pnand %p21790_p7, %p21789_p3 }
 0x82a   : > { %p12810_p6 = pneg %p12809_p4 }
 0x82c   : > { %13760 = dma.done.wait (%p12810_p6), %s11326_s21, 4096  }
 0x82d   : > { %13762 = vsyncadd (%p12810_p6), %s11326_s21, 4294963200  ;;  %p26_p12 = scmp.ge.s32.totalorder %s13965_s19, 4   ;;  %s21791_s30 = smov %s13769_s10 }
 0x82e   : > { %s21792_s10 = smov %s13773_s11  ;;  %s21793_s11 = smov %s13976_s17 }
 0x82f   : > { %s21794_s12 = smov %s13965_s19  ;;  %28 = sbr.rel (!%p26_p12) target bundleno = 13 (0xd), region = 133 }
 0x834   :  { %11331 = vsyncpa [#allocation3], 1 }
 0x835   :  { %11333 = vsyncpa [#allocation3 + $0x1], 1 }
 0x836   :  { %11334 = vsyncpa [#allocation6], 1 }
 0x837   :  { %11335 = vsyncpa [#allocation9], 1 }
 0x838   :  { %11336 = vsyncpa [#allocation12], 1 }
 0x839   :  { %11337 = vsyncpa [#allocation15], 1 }
 0x83a   :  { %11338 = vsyncpa [#allocation4], 1 }
 0x83b   :  { %11340 = vsyncpa [#allocation4 + $0x1], 1 }

</bundles_post_ra>
